<compile_context>
chip_gen: v7x
topology: tpu7x:2x2x1
jax: 0.10.0
libtpu: 0.0.40
codegen_flags: <defaults>
</compile_context>

<pallas_src>
import functools

import jax
import jax.numpy as jnp
from jax.experimental import pallas as pl
from jax.experimental.pallas import tpu as pltpu

BN_EPS = 1e-5
LATENT_SIZE = 32


def _round_up(x, m):
    return (x + m - 1) // m * m


def _pad2d(a, rows, cols, dtype):
    """Cast + zero-pad a 2-D array to (rows, cols); no copy if already right."""
    a = a.astype(dtype)
    if a.shape == (rows, cols):
        return a
    return jnp.zeros((rows, cols), dtype).at[:a.shape[0], :a.shape[1]].set(a)


# ---------------------------------------------------------------------------
# Pallas kernels
# ---------------------------------------------------------------------------

def _matmul_stats_kernel(x_ref, w_ref, y_ref, stats_ref):
    """y = x @ w (bf16 operands, f32 accumulate).  Also accumulates per-column
    sum (row 0) and sum-of-squares (row 1) of y into the grid-resident stats
    output across the M grid axis (rows beyond the valid M are zero patches,
    so no masking is needed)."""
    y = jnp.dot(x_ref[...], w_ref[...], preferred_element_type=jnp.float32)
    y_ref[...] = y

    @pl.when(pl.program_id(0) == 0)
    def _():
        stats_ref[...] = jnp.zeros_like(stats_ref)

    stats_ref[...] += jnp.concatenate(
        [jnp.sum(y, axis=0, keepdims=True),
         jnp.sum(y * y, axis=0, keepdims=True)], axis=0)


def _scale_shift_act_kernel(y_ref, sc_ref, sh_ref, o_ref, *, act):
    """Fused BatchNorm-apply (precomputed per-column scale/shift) + activation.
    act: 0 = identity, 1 = ReLU, 2 = ReLU followed by Sigmoid."""
    y = y_ref[...] * sc_ref[...] + sh_ref[...]
    if act >= 1:
        y = jnp.maximum(y, 0.0)
    if act == 2:
        y = jax.nn.sigmoid(y)
    o_ref[...] = y.astype(o_ref.dtype)


def _head_kernel(flat_ref, wmu_ref, bmu_ref, wlv_ref, blv_ref, eps_ref,
                 wz_ref, bz_ref, mu_ref, lv_ref, d_ref):
    """fc_mu + fc_var + reparameterization sample + fc_z fused in one kernel."""
    flat = flat_ref[...]
    mu = jnp.dot(flat, wmu_ref[...], preferred_element_type=jnp.float32) + bmu_ref[...]
    lv = jnp.dot(flat, wlv_ref[...], preferred_element_type=jnp.float32) + blv_ref[...]
    z = mu + eps_ref[...] * jnp.exp(0.5 * lv)
    # Lanes >= latent of z are harmless: the corresponding rows of wz are zero.
    d = jnp.dot(z, wz_ref[...], preferred_element_type=jnp.float32) + bz_ref[...]
    mu_ref[...] = mu
    lv_ref[...] = lv
    d_ref[...] = d


# ---------------------------------------------------------------------------
# Pallas wrappers
# ---------------------------------------------------------------------------

def _matmul_with_stats(x, w):
    """x:(M,K) @ w:(K,N) -> (y_pad (Mp,Np) f32, stats (2,Np) f32, M, N, tm)."""
    M, K = x.shape
    N = w.shape[1]
    tm = min(1024, _round_up(M, 16))
    Mp = _round_up(M, tm)
    Kp = _round_up(K, 128)
    Np = _round_up(N, 128)

    xb = _pad2d(x, Mp, Kp, jnp.bfloat16)
    wb = _pad2d(w, Kp, Np, jnp.bfloat16)

    y_pad, stats = pl.pallas_call(
        _matmul_stats_kernel,
        out_shape=(jax.ShapeDtypeStruct((Mp, Np), jnp.float32),
                   jax.ShapeDtypeStruct((2, Np), jnp.float32)),
        grid=(Mp // tm,),
        in_specs=[
            pl.BlockSpec((tm, Kp), lambda i: (i, 0)),
            pl.BlockSpec((Kp, Np), lambda i: (0, 0)),
        ],
        out_specs=[
            pl.BlockSpec((tm, Np), lambda i: (i, 0)),
            pl.BlockSpec((2, Np), lambda i: (0, 0)),      # resident accumulator
        ],
        compiler_params=pltpu.CompilerParams(
            dimension_semantics=("arbitrary",)),          # stats accumulate over M
    )(xb, wb)
    return y_pad, stats, M, N, tm


def _bn_scale_shift(stats, gamma, beta, count, n_groups, np_cols):
    """Fold training-mode BatchNorm (batch statistics) + affine into a
    per-matmul-column scale/shift.  For sub-pixel deconv layers the columns
    hold n_groups=4 parity copies of the channel axis; their partial sums are
    reduced here.  (Tiny XLA glue on a (2, Np) array.)"""
    c = gamma.shape[0]
    s = stats[0, :n_groups * c].reshape(n_groups, c).sum(axis=0)
    ss = stats[1, :n_groups * c].reshape(n_groups, c).sum(axis=0)
    inv_n = 1.0 / float(count)
    mean = s * inv_n
    var = jnp.maximum(ss * inv_n - mean * mean, 0.0)
    inv_std = jax.lax.rsqrt(var + BN_EPS)
    scale_c = gamma.astype(jnp.float32) * inv_std
    shift_c = beta.astype(jnp.float32) - mean * scale_c
    scale = jnp.zeros((1, np_cols), jnp.float32).at[0, :n_groups * c].set(
        jnp.tile(scale_c, n_groups))
    shift = jnp.zeros((1, np_cols), jnp.float32).at[0, :n_groups * c].set(
        jnp.tile(shift_c, n_groups))
    return scale, shift


def _apply_bn_act(y_pad, scale, shift, tm, act, out_dtype=jnp.bfloat16):
    Mp, Np = y_pad.shape
    return pl.pallas_call(
        functools.partial(_scale_shift_act_kernel, act=act),
        out_shape=jax.ShapeDtypeStruct((Mp, Np), out_dtype),
        grid=(Mp // tm,),
        in_specs=[
            pl.BlockSpec((tm, Np), lambda i: (i, 0)),
            pl.BlockSpec((1, Np), lambda i: (0, 0)),
            pl.BlockSpec((1, Np), lambda i: (0, 0)),
        ],
        out_specs=pl.BlockSpec((tm, Np), lambda i: (i, 0)),
        compiler_params=pltpu.CompilerParams(
            dimension_semantics=("parallel",)),
    )(y_pad, scale, shift)


# ---------------------------------------------------------------------------
# Conv / deconv layers (glue: strided-slice im2col, sub-pixel interleave)
# ---------------------------------------------------------------------------

def _im2col(x, k, s):
    """(B,H,W,C) -> (B*Ho*Wo, k*k*C) via k*k static strided slices (no gather).
    Column order is (ky, kx, c)."""
    B, H, W, C = x.shape
    Ho = (H - k) // s + 1
    Wo = (W - k) // s + 1
    cols = []
    for dy in range(k):
        for dx in range(k):
            cols.append(x[:, dy:dy + (Ho - 1) * s + 1:s,
                           dx:dx + (Wo - 1) * s + 1:s, :])
    patches = jnp.concatenate(cols, axis=-1)
    return patches.reshape(B * Ho * Wo, k * k * C), B, Ho, Wo


def _conv_bn_act(x, w_oihw, gamma, beta, stride, act):
    """Conv2d(k=4, s=2, bias cancelled by BN) + BatchNorm(batch stats) + act."""
    cout, cin, k, _ = w_oihw.shape
    patches, B, Ho, Wo = _im2col(x, k, stride)
    wmat = jnp.transpose(w_oihw, (2, 3, 1, 0)).reshape(k * k * cin, cout)
    y_pad, stats, M, _, tm = _matmul_with_stats(patches, wmat)
    scale, shift = _bn_scale_shift(stats, gamma, beta, count=M,
                                   n_groups=1, np_cols=y_pad.shape[1])
    out = _apply_bn_act(y_pad, scale, shift, tm, act)
    return out[:M, :cout].reshape(B, Ho, Wo, cout)


def _deconv_weight_mat(w_iohw):
    """ConvTranspose2d(k=4,s=2) weight (Cin,Cout,4,4) -> sub-pixel matmul weight
    (4*Cin, 4*Cout): rows ordered (dy, dx, cin) over the 2x2 window, columns
    ordered (parity_y, parity_x, cout)."""
    cin, cout = w_iohw.shape[0], w_iohw.shape[1]
    w6 = w_iohw.reshape(cin, cout, 2, 2, 2, 2)   # (cin, cout, my, py, mx, px)
    w6 = w6[:, :, ::-1, :, ::-1, :]              # my -> dy = 1 - my (same for x)
    w6 = jnp.transpose(w6, (2, 4, 0, 3, 5, 1))   # (dy, dx, cin, py, px, cout)
    return w6.reshape(4 * cin, 4 * cout)


def _deconv_bn_act(x, w_iohw, gamma, beta, out_padding, act,
                   out_dtype=jnp.bfloat16):
    """ConvTranspose2d(k=4, s=2, output_padding) + BN + act via the sub-pixel
    decomposition (4 output parities from one 2x2/stride-1 conv)."""
    B, H, W, cin = x.shape
    cout = w_iohw.shape[1]
    S = H + 1 + out_padding
    Ho = 2 * H + 2 + out_padding                 # square spatial dims

    xp = jnp.pad(x, ((0, 0), (1, 1 + out_padding), (1, 1 + out_padding), (0, 0)))
    patches, _, _, _ = _im2col(xp, 2, 1)         # (B*S*S, 4*cin)
    wmat = _deconv_weight_mat(w_iohw)            # (4*cin, 4*cout)

    y_pad, stats, M, _, tm = _matmul_with_stats(patches, wmat)
    # Parity groups are channel copies: reduce their stats and normalize by the
    # true output pixel count.  Sub-grid positions outside (Ho, Ho) and Mp row
    # padding are exact zeros (zero patches, no bias), so no masking is needed.
    scale, shift = _bn_scale_shift(stats, gamma, beta, count=B * Ho * Ho,
                                   n_groups=4, np_cols=y_pad.shape[1])
    out = _apply_bn_act(y_pad, scale, shift, tm, act, out_dtype=out_dtype)

    sub = out[:M, :4 * cout].reshape(B, S, S, 2, 2, cout)          # (b,oy',ox',py,px,c)
    full = jnp.transpose(sub, (0, 1, 3, 2, 4, 5)).reshape(B, 2 * S, 2 * S, cout)
    return full[:, :Ho, :Ho, :]


def _heads(params, flat, eps, latent):
    """fc_mu / fc_var / sample / fc_z in one fused pallas_call."""
    B = flat.shape[0]
    Bp = _round_up(B, 8)
    Lp = _round_up(latent, 128)
    f32 = jnp.float32

    flat_p = _pad2d(flat, Bp, 256, f32)
    eps_p = _pad2d(eps, Bp, Lp, f32)
    wmu = _pad2d(params["fc_mu_w"].T, 256, Lp, f32)
    bmu = _pad2d(params["fc_mu_b"].reshape(1, -1), 1, Lp, f32)
    wlv = _pad2d(params["fc_var_w"].T, 256, Lp, f32)
    blv = _pad2d(params["fc_var_b"].reshape(1, -1), 1, Lp, f32)
    wz = _pad2d(params["fc_z_w"].T, Lp, 256, f32)
    bz = params["fc_z_b"].reshape(1, 256).astype(f32)

    mu_p, lv_p, d_p = pl.pallas_call(
        _head_kernel,
        out_shape=(jax.ShapeDtypeStruct((Bp, Lp), f32),
                   jax.ShapeDtypeStruct((Bp, Lp), f32),
                   jax.ShapeDtypeStruct((Bp, 256), f32)),
    )(flat_p, wmu, bmu, wlv, blv, eps_p, wz, bz)
    return mu_p[:B, :latent], lv_p[:B, :latent], d_p[:B]


# ---------------------------------------------------------------------------
# BetaVAE parameters + forward
# ---------------------------------------------------------------------------

def init_params(key, latent_size=LATENT_SIZE):
    def nrm(k, shape, scale=0.05):
        return scale * jax.random.normal(k, shape, jnp.float32)

    keys = iter(jax.random.split(key, 64))
    p = {"enc": [], "dec": []}
    for cin, cout in [(3, 32), (32, 32), (32, 64), (64, 64)]:
        p["enc"].append(dict(
            w=nrm(next(keys), (cout, cin, 4, 4)),
            # Conv bias kept for parameter parity with PyTorch; it cancels
            # exactly under training-mode BatchNorm (batch statistics).
            b=nrm(next(keys), (cout,), 0.01),
            gamma=jnp.ones((cout,), jnp.float32),
            beta=jnp.zeros((cout,), jnp.float32)))
    p["fc_mu_w"] = nrm(next(keys), (latent_size, 256))
    p["fc_mu_b"] = jnp.zeros((latent_size,), jnp.float32)
    p["fc_var_w"] = nrm(next(keys), (latent_size, 256))
    p["fc_var_b"] = jnp.zeros((latent_size,), jnp.float32)
    p["fc_z_w"] = nrm(next(keys), (256, latent_size))
    p["fc_z_b"] = jnp.zeros((256,), jnp.float32)
    for cin, cout in [(64, 64), (64, 32), (32, 32), (32, 3)]:
        p["dec"].append(dict(
            w=nrm(next(keys), (cin, cout, 4, 4)),   # ConvTranspose2d (Cin,Cout,kH,kW)
            b=nrm(next(keys), (cout,), 0.01),       # cancelled by BN (see above)
            gamma=jnp.ones((cout,), jnp.float32),
            beta=jnp.zeros((cout,), jnp.float32)))
    return p


def beta_vae_forward(params, x_nchw, eps):
    """x_nchw: (B, 3, 64, 64) f32, eps: (B, latent) standard normal sample."""
    B = x_nchw.shape[0]
    latent = eps.shape[1]
    dec_out_pad = (0, 0, 1, 0)

    # ----- encode -----
    h = jnp.transpose(x_nchw, (0, 2, 3, 1)).astype(jnp.bfloat16)   # NCHW -> NHWC
    for layer in params["enc"]:
        h = _conv_bn_act(h, layer["w"], layer["gamma"], layer["beta"],
                         stride=2, act=1)
    # (B, 2, 2, 64) NHWC -> PyTorch view(-1, 256) flatten order (C, H, W)
    flat = jnp.transpose(h, (0, 3, 1, 2)).reshape(B, 256)

    # ----- fc_mu / fc_var / sample / fc_z (single fused kernel) -----
    mu, logvar, d = _heads(params, flat, eps, latent)

    # ----- decode -----
    d = jnp.transpose(d.reshape(B, 64, 2, 2), (0, 2, 3, 1)).astype(jnp.bfloat16)
    n_dec = len(params["dec"])
    for idx, layer in enumerate(params["dec"]):
        last = idx == n_dec - 1
        act = 2 if last else 1             # last stage: BN + ReLU then Sigmoid
        d = _deconv_bn_act(d, layer["w"], layer["gamma"], layer["beta"],
                           dec_out_pad[idx], act,
                           out_dtype=jnp.float32 if last else jnp.bfloat16)
    rx = jnp.transpose(d, (0, 3, 1, 2)).astype(jnp.float32)        # NHWC -> NCHW
    return rx, mu, logvar


if __name__ == "__main__":
    key = jax.random.PRNGKey(0)
    kp, kx, ke = jax.random.split(key, 3)
    params = init_params(kp)
    # Input size is fixed at 3x64x64 by the module (encoder flattens to 256 = 64*2*2).
    x = jax.random.uniform(kx, (2, 3, 64, 64), jnp.float32)
    eps = jax.random.normal(ke, (2, LATENT_SIZE), jnp.float32)

    fwd = jax.jit(beta_vae_forward)
    rx, mu, logvar = fwd(params, x, eps)
    jax.block_until_ready((rx, mu, logvar))

    assert rx.shape == (2, 3, 64, 64)
    assert mu.shape == (2, LATENT_SIZE) and logvar.shape == (2, LATENT_SIZE)
    assert bool(jnp.all(jnp.isfinite(rx)))
    assert bool(jnp.all((rx >= 0.0) & (rx <= 1.0)))   # sigmoid output range
    print("KERNEL_OK")
</pallas_src>

<mosaic_0001>
module attributes {stable_mosaic.version = 11 : i64} {
  func.func @_matmul_stats_kernel(%arg0: i32, %arg1: memref<1024x128xbf16, #tpu.memory_space<vmem>>, %arg2: memref<128x128xbf16, #tpu.memory_space<vmem>>, %arg3: memref<1024x128xf32, #tpu.memory_space<vmem>>, %arg4: memref<2x128xf32, #tpu.memory_space<vmem>>) attributes {dimension_semantics = [#tpu.dimension_semantics<arbitrary>], iteration_bounds = array<i64: 2>, scalar_prefetch = 0 : i64, scratch_operands = 0 : i64, tpu.core_type = #tpu.core_type<tc>, window_params = [{transform_indices = @transform_0, window_bounds = array<i64: 1024, 128>}, {pipeline_mode = #tpu.pipeline_mode<synchronous>, transform_indices = @transform_1, window_bounds = array<i64: 128, 128>}, {transform_indices = @transform_2, window_bounds = array<i64: 1024, 128>}, {pipeline_mode = #tpu.pipeline_mode<synchronous>, transform_indices = @transform_3, window_bounds = array<i64: 2, 128>}]} {
    %c0 = arith.constant 0 : index
    %c0_0 = arith.constant 0 : index
    %0 = vector.load %arg1[%c0, %c0_0] : memref<1024x128xbf16, #tpu.memory_space<vmem>>, vector<1024x128xbf16>
    %c0_1 = arith.constant 0 : index
    %c0_2 = arith.constant 0 : index
    %1 = vector.load %arg2[%c0_1, %c0_2] : memref<128x128xbf16, #tpu.memory_space<vmem>>, vector<128x128xbf16>
    %cst = arith.constant dense<0.000000e+00> : vector<1024x128xf32>
    %2 = tpu.matmul %0, %1, %cst {dimension_numbers = #tpu.dot_dimension_numbers<[1], [0], [0], [1], [0, 0, 1, 1], [], []>} : vector<1024x128xbf16>, vector<128x128xbf16>, vector<1024x128xf32> -> vector<1024x128xf32>
    %c0_3 = arith.constant 0 : index
    %c0_4 = arith.constant 0 : index
    %3 = vector.load %arg3[%c0_3, %c0_4] : memref<1024x128xf32, #tpu.memory_space<vmem>>, vector<1024x128xf32>
    tpu.vector_store %arg3[%c0_3, %c0_4], %2 {strides = array<i32>} : memref<1024x128xf32, #tpu.memory_space<vmem>>, vector<1024x128xf32>,
    %c0_i32 = arith.constant 0 : i32
    %4 = arith.cmpi eq, %arg0, %c0_i32 : i32
    %5 = arith.extui %4 : i1 to i32
    %c0_i32_5 = arith.constant 0 : i32
    %6 = arith.cmpi ne, %5, %c0_i32_5 : i32
    scf.if %6 {
      %cst_12 = arith.constant 0.000000e+00 : f32
      %16 = vector.broadcast %cst_12 : f32 to vector<2x128xf32>
      %c0_13 = arith.constant 0 : index
      %c0_14 = arith.constant 0 : index
      %17 = vector.load %arg4[%c0_13, %c0_14] : memref<2x128xf32, #tpu.memory_space<vmem>>, vector<2x128xf32>
      tpu.vector_store %arg4[%c0_13, %c0_14], %16 {strides = array<i32>} : memref<2x128xf32, #tpu.memory_space<vmem>>, vector<2x128xf32>,
    } else {
    }
    %c0_6 = arith.constant 0 : index
    %c0_7 = arith.constant 0 : index
    %7 = vector.load %arg4[%c0_6, %c0_7] : memref<2x128xf32, #tpu.memory_space<vmem>>, vector<2x128xf32>
    %cst_8 = arith.constant dense<0.000000e+00> : vector<128xf32>
    %8 = vector.multi_reduction <add>, %2, %cst_8 [0] : vector<1024x128xf32> to vector<128xf32>
    %9 = vector.shape_cast %8 : vector<128xf32> to vector<1x128xf32>
    %10 = arith.mulf %2, %2 : vector<1024x128xf32>
    %cst_9 = arith.constant dense<0.000000e+00> : vector<128xf32>
    %11 = vector.multi_reduction <add>, %10, %cst_9 [0] : vector<1024x128xf32> to vector<128xf32>
    %12 = vector.shape_cast %11 : vector<128xf32> to vector<1x128xf32>
    %13 = tpu.concatenate %9, %12 in 0 : vector<1x128xf32>, vector<1x128xf32> -> vector<2x128xf32>
    %14 = arith.addf %7, %13 : vector<2x128xf32>
    %c0_10 = arith.constant 0 : index
    %c0_11 = arith.constant 0 : index
    %15 = vector.load %arg4[%c0_10, %c0_11] : memref<2x128xf32, #tpu.memory_space<vmem>>, vector<2x128xf32>
    tpu.vector_store %arg4[%c0_10, %c0_11], %14 {strides = array<i32>} : memref<2x128xf32, #tpu.memory_space<vmem>>, vector<2x128xf32>,
    return
  }
  func.func @transform_0(%arg0: i32) -> (i32, i32) {
    %c0_i32 = arith.constant 0 : i32
    %c0_i32_0 = arith.constant 0 : i32
    return %arg0, %c0_i32 : i32, i32
  }
  func.func @transform_1(%arg0: i32) -> (i32, i32) {
    %c0_i32 = arith.constant 0 : i32
    %c0_i32_0 = arith.constant 0 : i32
    %c0_i32_1 = arith.constant 0 : i32
    return %c0_i32, %c0_i32_0 : i32, i32
  }
  func.func @transform_2(%arg0: i32) -> (i32, i32) {
    %c0_i32 = arith.constant 0 : i32
    %c0_i32_0 = arith.constant 0 : i32
    return %arg0, %c0_i32 : i32, i32
  }
  func.func @transform_3(%arg0: i32) -> (i32, i32) {
    %c0_i32 = arith.constant 0 : i32
    %c0_i32_0 = arith.constant 0 : i32
    %c0_i32_1 = arith.constant 0 : i32
    return %c0_i32, %c0_i32_0 : i32, i32
  }
}

module attributes {stable_mosaic.version = 11 : i64} {
  func.func @_scale_shift_act_kernel(%arg0: i32, %arg1: memref<1024x128xf32, #tpu.memory_space<vmem>>, %arg2: memref<1x128xf32, #tpu.memory_space<vmem>>, %arg3: memref<1x128xf32, #tpu.memory_space<vmem>>, %arg4: memref<1024x128xbf16, #tpu.memory_space<vmem>>) attributes {dimension_semantics = [#tpu.dimension_semantics<parallel>], iteration_bounds = array<i64: 2>, scalar_prefetch = 0 : i64, scratch_operands = 0 : i64, tpu.core_type = #tpu.core_type<tc>, window_params = [{transform_indices = @transform_0, window_bounds = array<i64: 1024, 128>}, {pipeline_mode = #tpu.pipeline_mode<synchronous>, transform_indices = @transform_1, window_bounds = array<i64: 1, 128>}, {pipeline_mode = #tpu.pipeline_mode<synchronous>, transform_indices = @transform_2, window_bounds = array<i64: 1, 128>}, {transform_indices = @transform_3, window_bounds = array<i64: 1024, 128>}]} {
    %c0 = arith.constant 0 : index
    %c0_0 = arith.constant 0 : index
    %0 = vector.load %arg1[%c0, %c0_0] : memref<1024x128xf32, #tpu.memory_space<vmem>>, vector<1024x128xf32>
    %c0_1 = arith.constant 0 : index
    %c0_2 = arith.constant 0 : index
    %1 = vector.load %arg2[%c0_1, %c0_2] : memref<1x128xf32, #tpu.memory_space<vmem>>, vector<1x128xf32>
    %2 = vector.broadcast %1 : vector<1x128xf32> to vector<1024x128xf32>
    %3 = arith.mulf %0, %2 : vector<1024x128xf32>
    %c0_3 = arith.constant 0 : index
    %c0_4 = arith.constant 0 : index
    %4 = vector.load %arg3[%c0_3, %c0_4] : memref<1x128xf32, #tpu.memory_space<vmem>>, vector<1x128xf32>
    %5 = vector.broadcast %4 : vector<1x128xf32> to vector<1024x128xf32>
    %6 = arith.addf %3, %5 : vector<1024x128xf32>
    %cst = arith.constant 0.000000e+00 : f32
    %7 = vector.broadcast %cst : f32 to vector<1024x128xf32>
    %8 = arith.maximumf %6, %7 : vector<1024x128xf32>
    %9 = arith.truncf %8 : vector<1024x128xf32> to vector<1024x128xbf16>
    %c0_5 = arith.constant 0 : index
    %c0_6 = arith.constant 0 : index
    %10 = vector.load %arg4[%c0_5, %c0_6] : memref<1024x128xbf16, #tpu.memory_space<vmem>>, vector<1024x128xbf16>
    tpu.vector_store %arg4[%c0_5, %c0_6], %9 {strides = array<i32>} : memref<1024x128xbf16, #tpu.memory_space<vmem>>, vector<1024x128xbf16>,
    return
  }
  func.func @transform_0(%arg0: i32) -> (i32, i32) {
    %c0_i32 = arith.constant 0 : i32
    %c0_i32_0 = arith.constant 0 : i32
    return %arg0, %c0_i32 : i32, i32
  }
  func.func @transform_1(%arg0: i32) -> (i32, i32) {
    %c0_i32 = arith.constant 0 : i32
    %c0_i32_0 = arith.constant 0 : i32
    %c0_i32_1 = arith.constant 0 : i32
    return %c0_i32, %c0_i32_0 : i32, i32
  }
  func.func @transform_2(%arg0: i32) -> (i32, i32) {
    %c0_i32 = arith.constant 0 : i32
    %c0_i32_0 = arith.constant 0 : i32
    %c0_i32_1 = arith.constant 0 : i32
    return %c0_i32, %c0_i32_0 : i32, i32
  }
  func.func @transform_3(%arg0: i32) -> (i32, i32) {
    %c0_i32 = arith.constant 0 : i32
    %c0_i32_0 = arith.constant 0 : i32
    return %arg0, %c0_i32 : i32, i32
  }
}

module attributes {stable_mosaic.version = 11 : i64} {
  func.func @_matmul_stats_kernel(%arg0: i32, %arg1: memref<400x512xbf16, #tpu.memory_space<vmem>>, %arg2: memref<512x128xbf16, #tpu.memory_space<vmem>>, %arg3: memref<400x128xf32, #tpu.memory_space<vmem>>, %arg4: memref<2x128xf32, #tpu.memory_space<vmem>>) attributes {dimension_semantics = [#tpu.dimension_semantics<arbitrary>], iteration_bounds = array<i64: 1>, scalar_prefetch = 0 : i64, scratch_operands = 0 : i64, tpu.core_type = #tpu.core_type<tc>, window_params = [{transform_indices = @transform_0, window_bounds = array<i64: 400, 512>}, {pipeline_mode = #tpu.pipeline_mode<synchronous>, transform_indices = @transform_1, window_bounds = array<i64: 512, 128>}, {transform_indices = @transform_2, window_bounds = array<i64: 400, 128>}, {pipeline_mode = #tpu.pipeline_mode<synchronous>, transform_indices = @transform_3, window_bounds = array<i64: 2, 128>}]} {
    %c0 = arith.constant 0 : index
    %c0_0 = arith.constant 0 : index
    %0 = vector.load %arg1[%c0, %c0_0] : memref<400x512xbf16, #tpu.memory_space<vmem>>, vector<400x512xbf16>
    %c0_1 = arith.constant 0 : index
    %c0_2 = arith.constant 0 : index
    %1 = vector.load %arg2[%c0_1, %c0_2] : memref<512x128xbf16, #tpu.memory_space<vmem>>, vector<512x128xbf16>
    %cst = arith.constant dense<0.000000e+00> : vector<400x128xf32>
    %2 = tpu.matmul %0, %1, %cst {dimension_numbers = #tpu.dot_dimension_numbers<[1], [0], [0], [1], [0, 0, 1, 1], [], []>} : vector<400x512xbf16>, vector<512x128xbf16>, vector<400x128xf32> -> vector<400x128xf32>
    %c0_3 = arith.constant 0 : index
    %c0_4 = arith.constant 0 : index
    %3 = vector.load %arg3[%c0_3, %c0_4] : memref<400x128xf32, #tpu.memory_space<vmem>>, vector<400x128xf32>
    tpu.vector_store %arg3[%c0_3, %c0_4], %2 {strides = array<i32>} : memref<400x128xf32, #tpu.memory_space<vmem>>, vector<400x128xf32>,
    %c0_i32 = arith.constant 0 : i32
    %4 = arith.cmpi eq, %arg0, %c0_i32 : i32
    %5 = arith.extui %4 : i1 to i32
    %c0_i32_5 = arith.constant 0 : i32
    %6 = arith.cmpi ne, %5, %c0_i32_5 : i32
    scf.if %6 {
      %cst_12 = arith.constant 0.000000e+00 : f32
      %16 = vector.broadcast %cst_12 : f32 to vector<2x128xf32>
      %c0_13 = arith.constant 0 : index
      %c0_14 = arith.constant 0 : index
      %17 = vector.load %arg4[%c0_13, %c0_14] : memref<2x128xf32, #tpu.memory_space<vmem>>, vector<2x128xf32>
      tpu.vector_store %arg4[%c0_13, %c0_14], %16 {strides = array<i32>} : memref<2x128xf32, #tpu.memory_space<vmem>>, vector<2x128xf32>,
    } else {
    }
    %c0_6 = arith.constant 0 : index
    %c0_7 = arith.constant 0 : index
    %7 = vector.load %arg4[%c0_6, %c0_7] : memref<2x128xf32, #tpu.memory_space<vmem>>, vector<2x128xf32>
    %cst_8 = arith.constant dense<0.000000e+00> : vector<128xf32>
    %8 = vector.multi_reduction <add>, %2, %cst_8 [0] : vector<400x128xf32> to vector<128xf32>
    %9 = vector.shape_cast %8 : vector<128xf32> to vector<1x128xf32>
    %10 = arith.mulf %2, %2 : vector<400x128xf32>
    %cst_9 = arith.constant dense<0.000000e+00> : vector<128xf32>
    %11 = vector.multi_reduction <add>, %10, %cst_9 [0] : vector<400x128xf32> to vector<128xf32>
    %12 = vector.shape_cast %11 : vector<128xf32> to vector<1x128xf32>
    %13 = tpu.concatenate %9, %12 in 0 : vector<1x128xf32>, vector<1x128xf32> -> vector<2x128xf32>
    %14 = arith.addf %7, %13 : vector<2x128xf32>
    %c0_10 = arith.constant 0 : index
    %c0_11 = arith.constant 0 : index
    %15 = vector.load %arg4[%c0_10, %c0_11] : memref<2x128xf32, #tpu.memory_space<vmem>>, vector<2x128xf32>
    tpu.vector_store %arg4[%c0_10, %c0_11], %14 {strides = array<i32>} : memref<2x128xf32, #tpu.memory_space<vmem>>, vector<2x128xf32>,
    return
  }
  func.func @transform_0(%arg0: i32) -> (i32, i32) {
    %c0_i32 = arith.constant 0 : i32
    %c0_i32_0 = arith.constant 0 : i32
    return %arg0, %c0_i32 : i32, i32
  }
  func.func @transform_1(%arg0: i32) -> (i32, i32) {
    %c0_i32 = arith.constant 0 : i32
    %c0_i32_0 = arith.constant 0 : i32
    %c0_i32_1 = arith.constant 0 : i32
    return %c0_i32, %c0_i32_0 : i32, i32
  }
  func.func @transform_2(%arg0: i32) -> (i32, i32) {
    %c0_i32 = arith.constant 0 : i32
    %c0_i32_0 = arith.constant 0 : i32
    return %arg0, %c0_i32 : i32, i32
  }
  func.func @transform_3(%arg0: i32) -> (i32, i32) {
    %c0_i32 = arith.constant 0 : i32
    %c0_i32_0 = arith.constant 0 : i32
    %c0_i32_1 = arith.constant 0 : i32
    return %c0_i32, %c0_i32_0 : i32, i32
  }
}

module attributes {stable_mosaic.version = 11 : i64} {
  func.func @_scale_shift_act_kernel(%arg0: i32, %arg1: memref<400x128xf32, #tpu.memory_space<vmem>>, %arg2: memref<1x128xf32, #tpu.memory_space<vmem>>, %arg3: memref<1x128xf32, #tpu.memory_space<vmem>>, %arg4: memref<400x128xbf16, #tpu.memory_space<vmem>>) attributes {dimension_semantics = [#tpu.dimension_semantics<parallel>], iteration_bounds = array<i64: 1>, scalar_prefetch = 0 : i64, scratch_operands = 0 : i64, tpu.core_type = #tpu.core_type<tc>, window_params = [{transform_indices = @transform_0, window_bounds = array<i64: 400, 128>}, {pipeline_mode = #tpu.pipeline_mode<synchronous>, transform_indices = @transform_1, window_bounds = array<i64: 1, 128>}, {pipeline_mode = #tpu.pipeline_mode<synchronous>, transform_indices = @transform_2, window_bounds = array<i64: 1, 128>}, {transform_indices = @transform_3, window_bounds = array<i64: 400, 128>}]} {
    %c0 = arith.constant 0 : index
    %c0_0 = arith.constant 0 : index
    %0 = vector.load %arg1[%c0, %c0_0] : memref<400x128xf32, #tpu.memory_space<vmem>>, vector<400x128xf32>
    %c0_1 = arith.constant 0 : index
    %c0_2 = arith.constant 0 : index
    %1 = vector.load %arg2[%c0_1, %c0_2] : memref<1x128xf32, #tpu.memory_space<vmem>>, vector<1x128xf32>
    %2 = vector.broadcast %1 : vector<1x128xf32> to vector<400x128xf32>
    %3 = arith.mulf %0, %2 : vector<400x128xf32>
    %c0_3 = arith.constant 0 : index
    %c0_4 = arith.constant 0 : index
    %4 = vector.load %arg3[%c0_3, %c0_4] : memref<1x128xf32, #tpu.memory_space<vmem>>, vector<1x128xf32>
    %5 = vector.broadcast %4 : vector<1x128xf32> to vector<400x128xf32>
    %6 = arith.addf %3, %5 : vector<400x128xf32>
    %cst = arith.constant 0.000000e+00 : f32
    %7 = vector.broadcast %cst : f32 to vector<400x128xf32>
    %8 = arith.maximumf %6, %7 : vector<400x128xf32>
    %9 = arith.truncf %8 : vector<400x128xf32> to vector<400x128xbf16>
    %c0_5 = arith.constant 0 : index
    %c0_6 = arith.constant 0 : index
    %10 = vector.load %arg4[%c0_5, %c0_6] : memref<400x128xbf16, #tpu.memory_space<vmem>>, vector<400x128xbf16>
    tpu.vector_store %arg4[%c0_5, %c0_6], %9 {strides = array<i32>} : memref<400x128xbf16, #tpu.memory_space<vmem>>, vector<400x128xbf16>,
    return
  }
  func.func @transform_0(%arg0: i32) -> (i32, i32) {
    %c0_i32 = arith.constant 0 : i32
    %c0_i32_0 = arith.constant 0 : i32
    return %arg0, %c0_i32 : i32, i32
  }
  func.func @transform_1(%arg0: i32) -> (i32, i32) {
    %c0_i32 = arith.constant 0 : i32
    %c0_i32_0 = arith.constant 0 : i32
    %c0_i32_1 = arith.constant 0 : i32
    return %c0_i32, %c0_i32_0 : i32, i32
  }
  func.func @transform_2(%arg0: i32) -> (i32, i32) {
    %c0_i32 = arith.constant 0 : i32
    %c0_i32_0 = arith.constant 0 : i32
    %c0_i32_1 = arith.constant 0 : i32
    return %c0_i32, %c0_i32_0 : i32, i32
  }
  func.func @transform_3(%arg0: i32) -> (i32, i32) {
    %c0_i32 = arith.constant 0 : i32
    %c0_i32_0 = arith.constant 0 : i32
    return %arg0, %c0_i32 : i32, i32
  }
}

module attributes {stable_mosaic.version = 11 : i64} {
  func.func @_matmul_stats_kernel(%arg0: i32, %arg1: memref<80x512xbf16, #tpu.memory_space<vmem>>, %arg2: memref<512x128xbf16, #tpu.memory_space<vmem>>, %arg3: memref<80x128xf32, #tpu.memory_space<vmem>>, %arg4: memref<2x128xf32, #tpu.memory_space<vmem>>) attributes {dimension_semantics = [#tpu.dimension_semantics<arbitrary>], iteration_bounds = array<i64: 1>, scalar_prefetch = 0 : i64, scratch_operands = 0 : i64, tpu.core_type = #tpu.core_type<tc>, window_params = [{transform_indices = @transform_0, window_bounds = array<i64: 80, 512>}, {pipeline_mode = #tpu.pipeline_mode<synchronous>, transform_indices = @transform_1, window_bounds = array<i64: 512, 128>}, {transform_indices = @transform_2, window_bounds = array<i64: 80, 128>}, {pipeline_mode = #tpu.pipeline_mode<synchronous>, transform_indices = @transform_3, window_bounds = array<i64: 2, 128>}]} {
    %c0 = arith.constant 0 : index
    %c0_0 = arith.constant 0 : index
    %0 = vector.load %arg1[%c0, %c0_0] : memref<80x512xbf16, #tpu.memory_space<vmem>>, vector<80x512xbf16>
    %c0_1 = arith.constant 0 : index
    %c0_2 = arith.constant 0 : index
    %1 = vector.load %arg2[%c0_1, %c0_2] : memref<512x128xbf16, #tpu.memory_space<vmem>>, vector<512x128xbf16>
    %cst = arith.constant dense<0.000000e+00> : vector<80x128xf32>
    %2 = tpu.matmul %0, %1, %cst {dimension_numbers = #tpu.dot_dimension_numbers<[1], [0], [0], [1], [0, 0, 1, 1], [], []>} : vector<80x512xbf16>, vector<512x128xbf16>, vector<80x128xf32> -> vector<80x128xf32>
    %c0_3 = arith.constant 0 : index
    %c0_4 = arith.constant 0 : index
    %3 = vector.load %arg3[%c0_3, %c0_4] : memref<80x128xf32, #tpu.memory_space<vmem>>, vector<80x128xf32>
    tpu.vector_store %arg3[%c0_3, %c0_4], %2 {strides = array<i32>} : memref<80x128xf32, #tpu.memory_space<vmem>>, vector<80x128xf32>,
    %c0_i32 = arith.constant 0 : i32
    %4 = arith.cmpi eq, %arg0, %c0_i32 : i32
    %5 = arith.extui %4 : i1 to i32
    %c0_i32_5 = arith.constant 0 : i32
    %6 = arith.cmpi ne, %5, %c0_i32_5 : i32
    scf.if %6 {
      %cst_12 = arith.constant 0.000000e+00 : f32
      %16 = vector.broadcast %cst_12 : f32 to vector<2x128xf32>
      %c0_13 = arith.constant 0 : index
      %c0_14 = arith.constant 0 : index
      %17 = vector.load %arg4[%c0_13, %c0_14] : memref<2x128xf32, #tpu.memory_space<vmem>>, vector<2x128xf32>
      tpu.vector_store %arg4[%c0_13, %c0_14], %16 {strides = array<i32>} : memref<2x128xf32, #tpu.memory_space<vmem>>, vector<2x128xf32>,
    } else {
    }
    %c0_6 = arith.constant 0 : index
    %c0_7 = arith.constant 0 : index
    %7 = vector.load %arg4[%c0_6, %c0_7] : memref<2x128xf32, #tpu.memory_space<vmem>>, vector<2x128xf32>
    %cst_8 = arith.constant dense<0.000000e+00> : vector<128xf32>
    %8 = vector.multi_reduction <add>, %2, %cst_8 [0] : vector<80x128xf32> to vector<128xf32>
    %9 = vector.shape_cast %8 : vector<128xf32> to vector<1x128xf32>
    %10 = arith.mulf %2, %2 : vector<80x128xf32>
    %cst_9 = arith.constant dense<0.000000e+00> : vector<128xf32>
    %11 = vector.multi_reduction <add>, %10, %cst_9 [0] : vector<80x128xf32> to vector<128xf32>
    %12 = vector.shape_cast %11 : vector<128xf32> to vector<1x128xf32>
    %13 = tpu.concatenate %9, %12 in 0 : vector<1x128xf32>, vector<1x128xf32> -> vector<2x128xf32>
    %14 = arith.addf %7, %13 : vector<2x128xf32>
    %c0_10 = arith.constant 0 : index
    %c0_11 = arith.constant 0 : index
    %15 = vector.load %arg4[%c0_10, %c0_11] : memref<2x128xf32, #tpu.memory_space<vmem>>, vector<2x128xf32>
    tpu.vector_store %arg4[%c0_10, %c0_11], %14 {strides = array<i32>} : memref<2x128xf32, #tpu.memory_space<vmem>>, vector<2x128xf32>,
    return
  }
  func.func @transform_0(%arg0: i32) -> (i32, i32) {
    %c0_i32 = arith.constant 0 : i32
    %c0_i32_0 = arith.constant 0 : i32
    return %arg0, %c0_i32 : i32, i32
  }
  func.func @transform_1(%arg0: i32) -> (i32, i32) {
    %c0_i32 = arith.constant 0 : i32
    %c0_i32_0 = arith.constant 0 : i32
    %c0_i32_1 = arith.constant 0 : i32
    return %c0_i32, %c0_i32_0 : i32, i32
  }
  func.func @transform_2(%arg0: i32) -> (i32, i32) {
    %c0_i32 = arith.constant 0 : i32
    %c0_i32_0 = arith.constant 0 : i32
    return %arg0, %c0_i32 : i32, i32
  }
  func.func @transform_3(%arg0: i32) -> (i32, i32) {
    %c0_i32 = arith.constant 0 : i32
    %c0_i32_0 = arith.constant 0 : i32
    %c0_i32_1 = arith.constant 0 : i32
    return %c0_i32, %c0_i32_0 : i32, i32
  }
}

module attributes {stable_mosaic.version = 11 : i64} {
  func.func @_scale_shift_act_kernel(%arg0: i32, %arg1: memref<80x128xf32, #tpu.memory_space<vmem>>, %arg2: memref<1x128xf32, #tpu.memory_space<vmem>>, %arg3: memref<1x128xf32, #tpu.memory_space<vmem>>, %arg4: memref<80x128xbf16, #tpu.memory_space<vmem>>) attributes {dimension_semantics = [#tpu.dimension_semantics<parallel>], iteration_bounds = array<i64: 1>, scalar_prefetch = 0 : i64, scratch_operands = 0 : i64, tpu.core_type = #tpu.core_type<tc>, window_params = [{transform_indices = @transform_0, window_bounds = array<i64: 80, 128>}, {pipeline_mode = #tpu.pipeline_mode<synchronous>, transform_indices = @transform_1, window_bounds = array<i64: 1, 128>}, {pipeline_mode = #tpu.pipeline_mode<synchronous>, transform_indices = @transform_2, window_bounds = array<i64: 1, 128>}, {transform_indices = @transform_3, window_bounds = array<i64: 80, 128>}]} {
    %c0 = arith.constant 0 : index
    %c0_0 = arith.constant 0 : index
    %0 = vector.load %arg1[%c0, %c0_0] : memref<80x128xf32, #tpu.memory_space<vmem>>, vector<80x128xf32>
    %c0_1 = arith.constant 0 : index
    %c0_2 = arith.constant 0 : index
    %1 = vector.load %arg2[%c0_1, %c0_2] : memref<1x128xf32, #tpu.memory_space<vmem>>, vector<1x128xf32>
    %2 = vector.broadcast %1 : vector<1x128xf32> to vector<80x128xf32>
    %3 = arith.mulf %0, %2 : vector<80x128xf32>
    %c0_3 = arith.constant 0 : index
    %c0_4 = arith.constant 0 : index
    %4 = vector.load %arg3[%c0_3, %c0_4] : memref<1x128xf32, #tpu.memory_space<vmem>>, vector<1x128xf32>
    %5 = vector.broadcast %4 : vector<1x128xf32> to vector<80x128xf32>
    %6 = arith.addf %3, %5 : vector<80x128xf32>
    %cst = arith.constant 0.000000e+00 : f32
    %7 = vector.broadcast %cst : f32 to vector<80x128xf32>
    %8 = arith.maximumf %6, %7 : vector<80x128xf32>
    %9 = arith.truncf %8 : vector<80x128xf32> to vector<80x128xbf16>
    %c0_5 = arith.constant 0 : index
    %c0_6 = arith.constant 0 : index
    %10 = vector.load %arg4[%c0_5, %c0_6] : memref<80x128xbf16, #tpu.memory_space<vmem>>, vector<80x128xbf16>
    tpu.vector_store %arg4[%c0_5, %c0_6], %9 {strides = array<i32>} : memref<80x128xbf16, #tpu.memory_space<vmem>>, vector<80x128xbf16>,
    return
  }
  func.func @transform_0(%arg0: i32) -> (i32, i32) {
    %c0_i32 = arith.constant 0 : i32
    %c0_i32_0 = arith.constant 0 : i32
    return %arg0, %c0_i32 : i32, i32
  }
  func.func @transform_1(%arg0: i32) -> (i32, i32) {
    %c0_i32 = arith.constant 0 : i32
    %c0_i32_0 = arith.constant 0 : i32
    %c0_i32_1 = arith.constant 0 : i32
    return %c0_i32, %c0_i32_0 : i32, i32
  }
  func.func @transform_2(%arg0: i32) -> (i32, i32) {
    %c0_i32 = arith.constant 0 : i32
    %c0_i32_0 = arith.constant 0 : i32
    %c0_i32_1 = arith.constant 0 : i32
    return %c0_i32, %c0_i32_0 : i32, i32
  }
  func.func @transform_3(%arg0: i32) -> (i32, i32) {
    %c0_i32 = arith.constant 0 : i32
    %c0_i32_0 = arith.constant 0 : i32
    return %arg0, %c0_i32 : i32, i32
  }
}

module attributes {stable_mosaic.version = 11 : i64} {
  func.func @_matmul_stats_kernel(%arg0: i32, %arg1: memref<16x1024xbf16, #tpu.memory_space<vmem>>, %arg2: memref<1024x128xbf16, #tpu.memory_space<vmem>>, %arg3: memref<16x128xf32, #tpu.memory_space<vmem>>, %arg4: memref<2x128xf32, #tpu.memory_space<vmem>>) attributes {dimension_semantics = [#tpu.dimension_semantics<arbitrary>], iteration_bounds = array<i64: 1>, scalar_prefetch = 0 : i64, scratch_operands = 0 : i64, tpu.core_type = #tpu.core_type<tc>, window_params = [{transform_indices = @transform_0, window_bounds = array<i64: 16, 1024>}, {pipeline_mode = #tpu.pipeline_mode<synchronous>, transform_indices = @transform_1, window_bounds = array<i64: 1024, 128>}, {transform_indices = @transform_2, window_bounds = array<i64: 16, 128>}, {pipeline_mode = #tpu.pipeline_mode<synchronous>, transform_indices = @transform_3, window_bounds = array<i64: 2, 128>}]} {
    %c0 = arith.constant 0 : index
    %c0_0 = arith.constant 0 : index
    %0 = vector.load %arg1[%c0, %c0_0] : memref<16x1024xbf16, #tpu.memory_space<vmem>>, vector<16x1024xbf16>
    %c0_1 = arith.constant 0 : index
    %c0_2 = arith.constant 0 : index
    %1 = vector.load %arg2[%c0_1, %c0_2] : memref<1024x128xbf16, #tpu.memory_space<vmem>>, vector<1024x128xbf16>
    %cst = arith.constant dense<0.000000e+00> : vector<16x128xf32>
    %2 = tpu.matmul %0, %1, %cst {dimension_numbers = #tpu.dot_dimension_numbers<[1], [0], [0], [1], [0, 0, 1, 1], [], []>} : vector<16x1024xbf16>, vector<1024x128xbf16>, vector<16x128xf32> -> vector<16x128xf32>
    %c0_3 = arith.constant 0 : index
    %c0_4 = arith.constant 0 : index
    %3 = vector.load %arg3[%c0_3, %c0_4] : memref<16x128xf32, #tpu.memory_space<vmem>>, vector<16x128xf32>
    tpu.vector_store %arg3[%c0_3, %c0_4], %2 {strides = array<i32>} : memref<16x128xf32, #tpu.memory_space<vmem>>, vector<16x128xf32>,
    %c0_i32 = arith.constant 0 : i32
    %4 = arith.cmpi eq, %arg0, %c0_i32 : i32
    %5 = arith.extui %4 : i1 to i32
    %c0_i32_5 = arith.constant 0 : i32
    %6 = arith.cmpi ne, %5, %c0_i32_5 : i32
    scf.if %6 {
      %cst_12 = arith.constant 0.000000e+00 : f32
      %16 = vector.broadcast %cst_12 : f32 to vector<2x128xf32>
      %c0_13 = arith.constant 0 : index
      %c0_14 = arith.constant 0 : index
      %17 = vector.load %arg4[%c0_13, %c0_14] : memref<2x128xf32, #tpu.memory_space<vmem>>, vector<2x128xf32>
      tpu.vector_store %arg4[%c0_13, %c0_14], %16 {strides = array<i32>} : memref<2x128xf32, #tpu.memory_space<vmem>>, vector<2x128xf32>,
    } else {
    }
    %c0_6 = arith.constant 0 : index
    %c0_7 = arith.constant 0 : index
    %7 = vector.load %arg4[%c0_6, %c0_7] : memref<2x128xf32, #tpu.memory_space<vmem>>, vector<2x128xf32>
    %cst_8 = arith.constant dense<0.000000e+00> : vector<128xf32>
    %8 = vector.multi_reduction <add>, %2, %cst_8 [0] : vector<16x128xf32> to vector<128xf32>
    %9 = vector.shape_cast %8 : vector<128xf32> to vector<1x128xf32>
    %10 = arith.mulf %2, %2 : vector<16x128xf32>
    %cst_9 = arith.constant dense<0.000000e+00> : vector<128xf32>
    %11 = vector.multi_reduction <add>, %10, %cst_9 [0] : vector<16x128xf32> to vector<128xf32>
    %12 = vector.shape_cast %11 : vector<128xf32> to vector<1x128xf32>
    %13 = tpu.concatenate %9, %12 in 0 : vector<1x128xf32>, vector<1x128xf32> -> vector<2x128xf32>
    %14 = arith.addf %7, %13 : vector<2x128xf32>
    %c0_10 = arith.constant 0 : index
    %c0_11 = arith.constant 0 : index
    %15 = vector.load %arg4[%c0_10, %c0_11] : memref<2x128xf32, #tpu.memory_space<vmem>>, vector<2x128xf32>
    tpu.vector_store %arg4[%c0_10, %c0_11], %14 {strides = array<i32>} : memref<2x128xf32, #tpu.memory_space<vmem>>, vector<2x128xf32>,
    return
  }
  func.func @transform_0(%arg0: i32) -> (i32, i32) {
    %c0_i32 = arith.constant 0 : i32
    %c0_i32_0 = arith.constant 0 : i32
    return %arg0, %c0_i32 : i32, i32
  }
  func.func @transform_1(%arg0: i32) -> (i32, i32) {
    %c0_i32 = arith.constant 0 : i32
    %c0_i32_0 = arith.constant 0 : i32
    %c0_i32_1 = arith.constant 0 : i32
    return %c0_i32, %c0_i32_0 : i32, i32
  }
  func.func @transform_2(%arg0: i32) -> (i32, i32) {
    %c0_i32 = arith.constant 0 : i32
    %c0_i32_0 = arith.constant 0 : i32
    return %arg0, %c0_i32 : i32, i32
  }
  func.func @transform_3(%arg0: i32) -> (i32, i32) {
    %c0_i32 = arith.constant 0 : i32
    %c0_i32_0 = arith.constant 0 : i32
    %c0_i32_1 = arith.constant 0 : i32
    return %c0_i32, %c0_i32_0 : i32, i32
  }
}

module attributes {stable_mosaic.version = 11 : i64} {
  func.func @_scale_shift_act_kernel(%arg0: i32, %arg1: memref<16x128xf32, #tpu.memory_space<vmem>>, %arg2: memref<1x128xf32, #tpu.memory_space<vmem>>, %arg3: memref<1x128xf32, #tpu.memory_space<vmem>>, %arg4: memref<16x128xbf16, #tpu.memory_space<vmem>>) attributes {dimension_semantics = [#tpu.dimension_semantics<parallel>], iteration_bounds = array<i64: 1>, scalar_prefetch = 0 : i64, scratch_operands = 0 : i64, tpu.core_type = #tpu.core_type<tc>, window_params = [{transform_indices = @transform_0, window_bounds = array<i64: 16, 128>}, {pipeline_mode = #tpu.pipeline_mode<synchronous>, transform_indices = @transform_1, window_bounds = array<i64: 1, 128>}, {pipeline_mode = #tpu.pipeline_mode<synchronous>, transform_indices = @transform_2, window_bounds = array<i64: 1, 128>}, {transform_indices = @transform_3, window_bounds = array<i64: 16, 128>}]} {
    %c0 = arith.constant 0 : index
    %c0_0 = arith.constant 0 : index
    %0 = vector.load %arg1[%c0, %c0_0] : memref<16x128xf32, #tpu.memory_space<vmem>>, vector<16x128xf32>
    %c0_1 = arith.constant 0 : index
    %c0_2 = arith.constant 0 : index
    %1 = vector.load %arg2[%c0_1, %c0_2] : memref<1x128xf32, #tpu.memory_space<vmem>>, vector<1x128xf32>
    %2 = vector.broadcast %1 : vector<1x128xf32> to vector<16x128xf32>
    %3 = arith.mulf %0, %2 : vector<16x128xf32>
    %c0_3 = arith.constant 0 : index
    %c0_4 = arith.constant 0 : index
    %4 = vector.load %arg3[%c0_3, %c0_4] : memref<1x128xf32, #tpu.memory_space<vmem>>, vector<1x128xf32>
    %5 = vector.broadcast %4 : vector<1x128xf32> to vector<16x128xf32>
    %6 = arith.addf %3, %5 : vector<16x128xf32>
    %cst = arith.constant 0.000000e+00 : f32
    %7 = vector.broadcast %cst : f32 to vector<16x128xf32>
    %8 = arith.maximumf %6, %7 : vector<16x128xf32>
    %9 = arith.truncf %8 : vector<16x128xf32> to vector<16x128xbf16>
    %c0_5 = arith.constant 0 : index
    %c0_6 = arith.constant 0 : index
    %10 = vector.load %arg4[%c0_5, %c0_6] : memref<16x128xbf16, #tpu.memory_space<vmem>>, vector<16x128xbf16>
    tpu.vector_store %arg4[%c0_5, %c0_6], %9 {strides = array<i32>} : memref<16x128xbf16, #tpu.memory_space<vmem>>, vector<16x128xbf16>,
    return
  }
  func.func @transform_0(%arg0: i32) -> (i32, i32) {
    %c0_i32 = arith.constant 0 : i32
    %c0_i32_0 = arith.constant 0 : i32
    return %arg0, %c0_i32 : i32, i32
  }
  func.func @transform_1(%arg0: i32) -> (i32, i32) {
    %c0_i32 = arith.constant 0 : i32
    %c0_i32_0 = arith.constant 0 : i32
    %c0_i32_1 = arith.constant 0 : i32
    return %c0_i32, %c0_i32_0 : i32, i32
  }
  func.func @transform_2(%arg0: i32) -> (i32, i32) {
    %c0_i32 = arith.constant 0 : i32
    %c0_i32_0 = arith.constant 0 : i32
    %c0_i32_1 = arith.constant 0 : i32
    return %c0_i32, %c0_i32_0 : i32, i32
  }
  func.func @transform_3(%arg0: i32) -> (i32, i32) {
    %c0_i32 = arith.constant 0 : i32
    %c0_i32_0 = arith.constant 0 : i32
    return %arg0, %c0_i32 : i32, i32
  }
}

module attributes {stable_mosaic.version = 11 : i64} {
  func.func @_head_kernel(%arg0: memref<8x256xf32, #tpu.memory_space<vmem>>, %arg1: memref<256x128xf32, #tpu.memory_space<vmem>>, %arg2: memref<1x128xf32, #tpu.memory_space<vmem>>, %arg3: memref<256x128xf32, #tpu.memory_space<vmem>>, %arg4: memref<1x128xf32, #tpu.memory_space<vmem>>, %arg5: memref<8x128xf32, #tpu.memory_space<vmem>>, %arg6: memref<128x256xf32, #tpu.memory_space<vmem>>, %arg7: memref<1x256xf32, #tpu.memory_space<vmem>>, %arg8: memref<8x128xf32, #tpu.memory_space<vmem>>, %arg9: memref<8x128xf32, #tpu.memory_space<vmem>>, %arg10: memref<8x256xf32, #tpu.memory_space<vmem>>) attributes {dimension_semantics = [], scalar_prefetch = 0 : i64, scratch_operands = 0 : i64, tpu.core_type = #tpu.core_type<tc>} {
    %c0 = arith.constant 0 : index
    %c0_0 = arith.constant 0 : index
    %0 = vector.load %arg0[%c0, %c0_0] : memref<8x256xf32, #tpu.memory_space<vmem>>, vector<8x256xf32>
    %c0_1 = arith.constant 0 : index
    %c0_2 = arith.constant 0 : index
    %1 = vector.load %arg1[%c0_1, %c0_2] : memref<256x128xf32, #tpu.memory_space<vmem>>, vector<256x128xf32>
    %cst = arith.constant dense<0.000000e+00> : vector<8x128xf32>
    %2 = tpu.matmul %0, %1, %cst {dimension_numbers = #tpu.dot_dimension_numbers<[1], [0], [0], [1], [0, 0, 1, 1], [], []>} : vector<8x256xf32>, vector<256x128xf32>, vector<8x128xf32> -> vector<8x128xf32>
    %c0_3 = arith.constant 0 : index
    %c0_4 = arith.constant 0 : index
    %3 = vector.load %arg2[%c0_3, %c0_4] : memref<1x128xf32, #tpu.memory_space<vmem>>, vector<1x128xf32>
    %4 = vector.broadcast %3 : vector<1x128xf32> to vector<8x128xf32>
    %5 = arith.addf %2, %4 : vector<8x128xf32>
    %c0_5 = arith.constant 0 : index
    %c0_6 = arith.constant 0 : index
    %6 = vector.load %arg3[%c0_5, %c0_6] : memref<256x128xf32, #tpu.memory_space<vmem>>, vector<256x128xf32>
    %cst_7 = arith.constant dense<0.000000e+00> : vector<8x128xf32>
    %7 = tpu.matmul %0, %6, %cst_7 {dimension_numbers = #tpu.dot_dimension_numbers<[1], [0], [0], [1], [0, 0, 1, 1], [], []>} : vector<8x256xf32>, vector<256x128xf32>, vector<8x128xf32> -> vector<8x128xf32>
    %c0_8 = arith.constant 0 : index
    %c0_9 = arith.constant 0 : index
    %8 = vector.load %arg4[%c0_8, %c0_9] : memref<1x128xf32, #tpu.memory_space<vmem>>, vector<1x128xf32>
    %9 = vector.broadcast %8 : vector<1x128xf32> to vector<8x128xf32>
    %10 = arith.addf %7, %9 : vector<8x128xf32>
    %c0_10 = arith.constant 0 : index
    %c0_11 = arith.constant 0 : index
    %11 = vector.load %arg5[%c0_10, %c0_11] : memref<8x128xf32, #tpu.memory_space<vmem>>, vector<8x128xf32>
    %cst_12 = arith.constant 5.000000e-01 : f32
    %12 = vector.broadcast %cst_12 : f32 to vector<8x128xf32>
    %13 = arith.mulf %12, %10 : vector<8x128xf32>
    %14 = math.exp %13 : vector<8x128xf32>
    %15 = arith.mulf %11, %14 : vector<8x128xf32>
    %16 = arith.addf %5, %15 : vector<8x128xf32>
    %c0_13 = arith.constant 0 : index
    %c0_14 = arith.constant 0 : index
    %17 = vector.load %arg6[%c0_13, %c0_14] : memref<128x256xf32, #tpu.memory_space<vmem>>, vector<128x256xf32>
    %cst_15 = arith.constant dense<0.000000e+00> : vector<8x256xf32>
    %18 = tpu.matmul %16, %17, %cst_15 {dimension_numbers = #tpu.dot_dimension_numbers<[1], [0], [0], [1], [0, 0, 1, 1], [], []>} : vector<8x128xf32>, vector<128x256xf32>, vector<8x256xf32> -> vector<8x256xf32>
    %c0_16 = arith.constant 0 : index
    %c0_17 = arith.constant 0 : index
    %19 = vector.load %arg7[%c0_16, %c0_17] : memref<1x256xf32, #tpu.memory_space<vmem>>, vector<1x256xf32>
    %20 = vector.broadcast %19 : vector<1x256xf32> to vector<8x256xf32>
    %21 = arith.addf %18, %20 : vector<8x256xf32>
    %c0_18 = arith.constant 0 : index
    %c0_19 = arith.constant 0 : index
    %22 = vector.load %arg8[%c0_18, %c0_19] : memref<8x128xf32, #tpu.memory_space<vmem>>, vector<8x128xf32>
    tpu.vector_store %arg8[%c0_18, %c0_19], %5 {strides = array<i32>} : memref<8x128xf32, #tpu.memory_space<vmem>>, vector<8x128xf32>,
    %c0_20 = arith.constant 0 : index
    %c0_21 = arith.constant 0 : index
    %23 = vector.load %arg9[%c0_20, %c0_21] : memref<8x128xf32, #tpu.memory_space<vmem>>, vector<8x128xf32>
    tpu.vector_store %arg9[%c0_20, %c0_21], %10 {strides = array<i32>} : memref<8x128xf32, #tpu.memory_space<vmem>>, vector<8x128xf32>,
    %c0_22 = arith.constant 0 : index
    %c0_23 = arith.constant 0 : index
    %24 = vector.load %arg10[%c0_22, %c0_23] : memref<8x256xf32, #tpu.memory_space<vmem>>, vector<8x256xf32>
    tpu.vector_store %arg10[%c0_22, %c0_23], %21 {strides = array<i32>} : memref<8x256xf32, #tpu.memory_space<vmem>>, vector<8x256xf32>,
    return
  }
}

module attributes {stable_mosaic.version = 11 : i64} {
  func.func @_matmul_stats_kernel(%arg0: i32, %arg1: memref<32x256xbf16, #tpu.memory_space<vmem>>, %arg2: memref<256x256xbf16, #tpu.memory_space<vmem>>, %arg3: memref<32x256xf32, #tpu.memory_space<vmem>>, %arg4: memref<2x256xf32, #tpu.memory_space<vmem>>) attributes {dimension_semantics = [#tpu.dimension_semantics<arbitrary>], iteration_bounds = array<i64: 1>, scalar_prefetch = 0 : i64, scratch_operands = 0 : i64, tpu.core_type = #tpu.core_type<tc>, window_params = [{transform_indices = @transform_0, window_bounds = array<i64: 32, 256>}, {pipeline_mode = #tpu.pipeline_mode<synchronous>, transform_indices = @transform_1, window_bounds = array<i64: 256, 256>}, {transform_indices = @transform_2, window_bounds = array<i64: 32, 256>}, {pipeline_mode = #tpu.pipeline_mode<synchronous>, transform_indices = @transform_3, window_bounds = array<i64: 2, 256>}]} {
    %c0 = arith.constant 0 : index
    %c0_0 = arith.constant 0 : index
    %0 = vector.load %arg1[%c0, %c0_0] : memref<32x256xbf16, #tpu.memory_space<vmem>>, vector<32x256xbf16>
    %c0_1 = arith.constant 0 : index
    %c0_2 = arith.constant 0 : index
    %1 = vector.load %arg2[%c0_1, %c0_2] : memref<256x256xbf16, #tpu.memory_space<vmem>>, vector<256x256xbf16>
    %cst = arith.constant dense<0.000000e+00> : vector<32x256xf32>
    %2 = tpu.matmul %0, %1, %cst {dimension_numbers = #tpu.dot_dimension_numbers<[1], [0], [0], [1], [0, 0, 1, 1], [], []>} : vector<32x256xbf16>, vector<256x256xbf16>, vector<32x256xf32> -> vector<32x256xf32>
    %c0_3 = arith.constant 0 : index
    %c0_4 = arith.constant 0 : index
    %3 = vector.load %arg3[%c0_3, %c0_4] : memref<32x256xf32, #tpu.memory_space<vmem>>, vector<32x256xf32>
    tpu.vector_store %arg3[%c0_3, %c0_4], %2 {strides = array<i32>} : memref<32x256xf32, #tpu.memory_space<vmem>>, vector<32x256xf32>,
    %c0_i32 = arith.constant 0 : i32
    %4 = arith.cmpi eq, %arg0, %c0_i32 : i32
    %5 = arith.extui %4 : i1 to i32
    %c0_i32_5 = arith.constant 0 : i32
    %6 = arith.cmpi ne, %5, %c0_i32_5 : i32
    scf.if %6 {
      %cst_12 = arith.constant 0.000000e+00 : f32
      %16 = vector.broadcast %cst_12 : f32 to vector<2x256xf32>
      %c0_13 = arith.constant 0 : index
      %c0_14 = arith.constant 0 : index
      %17 = vector.load %arg4[%c0_13, %c0_14] : memref<2x256xf32, #tpu.memory_space<vmem>>, vector<2x256xf32>
      tpu.vector_store %arg4[%c0_13, %c0_14], %16 {strides = array<i32>} : memref<2x256xf32, #tpu.memory_space<vmem>>, vector<2x256xf32>,
    } else {
    }
    %c0_6 = arith.constant 0 : index
    %c0_7 = arith.constant 0 : index
    %7 = vector.load %arg4[%c0_6, %c0_7] : memref<2x256xf32, #tpu.memory_space<vmem>>, vector<2x256xf32>
    %cst_8 = arith.constant dense<0.000000e+00> : vector<256xf32>
    %8 = vector.multi_reduction <add>, %2, %cst_8 [0] : vector<32x256xf32> to vector<256xf32>
    %9 = vector.shape_cast %8 : vector<256xf32> to vector<1x256xf32>
    %10 = arith.mulf %2, %2 : vector<32x256xf32>
    %cst_9 = arith.constant dense<0.000000e+00> : vector<256xf32>
    %11 = vector.multi_reduction <add>, %10, %cst_9 [0] : vector<32x256xf32> to vector<256xf32>
    %12 = vector.shape_cast %11 : vector<256xf32> to vector<1x256xf32>
    %13 = tpu.concatenate %9, %12 in 0 : vector<1x256xf32>, vector<1x256xf32> -> vector<2x256xf32>
    %14 = arith.addf %7, %13 : vector<2x256xf32>
    %c0_10 = arith.constant 0 : index
    %c0_11 = arith.constant 0 : index
    %15 = vector.load %arg4[%c0_10, %c0_11] : memref<2x256xf32, #tpu.memory_space<vmem>>, vector<2x256xf32>
    tpu.vector_store %arg4[%c0_10, %c0_11], %14 {strides = array<i32>} : memref<2x256xf32, #tpu.memory_space<vmem>>, vector<2x256xf32>,
    return
  }
  func.func @transform_0(%arg0: i32) -> (i32, i32) {
    %c0_i32 = arith.constant 0 : i32
    %c0_i32_0 = arith.constant 0 : i32
    return %arg0, %c0_i32 : i32, i32
  }
  func.func @transform_1(%arg0: i32) -> (i32, i32) {
    %c0_i32 = arith.constant 0 : i32
    %c0_i32_0 = arith.constant 0 : i32
    %c0_i32_1 = arith.constant 0 : i32
    return %c0_i32, %c0_i32_0 : i32, i32
  }
  func.func @transform_2(%arg0: i32) -> (i32, i32) {
    %c0_i32 = arith.constant 0 : i32
    %c0_i32_0 = arith.constant 0 : i32
    return %arg0, %c0_i32 : i32, i32
  }
  func.func @transform_3(%arg0: i32) -> (i32, i32) {
    %c0_i32 = arith.constant 0 : i32
    %c0_i32_0 = arith.constant 0 : i32
    %c0_i32_1 = arith.constant 0 : i32
    return %c0_i32, %c0_i32_0 : i32, i32
  }
}

module attributes {stable_mosaic.version = 11 : i64} {
  func.func @_scale_shift_act_kernel(%arg0: i32, %arg1: memref<32x256xf32, #tpu.memory_space<vmem>>, %arg2: memref<1x256xf32, #tpu.memory_space<vmem>>, %arg3: memref<1x256xf32, #tpu.memory_space<vmem>>, %arg4: memref<32x256xbf16, #tpu.memory_space<vmem>>) attributes {dimension_semantics = [#tpu.dimension_semantics<parallel>], iteration_bounds = array<i64: 1>, scalar_prefetch = 0 : i64, scratch_operands = 0 : i64, tpu.core_type = #tpu.core_type<tc>, window_params = [{transform_indices = @transform_0, window_bounds = array<i64: 32, 256>}, {pipeline_mode = #tpu.pipeline_mode<synchronous>, transform_indices = @transform_1, window_bounds = array<i64: 1, 256>}, {pipeline_mode = #tpu.pipeline_mode<synchronous>, transform_indices = @transform_2, window_bounds = array<i64: 1, 256>}, {transform_indices = @transform_3, window_bounds = array<i64: 32, 256>}]} {
    %c0 = arith.constant 0 : index
    %c0_0 = arith.constant 0 : index
    %0 = vector.load %arg1[%c0, %c0_0] : memref<32x256xf32, #tpu.memory_space<vmem>>, vector<32x256xf32>
    %c0_1 = arith.constant 0 : index
    %c0_2 = arith.constant 0 : index
    %1 = vector.load %arg2[%c0_1, %c0_2] : memref<1x256xf32, #tpu.memory_space<vmem>>, vector<1x256xf32>
    %2 = vector.broadcast %1 : vector<1x256xf32> to vector<32x256xf32>
    %3 = arith.mulf %0, %2 : vector<32x256xf32>
    %c0_3 = arith.constant 0 : index
    %c0_4 = arith.constant 0 : index
    %4 = vector.load %arg3[%c0_3, %c0_4] : memref<1x256xf32, #tpu.memory_space<vmem>>, vector<1x256xf32>
    %5 = vector.broadcast %4 : vector<1x256xf32> to vector<32x256xf32>
    %6 = arith.addf %3, %5 : vector<32x256xf32>
    %cst = arith.constant 0.000000e+00 : f32
    %7 = vector.broadcast %cst : f32 to vector<32x256xf32>
    %8 = arith.maximumf %6, %7 : vector<32x256xf32>
    %9 = arith.truncf %8 : vector<32x256xf32> to vector<32x256xbf16>
    %c0_5 = arith.constant 0 : index
    %c0_6 = arith.constant 0 : index
    %10 = vector.load %arg4[%c0_5, %c0_6] : memref<32x256xbf16, #tpu.memory_space<vmem>>, vector<32x256xbf16>
    tpu.vector_store %arg4[%c0_5, %c0_6], %9 {strides = array<i32>} : memref<32x256xbf16, #tpu.memory_space<vmem>>, vector<32x256xbf16>,
    return
  }
  func.func @transform_0(%arg0: i32) -> (i32, i32) {
    %c0_i32 = arith.constant 0 : i32
    %c0_i32_0 = arith.constant 0 : i32
    return %arg0, %c0_i32 : i32, i32
  }
  func.func @transform_1(%arg0: i32) -> (i32, i32) {
    %c0_i32 = arith.constant 0 : i32
    %c0_i32_0 = arith.constant 0 : i32
    %c0_i32_1 = arith.constant 0 : i32
    return %c0_i32, %c0_i32_0 : i32, i32
  }
  func.func @transform_2(%arg0: i32) -> (i32, i32) {
    %c0_i32 = arith.constant 0 : i32
    %c0_i32_0 = arith.constant 0 : i32
    %c0_i32_1 = arith.constant 0 : i32
    return %c0_i32, %c0_i32_0 : i32, i32
  }
  func.func @transform_3(%arg0: i32) -> (i32, i32) {
    %c0_i32 = arith.constant 0 : i32
    %c0_i32_0 = arith.constant 0 : i32
    return %arg0, %c0_i32 : i32, i32
  }
}

module attributes {stable_mosaic.version = 11 : i64} {
  func.func @_matmul_stats_kernel(%arg0: i32, %arg1: memref<112x256xbf16, #tpu.memory_space<vmem>>, %arg2: memref<256x128xbf16, #tpu.memory_space<vmem>>, %arg3: memref<112x128xf32, #tpu.memory_space<vmem>>, %arg4: memref<2x128xf32, #tpu.memory_space<vmem>>) attributes {dimension_semantics = [#tpu.dimension_semantics<arbitrary>], iteration_bounds = array<i64: 1>, scalar_prefetch = 0 : i64, scratch_operands = 0 : i64, tpu.core_type = #tpu.core_type<tc>, window_params = [{transform_indices = @transform_0, window_bounds = array<i64: 112, 256>}, {pipeline_mode = #tpu.pipeline_mode<synchronous>, transform_indices = @transform_1, window_bounds = array<i64: 256, 128>}, {transform_indices = @transform_2, window_bounds = array<i64: 112, 128>}, {pipeline_mode = #tpu.pipeline_mode<synchronous>, transform_indices = @transform_3, window_bounds = array<i64: 2, 128>}]} {
    %c0 = arith.constant 0 : index
    %c0_0 = arith.constant 0 : index
    %0 = vector.load %arg1[%c0, %c0_0] : memref<112x256xbf16, #tpu.memory_space<vmem>>, vector<112x256xbf16>
    %c0_1 = arith.constant 0 : index
    %c0_2 = arith.constant 0 : index
    %1 = vector.load %arg2[%c0_1, %c0_2] : memref<256x128xbf16, #tpu.memory_space<vmem>>, vector<256x128xbf16>
    %cst = arith.constant dense<0.000000e+00> : vector<112x128xf32>
    %2 = tpu.matmul %0, %1, %cst {dimension_numbers = #tpu.dot_dimension_numbers<[1], [0], [0], [1], [0, 0, 1, 1], [], []>} : vector<112x256xbf16>, vector<256x128xbf16>, vector<112x128xf32> -> vector<112x128xf32>
    %c0_3 = arith.constant 0 : index
    %c0_4 = arith.constant 0 : index
    %3 = vector.load %arg3[%c0_3, %c0_4] : memref<112x128xf32, #tpu.memory_space<vmem>>, vector<112x128xf32>
    tpu.vector_store %arg3[%c0_3, %c0_4], %2 {strides = array<i32>} : memref<112x128xf32, #tpu.memory_space<vmem>>, vector<112x128xf32>,
    %c0_i32 = arith.constant 0 : i32
    %4 = arith.cmpi eq, %arg0, %c0_i32 : i32
    %5 = arith.extui %4 : i1 to i32
    %c0_i32_5 = arith.constant 0 : i32
    %6 = arith.cmpi ne, %5, %c0_i32_5 : i32
    scf.if %6 {
      %cst_12 = arith.constant 0.000000e+00 : f32
      %16 = vector.broadcast %cst_12 : f32 to vector<2x128xf32>
      %c0_13 = arith.constant 0 : index
      %c0_14 = arith.constant 0 : index
      %17 = vector.load %arg4[%c0_13, %c0_14] : memref<2x128xf32, #tpu.memory_space<vmem>>, vector<2x128xf32>
      tpu.vector_store %arg4[%c0_13, %c0_14], %16 {strides = array<i32>} : memref<2x128xf32, #tpu.memory_space<vmem>>, vector<2x128xf32>,
    } else {
    }
    %c0_6 = arith.constant 0 : index
    %c0_7 = arith.constant 0 : index
    %7 = vector.load %arg4[%c0_6, %c0_7] : memref<2x128xf32, #tpu.memory_space<vmem>>, vector<2x128xf32>
    %cst_8 = arith.constant dense<0.000000e+00> : vector<128xf32>
    %8 = vector.multi_reduction <add>, %2, %cst_8 [0] : vector<112x128xf32> to vector<128xf32>
    %9 = vector.shape_cast %8 : vector<128xf32> to vector<1x128xf32>
    %10 = arith.mulf %2, %2 : vector<112x128xf32>
    %cst_9 = arith.constant dense<0.000000e+00> : vector<128xf32>
    %11 = vector.multi_reduction <add>, %10, %cst_9 [0] : vector<112x128xf32> to vector<128xf32>
    %12 = vector.shape_cast %11 : vector<128xf32> to vector<1x128xf32>
    %13 = tpu.concatenate %9, %12 in 0 : vector<1x128xf32>, vector<1x128xf32> -> vector<2x128xf32>
    %14 = arith.addf %7, %13 : vector<2x128xf32>
    %c0_10 = arith.constant 0 : index
    %c0_11 = arith.constant 0 : index
    %15 = vector.load %arg4[%c0_10, %c0_11] : memref<2x128xf32, #tpu.memory_space<vmem>>, vector<2x128xf32>
    tpu.vector_store %arg4[%c0_10, %c0_11], %14 {strides = array<i32>} : memref<2x128xf32, #tpu.memory_space<vmem>>, vector<2x128xf32>,
    return
  }
  func.func @transform_0(%arg0: i32) -> (i32, i32) {
    %c0_i32 = arith.constant 0 : i32
    %c0_i32_0 = arith.constant 0 : i32
    return %arg0, %c0_i32 : i32, i32
  }
  func.func @transform_1(%arg0: i32) -> (i32, i32) {
    %c0_i32 = arith.constant 0 : i32
    %c0_i32_0 = arith.constant 0 : i32
    %c0_i32_1 = arith.constant 0 : i32
    return %c0_i32, %c0_i32_0 : i32, i32
  }
  func.func @transform_2(%arg0: i32) -> (i32, i32) {
    %c0_i32 = arith.constant 0 : i32
    %c0_i32_0 = arith.constant 0 : i32
    return %arg0, %c0_i32 : i32, i32
  }
  func.func @transform_3(%arg0: i32) -> (i32, i32) {
    %c0_i32 = arith.constant 0 : i32
    %c0_i32_0 = arith.constant 0 : i32
    %c0_i32_1 = arith.constant 0 : i32
    return %c0_i32, %c0_i32_0 : i32, i32
  }
}

module attributes {stable_mosaic.version = 11 : i64} {
  func.func @_scale_shift_act_kernel(%arg0: i32, %arg1: memref<112x128xf32, #tpu.memory_space<vmem>>, %arg2: memref<1x128xf32, #tpu.memory_space<vmem>>, %arg3: memref<1x128xf32, #tpu.memory_space<vmem>>, %arg4: memref<112x128xbf16, #tpu.memory_space<vmem>>) attributes {dimension_semantics = [#tpu.dimension_semantics<parallel>], iteration_bounds = array<i64: 1>, scalar_prefetch = 0 : i64, scratch_operands = 0 : i64, tpu.core_type = #tpu.core_type<tc>, window_params = [{transform_indices = @transform_0, window_bounds = array<i64: 112, 128>}, {pipeline_mode = #tpu.pipeline_mode<synchronous>, transform_indices = @transform_1, window_bounds = array<i64: 1, 128>}, {pipeline_mode = #tpu.pipeline_mode<synchronous>, transform_indices = @transform_2, window_bounds = array<i64: 1, 128>}, {transform_indices = @transform_3, window_bounds = array<i64: 112, 128>}]} {
    %c0 = arith.constant 0 : index
    %c0_0 = arith.constant 0 : index
    %0 = vector.load %arg1[%c0, %c0_0] : memref<112x128xf32, #tpu.memory_space<vmem>>, vector<112x128xf32>
    %c0_1 = arith.constant 0 : index
    %c0_2 = arith.constant 0 : index
    %1 = vector.load %arg2[%c0_1, %c0_2] : memref<1x128xf32, #tpu.memory_space<vmem>>, vector<1x128xf32>
    %2 = vector.broadcast %1 : vector<1x128xf32> to vector<112x128xf32>
    %3 = arith.mulf %0, %2 : vector<112x128xf32>
    %c0_3 = arith.constant 0 : index
    %c0_4 = arith.constant 0 : index
    %4 = vector.load %arg3[%c0_3, %c0_4] : memref<1x128xf32, #tpu.memory_space<vmem>>, vector<1x128xf32>
    %5 = vector.broadcast %4 : vector<1x128xf32> to vector<112x128xf32>
    %6 = arith.addf %3, %5 : vector<112x128xf32>
    %cst = arith.constant 0.000000e+00 : f32
    %7 = vector.broadcast %cst : f32 to vector<112x128xf32>
    %8 = arith.maximumf %6, %7 : vector<112x128xf32>
    %9 = arith.truncf %8 : vector<112x128xf32> to vector<112x128xbf16>
    %c0_5 = arith.constant 0 : index
    %c0_6 = arith.constant 0 : index
    %10 = vector.load %arg4[%c0_5, %c0_6] : memref<112x128xbf16, #tpu.memory_space<vmem>>, vector<112x128xbf16>
    tpu.vector_store %arg4[%c0_5, %c0_6], %9 {strides = array<i32>} : memref<112x128xbf16, #tpu.memory_space<vmem>>, vector<112x128xbf16>,
    return
  }
  func.func @transform_0(%arg0: i32) -> (i32, i32) {
    %c0_i32 = arith.constant 0 : i32
    %c0_i32_0 = arith.constant 0 : i32
    return %arg0, %c0_i32 : i32, i32
  }
  func.func @transform_1(%arg0: i32) -> (i32, i32) {
    %c0_i32 = arith.constant 0 : i32
    %c0_i32_0 = arith.constant 0 : i32
    %c0_i32_1 = arith.constant 0 : i32
    return %c0_i32, %c0_i32_0 : i32, i32
  }
  func.func @transform_2(%arg0: i32) -> (i32, i32) {
    %c0_i32 = arith.constant 0 : i32
    %c0_i32_0 = arith.constant 0 : i32
    %c0_i32_1 = arith.constant 0 : i32
    return %c0_i32, %c0_i32_0 : i32, i32
  }
  func.func @transform_3(%arg0: i32) -> (i32, i32) {
    %c0_i32 = arith.constant 0 : i32
    %c0_i32_0 = arith.constant 0 : i32
    return %arg0, %c0_i32 : i32, i32
  }
}

module attributes {stable_mosaic.version = 11 : i64} {
  func.func @_matmul_stats_kernel(%arg0: i32, %arg1: memref<512x128xbf16, #tpu.memory_space<vmem>>, %arg2: memref<128x128xbf16, #tpu.memory_space<vmem>>, %arg3: memref<512x128xf32, #tpu.memory_space<vmem>>, %arg4: memref<2x128xf32, #tpu.memory_space<vmem>>) attributes {dimension_semantics = [#tpu.dimension_semantics<arbitrary>], iteration_bounds = array<i64: 1>, scalar_prefetch = 0 : i64, scratch_operands = 0 : i64, tpu.core_type = #tpu.core_type<tc>, window_params = [{transform_indices = @transform_0, window_bounds = array<i64: 512, 128>}, {pipeline_mode = #tpu.pipeline_mode<synchronous>, transform_indices = @transform_1, window_bounds = array<i64: 128, 128>}, {transform_indices = @transform_2, window_bounds = array<i64: 512, 128>}, {pipeline_mode = #tpu.pipeline_mode<synchronous>, transform_indices = @transform_3, window_bounds = array<i64: 2, 128>}]} {
    %c0 = arith.constant 0 : index
    %c0_0 = arith.constant 0 : index
    %0 = vector.load %arg1[%c0, %c0_0] : memref<512x128xbf16, #tpu.memory_space<vmem>>, vector<512x128xbf16>
    %c0_1 = arith.constant 0 : index
    %c0_2 = arith.constant 0 : index
    %1 = vector.load %arg2[%c0_1, %c0_2] : memref<128x128xbf16, #tpu.memory_space<vmem>>, vector<128x128xbf16>
    %cst = arith.constant dense<0.000000e+00> : vector<512x128xf32>
    %2 = tpu.matmul %0, %1, %cst {dimension_numbers = #tpu.dot_dimension_numbers<[1], [0], [0], [1], [0, 0, 1, 1], [], []>} : vector<512x128xbf16>, vector<128x128xbf16>, vector<512x128xf32> -> vector<512x128xf32>
    %c0_3 = arith.constant 0 : index
    %c0_4 = arith.constant 0 : index
    %3 = vector.load %arg3[%c0_3, %c0_4] : memref<512x128xf32, #tpu.memory_space<vmem>>, vector<512x128xf32>
    tpu.vector_store %arg3[%c0_3, %c0_4], %2 {strides = array<i32>} : memref<512x128xf32, #tpu.memory_space<vmem>>, vector<512x128xf32>,
    %c0_i32 = arith.constant 0 : i32
    %4 = arith.cmpi eq, %arg0, %c0_i32 : i32
    %5 = arith.extui %4 : i1 to i32
    %c0_i32_5 = arith.constant 0 : i32
    %6 = arith.cmpi ne, %5, %c0_i32_5 : i32
    scf.if %6 {
      %cst_12 = arith.constant 0.000000e+00 : f32
      %16 = vector.broadcast %cst_12 : f32 to vector<2x128xf32>
      %c0_13 = arith.constant 0 : index
      %c0_14 = arith.constant 0 : index
      %17 = vector.load %arg4[%c0_13, %c0_14] : memref<2x128xf32, #tpu.memory_space<vmem>>, vector<2x128xf32>
      tpu.vector_store %arg4[%c0_13, %c0_14], %16 {strides = array<i32>} : memref<2x128xf32, #tpu.memory_space<vmem>>, vector<2x128xf32>,
    } else {
    }
    %c0_6 = arith.constant 0 : index
    %c0_7 = arith.constant 0 : index
    %7 = vector.load %arg4[%c0_6, %c0_7] : memref<2x128xf32, #tpu.memory_space<vmem>>, vector<2x128xf32>
    %cst_8 = arith.constant dense<0.000000e+00> : vector<128xf32>
    %8 = vector.multi_reduction <add>, %2, %cst_8 [0] : vector<512x128xf32> to vector<128xf32>
    %9 = vector.shape_cast %8 : vector<128xf32> to vector<1x128xf32>
    %10 = arith.mulf %2, %2 : vector<512x128xf32>
    %cst_9 = arith.constant dense<0.000000e+00> : vector<128xf32>
    %11 = vector.multi_reduction <add>, %10, %cst_9 [0] : vector<512x128xf32> to vector<128xf32>
    %12 = vector.shape_cast %11 : vector<128xf32> to vector<1x128xf32>
    %13 = tpu.concatenate %9, %12 in 0 : vector<1x128xf32>, vector<1x128xf32> -> vector<2x128xf32>
    %14 = arith.addf %7, %13 : vector<2x128xf32>
    %c0_10 = arith.constant 0 : index
    %c0_11 = arith.constant 0 : index
    %15 = vector.load %arg4[%c0_10, %c0_11] : memref<2x128xf32, #tpu.memory_space<vmem>>, vector<2x128xf32>
    tpu.vector_store %arg4[%c0_10, %c0_11], %14 {strides = array<i32>} : memref<2x128xf32, #tpu.memory_space<vmem>>, vector<2x128xf32>,
    return
  }
  func.func @transform_0(%arg0: i32) -> (i32, i32) {
    %c0_i32 = arith.constant 0 : i32
    %c0_i32_0 = arith.constant 0 : i32
    return %arg0, %c0_i32 : i32, i32
  }
  func.func @transform_1(%arg0: i32) -> (i32, i32) {
    %c0_i32 = arith.constant 0 : i32
    %c0_i32_0 = arith.constant 0 : i32
    %c0_i32_1 = arith.constant 0 : i32
    return %c0_i32, %c0_i32_0 : i32, i32
  }
  func.func @transform_2(%arg0: i32) -> (i32, i32) {
    %c0_i32 = arith.constant 0 : i32
    %c0_i32_0 = arith.constant 0 : i32
    return %arg0, %c0_i32 : i32, i32
  }
  func.func @transform_3(%arg0: i32) -> (i32, i32) {
    %c0_i32 = arith.constant 0 : i32
    %c0_i32_0 = arith.constant 0 : i32
    %c0_i32_1 = arith.constant 0 : i32
    return %c0_i32, %c0_i32_0 : i32, i32
  }
}

module attributes {stable_mosaic.version = 11 : i64} {
  func.func @_scale_shift_act_kernel(%arg0: i32, %arg1: memref<512x128xf32, #tpu.memory_space<vmem>>, %arg2: memref<1x128xf32, #tpu.memory_space<vmem>>, %arg3: memref<1x128xf32, #tpu.memory_space<vmem>>, %arg4: memref<512x128xbf16, #tpu.memory_space<vmem>>) attributes {dimension_semantics = [#tpu.dimension_semantics<parallel>], iteration_bounds = array<i64: 1>, scalar_prefetch = 0 : i64, scratch_operands = 0 : i64, tpu.core_type = #tpu.core_type<tc>, window_params = [{transform_indices = @transform_0, window_bounds = array<i64: 512, 128>}, {pipeline_mode = #tpu.pipeline_mode<synchronous>, transform_indices = @transform_1, window_bounds = array<i64: 1, 128>}, {pipeline_mode = #tpu.pipeline_mode<synchronous>, transform_indices = @transform_2, window_bounds = array<i64: 1, 128>}, {transform_indices = @transform_3, window_bounds = array<i64: 512, 128>}]} {
    %c0 = arith.constant 0 : index
    %c0_0 = arith.constant 0 : index
    %0 = vector.load %arg1[%c0, %c0_0] : memref<512x128xf32, #tpu.memory_space<vmem>>, vector<512x128xf32>
    %c0_1 = arith.constant 0 : index
    %c0_2 = arith.constant 0 : index
    %1 = vector.load %arg2[%c0_1, %c0_2] : memref<1x128xf32, #tpu.memory_space<vmem>>, vector<1x128xf32>
    %2 = vector.broadcast %1 : vector<1x128xf32> to vector<512x128xf32>
    %3 = arith.mulf %0, %2 : vector<512x128xf32>
    %c0_3 = arith.constant 0 : index
    %c0_4 = arith.constant 0 : index
    %4 = vector.load %arg3[%c0_3, %c0_4] : memref<1x128xf32, #tpu.memory_space<vmem>>, vector<1x128xf32>
    %5 = vector.broadcast %4 : vector<1x128xf32> to vector<512x128xf32>
    %6 = arith.addf %3, %5 : vector<512x128xf32>
    %cst = arith.constant 0.000000e+00 : f32
    %7 = vector.broadcast %cst : f32 to vector<512x128xf32>
    %8 = arith.maximumf %6, %7 : vector<512x128xf32>
    %9 = arith.truncf %8 : vector<512x128xf32> to vector<512x128xbf16>
    %c0_5 = arith.constant 0 : index
    %c0_6 = arith.constant 0 : index
    %10 = vector.load %arg4[%c0_5, %c0_6] : memref<512x128xbf16, #tpu.memory_space<vmem>>, vector<512x128xbf16>
    tpu.vector_store %arg4[%c0_5, %c0_6], %9 {strides = array<i32>} : memref<512x128xbf16, #tpu.memory_space<vmem>>, vector<512x128xbf16>,
    return
  }
  func.func @transform_0(%arg0: i32) -> (i32, i32) {
    %c0_i32 = arith.constant 0 : i32
    %c0_i32_0 = arith.constant 0 : i32
    return %arg0, %c0_i32 : i32, i32
  }
  func.func @transform_1(%arg0: i32) -> (i32, i32) {
    %c0_i32 = arith.constant 0 : i32
    %c0_i32_0 = arith.constant 0 : i32
    %c0_i32_1 = arith.constant 0 : i32
    return %c0_i32, %c0_i32_0 : i32, i32
  }
  func.func @transform_2(%arg0: i32) -> (i32, i32) {
    %c0_i32 = arith.constant 0 : i32
    %c0_i32_0 = arith.constant 0 : i32
    %c0_i32_1 = arith.constant 0 : i32
    return %c0_i32, %c0_i32_0 : i32, i32
  }
  func.func @transform_3(%arg0: i32) -> (i32, i32) {
    %c0_i32 = arith.constant 0 : i32
    %c0_i32_0 = arith.constant 0 : i32
    return %arg0, %c0_i32 : i32, i32
  }
}

module attributes {stable_mosaic.version = 11 : i64} {
  func.func @_scale_shift_act_kernel(%arg0: i32, %arg1: memref<1024x128xf32, #tpu.memory_space<vmem>>, %arg2: memref<1x128xf32, #tpu.memory_space<vmem>>, %arg3: memref<1x128xf32, #tpu.memory_space<vmem>>, %arg4: memref<1024x128xf32, #tpu.memory_space<vmem>>) attributes {dimension_semantics = [#tpu.dimension_semantics<parallel>], iteration_bounds = array<i64: 2>, scalar_prefetch = 0 : i64, scratch_operands = 0 : i64, tpu.core_type = #tpu.core_type<tc>, window_params = [{transform_indices = @transform_0, window_bounds = array<i64: 1024, 128>}, {pipeline_mode = #tpu.pipeline_mode<synchronous>, transform_indices = @transform_1, window_bounds = array<i64: 1, 128>}, {pipeline_mode = #tpu.pipeline_mode<synchronous>, transform_indices = @transform_2, window_bounds = array<i64: 1, 128>}, {transform_indices = @transform_3, window_bounds = array<i64: 1024, 128>}]} {
    %c0 = arith.constant 0 : index
    %c0_0 = arith.constant 0 : index
    %0 = vector.load %arg1[%c0, %c0_0] : memref<1024x128xf32, #tpu.memory_space<vmem>>, vector<1024x128xf32>
    %c0_1 = arith.constant 0 : index
    %c0_2 = arith.constant 0 : index
    %1 = vector.load %arg2[%c0_1, %c0_2] : memref<1x128xf32, #tpu.memory_space<vmem>>, vector<1x128xf32>
    %2 = vector.broadcast %1 : vector<1x128xf32> to vector<1024x128xf32>
    %3 = arith.mulf %0, %2 : vector<1024x128xf32>
    %c0_3 = arith.constant 0 : index
    %c0_4 = arith.constant 0 : index
    %4 = vector.load %arg3[%c0_3, %c0_4] : memref<1x128xf32, #tpu.memory_space<vmem>>, vector<1x128xf32>
    %5 = vector.broadcast %4 : vector<1x128xf32> to vector<1024x128xf32>
    %6 = arith.addf %3, %5 : vector<1024x128xf32>
    %cst = arith.constant 0.000000e+00 : f32
    %7 = vector.broadcast %cst : f32 to vector<1024x128xf32>
    %8 = arith.maximumf %6, %7 : vector<1024x128xf32>
    %9 = arith.negf %8 : vector<1024x128xf32>
    %10 = math.exp %9 : vector<1024x128xf32>
    %cst_5 = arith.constant 1.000000e+00 : f32
    %11 = vector.broadcast %cst_5 : f32 to vector<1024x128xf32>
    %12 = arith.addf %11, %10 : vector<1024x128xf32>
    %13 = arith.divf %11, %12 : vector<1024x128xf32>
    %c0_6 = arith.constant 0 : index
    %c0_7 = arith.constant 0 : index
    %14 = vector.load %arg4[%c0_6, %c0_7] : memref<1024x128xf32, #tpu.memory_space<vmem>>, vector<1024x128xf32>
    tpu.vector_store %arg4[%c0_6, %c0_7], %13 {strides = array<i32>} : memref<1024x128xf32, #tpu.memory_space<vmem>>, vector<1024x128xf32>,
    return
  }
  func.func @transform_0(%arg0: i32) -> (i32, i32) {
    %c0_i32 = arith.constant 0 : i32
    %c0_i32_0 = arith.constant 0 : i32
    return %arg0, %c0_i32 : i32, i32
  }
  func.func @transform_1(%arg0: i32) -> (i32, i32) {
    %c0_i32 = arith.constant 0 : i32
    %c0_i32_0 = arith.constant 0 : i32
    %c0_i32_1 = arith.constant 0 : i32
    return %c0_i32, %c0_i32_0 : i32, i32
  }
  func.func @transform_2(%arg0: i32) -> (i32, i32) {
    %c0_i32 = arith.constant 0 : i32
    %c0_i32_0 = arith.constant 0 : i32
    %c0_i32_1 = arith.constant 0 : i32
    return %c0_i32, %c0_i32_0 : i32, i32
  }
  func.func @transform_3(%arg0: i32) -> (i32, i32) {
    %c0_i32 = arith.constant 0 : i32
    %c0_i32_0 = arith.constant 0 : i32
    return %arg0, %c0_i32 : i32, i32
  }
}

</mosaic_0001>

<bundles_post_ra>
// kernel: beta_vae_forward.18
= control target key start
LH: loop header
LB: loop body
LE: loop exit
PB: predicated region body
PF: predicated region fallthrough
CT: control target
= control target key end

     0   :  { %s2086_s12 = smov 0   ;;  %s2579_s0 = inlined_call_operand.vmem [shape: f32[2048,128], index: 0, kind: input, shape index: {}]   ;;  %s2580_s1 = inlined_call_operand.vmem [shape: f32[1,128], index: 1, kind: input, shape index: {}]   ;;  %s2581_s2 = inlined_call_operand.vmem [shape: f32[1,128], index: 2, kind: input, shape index: {}]   ;;  %s2582_s3 = inlined_call_operand.vmem [shape: bf16[2048,128], index: 3, kind: output, shape index: {}]  }
   0x1 LB: > { %s1396_s13 = sadd.s32 4294967295, %s2064_s12   ;;  %p1400_p0 = scmp.ge.s32.totalorder %s2064_s12, 1  ;;  %s2064_s12 = sphi %s2086_s12, %s13_s12  }
   0x2   : > { %p138_p1 = scmp.lt.s32.totalorder %s2064_s12, 3 }
   0x4   : > { %p139_p2 = pnand %p1400_p0, %p138_p1 }
   0x5   : > { %s1401_s14 = sshll.u32 (!%p139_p2), %s1396_s13, 7  ;;  %v2100_v0 = vld [vmem:[%s2580_s1] ss:$0 sm:$0xff] (!%p139_p2) }
   0x6   : > { %142 = sbr.rel (%p139_p2) target bundleno = 135 (0x87), region = 32  ;;  %p163_p3 = scmp.lt.s32.totalorder (!%p139_p2), %s1401_s14, 255  ;;  %v2110_v1 = vld [vmem:[%s2581_s2] ss:$0 sm:$0xff] (!%p139_p2) }
   0xd   : > { %s2584_s14 = smov (!%p163_p3, %s1401_s14), 255 }
   0xe   : > { %s1402_s15 = sshll.u32 %s2584_s14, 3  ;;  %s1404_s23 = sshll.u32 %s2584_s14, 2 }
   0xf   : > { %s2105_s20 = scalar_lea.vmem %s2579_s0, %s1402_s15  ;;  %s2142_s26 = scalar_lea.vmem %s2582_s3, %s1404_s23 }
  0x10   : > { %v174_v2 = vld [vmem:[%s2105_s20] sm:$0xff]  ;;  %v175_v3 = vld [vmem:[%s2105_s20 + $0x8] sm:$0xff]  ;;  %v176_v4 = vld [vmem:[%s2105_s20 + $0x10] sm:$0xff] }
  0x11   : > { %v309_v5 = vmul.f32 %v2100_v0, %v174_v2  ;;  %v310_v6 = vmul.f32 %v2100_v0, %v175_v3  ;;  %v177_v7 = vld [vmem:[%s2105_s20 + $0x18] sm:$0xff]  ;;  %v311_v8 = vmul.f32 %v2100_v0, %v176_v4  ;;  %v178_v9 = vld [vmem:[%s2105_s20 + $0x20] sm:$0xff]  ;;  %v179_v10 = vld [vmem:[%s2105_s20 + $0x28] sm:$0xff] }
  0x12   : > { %v312_v11 = vmul.f32 %v2100_v0, %v177_v7  ;;  %v313_v12 = vmul.f32 %v2100_v0, %v178_v9  ;;  %v314_v13 = vmul.f32 %v2100_v0, %v179_v10  ;;  %v180_v14 = vld [vmem:[%s2105_s20 + $0x30] sm:$0xff]  ;;  %v181_v15 = vld [vmem:[%s2105_s20 + $0x38] sm:$0xff]  ;;  %v182_v24 = vld [vmem:[%s2105_s20 + $0x40] sm:$0xff] }
  0x13   : > { %v444_v16 = vadd.f32 %v2110_v1, %v309_v5  ;;  %v445_v17 = vadd.f32 %v2110_v1, %v310_v6  ;;  %v446_v18 = vadd.f32 %v2110_v1, %v311_v8  ;;  %v315_v19 = vmul.f32 %v2100_v0, %v180_v14  ;;  %v183_v25 = vld [vmem:[%s2105_s20 + $0x48] sm:$0xff]  ;;  %v184_v30 = vld [vmem:[%s2105_s20 + $0x50] sm:$0xff]  ;;  %v185_v35 = vld [vmem:[%s2105_s20 + $0x58] sm:$0xff] }
  0x14   : > { %v447_v20 = vadd.f32 %v2110_v1, %v312_v11  ;;  %v448_v21 = vadd.f32 %v2110_v1, %v313_v12  ;;  %v449_v22 = vadd.f32 %v2110_v1, %v314_v13  ;;  %v316_v23 = vmul.f32 %v2100_v0, %v181_v15  ;;  %v186_v36 = vld [vmem:[%s2105_s20 + $0x60] sm:$0xff]  ;;  %v187_v41 = vld [vmem:[%s2105_s20 + $0x68] sm:$0xff]  ;;  %v188_v42 = vld [vmem:[%s2105_s20 + $0x70] sm:$0xff] }
  0x15   : > { %v572_v26 = vmax.f32 %v444_v16, 0.0  ;;  %v573_v27 = vmax.f32 %v445_v17, 0.0  ;;  %v574_v28 = vmax.f32 %v446_v18, 0.0  ;;  %v450_v29 = vadd.f32 %v2110_v1, %v315_v19  ;;  %v189_v51 = vld [vmem:[%s2105_s20 + $0x78] sm:$0xff]  ;;  %v190_v56 = vld [vmem:[%s2105_s20 + $0x80] sm:$0xff]  ;;  %v191_v61 = vld [vmem:[%s2105_s20 + $0x88] sm:$0xff] }
  0x16   : > { %v575_v31 = vmax.f32 %v447_v20, 0.0  ;;  %v576_v32 = vmax.f32 %v448_v21, 0.0  ;;  %v577_v33 = vmax.f32 %v449_v22, 0.0  ;;  %v451_v34 = vadd.f32 %v2110_v1, %v316_v23  ;;  %v192_v4 = vld [vmem:[%s2105_s20 + $0x90] sm:$0xff]  ;;  %v193_v5 = vld [vmem:[%s2105_s20 + $0x98] sm:$0xff]  ;;  %v194_v10 = vld [vmem:[%s2105_s20 + $0xa0] sm:$0xff] }
  0x17   : > { %v1668_v37 = vpack.c.bf16 %v573_v27, %v572_v26  ;;  %v578_v38 = vmax.f32 %v450_v29, 0.0  ;;  %v317_v39 = vmul.f32 %v2100_v0, %v182_v24  ;;  %v318_v40 = vmul.f32 %v2100_v0, %v183_v25  ;;  %v195_v15 = vld [vmem:[%s2105_s20 + $0xa8] sm:$0xff]  ;;  %v196_v20 = vld [vmem:[%s2105_s20 + $0xb0] sm:$0xff]  ;;  %v197_v25 = vld [vmem:[%s2105_s20 + $0xb8] sm:$0xff] }
  0x18   : > { %v1673_v43 = vpack.c.bf16 %v575_v31, %v574_v28  ;;  %v1678_v44 = vpack.c.bf16 %v577_v33, %v576_v32  ;;  %v579_v45 = vmax.f32 %v451_v34, 0.0  ;;  %v319_v46 = vmul.f32 %v2100_v0, %v184_v30  ;;  %v198_v30 = vld [vmem:[%s2105_s20 + $0xc0] sm:$0xff] }
  0x19   : > { %1669 = vst [vmem:[%s2142_s26] sm:$0xff] %v1668_v37   ;;  %v452_v47 = vadd.f32 %v2110_v1, %v317_v39  ;;  %v453_v48 = vadd.f32 %v2110_v1, %v318_v40  ;;  %v320_v49 = vmul.f32 %v2100_v0, %v185_v35  ;;  %v321_v50 = vmul.f32 %v2100_v0, %v186_v36  ;;  %v199_v35 = vld [vmem:[%s2105_s20 + $0xc8] sm:$0xff]  ;;  %v200_v40 = vld [vmem:[%s2105_s20 + $0xd0] sm:$0xff] }
  0x1a   : > { %1985 = vst [vmem:[%s2142_s26 + $0x8] sm:$0xff] %v1673_v43   ;;  %1986 = vst [vmem:[%s2142_s26 + $0x10] sm:$0xff] %v1678_v44   ;;  %v1683_v52 = vpack.c.bf16 %v579_v45, %v578_v38  ;;  %v454_v53 = vadd.f32 %v2110_v1, %v319_v46  ;;  %v322_v54 = vmul.f32 %v2100_v0, %v187_v41  ;;  %v201_v41 = vld [vmem:[%s2105_s20 + $0xd8] sm:$0xff]  ;;  %v202_v46 = vld [vmem:[%s2105_s20 + $0xe0] sm:$0xff] }
  0x1b   : > { %v323_v55 = vmul.f32 %v2100_v0, %v188_v42  ;;  %v580_v57 = vmax.f32 %v452_v47, 0.0  ;;  %v581_v58 = vmax.f32 %v453_v48, 0.0  ;;  %v455_v59 = vadd.f32 %v2110_v1, %v320_v49 }
  0x1c   : > { %v456_v60 = vadd.f32 %v2110_v1, %v321_v50  ;;  %1987 = vst [vmem:[%s2142_s26 + $0x18] sm:$0xff] %v1683_v52   ;;  %v582_v62 = vmax.f32 %v454_v53, 0.0  ;;  %v457_v63 = vadd.f32 %v2110_v1, %v322_v54  ;;  %v324_v2 = vmul.f32 %v2100_v0, %v189_v51  ;;  %v203_v51 = vld [vmem:[%s2105_s20 + $0xe8] sm:$0xff] }
  0x1d   : > { %v458_v3 = vadd.f32 %v2110_v1, %v323_v55  ;;  %v1688_v6 = vpack.c.bf16 %v581_v58, %v580_v57  ;;  %v583_v7 = vmax.f32 %v455_v59, 0.0  ;;  %v325_v9 = vmul.f32 %v2100_v0, %v190_v56  ;;  %v204_v56 = vld [vmem:[%s2105_s20 + $0xf0] sm:$0xff] }
  0x1e   : > { %v584_v8 = vmax.f32 %v456_v60, 0.0  ;;  %v585_v11 = vmax.f32 %v457_v63, 0.0  ;;  %v459_v12 = vadd.f32 %v2110_v1, %v324_v2  ;;  %v326_v14 = vmul.f32 %v2100_v0, %v191_v61  ;;  %v205_v61 = vld [vmem:[%s2105_s20 + $0xf8] sm:$0xff] }
  0x1f   : > { %v586_v13 = vmax.f32 %v458_v3, 0.0  ;;  %1988 = vst [vmem:[%s2142_s26 + $0x20] sm:$0xff] %v1688_v6   ;;  %v1693_v16 = vpack.c.bf16 %v583_v7, %v582_v62  ;;  %v460_v17 = vadd.f32 %v2110_v1, %v325_v9  ;;  %v327_v18 = vmul.f32 %v2100_v0, %v192_v4  ;;  %v206_v4 = vld [vmem:[%s2105_s20 + $0x100] sm:$0xff]  ;;  %v207_v9 = vld [vmem:[%s2105_s20 + $0x108] sm:$0xff] }
  0x20   : > { %v328_v19 = vmul.f32 %v2100_v0, %v193_v5  ;;  %v1698_v21 = vpack.c.bf16 %v585_v11, %v584_v8  ;;  %v587_v22 = vmax.f32 %v459_v12, 0.0  ;;  %v461_v23 = vadd.f32 %v2110_v1, %v326_v14  ;;  %v208_v14 = vld [vmem:[%s2105_s20 + $0x110] sm:$0xff] }
  0x21   : > { %v329_v24 = vmul.f32 %v2100_v0, %v194_v10  ;;  %1989 = vst [vmem:[%s2142_s26 + $0x28] sm:$0xff] %v1693_v16   ;;  %v588_v26 = vmax.f32 %v460_v17, 0.0  ;;  %v462_v27 = vadd.f32 %v2110_v1, %v327_v18  ;;  %v330_v29 = vmul.f32 %v2100_v0, %v195_v15  ;;  %v209_v15 = vld [vmem:[%s2105_s20 + $0x118] sm:$0xff] }
  0x22   : > { %v463_v28 = vadd.f32 %v2110_v1, %v328_v19  ;;  %1990 = vst [vmem:[%s2142_s26 + $0x30] sm:$0xff] %v1698_v21   ;;  %v1703_v31 = vpack.c.bf16 %v587_v22, %v586_v13  ;;  %v589_v32 = vmax.f32 %v461_v23, 0.0  ;;  %v331_v34 = vmul.f32 %v2100_v0, %v196_v20  ;;  %v210_v20 = vld [vmem:[%s2105_s20 + $0x120] sm:$0xff] }
  0x23   : > { %v464_v33 = vadd.f32 %v2110_v1, %v329_v24  ;;  %v590_v36 = vmax.f32 %v462_v27, 0.0  ;;  %v465_v38 = vadd.f32 %v2110_v1, %v330_v29  ;;  %v332_v39 = vmul.f32 %v2100_v0, %v197_v25  ;;  %v211_v25 = vld [vmem:[%s2105_s20 + $0x128] sm:$0xff] }
  0x24   : > { %v591_v37 = vmax.f32 %v463_v28, 0.0  ;;  %1991 = vst [vmem:[%s2142_s26 + $0x38] sm:$0xff] %v1703_v31   ;;  %v1708_v42 = vpack.c.bf16 %v589_v32, %v588_v26  ;;  %v466_v44 = vadd.f32 %v2110_v1, %v331_v34  ;;  %v333_v45 = vmul.f32 %v2100_v0, %v198_v30  ;;  %v212_v30 = vld [vmem:[%s2105_s20 + $0x130] sm:$0xff] }
  0x25   : > { %v592_v43 = vmax.f32 %v464_v33, 0.0  ;;  %v593_v48 = vmax.f32 %v465_v38, 0.0  ;;  %v467_v49 = vadd.f32 %v2110_v1, %v332_v39  ;;  %v334_v50 = vmul.f32 %v2100_v0, %v199_v35  ;;  %v213_v35 = vld [vmem:[%s2105_s20 + $0x138] sm:$0xff] }
  0x26   : > { %v1713_v47 = vpack.c.bf16 %v591_v37, %v590_v36  ;;  %1992 = vst [vmem:[%s2142_s26 + $0x40] sm:$0xff] %v1708_v42   ;;  %v594_v52 = vmax.f32 %v466_v44, 0.0  ;;  %v468_v53 = vadd.f32 %v2110_v1, %v333_v45  ;;  %v335_v54 = vmul.f32 %v2100_v0, %v200_v40  ;;  %v214_v40 = vld [vmem:[%s2105_s20 + $0x140] sm:$0xff]  ;;  %v215_v45 = vld [vmem:[%s2105_s20 + $0x148] sm:$0xff] }
  0x27   : > { %v336_v55 = vmul.f32 %v2100_v0, %v201_v41  ;;  %v1718_v57 = vpack.c.bf16 %v593_v48, %v592_v43  ;;  %v595_v58 = vmax.f32 %v467_v49, 0.0  ;;  %v469_v59 = vadd.f32 %v2110_v1, %v334_v50  ;;  %v216_v50 = vld [vmem:[%s2105_s20 + $0x150] sm:$0xff] }
  0x28   : > { %1993 = vst [vmem:[%s2142_s26 + $0x48] sm:$0xff] %v1713_v47   ;;  %v337_v60 = vmul.f32 %v2100_v0, %v202_v46  ;;  %v596_v62 = vmax.f32 %v468_v53, 0.0  ;;  %v470_v63 = vadd.f32 %v2110_v1, %v335_v54  ;;  %v338_v3 = vmul.f32 %v2100_v0, %v203_v51  ;;  %v217_v51 = vld [vmem:[%s2105_s20 + $0x158] sm:$0xff] }
  0x29   : > { %v471_v2 = vadd.f32 %v2110_v1, %v336_v55  ;;  %1994 = vst [vmem:[%s2142_s26 + $0x50] sm:$0xff] %v1718_v57   ;;  %v1723_v5 = vpack.c.bf16 %v595_v58, %v594_v52  ;;  %v597_v6 = vmax.f32 %v469_v59, 0.0  ;;  %v339_v8 = vmul.f32 %v2100_v0, %v204_v56  ;;  %v218_v56 = vld [vmem:[%s2105_s20 + $0x160] sm:$0xff] }
  0x2a   : > { %v472_v7 = vadd.f32 %v2110_v1, %v337_v60  ;;  %v598_v10 = vmax.f32 %v470_v63, 0.0  ;;  %v473_v12 = vadd.f32 %v2110_v1, %v338_v3  ;;  %v340_v13 = vmul.f32 %v2100_v0, %v205_v61  ;;  %v219_v61 = vld [vmem:[%s2105_s20 + $0x168] sm:$0xff] }
  0x2b   : > { %v599_v11 = vmax.f32 %v471_v2, 0.0  ;;  %1995 = vst [vmem:[%s2142_s26 + $0x58] sm:$0xff] %v1723_v5   ;;  %v1728_v16 = vpack.c.bf16 %v597_v6, %v596_v62  ;;  %v474_v18 = vadd.f32 %v2110_v1, %v339_v8  ;;  %v341_v19 = vmul.f32 %v2100_v0, %v206_v4  ;;  %v220_v4 = vld [vmem:[%s2105_s20 + $0x170] sm:$0xff] }
  0x2c   : > { %v600_v17 = vmax.f32 %v472_v7, 0.0  ;;  %v601_v22 = vmax.f32 %v473_v12, 0.0  ;;  %v475_v23 = vadd.f32 %v2110_v1, %v340_v13  ;;  %v342_v24 = vmul.f32 %v2100_v0, %v207_v9  ;;  %v221_v9 = vld [vmem:[%s2105_s20 + $0x178] sm:$0xff] }
  0x2d   : > { %v1733_v21 = vpack.c.bf16 %v599_v11, %v598_v10  ;;  %1996 = vst [vmem:[%s2142_s26 + $0x60] sm:$0xff] %v1728_v16   ;;  %v602_v26 = vmax.f32 %v474_v18, 0.0  ;;  %v476_v27 = vadd.f32 %v2110_v1, %v341_v19  ;;  %v343_v28 = vmul.f32 %v2100_v0, %v208_v14  ;;  %v222_v14 = vld [vmem:[%s2105_s20 + $0x180] sm:$0xff]  ;;  %v223_v19 = vld [vmem:[%s2105_s20 + $0x188] sm:$0xff] }
  0x2e   : > { %v344_v29 = vmul.f32 %v2100_v0, %v209_v15  ;;  %v1738_v31 = vpack.c.bf16 %v601_v22, %v600_v17  ;;  %v603_v32 = vmax.f32 %v475_v23, 0.0  ;;  %v477_v33 = vadd.f32 %v2110_v1, %v342_v24  ;;  %v224_v24 = vld [vmem:[%s2105_s20 + $0x190] sm:$0xff] }
  0x2f   : > { %1997 = vst [vmem:[%s2142_s26 + $0x68] sm:$0xff] %v1733_v21   ;;  %v345_v34 = vmul.f32 %v2100_v0, %v210_v20  ;;  %v604_v36 = vmax.f32 %v476_v27, 0.0  ;;  %v478_v37 = vadd.f32 %v2110_v1, %v343_v28  ;;  %v346_v39 = vmul.f32 %v2100_v0, %v211_v25  ;;  %v225_v25 = vld [vmem:[%s2105_s20 + $0x198] sm:$0xff] }
  0x30   : > { %v479_v38 = vadd.f32 %v2110_v1, %v344_v29  ;;  %1998 = vst [vmem:[%s2142_s26 + $0x70] sm:$0xff] %v1738_v31   ;;  %v1743_v41 = vpack.c.bf16 %v603_v32, %v602_v26  ;;  %v605_v42 = vmax.f32 %v477_v33, 0.0  ;;  %v347_v44 = vmul.f32 %v2100_v0, %v212_v30  ;;  %v226_v30 = vld [vmem:[%s2105_s20 + $0x1a0] sm:$0xff] }
  0x31   : > { %v480_v43 = vadd.f32 %v2110_v1, %v345_v34  ;;  %v606_v46 = vmax.f32 %v478_v37, 0.0  ;;  %v481_v48 = vadd.f32 %v2110_v1, %v346_v39  ;;  %v348_v49 = vmul.f32 %v2100_v0, %v213_v35  ;;  %v227_v35 = vld [vmem:[%s2105_s20 + $0x1a8] sm:$0xff] }
  0x32   : > { %v607_v47 = vmax.f32 %v479_v38, 0.0  ;;  %1999 = vst [vmem:[%s2142_s26 + $0x78] sm:$0xff] %v1743_v41   ;;  %v1748_v52 = vpack.c.bf16 %v605_v42, %v604_v36  ;;  %v482_v54 = vadd.f32 %v2110_v1, %v347_v44  ;;  %v349_v55 = vmul.f32 %v2100_v0, %v214_v40  ;;  %v228_v40 = vld [vmem:[%s2105_s20 + $0x1b0] sm:$0xff] }
  0x33   : > { %v608_v53 = vmax.f32 %v480_v43, 0.0  ;;  %v609_v58 = vmax.f32 %v481_v48, 0.0  ;;  %v483_v59 = vadd.f32 %v2110_v1, %v348_v49  ;;  %v350_v60 = vmul.f32 %v2100_v0, %v215_v45  ;;  %v229_v45 = vld [vmem:[%s2105_s20 + $0x1b8] sm:$0xff] }
  0x34   : > { %v1753_v57 = vpack.c.bf16 %v607_v47, %v606_v46  ;;  %2000 = vst [vmem:[%s2142_s26 + $0x80] sm:$0xff] %v1748_v52   ;;  %v610_v62 = vmax.f32 %v482_v54, 0.0  ;;  %v484_v63 = vadd.f32 %v2110_v1, %v349_v55  ;;  %v351_v2 = vmul.f32 %v2100_v0, %v216_v50  ;;  %v230_v50 = vld [vmem:[%s2105_s20 + $0x1c0] sm:$0xff]  ;;  %v231_v55 = vld [vmem:[%s2105_s20 + $0x1c8] sm:$0xff] }
  0x35   : > { %v352_v3 = vmul.f32 %v2100_v0, %v217_v51  ;;  %v1758_v5 = vpack.c.bf16 %v609_v58, %v608_v53  ;;  %v611_v6 = vmax.f32 %v483_v59, 0.0  ;;  %v485_v7 = vadd.f32 %v2110_v1, %v350_v60  ;;  %v232_v60 = vld [vmem:[%s2105_s20 + $0x1d0] sm:$0xff] }
  0x36   : > { %2001 = vst [vmem:[%s2142_s26 + $0x88] sm:$0xff] %v1753_v57   ;;  %v353_v8 = vmul.f32 %v2100_v0, %v218_v56  ;;  %v612_v10 = vmax.f32 %v484_v63, 0.0  ;;  %v486_v11 = vadd.f32 %v2110_v1, %v351_v2  ;;  %v354_v13 = vmul.f32 %v2100_v0, %v219_v61  ;;  %v233_v61 = vld [vmem:[%s2105_s20 + $0x1d8] sm:$0xff] }
  0x37   : > { %v487_v12 = vadd.f32 %v2110_v1, %v352_v3  ;;  %2002 = vst [vmem:[%s2142_s26 + $0x90] sm:$0xff] %v1758_v5   ;;  %v1763_v15 = vpack.c.bf16 %v611_v6, %v610_v62  ;;  %v613_v16 = vmax.f32 %v485_v7, 0.0  ;;  %v355_v18 = vmul.f32 %v2100_v0, %v220_v4  ;;  %v234_v4 = vld [vmem:[%s2105_s20 + $0x1e0] sm:$0xff] }
  0x38   : > { %v488_v17 = vadd.f32 %v2110_v1, %v353_v8  ;;  %v614_v20 = vmax.f32 %v486_v11, 0.0  ;;  %v489_v22 = vadd.f32 %v2110_v1, %v354_v13  ;;  %v356_v23 = vmul.f32 %v2100_v0, %v221_v9  ;;  %v235_v9 = vld [vmem:[%s2105_s20 + $0x1e8] sm:$0xff] }
  0x39   : > { %v615_v21 = vmax.f32 %v487_v12, 0.0  ;;  %2003 = vst [vmem:[%s2142_s26 + $0x98] sm:$0xff] %v1763_v15   ;;  %v1768_v26 = vpack.c.bf16 %v613_v16, %v612_v10  ;;  %v490_v28 = vadd.f32 %v2110_v1, %v355_v18  ;;  %v357_v29 = vmul.f32 %v2100_v0, %v222_v14  ;;  %v236_v14 = vld [vmem:[%s2105_s20 + $0x1f0] sm:$0xff] }
  0x3a   : > { %v616_v27 = vmax.f32 %v488_v17, 0.0  ;;  %v617_v32 = vmax.f32 %v489_v22, 0.0  ;;  %v491_v33 = vadd.f32 %v2110_v1, %v356_v23  ;;  %v358_v34 = vmul.f32 %v2100_v0, %v223_v19  ;;  %v237_v19 = vld [vmem:[%s2105_s20 + $0x1f8] sm:$0xff] }
  0x3b   : > { %v1773_v31 = vpack.c.bf16 %v615_v21, %v614_v20  ;;  %2004 = vst [vmem:[%s2142_s26 + $0xa0] sm:$0xff] %v1768_v26   ;;  %v618_v36 = vmax.f32 %v490_v28, 0.0  ;;  %v492_v37 = vadd.f32 %v2110_v1, %v357_v29  ;;  %v359_v38 = vmul.f32 %v2100_v0, %v224_v24  ;;  %v238_v24 = vld [vmem:[%s2105_s20 + $0x200] sm:$0xff]  ;;  %v239_v29 = vld [vmem:[%s2105_s20 + $0x208] sm:$0xff] }
  0x3c   : > { %v360_v39 = vmul.f32 %v2100_v0, %v225_v25  ;;  %v1778_v41 = vpack.c.bf16 %v617_v32, %v616_v27  ;;  %v619_v42 = vmax.f32 %v491_v33, 0.0  ;;  %v493_v43 = vadd.f32 %v2110_v1, %v358_v34  ;;  %v240_v34 = vld [vmem:[%s2105_s20 + $0x210] sm:$0xff] }
  0x3d   : > { %2005 = vst [vmem:[%s2142_s26 + $0xa8] sm:$0xff] %v1773_v31   ;;  %v361_v44 = vmul.f32 %v2100_v0, %v226_v30  ;;  %v620_v46 = vmax.f32 %v492_v37, 0.0  ;;  %v494_v47 = vadd.f32 %v2110_v1, %v359_v38  ;;  %v362_v49 = vmul.f32 %v2100_v0, %v227_v35  ;;  %v241_v35 = vld [vmem:[%s2105_s20 + $0x218] sm:$0xff] }
  0x3e   : > { %v495_v48 = vadd.f32 %v2110_v1, %v360_v39  ;;  %2006 = vst [vmem:[%s2142_s26 + $0xb0] sm:$0xff] %v1778_v41   ;;  %v1783_v51 = vpack.c.bf16 %v619_v42, %v618_v36  ;;  %v621_v52 = vmax.f32 %v493_v43, 0.0  ;;  %v363_v54 = vmul.f32 %v2100_v0, %v228_v40  ;;  %v242_v40 = vld [vmem:[%s2105_s20 + $0x220] sm:$0xff] }
  0x3f   : > { %v496_v53 = vadd.f32 %v2110_v1, %v361_v44  ;;  %v622_v56 = vmax.f32 %v494_v47, 0.0  ;;  %v497_v58 = vadd.f32 %v2110_v1, %v362_v49  ;;  %v364_v59 = vmul.f32 %v2100_v0, %v229_v45  ;;  %v243_v45 = vld [vmem:[%s2105_s20 + $0x228] sm:$0xff] }
  0x40   : > { %v623_v57 = vmax.f32 %v495_v48, 0.0  ;;  %2007 = vst [vmem:[%s2142_s26 + $0xb8] sm:$0xff] %v1783_v51   ;;  %v1788_v62 = vpack.c.bf16 %v621_v52, %v620_v46  ;;  %v498_v2 = vadd.f32 %v2110_v1, %v363_v54  ;;  %v365_v3 = vmul.f32 %v2100_v0, %v230_v50  ;;  %v244_v50 = vld [vmem:[%s2105_s20 + $0x230] sm:$0xff] }
  0x41   : > { %v624_v63 = vmax.f32 %v496_v53, 0.0  ;;  %v625_v6 = vmax.f32 %v497_v58, 0.0  ;;  %v499_v7 = vadd.f32 %v2110_v1, %v364_v59  ;;  %v366_v8 = vmul.f32 %v2100_v0, %v231_v55  ;;  %v245_v55 = vld [vmem:[%s2105_s20 + $0x238] sm:$0xff] }
  0x42   : > { %v1793_v5 = vpack.c.bf16 %v623_v57, %v622_v56  ;;  %2008 = vst [vmem:[%s2142_s26 + $0xc0] sm:$0xff] %v1788_v62   ;;  %v626_v10 = vmax.f32 %v498_v2, 0.0  ;;  %v500_v11 = vadd.f32 %v2110_v1, %v365_v3  ;;  %v367_v12 = vmul.f32 %v2100_v0, %v232_v60  ;;  %v246_v60 = vld [vmem:[%s2105_s20 + $0x240] sm:$0xff]  ;;  %v247_v3 = vld [vmem:[%s2105_s20 + $0x248] sm:$0xff] }
  0x43   : > { %v368_v13 = vmul.f32 %v2100_v0, %v233_v61  ;;  %v1798_v15 = vpack.c.bf16 %v625_v6, %v624_v63  ;;  %v627_v16 = vmax.f32 %v499_v7, 0.0  ;;  %v501_v17 = vadd.f32 %v2110_v1, %v366_v8  ;;  %v248_v8 = vld [vmem:[%s2105_s20 + $0x250] sm:$0xff] }
  0x44   : > { %2009 = vst [vmem:[%s2142_s26 + $0xc8] sm:$0xff] %v1793_v5   ;;  %v369_v18 = vmul.f32 %v2100_v0, %v234_v4  ;;  %v628_v20 = vmax.f32 %v500_v11, 0.0  ;;  %v502_v21 = vadd.f32 %v2110_v1, %v367_v12  ;;  %v370_v23 = vmul.f32 %v2100_v0, %v235_v9  ;;  %v249_v9 = vld [vmem:[%s2105_s20 + $0x258] sm:$0xff] }
  0x45   : > { %v503_v22 = vadd.f32 %v2110_v1, %v368_v13  ;;  %2010 = vst [vmem:[%s2142_s26 + $0xd0] sm:$0xff] %v1798_v15   ;;  %v1803_v25 = vpack.c.bf16 %v627_v16, %v626_v10  ;;  %v629_v26 = vmax.f32 %v501_v17, 0.0  ;;  %v371_v28 = vmul.f32 %v2100_v0, %v236_v14  ;;  %v250_v14 = vld [vmem:[%s2105_s20 + $0x260] sm:$0xff] }
  0x46   : > { %v504_v27 = vadd.f32 %v2110_v1, %v369_v18  ;;  %v630_v30 = vmax.f32 %v502_v21, 0.0  ;;  %v505_v32 = vadd.f32 %v2110_v1, %v370_v23  ;;  %v372_v33 = vmul.f32 %v2100_v0, %v237_v19  ;;  %v251_v19 = vld [vmem:[%s2105_s20 + $0x268] sm:$0xff] }
  0x47   : > { %v631_v31 = vmax.f32 %v503_v22, 0.0  ;;  %2011 = vst [vmem:[%s2142_s26 + $0xd8] sm:$0xff] %v1803_v25   ;;  %v1808_v36 = vpack.c.bf16 %v629_v26, %v628_v20  ;;  %v506_v38 = vadd.f32 %v2110_v1, %v371_v28  ;;  %v373_v39 = vmul.f32 %v2100_v0, %v238_v24  ;;  %v252_v24 = vld [vmem:[%s2105_s20 + $0x270] sm:$0xff] }
  0x48   : > { %v632_v37 = vmax.f32 %v504_v27, 0.0  ;;  %v633_v42 = vmax.f32 %v505_v32, 0.0  ;;  %v507_v43 = vadd.f32 %v2110_v1, %v372_v33  ;;  %v374_v44 = vmul.f32 %v2100_v0, %v239_v29  ;;  %v253_v29 = vld [vmem:[%s2105_s20 + $0x278] sm:$0xff] }
  0x49   : > { %v1813_v41 = vpack.c.bf16 %v631_v31, %v630_v30  ;;  %2012 = vst [vmem:[%s2142_s26 + $0xe0] sm:$0xff] %v1808_v36   ;;  %v634_v46 = vmax.f32 %v506_v38, 0.0  ;;  %v508_v47 = vadd.f32 %v2110_v1, %v373_v39  ;;  %v375_v48 = vmul.f32 %v2100_v0, %v240_v34  ;;  %v254_v34 = vld [vmem:[%s2105_s20 + $0x280] sm:$0xff]  ;;  %v255_v39 = vld [vmem:[%s2105_s20 + $0x288] sm:$0xff] }
  0x4a   : > { %v376_v49 = vmul.f32 %v2100_v0, %v241_v35  ;;  %v1818_v51 = vpack.c.bf16 %v633_v42, %v632_v37  ;;  %v635_v52 = vmax.f32 %v507_v43, 0.0  ;;  %v509_v53 = vadd.f32 %v2110_v1, %v374_v44  ;;  %v256_v44 = vld [vmem:[%s2105_s20 + $0x290] sm:$0xff] }
  0x4b   : > { %2013 = vst [vmem:[%s2142_s26 + $0xe8] sm:$0xff] %v1813_v41   ;;  %v377_v54 = vmul.f32 %v2100_v0, %v242_v40  ;;  %v636_v56 = vmax.f32 %v508_v47, 0.0  ;;  %v510_v57 = vadd.f32 %v2110_v1, %v375_v48  ;;  %v378_v59 = vmul.f32 %v2100_v0, %v243_v45  ;;  %v257_v45 = vld [vmem:[%s2105_s20 + $0x298] sm:$0xff] }
  0x4c   : > { %v511_v58 = vadd.f32 %v2110_v1, %v376_v49  ;;  %2014 = vst [vmem:[%s2142_s26 + $0xf0] sm:$0xff] %v1818_v51   ;;  %v1823_v61 = vpack.c.bf16 %v635_v52, %v634_v46  ;;  %v637_v62 = vmax.f32 %v509_v53, 0.0  ;;  %v379_v2 = vmul.f32 %v2100_v0, %v244_v50  ;;  %v258_v50 = vld [vmem:[%s2105_s20 + $0x2a0] sm:$0xff] }
  0x4d   : > { %v512_v63 = vadd.f32 %v2110_v1, %v377_v54  ;;  %v638_v4 = vmax.f32 %v510_v57, 0.0  ;;  %v513_v6 = vadd.f32 %v2110_v1, %v378_v59  ;;  %v380_v7 = vmul.f32 %v2100_v0, %v245_v55  ;;  %v259_v55 = vld [vmem:[%s2105_s20 + $0x2a8] sm:$0xff] }
  0x4e   : > { %v639_v5 = vmax.f32 %v511_v58, 0.0  ;;  %2015 = vst [vmem:[%s2142_s26 + $0xf8] sm:$0xff] %v1823_v61   ;;  %v1828_v10 = vpack.c.bf16 %v637_v62, %v636_v56  ;;  %v514_v12 = vadd.f32 %v2110_v1, %v379_v2  ;;  %v381_v13 = vmul.f32 %v2100_v0, %v246_v60  ;;  %v260_v60 = vld [vmem:[%s2105_s20 + $0x2b0] sm:$0xff] }
  0x4f   : > { %v640_v11 = vmax.f32 %v512_v63, 0.0  ;;  %v641_v16 = vmax.f32 %v513_v6, 0.0  ;;  %v515_v17 = vadd.f32 %v2110_v1, %v380_v7  ;;  %v382_v18 = vmul.f32 %v2100_v0, %v247_v3  ;;  %v261_v3 = vld [vmem:[%s2105_s20 + $0x2b8] sm:$0xff] }
  0x50   : > { %v1833_v15 = vpack.c.bf16 %v639_v5, %v638_v4  ;;  %2016 = vst [vmem:[%s2142_s26 + $0x100] sm:$0xff] %v1828_v10   ;;  %v642_v20 = vmax.f32 %v514_v12, 0.0  ;;  %v516_v21 = vadd.f32 %v2110_v1, %v381_v13  ;;  %v383_v22 = vmul.f32 %v2100_v0, %v248_v8  ;;  %v262_v8 = vld [vmem:[%s2105_s20 + $0x2c0] sm:$0xff]  ;;  %v263_v13 = vld [vmem:[%s2105_s20 + $0x2c8] sm:$0xff] }
  0x51   : > { %v384_v23 = vmul.f32 %v2100_v0, %v249_v9  ;;  %v1838_v25 = vpack.c.bf16 %v641_v16, %v640_v11  ;;  %v643_v26 = vmax.f32 %v515_v17, 0.0  ;;  %v517_v27 = vadd.f32 %v2110_v1, %v382_v18  ;;  %v264_v18 = vld [vmem:[%s2105_s20 + $0x2d0] sm:$0xff] }
  0x52   : > { %2017 = vst [vmem:[%s2142_s26 + $0x108] sm:$0xff] %v1833_v15   ;;  %v385_v28 = vmul.f32 %v2100_v0, %v250_v14  ;;  %v644_v30 = vmax.f32 %v516_v21, 0.0  ;;  %v518_v31 = vadd.f32 %v2110_v1, %v383_v22  ;;  %v386_v33 = vmul.f32 %v2100_v0, %v251_v19  ;;  %v265_v19 = vld [vmem:[%s2105_s20 + $0x2d8] sm:$0xff] }
  0x53   : > { %v519_v32 = vadd.f32 %v2110_v1, %v384_v23  ;;  %2018 = vst [vmem:[%s2142_s26 + $0x110] sm:$0xff] %v1838_v25   ;;  %v1843_v35 = vpack.c.bf16 %v643_v26, %v642_v20  ;;  %v645_v36 = vmax.f32 %v517_v27, 0.0  ;;  %v387_v38 = vmul.f32 %v2100_v0, %v252_v24  ;;  %v266_v24 = vld [vmem:[%s2105_s20 + $0x2e0] sm:$0xff] }
  0x54   : > { %v520_v37 = vadd.f32 %v2110_v1, %v385_v28  ;;  %v646_v40 = vmax.f32 %v518_v31, 0.0  ;;  %v521_v42 = vadd.f32 %v2110_v1, %v386_v33  ;;  %v388_v43 = vmul.f32 %v2100_v0, %v253_v29  ;;  %v267_v29 = vld [vmem:[%s2105_s20 + $0x2e8] sm:$0xff] }
  0x55   : > { %v647_v41 = vmax.f32 %v519_v32, 0.0  ;;  %2019 = vst [vmem:[%s2142_s26 + $0x118] sm:$0xff] %v1843_v35   ;;  %v1848_v46 = vpack.c.bf16 %v645_v36, %v644_v30  ;;  %v522_v48 = vadd.f32 %v2110_v1, %v387_v38  ;;  %v389_v49 = vmul.f32 %v2100_v0, %v254_v34  ;;  %v268_v34 = vld [vmem:[%s2105_s20 + $0x2f0] sm:$0xff] }
  0x56   : > { %v648_v47 = vmax.f32 %v520_v37, 0.0  ;;  %v649_v52 = vmax.f32 %v521_v42, 0.0  ;;  %v523_v53 = vadd.f32 %v2110_v1, %v388_v43  ;;  %v390_v54 = vmul.f32 %v2100_v0, %v255_v39  ;;  %v269_v39 = vld [vmem:[%s2105_s20 + $0x2f8] sm:$0xff] }
  0x57   : > { %v1853_v51 = vpack.c.bf16 %v647_v41, %v646_v40  ;;  %2020 = vst [vmem:[%s2142_s26 + $0x120] sm:$0xff] %v1848_v46   ;;  %v650_v56 = vmax.f32 %v522_v48, 0.0  ;;  %v524_v57 = vadd.f32 %v2110_v1, %v389_v49  ;;  %v391_v58 = vmul.f32 %v2100_v0, %v256_v44  ;;  %v270_v44 = vld [vmem:[%s2105_s20 + $0x300] sm:$0xff]  ;;  %v271_v49 = vld [vmem:[%s2105_s20 + $0x308] sm:$0xff] }
  0x58   : > { %v392_v59 = vmul.f32 %v2100_v0, %v257_v45  ;;  %v1858_v61 = vpack.c.bf16 %v649_v52, %v648_v47  ;;  %v651_v62 = vmax.f32 %v523_v53, 0.0  ;;  %v525_v63 = vadd.f32 %v2110_v1, %v390_v54  ;;  %v272_v54 = vld [vmem:[%s2105_s20 + $0x310] sm:$0xff] }
  0x59   : > { %2021 = vst [vmem:[%s2142_s26 + $0x128] sm:$0xff] %v1853_v51   ;;  %v393_v2 = vmul.f32 %v2100_v0, %v258_v50  ;;  %v652_v4 = vmax.f32 %v524_v57, 0.0  ;;  %v526_v5 = vadd.f32 %v2110_v1, %v391_v58  ;;  %v394_v7 = vmul.f32 %v2100_v0, %v259_v55  ;;  %v273_v55 = vld [vmem:[%s2105_s20 + $0x318] sm:$0xff] }
  0x5a   : > { %v527_v6 = vadd.f32 %v2110_v1, %v392_v59  ;;  %2022 = vst [vmem:[%s2142_s26 + $0x130] sm:$0xff] %v1858_v61   ;;  %v1863_v9 = vpack.c.bf16 %v651_v62, %v650_v56  ;;  %v653_v10 = vmax.f32 %v525_v63, 0.0  ;;  %v395_v12 = vmul.f32 %v2100_v0, %v260_v60  ;;  %v274_v60 = vld [vmem:[%s2105_s20 + $0x320] sm:$0xff] }
  0x5b   : > { %v528_v11 = vadd.f32 %v2110_v1, %v393_v2  ;;  %v654_v14 = vmax.f32 %v526_v5, 0.0  ;;  %v529_v16 = vadd.f32 %v2110_v1, %v394_v7  ;;  %v396_v17 = vmul.f32 %v2100_v0, %v261_v3  ;;  %v275_v3 = vld [vmem:[%s2105_s20 + $0x328] sm:$0xff] }
  0x5c   : > { %v655_v15 = vmax.f32 %v527_v6, 0.0  ;;  %2023 = vst [vmem:[%s2142_s26 + $0x138] sm:$0xff] %v1863_v9   ;;  %v1868_v20 = vpack.c.bf16 %v653_v10, %v652_v4  ;;  %v530_v22 = vadd.f32 %v2110_v1, %v395_v12  ;;  %v397_v23 = vmul.f32 %v2100_v0, %v262_v8  ;;  %v276_v8 = vld [vmem:[%s2105_s20 + $0x330] sm:$0xff] }
  0x5d   : > { %v656_v21 = vmax.f32 %v528_v11, 0.0  ;;  %v657_v26 = vmax.f32 %v529_v16, 0.0  ;;  %v531_v27 = vadd.f32 %v2110_v1, %v396_v17  ;;  %v398_v28 = vmul.f32 %v2100_v0, %v263_v13  ;;  %v277_v13 = vld [vmem:[%s2105_s20 + $0x338] sm:$0xff] }
  0x5e   : > { %v1873_v25 = vpack.c.bf16 %v655_v15, %v654_v14  ;;  %2024 = vst [vmem:[%s2142_s26 + $0x140] sm:$0xff] %v1868_v20   ;;  %v658_v30 = vmax.f32 %v530_v22, 0.0  ;;  %v532_v31 = vadd.f32 %v2110_v1, %v397_v23  ;;  %v399_v32 = vmul.f32 %v2100_v0, %v264_v18  ;;  %v278_v18 = vld [vmem:[%s2105_s20 + $0x340] sm:$0xff]  ;;  %v279_v23 = vld [vmem:[%s2105_s20 + $0x348] sm:$0xff] }
  0x5f   : > { %v400_v33 = vmul.f32 %v2100_v0, %v265_v19  ;;  %v1878_v35 = vpack.c.bf16 %v657_v26, %v656_v21  ;;  %v659_v36 = vmax.f32 %v531_v27, 0.0  ;;  %v533_v37 = vadd.f32 %v2110_v1, %v398_v28  ;;  %v280_v28 = vld [vmem:[%s2105_s20 + $0x350] sm:$0xff] }
  0x60   : > { %2025 = vst [vmem:[%s2142_s26 + $0x148] sm:$0xff] %v1873_v25   ;;  %v401_v38 = vmul.f32 %v2100_v0, %v266_v24  ;;  %v660_v40 = vmax.f32 %v532_v31, 0.0  ;;  %v534_v41 = vadd.f32 %v2110_v1, %v399_v32  ;;  %v402_v43 = vmul.f32 %v2100_v0, %v267_v29  ;;  %v281_v29 = vld [vmem:[%s2105_s20 + $0x358] sm:$0xff]  ;;  %v2483_v32 = vld [vmem:[%s2581_s2] ss:$0 sm:$0xff] }
  0x61   : > { %v535_v42 = vadd.f32 %v2110_v1, %v400_v33  ;;  %2026 = vst [vmem:[%s2142_s26 + $0x150] sm:$0xff] %v1878_v35   ;;  %v1883_v45 = vpack.c.bf16 %v659_v36, %v658_v30  ;;  %v661_v46 = vmax.f32 %v533_v37, 0.0  ;;  %v403_v48 = vmul.f32 %v2100_v0, %v268_v34  ;;  %v282_v34 = vld [vmem:[%s2105_s20 + $0x360] sm:$0xff] }
  0x62   : > { %v536_v47 = vadd.f32 %v2110_v1, %v401_v38  ;;  %v662_v50 = vmax.f32 %v534_v41, 0.0  ;;  %v537_v52 = vadd.f32 %v2110_v1, %v402_v43  ;;  %v404_v53 = vmul.f32 %v2100_v0, %v269_v39  ;;  %v283_v39 = vld [vmem:[%s2105_s20 + $0x368] sm:$0xff] }
  0x63   : > { %v663_v51 = vmax.f32 %v535_v42, 0.0  ;;  %2027 = vst [vmem:[%s2142_s26 + $0x158] sm:$0xff] %v1883_v45   ;;  %v1888_v56 = vpack.c.bf16 %v661_v46, %v660_v40  ;;  %v538_v58 = vadd.f32 %v2110_v1, %v403_v48  ;;  %v405_v59 = vmul.f32 %v2100_v0, %v270_v44  ;;  %v284_v44 = vld [vmem:[%s2105_s20 + $0x370] sm:$0xff] }
  0x64   : > { %v664_v57 = vmax.f32 %v536_v47, 0.0  ;;  %v665_v62 = vmax.f32 %v537_v52, 0.0  ;;  %v539_v63 = vadd.f32 %v2110_v1, %v404_v53  ;;  %v406_v2 = vmul.f32 %v2100_v0, %v271_v49  ;;  %v285_v49 = vld [vmem:[%s2105_s20 + $0x378] sm:$0xff] }
  0x65   : > { %v1893_v61 = vpack.c.bf16 %v663_v51, %v662_v50  ;;  %2028 = vst [vmem:[%s2142_s26 + $0x160] sm:$0xff] %v1888_v56   ;;  %v666_v4 = vmax.f32 %v538_v58, 0.0  ;;  %v540_v5 = vadd.f32 %v2110_v1, %v405_v59  ;;  %v407_v6 = vmul.f32 %v2100_v0, %v272_v54  ;;  %v286_v54 = vld [vmem:[%s2105_s20 + $0x380] sm:$0xff]  ;;  %v287_v59 = vld [vmem:[%s2105_s20 + $0x388] sm:$0xff] }
  0x66   : > { %v408_v7 = vmul.f32 %v2100_v0, %v273_v55  ;;  %v1898_v9 = vpack.c.bf16 %v665_v62, %v664_v57  ;;  %v667_v10 = vmax.f32 %v539_v63, 0.0  ;;  %v541_v11 = vadd.f32 %v2110_v1, %v406_v2  ;;  %v288_v2 = vld [vmem:[%s2105_s20 + $0x390] sm:$0xff] }
  0x67   : > { %2029 = vst [vmem:[%s2142_s26 + $0x168] sm:$0xff] %v1893_v61   ;;  %v409_v12 = vmul.f32 %v2100_v0, %v274_v60  ;;  %v668_v14 = vmax.f32 %v540_v5, 0.0  ;;  %v542_v15 = vadd.f32 %v2110_v1, %v407_v6  ;;  %v410_v17 = vmul.f32 %v2100_v0, %v275_v3  ;;  %v289_v3 = vld [vmem:[%s2105_s20 + $0x398] sm:$0xff] }
  0x68   : > { %v543_v16 = vadd.f32 %v2110_v1, %v408_v7  ;;  %2030 = vst [vmem:[%s2142_s26 + $0x170] sm:$0xff] %v1898_v9   ;;  %v1903_v19 = vpack.c.bf16 %v667_v10, %v666_v4  ;;  %v669_v20 = vmax.f32 %v541_v11, 0.0  ;;  %v411_v22 = vmul.f32 %v2100_v0, %v276_v8  ;;  %v290_v8 = vld [vmem:[%s2105_s20 + $0x3a0] sm:$0xff] }
  0x69   : > { %v544_v21 = vadd.f32 %v2110_v1, %v409_v12  ;;  %v670_v24 = vmax.f32 %v542_v15, 0.0  ;;  %v545_v26 = vadd.f32 %v2110_v1, %v410_v17  ;;  %v412_v27 = vmul.f32 %v2100_v0, %v277_v13  ;;  %v2489_v1 = vld [vmem:[%s2580_s1] ss:$0 sm:$0xff]  ;;  %v291_v13 = vld [vmem:[%s2105_s20 + $0x3a8] sm:$0xff] }
  0x6a   : > { %v671_v25 = vmax.f32 %v543_v16, 0.0  ;;  %2031 = vst [vmem:[%s2142_s26 + $0x178] sm:$0xff] %v1903_v19   ;;  %v1908_v30 = vpack.c.bf16 %v669_v20, %v668_v14  ;;  %v546_v33 = vadd.f32 %v2483_v32, %v411_v22  ;;  %v413_v0 = vmul.f32 %v2489_v1, %v278_v18  ;;  %v292_v18 = vld [vmem:[%s2105_s20 + $0x3b0] sm:$0xff] }
  0x6b   : > { %v672_v31 = vmax.f32 %v544_v21, 0.0  ;;  %v673_v36 = vmax.f32 %v545_v26, 0.0  ;;  %v547_v37 = vadd.f32 %v2483_v32, %v412_v27  ;;  %v414_v38 = vmul.f32 %v2489_v1, %v279_v23  ;;  %v293_v23 = vld [vmem:[%s2105_s20 + $0x3b8] sm:$0xff] }
  0x6c   : > { %v1913_v35 = vpack.c.bf16 %v671_v25, %v670_v24  ;;  %2032 = vst [vmem:[%s2142_s26 + $0x180] sm:$0xff] %v1908_v30   ;;  %v674_v40 = vmax.f32 %v546_v33, 0.0  ;;  %v548_v41 = vadd.f32 %v2483_v32, %v413_v0  ;;  %v415_v42 = vmul.f32 %v2489_v1, %v280_v28  ;;  %v294_v28 = vld [vmem:[%s2105_s20 + $0x3c0] sm:$0xff]  ;;  %v295_v0 = vld [vmem:[%s2105_s20 + $0x3c8] sm:$0xff] }
  0x6d   : > { %v416_v43 = vmul.f32 %v2489_v1, %v281_v29  ;;  %v1918_v45 = vpack.c.bf16 %v673_v36, %v672_v31  ;;  %v675_v46 = vmax.f32 %v547_v37, 0.0  ;;  %v549_v47 = vadd.f32 %v2483_v32, %v414_v38  ;;  %v296_v38 = vld [vmem:[%s2105_s20 + $0x3d0] sm:$0xff] }
  0x6e   : > { %2033 = vst [vmem:[%s2142_s26 + $0x188] sm:$0xff] %v1913_v35   ;;  %v417_v48 = vmul.f32 %v2489_v1, %v282_v34  ;;  %v676_v50 = vmax.f32 %v548_v41, 0.0  ;;  %v550_v51 = vadd.f32 %v2483_v32, %v415_v42  ;;  %v418_v53 = vmul.f32 %v2489_v1, %v283_v39  ;;  %v297_v39 = vld [vmem:[%s2105_s20 + $0x3d8] sm:$0xff] }
  0x6f   : > { %v551_v52 = vadd.f32 %v2483_v32, %v416_v43  ;;  %2034 = vst [vmem:[%s2142_s26 + $0x190] sm:$0xff] %v1918_v45   ;;  %v1923_v55 = vpack.c.bf16 %v675_v46, %v674_v40  ;;  %v677_v56 = vmax.f32 %v549_v47, 0.0  ;;  %v419_v58 = vmul.f32 %v2489_v1, %v284_v44  ;;  %v298_v44 = vld [vmem:[%s2105_s20 + $0x3e0] sm:$0xff] }
  0x70   : > { %v552_v57 = vadd.f32 %v2483_v32, %v417_v48  ;;  %v678_v60 = vmax.f32 %v550_v51, 0.0  ;;  %v553_v62 = vadd.f32 %v2483_v32, %v418_v53  ;;  %v420_v63 = vmul.f32 %v2489_v1, %v285_v49  ;;  %v299_v49 = vld [vmem:[%s2105_s20 + $0x3e8] sm:$0xff] }
  0x71   : > { %v679_v61 = vmax.f32 %v551_v52, 0.0  ;;  %2035 = vst [vmem:[%s2142_s26 + $0x198] sm:$0xff] %v1923_v55   ;;  %v1928_v4 = vpack.c.bf16 %v677_v56, %v676_v50  ;;  %v554_v6 = vadd.f32 %v2483_v32, %v419_v58  ;;  %v421_v7 = vmul.f32 %v2489_v1, %v286_v54  ;;  %v300_v54 = vld [vmem:[%s2105_s20 + $0x3f0] sm:$0xff] }
  0x72   : > { %v680_v5 = vmax.f32 %v552_v57, 0.0  ;;  %v681_v10 = vmax.f32 %v553_v62, 0.0  ;;  %v555_v11 = vadd.f32 %v2483_v32, %v420_v63  ;;  %v422_v12 = vmul.f32 %v2489_v1, %v287_v59  ;;  %v301_v59 = vld [vmem:[%s2105_s20 + $0x3f8] sm:$0xff] }
  0x73   : > { %v1933_v9 = vpack.c.bf16 %v679_v61, %v678_v60  ;;  %2036 = vst [vmem:[%s2142_s26 + $0x1a0] sm:$0xff] %v1928_v4   ;;  %v682_v14 = vmax.f32 %v554_v6, 0.0  ;;  %v556_v15 = vadd.f32 %v2483_v32, %v421_v7  ;;  %v423_v16 = vmul.f32 %v2489_v1, %v288_v2 }
  0x74   : > { %v424_v17 = vmul.f32 %v2489_v1, %v289_v3  ;;  %v1938_v19 = vpack.c.bf16 %v681_v10, %v680_v5  ;;  %v683_v20 = vmax.f32 %v555_v11, 0.0  ;;  %v557_v21 = vadd.f32 %v2483_v32, %v422_v12 }
  0x75   : > { %2037 = vst [vmem:[%s2142_s26 + $0x1a8] sm:$0xff] %v1933_v9   ;;  %v425_v22 = vmul.f32 %v2489_v1, %v290_v8  ;;  %v684_v24 = vmax.f32 %v556_v15, 0.0  ;;  %v558_v25 = vadd.f32 %v2483_v32, %v423_v16  ;;  %v426_v27 = vmul.f32 %v2489_v1, %v291_v13 }
  0x76   : > { %v559_v26 = vadd.f32 %v2483_v32, %v424_v17  ;;  %2038 = vst [vmem:[%s2142_s26 + $0x1b0] sm:$0xff] %v1938_v19   ;;  %v1943_v29 = vpack.c.bf16 %v683_v20, %v682_v14  ;;  %v685_v30 = vmax.f32 %v557_v21, 0.0  ;;  %v427_v33 = vmul.f32 %v2489_v1, %v292_v18 }
  0x77   : > { %v560_v31 = vadd.f32 %v2483_v32, %v425_v22  ;;  %v686_v34 = vmax.f32 %v558_v25, 0.0  ;;  %v561_v36 = vadd.f32 %v2483_v32, %v426_v27  ;;  %v428_v37 = vmul.f32 %v2489_v1, %v293_v23 }
  0x78   : > { %v687_v35 = vmax.f32 %v559_v26, 0.0  ;;  %2039 = vst [vmem:[%s2142_s26 + $0x1b8] sm:$0xff] %v1943_v29   ;;  %v1948_v40 = vpack.c.bf16 %v685_v30, %v684_v24  ;;  %v562_v42 = vadd.f32 %v2483_v32, %v427_v33  ;;  %v429_v43 = vmul.f32 %v2489_v1, %v294_v28 }
  0x79   : > { %v688_v41 = vmax.f32 %v560_v31, 0.0  ;;  %v689_v46 = vmax.f32 %v561_v36, 0.0  ;;  %v563_v47 = vadd.f32 %v2483_v32, %v428_v37  ;;  %v430_v48 = vmul.f32 %v2489_v1, %v295_v0 }
  0x7a   : > { %v1953_v45 = vpack.c.bf16 %v687_v35, %v686_v34  ;;  %2040 = vst [vmem:[%s2142_s26 + $0x1c0] sm:$0xff] %v1948_v40   ;;  %v690_v50 = vmax.f32 %v562_v42, 0.0  ;;  %v564_v51 = vadd.f32 %v2483_v32, %v429_v43  ;;  %v431_v52 = vmul.f32 %v2489_v1, %v296_v38 }
  0x7b   : > { %v432_v53 = vmul.f32 %v2489_v1, %v297_v39  ;;  %v1958_v55 = vpack.c.bf16 %v689_v46, %v688_v41  ;;  %v691_v56 = vmax.f32 %v563_v47, 0.0  ;;  %v565_v57 = vadd.f32 %v2483_v32, %v430_v48 }
  0x7c   : > { %2041 = vst [vmem:[%s2142_s26 + $0x1c8] sm:$0xff] %v1953_v45   ;;  %v433_v58 = vmul.f32 %v2489_v1, %v298_v44  ;;  %v692_v60 = vmax.f32 %v564_v51, 0.0  ;;  %v566_v61 = vadd.f32 %v2483_v32, %v431_v52  ;;  %v434_v63 = vmul.f32 %v2489_v1, %v299_v49 }
  0x7d   : > { %v567_v62 = vadd.f32 %v2483_v32, %v432_v53  ;;  %2042 = vst [vmem:[%s2142_s26 + $0x1d0] sm:$0xff] %v1958_v55   ;;  %v1963_v2 = vpack.c.bf16 %v691_v56, %v690_v50  ;;  %v693_v3 = vmax.f32 %v565_v57, 0.0  ;;  %v435_v5 = vmul.f32 %v2489_v1, %v300_v54 }
  0x7e   : > { %v568_v4 = vadd.f32 %v2483_v32, %v433_v58  ;;  %v694_v6 = vmax.f32 %v566_v61, 0.0  ;;  %v569_v8 = vadd.f32 %v2483_v32, %v434_v63  ;;  %v436_v9 = vmul.f32 %v2489_v1, %v301_v59 }
  0x7f   : > { %v695_v7 = vmax.f32 %v567_v62, 0.0  ;;  %2043 = vst [vmem:[%s2142_s26 + $0x1d8] sm:$0xff] %v1963_v2   ;;  %v1968_v10 = vpack.c.bf16 %v693_v3, %v692_v60  ;;  %v570_v12 = vadd.f32 %v2483_v32, %v435_v5 }
  0x80   : > { %v696_v11 = vmax.f32 %v568_v4, 0.0  ;;  %v697_v14 = vmax.f32 %v569_v8, 0.0  ;;  %v571_v15 = vadd.f32 %v2483_v32, %v436_v9 }
  0x81   : > { %v1973_v13 = vpack.c.bf16 %v695_v7, %v694_v6  ;;  %2044 = vst [vmem:[%s2142_s26 + $0x1e0] sm:$0xff] %v1968_v10   ;;  %v698_v16 = vmax.f32 %v570_v12, 0.0 }
  0x82   : > { %v1978_v17 = vpack.c.bf16 %v697_v14, %v696_v11  ;;  %v699_v18 = vmax.f32 %v571_v15, 0.0 }
  0x83   : > { %2045 = vst [vmem:[%s2142_s26 + $0x1e8] sm:$0xff] %v1973_v13  }
  0x84   : > { %2046 = vst [vmem:[%s2142_s26 + $0x1f0] sm:$0xff] %v1978_v17   ;;  %v1983_v19 = vpack.c.bf16 %v699_v18, %v698_v16 }
  0x86   : > { %2047 = vst [vmem:[%s2142_s26 + $0x1f8] sm:$0xff] %v1983_v19  }
  0x87 PF: > { %s13_s12 = sadd.s32 1, %s2064_s12  }
  0x88   : > { %p10_p4 = scmp.ge.s32.totalorder %s13_s12, 4  }
  0x8a   :  { %12 = sbr.rel (!%p10_p4) target bundleno = 1 (0x1), region = 62 }

// kernel: beta_vae_forward.17
= control target key start
LH: loop header
LB: loop body
LE: loop exit
PB: predicated region body
PF: predicated region fallthrough
CT: control target
= control target key end

     0   :  { %s2314_s12 = smov 0   ;;  %s3336_s0 = inlined_call_operand.vmem [shape: bf16[2048,128], index: 0, kind: input, shape index: {}]   ;;  %s3337_s1 = inlined_call_operand.vmem [shape: bf16[128,128], index: 1, kind: input, shape index: {}]   ;;  %s3338_s2 = inlined_call_operand.vmem [shape: f32[2048,128], index: 2, kind: output, shape index: {0}]   ;;  %s3339_s3 = inlined_call_operand.vmem [shape: f32[2,128], index: 3, kind: output, shape index: {1}]  }
   0x1 LB: > { %s1888_s13 = sadd.s32 4294967295, %s2291_s12   ;;  %p1892_p0 = scmp.ge.s32.totalorder %s2291_s12, 1  ;;  %s2291_s12 = sphi %s2314_s12, %s14_s12  }
   0x2   : > { %p136_p1 = scmp.lt.s32.totalorder %s2291_s12, 3 }
   0x4   : > { %p137_p2 = pnand %p1892_p0, %p136_p1 }
   0x6   : > { %140 = sbr.rel (%p137_p2) target bundleno = 671 (0x29f), region = 28 }
   0xd   : > { %v2213_v0 = vld [vmem:[%s3337_s1] sm:$0xff]   ;;  %s1893_s16 = sshll.u32 %s1888_s13, 7  ;;  %v2214_v1 = vld [vmem:[%s3337_s1 + $0x8] sm:$0xff]   ;;  %v2215_v2 = vld [vmem:[%s3337_s1 + $0x10] sm:$0xff]   ;;  %p1969_p4 = scmp.ne.s32.totalorder %s1888_s13, 0 }
   0xe   : > { %p161_p3 = scmp.lt.s32.totalorder %s1893_s16, 255  ;;  %2044 = vmatprep.subr.bf16.mxu0 %v2213_v0  ;;  %2188 = vmatprep.subr.bf16.mxu1 %v2213_v0  ;;  %v2216_v3 = vld [vmem:[%s3337_s1 + $0x18] sm:$0xff]   ;;  %v2217_v6 = vld [vmem:[%s3337_s1 + $0x20] sm:$0xff]   ;;  %v2218_v7 = vld [vmem:[%s3337_s1 + $0x28] sm:$0xff]  }
   0xf   : > { %2045 = vmatpush3.bf16.msra.mxu0 %v2213_v0  ;;  %2196 = vmatpush3.bf16.msra.mxu1 %v2213_v0  ;;  %v2219_v8 = vld [vmem:[%s3337_s1 + $0x30] sm:$0xff]   ;;  %v2220_v9 = vld [vmem:[%s3337_s1 + $0x38] sm:$0xff]  }
  0x10   : > { %s3645_s16 = smov (!%p161_p3, %s1893_s16), 255  ;;  %2046 = vmatprep.subr.bf16.mxu0 %v2214_v1  ;;  %2189 = vmatprep.subr.bf16.mxu1 %v2214_v1 }
  0x11   : > { %s1894_s21 = sshll.u32 %s3645_s16, 2  ;;  %s1896_s8 = sshll.u32 %s3645_s16, 3 }
  0x12   : > { %s2339_s24 = scalar_lea.vmem %s3336_s0, %s1894_s21  ;;  %s2424_s11 = scalar_lea.vmem %s3338_s2, %s1896_s8 }
  0x13   : > { %2047 = vmatpush3.bf16.msra.mxu0 %v2214_v1  ;;  %2197 = vmatpush3.bf16.msra.mxu1 %v2214_v1  ;;  %v2221_v4 = vld [vmem:[%s2339_s24] sm:$0xff]   ;;  %v2223_v10 = vld [vmem:[%s2339_s24 + $0x8] sm:$0xff]   ;;  %v2225_v12 = vld [vmem:[%s2339_s24 + $0x10] sm:$0xff]  }
  0x14   : > { %2048 = vmatprep.subr.bf16.mxu0 %v2215_v2  ;;  %2190 = vmatprep.subr.bf16.mxu1 %v2215_v2  ;;  %v2222_v5 = vld [vmem:[%s2339_s24 + $0x100] sm:$0xff]   ;;  %v2224_v11 = vld [vmem:[%s2339_s24 + $0x108] sm:$0xff]   ;;  %v2226_v13 = vld [vmem:[%s2339_s24 + $0x110] sm:$0xff]  }
  0x15   : > { %2060 = vmatprep.mubr.bf16.mxu0 %v2221_v4  ;;  %2124 = vmatprep.mubr.bf16.mxu1 %v2222_v5  ;;  %v2227_v14 = vld [vmem:[%s2339_s24 + $0x18] sm:$0xff]   ;;  %v2229_v16 = vld [vmem:[%s2339_s24 + $0x20] sm:$0xff]   ;;  %v2231_v18 = vld [vmem:[%s2339_s24 + $0x28] sm:$0xff]  }
  0x16   : > { %v2228_v15 = vld [vmem:[%s2339_s24 + $0x118] sm:$0xff]   ;;  %v2230_v17 = vld [vmem:[%s2339_s24 + $0x120] sm:$0xff]   ;;  %v2232_v19 = vld [vmem:[%s2339_s24 + $0x128] sm:$0xff]  }
  0x17   : > { %2049 = vmatpush3.bf16.msra.mxu0 %v2215_v2  ;;  %2198 = vmatpush3.bf16.msra.mxu1 %v2215_v2  ;;  %v2233_v20 = vld [vmem:[%s2339_s24 + $0x30] sm:$0xff]   ;;  %v2235_v22 = vld [vmem:[%s2339_s24 + $0x38] sm:$0xff]   ;;  %v2237_v24 = vld [vmem:[%s2339_s24 + $0x40] sm:$0xff]  }
  0x18   : > { %2050 = vmatprep.subr.bf16.mxu0 %v2216_v3  ;;  %2191 = vmatprep.subr.bf16.mxu1 %v2216_v3  ;;  %v2234_v21 = vld [vmem:[%s2339_s24 + $0x130] sm:$0xff]   ;;  %v2236_v23 = vld [vmem:[%s2339_s24 + $0x138] sm:$0xff]   ;;  %v2238_v25 = vld [vmem:[%s2339_s24 + $0x140] sm:$0xff]  }
  0x19   : > { %v2239_v26 = vld [vmem:[%s2339_s24 + $0x48] sm:$0xff]   ;;  %v2241_v28 = vld [vmem:[%s2339_s24 + $0x50] sm:$0xff]   ;;  %v2243_v30 = vld [vmem:[%s2339_s24 + $0x58] sm:$0xff]  }
  0x1a   : > { %v2240_v27 = vld [vmem:[%s2339_s24 + $0x148] sm:$0xff]   ;;  %v2242_v29 = vld [vmem:[%s2339_s24 + $0x150] sm:$0xff]   ;;  %v2244_v31 = vld [vmem:[%s2339_s24 + $0x158] sm:$0xff]  }
  0x1b   : > { %2051 = vmatpush3.bf16.msra.mxu0 %v2216_v3  ;;  %2199 = vmatpush3.bf16.msra.mxu1 %v2216_v3  ;;  %v2245_v32 = vld [vmem:[%s2339_s24 + $0x60] sm:$0xff]   ;;  %v2247_v34 = vld [vmem:[%s2339_s24 + $0x68] sm:$0xff]   ;;  %v2249_v36 = vld [vmem:[%s2339_s24 + $0x70] sm:$0xff]  }
  0x1c   : > { %2052 = vmatprep.subr.bf16.mxu0 %v2217_v6  ;;  %2192 = vmatprep.subr.bf16.mxu1 %v2217_v6  ;;  %v2246_v33 = vld [vmem:[%s2339_s24 + $0x160] sm:$0xff]   ;;  %v2248_v35 = vld [vmem:[%s2339_s24 + $0x168] sm:$0xff]   ;;  %v2250_v37 = vld [vmem:[%s2339_s24 + $0x170] sm:$0xff]  }
  0x1d   : > { %v2251_v38 = vld [vmem:[%s2339_s24 + $0x78] sm:$0xff]   ;;  %v2253_v40 = vld [vmem:[%s2339_s24 + $0x80] sm:$0xff]   ;;  %v2255_v42 = vld [vmem:[%s2339_s24 + $0x88] sm:$0xff]  }
  0x1e   : > { %v2252_v39 = vld [vmem:[%s2339_s24 + $0x178] sm:$0xff]   ;;  %v2254_v41 = vld [vmem:[%s2339_s24 + $0x180] sm:$0xff]   ;;  %v2256_v43 = vld [vmem:[%s2339_s24 + $0x188] sm:$0xff]  }
  0x1f   : > { %2053 = vmatpush3.bf16.msra.mxu0 %v2217_v6  ;;  %2200 = vmatpush3.bf16.msra.mxu1 %v2217_v6  ;;  %v2257_v44 = vld [vmem:[%s2339_s24 + $0x90] sm:$0xff]   ;;  %v2259_v46 = vld [vmem:[%s2339_s24 + $0x98] sm:$0xff]   ;;  %v2261_v48 = vld [vmem:[%s2339_s24 + $0xa0] sm:$0xff]  }
  0x20   : > { %2054 = vmatprep.subr.bf16.mxu0 %v2218_v7  ;;  %2193 = vmatprep.subr.bf16.mxu1 %v2218_v7  ;;  %v2258_v45 = vld [vmem:[%s2339_s24 + $0x190] sm:$0xff]   ;;  %v2260_v47 = vld [vmem:[%s2339_s24 + $0x198] sm:$0xff]   ;;  %v2262_v49 = vld [vmem:[%s2339_s24 + $0x1a0] sm:$0xff]  }
  0x21   : > { %v2263_v50 = vld [vmem:[%s2339_s24 + $0xa8] sm:$0xff]   ;;  %v2265_v52 = vld [vmem:[%s2339_s24 + $0xb0] sm:$0xff]   ;;  %v2267_v54 = vld [vmem:[%s2339_s24 + $0xb8] sm:$0xff]  }
  0x22   : > { %v2264_v51 = vld [vmem:[%s2339_s24 + $0x1a8] sm:$0xff]   ;;  %v2266_v53 = vld [vmem:[%s2339_s24 + $0x1b0] sm:$0xff]   ;;  %v2268_v55 = vld [vmem:[%s2339_s24 + $0x1b8] sm:$0xff]  }
  0x23   : > { %2055 = vmatpush3.bf16.msra.mxu0 %v2218_v7  ;;  %2201 = vmatpush3.bf16.msra.mxu1 %v2218_v7  ;;  %v2269_v56 = vld [vmem:[%s2339_s24 + $0xc0] sm:$0xff]   ;;  %v2271_v58 = vld [vmem:[%s2339_s24 + $0xc8] sm:$0xff]   ;;  %v2273_v60 = vld [vmem:[%s2339_s24 + $0xd0] sm:$0xff]  }
  0x24   : > { %2056 = vmatprep.subr.bf16.mxu0 %v2219_v8  ;;  %2194 = vmatprep.subr.bf16.mxu1 %v2219_v8  ;;  %v2270_v57 = vld [vmem:[%s2339_s24 + $0x1c0] sm:$0xff]   ;;  %v2272_v59 = vld [vmem:[%s2339_s24 + $0x1c8] sm:$0xff]   ;;  %v2274_v61 = vld [vmem:[%s2339_s24 + $0x1d0] sm:$0xff]  }
  0x25   : > { %v2275_v62 = vld [vmem:[%s2339_s24 + $0xd8] sm:$0xff]   ;;  %v2277_v0 = vld [vmem:[%s2339_s24 + $0xe0] sm:$0xff]   ;;  %v2279_v2 = vld [vmem:[%s2339_s24 + $0xe8] sm:$0xff]  }
  0x26   : > { %v2276_v63 = vld [vmem:[%s2339_s24 + $0x1d8] sm:$0xff]   ;;  %v2278_v1 = vld [vmem:[%s2339_s24 + $0x1e0] sm:$0xff]   ;;  %v2280_v3 = vld [vmem:[%s2339_s24 + $0x1e8] sm:$0xff]  }
  0x27   : > { %2057 = vmatpush3.bf16.msra.mxu0 %v2219_v8  ;;  %2202 = vmatpush3.bf16.msra.mxu1 %v2219_v8  ;;  %v2281_v4 = vld [vmem:[%s2339_s24 + $0xf0] sm:$0xff]   ;;  %v2283_v6 = vld [vmem:[%s2339_s24 + $0xf8] sm:$0xff]  }
  0x28   : > { %2058 = vmatprep.subr.bf16.mxu0 %v2220_v9  ;;  %2195 = vmatprep.subr.bf16.mxu1 %v2220_v9  ;;  %v2282_v5 = vld [vmem:[%s2339_s24 + $0x1f0] sm:$0xff]   ;;  %v2284_v7 = vld [vmem:[%s2339_s24 + $0x1f8] sm:$0xff]  }
  0x2b   : > { %2059 = vmatpush3.bf16.msra.mxu0 %v2220_v9  ;;  %2203 = vmatpush3.bf16.msra.mxu1 %v2220_v9 }
  0x2e   : > { %2061 = vmatmul.mubr.bf16.vlgmr.msra.gmra.mrb[0].mxu0 %v2223_v10  ;;  %2125 = vmatmul.mubr.bf16.vlgmr.msra.gmra.mrb[0].mxu1 %v2224_v11 }
  0x2f   : > { %2064 = vmatprep.mubr.bf16.mxu0 %v2225_v12  ;;  %2128 = vmatprep.mubr.bf16.mxu1 %v2226_v13 }
  0x36   : > { %2065 = vmatmul.mubr.bf16.gmra.mrb[4].mxu0 %v2227_v14  ;;  %2129 = vmatmul.mubr.bf16.gmra.mrb[4].mxu1 %v2228_v15 }
  0x37   : > { %2068 = vmatprep.mubr.bf16.mxu0 %v2229_v16  ;;  %2132 = vmatprep.mubr.bf16.mxu1 %v2230_v17 }
  0x3e   : > { %2069 = vmatmul.mubr.bf16.gmra.mrb[8].mxu0 %v2231_v18  ;;  %2133 = vmatmul.mubr.bf16.gmra.mrb[8].mxu1 %v2232_v19 }
  0x3f   : > { %2072 = vmatprep.mubr.bf16.mxu0 %v2233_v20  ;;  %2136 = vmatprep.mubr.bf16.mxu1 %v2234_v21 }
  0x46   : > { %2073 = vmatmul.mubr.bf16.gmra.mrb[12].mxu0 %v2235_v22  ;;  %2137 = vmatmul.mubr.bf16.gmra.mrb[12].mxu1 %v2236_v23 }
  0x47   : > { %2076 = vmatprep.mubr.bf16.mxu0 %v2237_v24  ;;  %2140 = vmatprep.mubr.bf16.mxu1 %v2238_v25 }
  0x4e   : > { %2077 = vmatmul.mubr.bf16.gmra.mrb[16].mxu0 %v2239_v26  ;;  %2141 = vmatmul.mubr.bf16.gmra.mrb[16].mxu1 %v2240_v27 }
  0x4f   : > { %2080 = vmatprep.mubr.bf16.mxu0 %v2241_v28  ;;  %2144 = vmatprep.mubr.bf16.mxu1 %v2242_v29 }
  0x56   : > { %2081 = vmatmul.mubr.bf16.gmra.mrb[20].mxu0 %v2243_v30  ;;  %2145 = vmatmul.mubr.bf16.gmra.mrb[20].mxu1 %v2244_v31 }
  0x57   : > { %2084 = vmatprep.mubr.bf16.mxu0 %v2245_v32  ;;  %2148 = vmatprep.mubr.bf16.mxu1 %v2246_v33 }
  0x5e   : > { %2085 = vmatmul.mubr.bf16.gmra.mrb[24].mxu0 %v2247_v34  ;;  %2149 = vmatmul.mubr.bf16.gmra.mrb[24].mxu1 %v2248_v35 }
  0x5f   : > { %2088 = vmatprep.mubr.bf16.mxu0 %v2249_v36  ;;  %2152 = vmatprep.mubr.bf16.mxu1 %v2250_v37 }
  0x66   : > { %2089 = vmatmul.mubr.bf16.gmra.mrb[28].mxu0 %v2251_v38  ;;  %2153 = vmatmul.mubr.bf16.gmra.mrb[28].mxu1 %v2252_v39 }
  0x67   : > { %2092 = vmatprep.mubr.bf16.mxu0 %v2253_v40  ;;  %2156 = vmatprep.mubr.bf16.mxu1 %v2254_v41 }
  0x6e   : > { %2093 = vmatmul.mubr.bf16.gmra.mrb[32].mxu0 %v2255_v42  ;;  %2157 = vmatmul.mubr.bf16.gmra.mrb[32].mxu1 %v2256_v43 }
  0x6f   : > { %2096 = vmatprep.mubr.bf16.mxu0 %v2257_v44  ;;  %2160 = vmatprep.mubr.bf16.mxu1 %v2258_v45 }
  0x76   : > { %2097 = vmatmul.mubr.bf16.gmra.mrb[36].mxu0 %v2259_v46  ;;  %2161 = vmatmul.mubr.bf16.gmra.mrb[36].mxu1 %v2260_v47 }
  0x77   : > { %2100 = vmatprep.mubr.bf16.mxu0 %v2261_v48  ;;  %2164 = vmatprep.mubr.bf16.mxu1 %v2262_v49 }
  0x7e   : > { %2101 = vmatmul.mubr.bf16.gmra.mrb[40].mxu0 %v2263_v50  ;;  %2165 = vmatmul.mubr.bf16.gmra.mrb[40].mxu1 %v2264_v51 }
  0x7f   : > { %2104 = vmatprep.mubr.bf16.mxu0 %v2265_v52  ;;  %2168 = vmatprep.mubr.bf16.mxu1 %v2266_v53 }
  0x86   : > { %2105 = vmatmul.mubr.bf16.gmra.mrb[44].mxu0 %v2267_v54  ;;  %2169 = vmatmul.mubr.bf16.gmra.mrb[44].mxu1 %v2268_v55 }
  0x87   : > { %2108 = vmatprep.mubr.bf16.mxu0 %v2269_v56  ;;  %2172 = vmatprep.mubr.bf16.mxu1 %v2270_v57 }
  0x8e   : > { %2109 = vmatmul.mubr.bf16.gmra.mrb[48].mxu0 %v2271_v58  ;;  %2173 = vmatmul.mubr.bf16.gmra.mrb[48].mxu1 %v2272_v59 }
  0x8f   : > { %2112 = vmatprep.mubr.bf16.mxu0 %v2273_v60  ;;  %2176 = vmatprep.mubr.bf16.mxu1 %v2274_v61 }
  0x96   : > { %2113 = vmatmul.mubr.bf16.gmra.mrb[52].mxu0 %v2275_v62  ;;  %2177 = vmatmul.mubr.bf16.gmra.mrb[52].mxu1 %v2276_v63 }
  0x97   : > { %2116 = vmatprep.mubr.bf16.mxu0 %v2277_v0  ;;  %2180 = vmatprep.mubr.bf16.mxu1 %v2278_v1 }
  0x9e   : > { %2117 = vmatmul.mubr.bf16.gmra.mrb[56].mxu0 %v2279_v2  ;;  %2181 = vmatmul.mubr.bf16.gmra.mrb[56].mxu1 %v2280_v3 }
  0x9f   : > { %2120 = vmatprep.mubr.bf16.mxu0 %v2281_v4  ;;  %2184 = vmatprep.mubr.bf16.mxu1 %v2282_v5 }
  0xa6   : > { %2121 = vmatmul.mubr.bf16.gmra.mrb[60].mxu0 %v2283_v6  ;;  %2185 = vmatmul.mubr.bf16.gmra.mrb[60].mxu1 %v2284_v7 }
 0x101   : > { %v2426_v8 = vpop.f32.mrb[0].mxu0  ;;  %v2428_v9 = vpop.f32.mrb[0].mxu1 }
 0x102   : > { %3492 = vst [vmem:[#allocation2_spill] sm:$0xff] %v2428_v9  ;;  %1296 = vst [vmem:[%s2424_s11 + $0x10] sm:$0xff] %v2426_v8  ;;  %v2434_v10 = vpop.f32.mrb[1].mxu0  ;;  %v2436_v11 = vpop.f32.mrb[1].mxu1 }
 0x103   : > { %1360 = vst [vmem:[%s2424_s11 + $0x210] sm:$0xff] %v2428_v9  ;;  %3493 = vst [vmem:[#allocation3_spill] sm:$0xff] %v2436_v11  ;;  %v2442_v12 = vpop.f32.mrb[2].mxu0  ;;  %v2444_v13 = vpop.f32.mrb[2].mxu1 }
 0x104   : > { %1294 = vst [vmem:[%s2424_s11] sm:$0xff] %v2434_v10  ;;  %1358 = vst [vmem:[%s2424_s11 + $0x200] sm:$0xff] %v2436_v11  ;;  %v2450_v14 = vpop.f32.mrb[3].mxu0  ;;  %v2452_v15 = vpop.f32.mrb[3].mxu1 }
 0x105   : > { %3494 = vst [vmem:[#allocation4_spill] sm:$0xff] %v2444_v13  ;;  %1297 = vst [vmem:[%s2424_s11 + $0x18] sm:$0xff] %v2442_v12 }
 0x106   : > { %1361 = vst [vmem:[%s2424_s11 + $0x218] sm:$0xff] %v2444_v13  ;;  %3495 = vst [vmem:[#allocation5_spill] sm:$0xff] %v2452_v15 }
 0x107   : > { %1295 = vst [vmem:[%s2424_s11 + $0x8] sm:$0xff] %v2450_v14  ;;  %1359 = vst [vmem:[%s2424_s11 + $0x208] sm:$0xff] %v2452_v15 }
 0x109   : > { %v2458_v16 = vpop.f32.mrb[4].mxu0  ;;  %v2460_v17 = vpop.f32.mrb[4].mxu1 }
 0x10a   : > { %3496 = vst [vmem:[#allocation6_spill] sm:$0xff] %v2460_v17  ;;  %1300 = vst [vmem:[%s2424_s11 + $0x30] sm:$0xff] %v2458_v16  ;;  %v2466_v18 = vpop.f32.mrb[5].mxu0  ;;  %v2468_v19 = vpop.f32.mrb[5].mxu1 }
 0x10b   : > { %1364 = vst [vmem:[%s2424_s11 + $0x230] sm:$0xff] %v2460_v17  ;;  %3497 = vst [vmem:[#allocation7_spill] sm:$0xff] %v2468_v19  ;;  %v2474_v20 = vpop.f32.mrb[6].mxu0  ;;  %v2476_v21 = vpop.f32.mrb[6].mxu1 }
 0x10c   : > { %1298 = vst [vmem:[%s2424_s11 + $0x20] sm:$0xff] %v2466_v18  ;;  %1362 = vst [vmem:[%s2424_s11 + $0x220] sm:$0xff] %v2468_v19  ;;  %v2482_v22 = vpop.f32.mrb[7].mxu0  ;;  %v2484_v23 = vpop.f32.mrb[7].mxu1 }
 0x10d   : > { %3498 = vst [vmem:[#allocation8_spill] sm:$0xff] %v2476_v21  ;;  %1301 = vst [vmem:[%s2424_s11 + $0x38] sm:$0xff] %v2474_v20 }
 0x10e   : > { %1365 = vst [vmem:[%s2424_s11 + $0x238] sm:$0xff] %v2476_v21  ;;  %3499 = vst [vmem:[#allocation9_spill] sm:$0xff] %v2484_v23 }
 0x10f   : > { %1299 = vst [vmem:[%s2424_s11 + $0x28] sm:$0xff] %v2482_v22  ;;  %1363 = vst [vmem:[%s2424_s11 + $0x228] sm:$0xff] %v2484_v23 }
 0x111   : > { %v2490_v24 = vpop.f32.mrb[8].mxu0  ;;  %v2492_v25 = vpop.f32.mrb[8].mxu1 }
 0x112   : > { %3500 = vst [vmem:[#allocation10_spill] sm:$0xff] %v2492_v25  ;;  %1304 = vst [vmem:[%s2424_s11 + $0x50] sm:$0xff] %v2490_v24  ;;  %v2498_v26 = vpop.f32.mrb[9].mxu0  ;;  %v2500_v27 = vpop.f32.mrb[9].mxu1 }
 0x113   : > { %1368 = vst [vmem:[%s2424_s11 + $0x250] sm:$0xff] %v2492_v25  ;;  %3501 = vst [vmem:[#allocation11_spill] sm:$0xff] %v2500_v27  ;;  %v2506_v28 = vpop.f32.mrb[10].mxu0  ;;  %v2508_v29 = vpop.f32.mrb[10].mxu1 }
 0x114   : > { %1302 = vst [vmem:[%s2424_s11 + $0x40] sm:$0xff] %v2498_v26  ;;  %1366 = vst [vmem:[%s2424_s11 + $0x240] sm:$0xff] %v2500_v27  ;;  %v2514_v30 = vpop.f32.mrb[11].mxu0  ;;  %v2516_v31 = vpop.f32.mrb[11].mxu1 }
 0x115   : > { %3502 = vst [vmem:[#allocation12_spill] sm:$0xff] %v2508_v29  ;;  %1305 = vst [vmem:[%s2424_s11 + $0x58] sm:$0xff] %v2506_v28 }
 0x116   : > { %1369 = vst [vmem:[%s2424_s11 + $0x258] sm:$0xff] %v2508_v29  ;;  %3503 = vst [vmem:[#allocation13_spill] sm:$0xff] %v2516_v31 }
 0x117   : > { %1303 = vst [vmem:[%s2424_s11 + $0x48] sm:$0xff] %v2514_v30  ;;  %1367 = vst [vmem:[%s2424_s11 + $0x248] sm:$0xff] %v2516_v31 }
 0x119   : > { %v2522_v32 = vpop.f32.mrb[12].mxu0  ;;  %v2524_v33 = vpop.f32.mrb[12].mxu1 }
 0x11a   : > { %3504 = vst [vmem:[#allocation14_spill] sm:$0xff] %v2524_v33  ;;  %1308 = vst [vmem:[%s2424_s11 + $0x70] sm:$0xff] %v2522_v32  ;;  %v2530_v34 = vpop.f32.mrb[13].mxu0  ;;  %v2532_v35 = vpop.f32.mrb[13].mxu1 }
 0x11b   : > { %1372 = vst [vmem:[%s2424_s11 + $0x270] sm:$0xff] %v2524_v33  ;;  %3505 = vst [vmem:[#allocation15_spill] sm:$0xff] %v2532_v35  ;;  %v2538_v36 = vpop.f32.mrb[14].mxu0  ;;  %v2540_v37 = vpop.f32.mrb[14].mxu1 }
 0x11c   : > { %1306 = vst [vmem:[%s2424_s11 + $0x60] sm:$0xff] %v2530_v34  ;;  %1370 = vst [vmem:[%s2424_s11 + $0x260] sm:$0xff] %v2532_v35  ;;  %v2546_v38 = vpop.f32.mrb[15].mxu0  ;;  %v2548_v39 = vpop.f32.mrb[15].mxu1 }
 0x11d   : > { %3506 = vst [vmem:[#allocation16_spill] sm:$0xff] %v2540_v37  ;;  %1309 = vst [vmem:[%s2424_s11 + $0x78] sm:$0xff] %v2538_v36 }
 0x11e   : > { %1373 = vst [vmem:[%s2424_s11 + $0x278] sm:$0xff] %v2540_v37  ;;  %3507 = vst [vmem:[#allocation17_spill] sm:$0xff] %v2548_v39 }
 0x11f   : > { %1307 = vst [vmem:[%s2424_s11 + $0x68] sm:$0xff] %v2546_v38  ;;  %1371 = vst [vmem:[%s2424_s11 + $0x268] sm:$0xff] %v2548_v39 }
 0x121   : > { %v2554_v40 = vpop.f32.mrb[16].mxu0  ;;  %v2556_v41 = vpop.f32.mrb[16].mxu1 }
 0x122   : > { %3508 = vst [vmem:[#allocation18_spill] sm:$0xff] %v2556_v41  ;;  %1312 = vst [vmem:[%s2424_s11 + $0x90] sm:$0xff] %v2554_v40  ;;  %v2562_v42 = vpop.f32.mrb[17].mxu0  ;;  %v2564_v43 = vpop.f32.mrb[17].mxu1 }
 0x123   : > { %1376 = vst [vmem:[%s2424_s11 + $0x290] sm:$0xff] %v2556_v41  ;;  %3509 = vst [vmem:[#allocation19_spill] sm:$0xff] %v2564_v43  ;;  %v2570_v44 = vpop.f32.mrb[18].mxu0  ;;  %v2572_v45 = vpop.f32.mrb[18].mxu1 }
 0x124   : > { %1310 = vst [vmem:[%s2424_s11 + $0x80] sm:$0xff] %v2562_v42  ;;  %1374 = vst [vmem:[%s2424_s11 + $0x280] sm:$0xff] %v2564_v43  ;;  %v2578_v46 = vpop.f32.mrb[19].mxu0  ;;  %v2580_v47 = vpop.f32.mrb[19].mxu1 }
 0x125   : > { %3510 = vst [vmem:[#allocation20_spill] sm:$0xff] %v2572_v45  ;;  %1313 = vst [vmem:[%s2424_s11 + $0x98] sm:$0xff] %v2570_v44 }
 0x126   : > { %1377 = vst [vmem:[%s2424_s11 + $0x298] sm:$0xff] %v2572_v45  ;;  %3511 = vst [vmem:[#allocation21_spill] sm:$0xff] %v2580_v47 }
 0x127   : > { %1311 = vst [vmem:[%s2424_s11 + $0x88] sm:$0xff] %v2578_v46  ;;  %1375 = vst [vmem:[%s2424_s11 + $0x288] sm:$0xff] %v2580_v47 }
 0x129   : > { %v2586_v48 = vpop.f32.mrb[20].mxu0  ;;  %v2588_v49 = vpop.f32.mrb[20].mxu1 }
 0x12a   : > { %3512 = vst [vmem:[#allocation22_spill] sm:$0xff] %v2588_v49  ;;  %1316 = vst [vmem:[%s2424_s11 + $0xb0] sm:$0xff] %v2586_v48  ;;  %v2594_v50 = vpop.f32.mrb[21].mxu0  ;;  %v2596_v51 = vpop.f32.mrb[21].mxu1 }
 0x12b   : > { %1380 = vst [vmem:[%s2424_s11 + $0x2b0] sm:$0xff] %v2588_v49  ;;  %3513 = vst [vmem:[#allocation23_spill] sm:$0xff] %v2596_v51  ;;  %v2602_v52 = vpop.f32.mrb[22].mxu0  ;;  %v2604_v53 = vpop.f32.mrb[22].mxu1 }
 0x12c   : > { %1314 = vst [vmem:[%s2424_s11 + $0xa0] sm:$0xff] %v2594_v50  ;;  %1378 = vst [vmem:[%s2424_s11 + $0x2a0] sm:$0xff] %v2596_v51  ;;  %v2610_v54 = vpop.f32.mrb[23].mxu0  ;;  %v2612_v55 = vpop.f32.mrb[23].mxu1 }
 0x12d   : > { %3514 = vst [vmem:[#allocation24_spill] sm:$0xff] %v2604_v53  ;;  %1317 = vst [vmem:[%s2424_s11 + $0xb8] sm:$0xff] %v2602_v52 }
 0x12e   : > { %1381 = vst [vmem:[%s2424_s11 + $0x2b8] sm:$0xff] %v2604_v53  ;;  %3515 = vst [vmem:[#allocation25_spill] sm:$0xff] %v2612_v55 }
 0x12f   : > { %1315 = vst [vmem:[%s2424_s11 + $0xa8] sm:$0xff] %v2610_v54  ;;  %1379 = vst [vmem:[%s2424_s11 + $0x2a8] sm:$0xff] %v2612_v55 }
 0x131   : > { %v2618_v56 = vpop.f32.mrb[24].mxu0  ;;  %v2620_v57 = vpop.f32.mrb[24].mxu1 }
 0x132   : > { %3516 = vst [vmem:[#allocation26_spill] sm:$0xff] %v2620_v57  ;;  %1320 = vst [vmem:[%s2424_s11 + $0xd0] sm:$0xff] %v2618_v56  ;;  %v2626_v58 = vpop.f32.mrb[25].mxu0  ;;  %v2628_v59 = vpop.f32.mrb[25].mxu1 }
 0x133   : > { %1384 = vst [vmem:[%s2424_s11 + $0x2d0] sm:$0xff] %v2620_v57  ;;  %3517 = vst [vmem:[#allocation27_spill] sm:$0xff] %v2628_v59  ;;  %v2634_v60 = vpop.f32.mrb[26].mxu0  ;;  %v2636_v61 = vpop.f32.mrb[26].mxu1 }
 0x134   : > { %1318 = vst [vmem:[%s2424_s11 + $0xc0] sm:$0xff] %v2626_v58  ;;  %1382 = vst [vmem:[%s2424_s11 + $0x2c0] sm:$0xff] %v2628_v59  ;;  %v2642_v62 = vpop.f32.mrb[27].mxu0  ;;  %v2644_v63 = vpop.f32.mrb[27].mxu1 }
 0x135   : > { %3518 = vst [vmem:[#allocation28_spill] sm:$0xff] %v2636_v61  ;;  %1321 = vst [vmem:[%s2424_s11 + $0xd8] sm:$0xff] %v2634_v60 }
 0x136   : > { %1385 = vst [vmem:[%s2424_s11 + $0x2d8] sm:$0xff] %v2636_v61  ;;  %3519 = vst [vmem:[#allocation29_spill] sm:$0xff] %v2644_v63 }
 0x137   : > { %1319 = vst [vmem:[%s2424_s11 + $0xc8] sm:$0xff] %v2642_v62  ;;  %1383 = vst [vmem:[%s2424_s11 + $0x2c8] sm:$0xff] %v2644_v63 }
 0x139   : > { %v2650_v0 = vpop.f32.mrb[28].mxu0  ;;  %v2652_v1 = vpop.f32.mrb[28].mxu1 }
 0x13a   : > { %3520 = vst [vmem:[#allocation30_spill] sm:$0xff] %v2652_v1  ;;  %1324 = vst [vmem:[%s2424_s11 + $0xf0] sm:$0xff] %v2650_v0  ;;  %v2658_v2 = vpop.f32.mrb[29].mxu0  ;;  %v2660_v3 = vpop.f32.mrb[29].mxu1 }
 0x13b   : > { %1388 = vst [vmem:[%s2424_s11 + $0x2f0] sm:$0xff] %v2652_v1  ;;  %3521 = vst [vmem:[#allocation31_spill] sm:$0xff] %v2660_v3  ;;  %v2666_v4 = vpop.f32.mrb[30].mxu0  ;;  %v2668_v5 = vpop.f32.mrb[30].mxu1 }
 0x13c   : > { %1322 = vst [vmem:[%s2424_s11 + $0xe0] sm:$0xff] %v2658_v2  ;;  %1386 = vst [vmem:[%s2424_s11 + $0x2e0] sm:$0xff] %v2660_v3  ;;  %v2674_v6 = vpop.f32.mrb[31].mxu0  ;;  %v2676_v7 = vpop.f32.mrb[31].mxu1 }
 0x13d   : > { %3522 = vst [vmem:[#allocation32_spill] sm:$0xff] %v2668_v5  ;;  %1325 = vst [vmem:[%s2424_s11 + $0xf8] sm:$0xff] %v2666_v4 }
 0x13e   : > { %1389 = vst [vmem:[%s2424_s11 + $0x2f8] sm:$0xff] %v2668_v5  ;;  %3523 = vst [vmem:[#allocation33_spill] sm:$0xff] %v2676_v7 }
 0x13f   : > { %1323 = vst [vmem:[%s2424_s11 + $0xe8] sm:$0xff] %v2674_v6  ;;  %1387 = vst [vmem:[%s2424_s11 + $0x2e8] sm:$0xff] %v2676_v7 }
 0x141   : > { %v2682_v1 = vpop.f32.mrb[32].mxu0  ;;  %v2684_v3 = vpop.f32.mrb[32].mxu1 }
 0x142   : > { %3524 = vst [vmem:[#allocation34_spill] sm:$0xff] %v2684_v3  ;;  %1328 = vst [vmem:[%s2424_s11 + $0x110] sm:$0xff] %v2682_v1  ;;  %v2690_v5 = vpop.f32.mrb[33].mxu0  ;;  %v2692_v61 = vpop.f32.mrb[33].mxu1 }
 0x143   : > { %1392 = vst [vmem:[%s2424_s11 + $0x310] sm:$0xff] %v2684_v3  ;;  %3525 = vst [vmem:[#allocation35_spill] sm:$0xff] %v2692_v61  ;;  %v2698_v7 = vpop.f32.mrb[34].mxu0  ;;  %v2700_v57 = vpop.f32.mrb[34].mxu1 }
 0x144   : > { %1326 = vst [vmem:[%s2424_s11 + $0x100] sm:$0xff] %v2690_v5  ;;  %1390 = vst [vmem:[%s2424_s11 + $0x300] sm:$0xff] %v2692_v61  ;;  %v2706_v3 = vpop.f32.mrb[35].mxu0  ;;  %v2708_v63 = vpop.f32.mrb[35].mxu1 }
 0x145   : > { %3526 = vst [vmem:[#allocation36_spill] sm:$0xff] %v2700_v57  ;;  %1329 = vst [vmem:[%s2424_s11 + $0x118] sm:$0xff] %v2698_v7 }
 0x146   : > { %1393 = vst [vmem:[%s2424_s11 + $0x318] sm:$0xff] %v2700_v57  ;;  %3527 = vst [vmem:[#allocation37_spill] sm:$0xff] %v2708_v63 }
 0x147   : > { %1327 = vst [vmem:[%s2424_s11 + $0x108] sm:$0xff] %v2706_v3  ;;  %1391 = vst [vmem:[%s2424_s11 + $0x308] sm:$0xff] %v2708_v63 }
 0x149   : > { %v2714_v61 = vpop.f32.mrb[36].mxu0  ;;  %v2716_v59 = vpop.f32.mrb[36].mxu1 }
 0x14a   : > { %3528 = vst [vmem:[#allocation38_spill] sm:$0xff] %v2716_v59  ;;  %1332 = vst [vmem:[%s2424_s11 + $0x130] sm:$0xff] %v2714_v61  ;;  %v2722_v57 = vpop.f32.mrb[37].mxu0  ;;  %v2724_v53 = vpop.f32.mrb[37].mxu1 }
 0x14b   : > { %1396 = vst [vmem:[%s2424_s11 + $0x330] sm:$0xff] %v2716_v59  ;;  %3529 = vst [vmem:[#allocation39_spill] sm:$0xff] %v2724_v53  ;;  %v2730_v63 = vpop.f32.mrb[38].mxu0  ;;  %v2732_v49 = vpop.f32.mrb[38].mxu1 }
 0x14c   : > { %1330 = vst [vmem:[%s2424_s11 + $0x120] sm:$0xff] %v2722_v57  ;;  %1394 = vst [vmem:[%s2424_s11 + $0x320] sm:$0xff] %v2724_v53  ;;  %v2738_v59 = vpop.f32.mrb[39].mxu0  ;;  %v2740_v55 = vpop.f32.mrb[39].mxu1 }
 0x14d   : > { %3530 = vst [vmem:[#allocation40_spill] sm:$0xff] %v2732_v49  ;;  %1333 = vst [vmem:[%s2424_s11 + $0x138] sm:$0xff] %v2730_v63 }
 0x14e   : > { %1397 = vst [vmem:[%s2424_s11 + $0x338] sm:$0xff] %v2732_v49  ;;  %3531 = vst [vmem:[#allocation41_spill] sm:$0xff] %v2740_v55 }
 0x14f   : > { %1331 = vst [vmem:[%s2424_s11 + $0x128] sm:$0xff] %v2738_v59  ;;  %1395 = vst [vmem:[%s2424_s11 + $0x328] sm:$0xff] %v2740_v55 }
 0x151   : > { %v2746_v53 = vpop.f32.mrb[40].mxu0  ;;  %v2748_v51 = vpop.f32.mrb[40].mxu1 }
 0x152   : > { %3532 = vst [vmem:[#allocation42_spill] sm:$0xff] %v2748_v51  ;;  %1336 = vst [vmem:[%s2424_s11 + $0x150] sm:$0xff] %v2746_v53  ;;  %v2754_v49 = vpop.f32.mrb[41].mxu0  ;;  %v2756_v45 = vpop.f32.mrb[41].mxu1 }
 0x153   : > { %1400 = vst [vmem:[%s2424_s11 + $0x350] sm:$0xff] %v2748_v51  ;;  %3533 = vst [vmem:[#allocation43_spill] sm:$0xff] %v2756_v45  ;;  %v2762_v55 = vpop.f32.mrb[42].mxu0  ;;  %v2764_v41 = vpop.f32.mrb[42].mxu1 }
 0x154   : > { %1334 = vst [vmem:[%s2424_s11 + $0x140] sm:$0xff] %v2754_v49  ;;  %1398 = vst [vmem:[%s2424_s11 + $0x340] sm:$0xff] %v2756_v45  ;;  %v2770_v51 = vpop.f32.mrb[43].mxu0  ;;  %v2772_v47 = vpop.f32.mrb[43].mxu1 }
 0x155   : > { %3534 = vst [vmem:[#allocation44_spill] sm:$0xff] %v2764_v41  ;;  %1337 = vst [vmem:[%s2424_s11 + $0x158] sm:$0xff] %v2762_v55 }
 0x156   : > { %1401 = vst [vmem:[%s2424_s11 + $0x358] sm:$0xff] %v2764_v41  ;;  %3535 = vst [vmem:[#allocation45_spill] sm:$0xff] %v2772_v47 }
 0x157   : > { %1335 = vst [vmem:[%s2424_s11 + $0x148] sm:$0xff] %v2770_v51  ;;  %1399 = vst [vmem:[%s2424_s11 + $0x348] sm:$0xff] %v2772_v47 }
 0x159   : > { %v2778_v45 = vpop.f32.mrb[44].mxu0  ;;  %v2780_v43 = vpop.f32.mrb[44].mxu1 }
 0x15a   : > { %3536 = vst [vmem:[#allocation46_spill] sm:$0xff] %v2780_v43  ;;  %1340 = vst [vmem:[%s2424_s11 + $0x170] sm:$0xff] %v2778_v45  ;;  %v2786_v41 = vpop.f32.mrb[45].mxu0  ;;  %v2788_v37 = vpop.f32.mrb[45].mxu1 }
 0x15b   : > { %1404 = vst [vmem:[%s2424_s11 + $0x370] sm:$0xff] %v2780_v43  ;;  %3537 = vst [vmem:[#allocation47_spill] sm:$0xff] %v2788_v37  ;;  %v2794_v47 = vpop.f32.mrb[46].mxu0  ;;  %v2796_v33 = vpop.f32.mrb[46].mxu1 }
 0x15c   : > { %1338 = vst [vmem:[%s2424_s11 + $0x160] sm:$0xff] %v2786_v41  ;;  %1402 = vst [vmem:[%s2424_s11 + $0x360] sm:$0xff] %v2788_v37  ;;  %v2802_v43 = vpop.f32.mrb[47].mxu0  ;;  %v2804_v39 = vpop.f32.mrb[47].mxu1 }
 0x15d   : > { %3538 = vst [vmem:[#allocation48_spill] sm:$0xff] %v2796_v33  ;;  %1341 = vst [vmem:[%s2424_s11 + $0x178] sm:$0xff] %v2794_v47 }
 0x15e   : > { %1405 = vst [vmem:[%s2424_s11 + $0x378] sm:$0xff] %v2796_v33  ;;  %3539 = vst [vmem:[#allocation49_spill] sm:$0xff] %v2804_v39 }
 0x15f   : > { %1339 = vst [vmem:[%s2424_s11 + $0x168] sm:$0xff] %v2802_v43  ;;  %1403 = vst [vmem:[%s2424_s11 + $0x368] sm:$0xff] %v2804_v39 }
 0x161   : > { %v2810_v37 = vpop.f32.mrb[48].mxu0  ;;  %v2812_v35 = vpop.f32.mrb[48].mxu1 }
 0x162   : > { %3540 = vst [vmem:[#allocation50_spill] sm:$0xff] %v2812_v35  ;;  %1344 = vst [vmem:[%s2424_s11 + $0x190] sm:$0xff] %v2810_v37  ;;  %v2818_v33 = vpop.f32.mrb[49].mxu0  ;;  %v2820_v29 = vpop.f32.mrb[49].mxu1 }
 0x163   : > { %1408 = vst [vmem:[%s2424_s11 + $0x390] sm:$0xff] %v2812_v35  ;;  %3541 = vst [vmem:[#allocation51_spill] sm:$0xff] %v2820_v29  ;;  %v2826_v39 = vpop.f32.mrb[50].mxu0  ;;  %v2828_v25 = vpop.f32.mrb[50].mxu1 }
 0x164   : > { %1342 = vst [vmem:[%s2424_s11 + $0x180] sm:$0xff] %v2818_v33  ;;  %1406 = vst [vmem:[%s2424_s11 + $0x380] sm:$0xff] %v2820_v29  ;;  %v2834_v35 = vpop.f32.mrb[51].mxu0  ;;  %v2836_v31 = vpop.f32.mrb[51].mxu1 }
 0x165   : > { %3542 = vst [vmem:[#allocation52_spill] sm:$0xff] %v2828_v25  ;;  %1345 = vst [vmem:[%s2424_s11 + $0x198] sm:$0xff] %v2826_v39 }
 0x166   : > { %1409 = vst [vmem:[%s2424_s11 + $0x398] sm:$0xff] %v2828_v25  ;;  %3543 = vst [vmem:[#allocation53_spill] sm:$0xff] %v2836_v31 }
 0x167   : > { %1343 = vst [vmem:[%s2424_s11 + $0x188] sm:$0xff] %v2834_v35  ;;  %1407 = vst [vmem:[%s2424_s11 + $0x388] sm:$0xff] %v2836_v31 }
 0x169   : > { %v2842_v29 = vpop.f32.mrb[52].mxu0  ;;  %v2844_v27 = vpop.f32.mrb[52].mxu1 }
 0x16a   : > { %3544 = vst [vmem:[#allocation54_spill] sm:$0xff] %v2842_v29  ;;  %3545 = vst [vmem:[#allocation55_spill] sm:$0xff] %v2844_v27  ;;  %v2850_v25 = vpop.f32.mrb[53].mxu0  ;;  %v2852_v21 = vpop.f32.mrb[53].mxu1 }
 0x16b   : > { %1348 = vst [vmem:[%s2424_s11 + $0x1b0] sm:$0xff] %v2842_v29  ;;  %1412 = vst [vmem:[%s2424_s11 + $0x3b0] sm:$0xff] %v2844_v27  ;;  %v2858_v31 = vpop.f32.mrb[54].mxu0  ;;  %v2860_v17 = vpop.f32.mrb[54].mxu1 }
 0x16c   : > { %3546 = vst [vmem:[#allocation56_spill] sm:$0xff] %v2850_v25  ;;  %3547 = vst [vmem:[#allocation57_spill] sm:$0xff] %v2852_v21  ;;  %v2866_v27 = vpop.f32.mrb[55].mxu0  ;;  %v2868_v23 = vpop.f32.mrb[55].mxu1 }
 0x16d   : > { %1346 = vst [vmem:[%s2424_s11 + $0x1a0] sm:$0xff] %v2850_v25  ;;  %1410 = vst [vmem:[%s2424_s11 + $0x3a0] sm:$0xff] %v2852_v21 }
 0x16e   : > { %3548 = vst [vmem:[#allocation58_spill] sm:$0xff] %v2858_v31  ;;  %3549 = vst [vmem:[#allocation59_spill] sm:$0xff] %v2860_v17 }
 0x16f   : > { %1349 = vst [vmem:[%s2424_s11 + $0x1b8] sm:$0xff] %v2858_v31  ;;  %1413 = vst [vmem:[%s2424_s11 + $0x3b8] sm:$0xff] %v2860_v17 }
 0x170   : > { %3550 = vst [vmem:[#allocation60_spill] sm:$0xff] %v2866_v27  ;;  %3551 = vst [vmem:[#allocation61_spill] sm:$0xff] %v2868_v23 }
 0x171   : > { %1347 = vst [vmem:[%s2424_s11 + $0x1a8] sm:$0xff] %v2866_v27  ;;  %1411 = vst [vmem:[%s2424_s11 + $0x3a8] sm:$0xff] %v2868_v23  ;;  %v2874_v21 = vpop.f32.mrb[56].mxu0  ;;  %v2876_v19 = vpop.f32.mrb[56].mxu1 }
 0x172   : > { %3552 = vst [vmem:[#allocation62_spill] sm:$0xff] %v2874_v21  ;;  %3553 = vst [vmem:[#allocation63_spill] sm:$0xff] %v2876_v19  ;;  %v2882_v17 = vpop.f32.mrb[57].mxu0  ;;  %v2884_v13 = vpop.f32.mrb[57].mxu1 }
 0x173   : > { %1352 = vst [vmem:[%s2424_s11 + $0x1d0] sm:$0xff] %v2874_v21  ;;  %1416 = vst [vmem:[%s2424_s11 + $0x3d0] sm:$0xff] %v2876_v19  ;;  %v2890_v23 = vpop.f32.mrb[58].mxu0  ;;  %v2892_v9 = vpop.f32.mrb[58].mxu1 }
 0x174   : > { %3554 = vst [vmem:[#allocation64_spill] sm:$0xff] %v2882_v17  ;;  %3555 = vst [vmem:[#allocation65_spill] sm:$0xff] %v2884_v13  ;;  %v2898_v19 = vpop.f32.mrb[59].mxu0  ;;  %v2900_v15 = vpop.f32.mrb[59].mxu1 }
 0x175   : > { %1350 = vst [vmem:[%s2424_s11 + $0x1c0] sm:$0xff] %v2882_v17  ;;  %1414 = vst [vmem:[%s2424_s11 + $0x3c0] sm:$0xff] %v2884_v13 }
 0x176   : > { %3556 = vst [vmem:[#allocation66_spill] sm:$0xff] %v2890_v23  ;;  %3557 = vst [vmem:[#allocation67_spill] sm:$0xff] %v2892_v9 }
 0x177   : > { %1353 = vst [vmem:[%s2424_s11 + $0x1d8] sm:$0xff] %v2890_v23  ;;  %1417 = vst [vmem:[%s2424_s11 + $0x3d8] sm:$0xff] %v2892_v9 }
 0x178   : > { %3558 = vst [vmem:[#allocation68_spill] sm:$0xff] %v2898_v19  ;;  %3559 = vst [vmem:[#allocation69_spill] sm:$0xff] %v2900_v15 }
 0x179   : > { %1351 = vst [vmem:[%s2424_s11 + $0x1c8] sm:$0xff] %v2898_v19  ;;  %1415 = vst [vmem:[%s2424_s11 + $0x3c8] sm:$0xff] %v2900_v15  ;;  %v2906_v13 = vpop.f32.mrb[60].mxu0  ;;  %v2908_v11 = vpop.f32.mrb[60].mxu1 }
 0x17a   : > { %3560 = vst [vmem:[#allocation70_spill] sm:$0xff] %v2906_v13  ;;  %3561 = vst [vmem:[#allocation71_spill] sm:$0xff] %v2908_v11  ;;  %v2914_v9 = vpop.f32.mrb[61].mxu0  ;;  %v2916_v23 = vpop.f32.mrb[61].mxu1 }
 0x17b   : > { %1356 = vst [vmem:[%s2424_s11 + $0x1f0] sm:$0xff] %v2906_v13  ;;  %1420 = vst [vmem:[%s2424_s11 + $0x3f0] sm:$0xff] %v2908_v11  ;;  %v2922_v21 = vpop.f32.mrb[62].mxu0  ;;  %v2924_v15 = vpop.f32.mrb[62].mxu1  ;;  %1425 = sbr.rel (%p1969_p4) target bundleno = 387 (0x183), region = 32  ;;  %v2293_v11 = vmov (!%p1969_p4), 0.0  }
 0x17c   : > { %3562 = vst [vmem:[#allocation72_spill] sm:$0xff] %v2914_v9  ;;  %3563 = vst [vmem:[#allocation73_spill] sm:$0xff] %v2916_v23  ;;  %v2930_v19 = vpop.f32.mrb[63].mxu0  ;;  %v2932_v13 = vpop.f32.mrb[63].mxu1 }
 0x17d   : > { %1354 = vst [vmem:[%s2424_s11 + $0x1e0] sm:$0xff] %v2914_v9  ;;  %1418 = vst [vmem:[%s2424_s11 + $0x3e0] sm:$0xff] %v2916_v23 }
 0x17e   : > { %3564 = vst [vmem:[#allocation74_spill] sm:$0xff] %v2922_v21  ;;  %3565 = vst [vmem:[#allocation75_spill] sm:$0xff] %v2924_v15 }
 0x17f   : > { %1357 = vst [vmem:[%s2424_s11 + $0x1f8] sm:$0xff] %v2922_v21  ;;  %1421 = vst [vmem:[%s2424_s11 + $0x3f8] sm:$0xff] %v2924_v15 }
 0x180   : > { %3566 = vst [vmem:[#allocation76_spill] sm:$0xff] %v2930_v19  ;;  %3567 = vst [vmem:[#allocation77_spill] sm:$0xff] %v2932_v13 }
 0x181   : > { %1355 = vst [vmem:[%s2424_s11 + $0x1e8] sm:$0xff] %v2930_v19  ;;  %1419 = vst [vmem:[%s2424_s11 + $0x3e8] sm:$0xff] %v2932_v13 }
 0x182   : > { %1426 = vst [vmem:[%s3339_s3] sm:$0x3] %v2293_v11 }
 0x183 PF: > { %v1428_v15 = vadd.f32 %v2450_v14, %v2434_v10  ;;  %v1561_v29 = vmul.f32 %v2434_v10, %v2434_v10  ;;  %vm1822_vm0 = vcmask 1040384  }
 0x185   : > { %v1429_v23 = vadd.f32 %v2426_v8, %v1428_v15  ;;  %v1562_v15 = vmul.f32 %v2450_v14, %v2450_v14  ;;  %v1566_v14 = vmul.f32 %v2482_v22, %v2482_v22 }
 0x187   : > { %v1430_v21 = vadd.f32 %v2442_v12, %v1429_v23 }
 0x189   : > { %v1431_v19 = vadd.f32 %v1430_v21, %v2466_v18  ;;  %v1563_v21 = vmul.f32 %v2426_v8, %v2426_v8 }
 0x18b   : > { %v1432_v13 = vadd.f32 %v1431_v19, %v2482_v22 }
 0x18d   : > { %v1433_v9 = vadd.f32 %v2458_v16, %v1432_v13  ;;  %v1689_v13 = vadd.f32 %v1562_v15, %v1561_v29  ;;  %v1568_v29 = vmul.f32 %v2474_v20, %v2474_v20 }
 0x18f   : > { %v1434_v17 = vadd.f32 %v2474_v20, %v1433_v9  ;;  %v1564_v9 = vmul.f32 %v2442_v12, %v2442_v12  ;;  %v1690_v10 = vadd.f32 %v1689_v13, %v1563_v21  ;;  %v1569_v21 = vmul.f32 %v2498_v26, %v2498_v26 }
 0x190   : > { %v1571_v13 = vmul.f32 %v2490_v24, %v2490_v24 }
 0x191   : > { %v1435_v31 = vadd.f32 %v1434_v17, %v2498_v26 }
 0x193   : > { %v1436_v11 = vadd.f32 %v1435_v31, %v2514_v30  ;;  %v1565_v31 = vmul.f32 %v2466_v18, %v2466_v18 }
 0x195   : > { %v1437_v23 = vadd.f32 %v2490_v24, %v1436_v11  ;;  %v1691_v11 = vadd.f32 %v1690_v10, %v1564_v9  ;;  %v1573_v10 = vmul.f32 %v2530_v34, %v2530_v34 }
 0x197   : > { %v1438_v19 = vadd.f32 %v2506_v28, %v1437_v23  ;;  %v1567_v23 = vmul.f32 %v2458_v16, %v2458_v16  ;;  %v1692_v25 = vadd.f32 %v1691_v11, %v1565_v31  ;;  %v1574_v11 = vmul.f32 %v2546_v38, %v2546_v38 }
 0x199   : > { %v1439_v17 = vadd.f32 %v1438_v19, %v2530_v34  ;;  %v1693_v15 = vadd.f32 %v1692_v25, %v1566_v14  ;;  %v1572_v25 = vmul.f32 %v2506_v28, %v2506_v28 }
 0x19b   : > { %v1440_v27 = vadd.f32 %v1439_v17, %v2546_v38  ;;  %v1694_v19 = vadd.f32 %v1693_v15, %v1567_v23  ;;  %v1575_v23 = vmul.f32 %v2522_v32, %v2522_v32 }
 0x19d   : > { %v1441_v8 = vadd.f32 %v2522_v32, %v1440_v27  ;;  %v1570_v27 = vmul.f32 %v2514_v30, %v2514_v30  ;;  %v1695_v9 = vadd.f32 %v1694_v19, %v1568_v29  ;;  %v1576_v29 = vmul.f32 %v2538_v36, %v2538_v36 }
 0x19e   : > { %v1578_v19 = vmul.f32 %v2578_v46, %v2578_v46 }
 0x19f   : > { %v1442_v12 = vadd.f32 %v2538_v36, %v1441_v8  ;;  %v1696_v17 = vadd.f32 %v1695_v9, %v1569_v21 }
 0x1a1   : > { %v1443_v18 = vadd.f32 %v1442_v12, %v2562_v42  ;;  %v1697_v31 = vadd.f32 %v1696_v17, %v1570_v27  ;;  %v1579_v27 = vmul.f32 %v2554_v40, %v2554_v40  ;;  %v1581_v17 = vmul.f32 %v2594_v50, %v2594_v50 }
 0x1a3   : > { %v1444_v22 = vadd.f32 %v1443_v18, %v2578_v46  ;;  %v1698_v14 = vadd.f32 %v1697_v31, %v1571_v13  ;;  %v1577_v18 = vmul.f32 %v2562_v42, %v2562_v42 }
 0x1a5   : > { %v1445_v16 = vadd.f32 %v2554_v40, %v1444_v22  ;;  %v1699_v8 = vadd.f32 %v1698_v14, %v1572_v25  ;;  %v1582_v25 = vmul.f32 %v2610_v54, %v2610_v54  ;;  %v1584_v14 = vmul.f32 %v2602_v52, %v2602_v52 }
 0x1a7   : > { %v1446_v20 = vadd.f32 %v2570_v44, %v1445_v16  ;;  %v1700_v12 = vadd.f32 %v1699_v8, %v1573_v10  ;;  %v1580_v16 = vmul.f32 %v2570_v44, %v2570_v44 }
 0x1a9   : > { %v1447_v26 = vadd.f32 %v1446_v20, %v2594_v50  ;;  %v1701_v15 = vadd.f32 %v1700_v12, %v1574_v11  ;;  %v1585_v11 = vmul.f32 %v2626_v58, %v2626_v58  ;;  %v1587_v12 = vmul.f32 %v2618_v56, %v2618_v56 }
 0x1ab   : > { %v1448_v30 = vadd.f32 %v1447_v26, %v2610_v54  ;;  %v1702_v21 = vadd.f32 %v1701_v15, %v1575_v23  ;;  %v1583_v26 = vmul.f32 %v2586_v48, %v2586_v48 }
 0x1ad   : > { %v1449_v24 = vadd.f32 %v2586_v48, %v1448_v30  ;;  %v1703_v22 = vadd.f32 %v1702_v21, %v1576_v29  ;;  %v1588_v29 = vmul.f32 %v2634_v60, %v2634_v60  ;;  %v1590_v21 = vmul.f32 %v2674_v6, %v2674_v6 }
 0x1af   : > { %v1450_v28 = vadd.f32 %v2602_v52, %v1449_v24  ;;  %v1704_v9 = vadd.f32 %v1703_v22, %v1577_v18  ;;  %v1586_v24 = vmul.f32 %v2642_v62, %v2642_v62 }
 0x1b1   : > { %v1451_v34 = vadd.f32 %v1450_v28, %v2626_v58  ;;  %v1705_v13 = vadd.f32 %v1704_v9, %v1578_v19  ;;  %v1591_v19 = vmul.f32 %v2650_v0, %v2650_v0  ;;  %v1593_v9 = vmul.f32 %v2690_v5, %v2690_v5 }
 0x1b3   : > { %v1452_v38 = vadd.f32 %v1451_v34, %v2642_v62  ;;  %v1706_v20 = vadd.f32 %v1705_v13, %v1579_v27  ;;  %v1589_v34 = vmul.f32 %v2658_v2, %v2658_v2 }
 0x1b5   : > { %v1453_v32 = vadd.f32 %v2618_v56, %v1452_v38  ;;  %v1707_v31 = vadd.f32 %v1706_v20, %v1580_v16  ;;  %v1594_v16 = vmul.f32 %v2706_v3, %v2706_v3  ;;  %v1596_v20 = vmul.f32 %v2698_v7, %v2698_v7 }
 0x1b7   : > { %v1454_v36 = vadd.f32 %v2634_v60, %v1453_v32  ;;  %v1708_v10 = vadd.f32 %v1707_v31, %v1581_v17  ;;  %v1592_v32 = vmul.f32 %v2666_v4, %v2666_v4 }
 0x1b9   : > { %v1455_v42 = vadd.f32 %v1454_v36, %v2658_v2  ;;  %v1709_v30 = vadd.f32 %v1708_v10, %v1582_v25  ;;  %v1597_v25 = vmul.f32 %v2722_v57, %v2722_v57  ;;  %v1599_v10 = vmul.f32 %v2714_v61, %v2714_v61 }
 0x1bb   : > { %v1456_v46 = vadd.f32 %v1455_v42, %v2674_v6  ;;  %v1710_v8 = vadd.f32 %v1709_v30, %v1583_v26  ;;  %v1595_v42 = vmul.f32 %v2682_v1, %v2682_v1 }
 0x1bd   : > { %v1457_v40 = vadd.f32 %v2650_v0, %v1456_v46  ;;  %v1711_v23 = vadd.f32 %v1710_v8, %v1584_v14  ;;  %v1600_v14 = vmul.f32 %v2730_v63, %v2730_v63  ;;  %v1602_v8 = vmul.f32 %v2770_v51, %v2770_v51 }
 0x1bf   : > { %v1458_v44 = vadd.f32 %v2666_v4, %v1457_v40  ;;  %v1712_v28 = vadd.f32 %v1711_v23, %v1585_v11  ;;  %v1598_v40 = vmul.f32 %v2738_v59, %v2738_v59 }
 0x1c1   : > { %v1459_v50 = vadd.f32 %v1458_v44, %v2690_v5  ;;  %v1713_v15 = vadd.f32 %v1712_v28, %v1586_v24  ;;  %v1603_v24 = vmul.f32 %v2746_v53, %v2746_v53 }
 0x1c3   : > { %v1460_v54 = vadd.f32 %v1459_v50, %v2706_v3  ;;  %v1714_v18 = vadd.f32 %v1713_v15, %v1587_v12  ;;  %v1601_v50 = vmul.f32 %v2754_v49, %v2754_v49 }
 0x1c5   : > { %v1461_v48 = vadd.f32 %v2682_v1, %v1460_v54  ;;  %v1715_v38 = vadd.f32 %v1714_v18, %v1588_v29 }
 0x1c7   : > { %v1462_v52 = vadd.f32 %v2698_v7, %v1461_v48  ;;  %v1716_v22 = vadd.f32 %v1715_v38, %v1589_v34  ;;  %v1604_v48 = vmul.f32 %v2762_v55, %v2762_v55 }
 0x1c9   : > { %v1463_v58 = vadd.f32 %v1462_v52, %v2722_v57  ;;  %v1717_v27 = vadd.f32 %v1716_v22, %v1590_v21  ;;  %v1605_v52 = vmul.f32 %v2786_v41, %v2786_v41 }
 0x1cb   : > { %v1464_v62 = vadd.f32 %v1463_v58, %v2738_v59  ;;  %v1718_v36 = vadd.f32 %v1717_v27, %v1591_v19  ;;  %v1606_v58 = vmul.f32 %v2802_v43, %v2802_v43 }
 0x1cd   : > { %v1465_v56 = vadd.f32 %v2714_v61, %v1464_v62  ;;  %v1719_v13 = vadd.f32 %v1718_v36, %v1592_v32  ;;  %v1607_v62 = vmul.f32 %v2778_v45, %v2778_v45 }
 0x1cf   : > { %v1466_v60 = vadd.f32 %v2730_v63, %v1465_v56  ;;  %v1720_v17 = vadd.f32 %v1719_v13, %v1593_v9  ;;  %v1608_v56 = vmul.f32 %v2794_v47, %v2794_v47 }
 0x1d1   : > { %v1467_v2 = vadd.f32 %v1466_v60, %v2754_v49  ;;  %v1721_v46 = vadd.f32 %v1720_v17, %v1594_v16  ;;  %v3568_v49 = vld [vmem:[#allocation56_spill] sm:$0xff]  ;;  %v1609_v60 = vmul.f32 %v2818_v33, %v2818_v33 }
 0x1d3   : > { %v1468_v6 = vadd.f32 %v1467_v2, %v2770_v51  ;;  %v1722_v31 = vadd.f32 %v1721_v46, %v1595_v42  ;;  %v3569_v51 = vld [vmem:[#allocation60_spill] sm:$0xff]  ;;  %v1610_v2 = vmul.f32 %v2834_v35, %v2834_v35 }
 0x1d5   : > { %v1469_v0 = vadd.f32 %v2746_v53, %v1468_v6  ;;  %v1723_v26 = vadd.f32 %v1722_v31, %v1596_v20  ;;  %v3570_v53 = vld [vmem:[#allocation54_spill] sm:$0xff]  ;;  %v1611_v6 = vmul.f32 %v2810_v37, %v2810_v37 }
 0x1d7   : > { %v1470_v4 = vadd.f32 %v2762_v55, %v1469_v0  ;;  %v1724_v44 = vadd.f32 %v1723_v26, %v1597_v25  ;;  %v3571_v55 = vld [vmem:[#allocation58_spill] sm:$0xff]  ;;  %v1612_v0 = vmul.f32 %v2826_v39, %v2826_v39 }
 0x1d9   : > { %v1471_v5 = vadd.f32 %v1470_v4, %v2786_v41  ;;  %v1725_v30 = vadd.f32 %v1724_v44, %v1598_v40  ;;  %v3572_v41 = vld [vmem:[#allocation64_spill] sm:$0xff]  ;;  %v1613_v4 = vmul.f32 %v3568_v49, %v3568_v49  ;;  %v3580_v44 = vld [vmem:[#allocation3_spill] sm:$0xff] }
 0x1db   : > { %v1472_v3 = vadd.f32 %v1471_v5, %v2802_v43  ;;  %v1726_v11 = vadd.f32 %v1725_v30, %v1599_v10  ;;  %v3573_v43 = vld [vmem:[#allocation68_spill] sm:$0xff]  ;;  %v1614_v5 = vmul.f32 %v3569_v51, %v3569_v51 }
 0x1dd   : > { %v1473_v1 = vadd.f32 %v2778_v45, %v1472_v3  ;;  %v1727_v54 = vadd.f32 %v1726_v11, %v1600_v14  ;;  %v3574_v45 = vld [vmem:[#allocation62_spill] sm:$0xff]  ;;  %v1615_v3 = vmul.f32 %v3570_v53, %v3570_v53  ;;  %v1617_v14 = vmul.f32 %v3572_v41, %v3572_v41 }
 0x1de   : > { %v1618_v11 = vmul.f32 %v3573_v43, %v3573_v43 }
 0x1df   : > { %v1474_v7 = vadd.f32 %v2794_v47, %v1473_v1  ;;  %v1728_v23 = vadd.f32 %v1727_v54, %v1601_v50  ;;  %v3575_v47 = vld [vmem:[#allocation66_spill] sm:$0xff]  ;;  %v1616_v1 = vmul.f32 %v3571_v55, %v3571_v55 }
 0x1e1   : > { %v1475_v57 = vadd.f32 %v1474_v7, %v2818_v33  ;;  %v1729_v12 = vadd.f32 %v1728_v23, %v1602_v8  ;;  %v3576_v33 = vld [vmem:[#allocation72_spill] sm:$0xff]  ;;  %v3582_v8 = vld [vmem:[#allocation2_spill] sm:$0xff] }
 0x1e2   : > { %v3583_v23 = vld [vmem:[#allocation4_spill] sm:$0xff] }
 0x1e3   : > { %v1476_v59 = vadd.f32 %v1475_v57, %v2834_v35  ;;  %v1730_v29 = vadd.f32 %v1729_v12, %v1603_v24  ;;  %v3577_v35 = vld [vmem:[#allocation76_spill] sm:$0xff]  ;;  %v3581_v57 = vld [vmem:[#allocation5_spill] sm:$0xff] }
 0x1e5   : > { %v1477_v61 = vadd.f32 %v2810_v37, %v1476_v59  ;;  %v1731_v34 = vadd.f32 %v1730_v29, %v1604_v48  ;;  %v3578_v37 = vld [vmem:[#allocation70_spill] sm:$0xff]  ;;  %v1620_v48 = vmul.f32 %v3575_v47, %v3575_v47 }
 0x1e7   : > { %v1478_v63 = vadd.f32 %v2826_v39, %v1477_v61  ;;  %v1732_v21 = vadd.f32 %v1731_v34, %v1605_v52  ;;  %v3579_v39 = vld [vmem:[#allocation74_spill] sm:$0xff]  ;;  %v1619_v61 = vmul.f32 %v3574_v45, %v3574_v45  ;;  %v1621_v52 = vmul.f32 %v3576_v33, %v3576_v33 }
 0x1e9   : > { %v1479_v28 = vadd.f32 %v1478_v63, %v3568_v49  ;;  %v1733_v19 = vadd.f32 %v1732_v21, %v1606_v58  ;;  %v3584_v49 = vld [vmem:[#allocation7_spill] sm:$0xff]  ;;  %v1622_v58 = vmul.f32 %v3577_v35, %v3577_v35 }
 0x1eb   : > { %v1480_v15 = vadd.f32 %v1479_v28, %v3569_v51  ;;  %v1734_v32 = vadd.f32 %v1733_v19, %v1607_v62  ;;  %v3585_v51 = vld [vmem:[#allocation9_spill] sm:$0xff]  ;;  %v1623_v62 = vmul.f32 %v3578_v37, %v3578_v37 }
 0x1ed   : > { %v1481_v18 = vadd.f32 %v3570_v53, %v1480_v15  ;;  %v1735_v9 = vadd.f32 %v1734_v32, %v1608_v56  ;;  %v3586_v53 = vld [vmem:[#allocation6_spill] sm:$0xff]  ;;  %v1624_v56 = vmul.f32 %v3579_v39, %v3579_v39 }
 0x1ef   : > { %v1482_v38 = vadd.f32 %v3571_v55, %v1481_v18  ;;  %v1736_v16 = vadd.f32 %v1735_v9, %v1609_v60  ;;  %v3587_v55 = vld [vmem:[#allocation8_spill] sm:$0xff]  ;;  %v1625_v60 = vmul.f32 %v3580_v44, %v3580_v44 }
 0x1f1   : > { %v1483_v22 = vadd.f32 %v1482_v38, %v3572_v41  ;;  %v1737_v42 = vadd.f32 %v1736_v16, %v1610_v2  ;;  %v3588_v41 = vld [vmem:[#allocation11_spill] sm:$0xff]  ;;  %v1626_v2 = vmul.f32 %v3581_v57, %v3581_v57 }
 0x1f3   : > { %v1484_v27 = vadd.f32 %v1483_v22, %v3573_v43  ;;  %v1738_v20 = vadd.f32 %v1737_v42, %v1611_v6  ;;  %v3589_v43 = vld [vmem:[#allocation13_spill] sm:$0xff]  ;;  %v1627_v6 = vmul.f32 %v3582_v8, %v3582_v8 }
 0x1f5   : > { %v1485_v36 = vadd.f32 %v3574_v45, %v1484_v27  ;;  %v1739_v25 = vadd.f32 %v1738_v20, %v1612_v0  ;;  %v3590_v45 = vld [vmem:[#allocation10_spill] sm:$0xff]  ;;  %v1628_v0 = vmul.f32 %v3583_v23, %v3583_v23 }
 0x1f7   : > { %v1486_v13 = vadd.f32 %v3575_v47, %v1485_v36  ;;  %v1740_v40 = vadd.f32 %v1739_v25, %v1613_v4  ;;  %v3591_v47 = vld [vmem:[#allocation12_spill] sm:$0xff]  ;;  %v1629_v4 = vmul.f32 %v3584_v49, %v3584_v49 }
 0x1f9   : > { %v1487_v17 = vadd.f32 %v1486_v13, %v3576_v33  ;;  %v1741_v10 = vadd.f32 %v1740_v40, %v1614_v5  ;;  %v3592_v33 = vld [vmem:[#allocation15_spill] sm:$0xff]  ;;  %v1630_v5 = vmul.f32 %v3585_v51, %v3585_v51 }
 0x1fb   : > { %v1488_v46 = vadd.f32 %v1487_v17, %v3577_v35  ;;  %v1742_v30 = vadd.f32 %v1741_v10, %v1615_v3  ;;  %v3593_v35 = vld [vmem:[#allocation17_spill] sm:$0xff]  ;;  %v1631_v3 = vmul.f32 %v3586_v53, %v3586_v53 }
 0x1fd   : > { %v1489_v31 = vadd.f32 %v3578_v37, %v1488_v46  ;;  %v1743_v59 = vadd.f32 %v1742_v30, %v1616_v1  ;;  %v3594_v37 = vld [vmem:[#allocation14_spill] sm:$0xff]  ;;  %v1632_v1 = vmul.f32 %v3587_v55, %v3587_v55 }
 0x1ff   : > { %v1490_v26 = vadd.f32 %v3579_v39, %v1489_v31  ;;  %v1744_v24 = vadd.f32 %v1743_v59, %v1617_v14  ;;  %v3595_v39 = vld [vmem:[#allocation16_spill] sm:$0xff]  ;;  %v1633_v14 = vmul.f32 %v3588_v41, %v3588_v41 }
 0x201   : > { %v1491_v7 = vadd.f32 %v1490_v26, %v3580_v44  ;;  %v1745_v12 = vadd.f32 %v1744_v24, %v1618_v11  ;;  %v3596_v44 = vld [vmem:[#allocation19_spill] sm:$0xff]  ;;  %v1634_v11 = vmul.f32 %v3589_v43, %v3589_v43 }
 0x203   : > { %v1492_v50 = vadd.f32 %v1491_v7, %v3581_v57  ;;  %v1746_v29 = vadd.f32 %v1745_v12, %v1619_v61  ;;  %v3597_v57 = vld [vmem:[#allocation21_spill] sm:$0xff]  ;;  %v1635_v61 = vmul.f32 %v3590_v45, %v3590_v45 }
 0x205   : > { %v1493_v54 = vadd.f32 %v3582_v8, %v1492_v50  ;;  %v1747_v34 = vadd.f32 %v1746_v29, %v1620_v48  ;;  %v3598_v8 = vld [vmem:[#allocation18_spill] sm:$0xff]  ;;  %v1636_v48 = vmul.f32 %v3591_v47, %v3591_v47 }
 0x207   : > { %v1494_v63 = vadd.f32 %v3583_v23, %v1493_v54  ;;  %v1748_v21 = vadd.f32 %v1747_v34, %v1621_v52  ;;  %v3599_v23 = vld [vmem:[#allocation20_spill] sm:$0xff]  ;;  %v1637_v52 = vmul.f32 %v3592_v33, %v3592_v33 }
 0x209   : > { %v1495_v28 = vadd.f32 %v1494_v63, %v3584_v49  ;;  %v1749_v19 = vadd.f32 %v1748_v21, %v1622_v58  ;;  %v3600_v49 = vld [vmem:[#allocation23_spill] sm:$0xff]  ;;  %v1638_v58 = vmul.f32 %v3593_v35, %v3593_v35 }
 0x20b   : > { %v1496_v15 = vadd.f32 %v1495_v28, %v3585_v51  ;;  %v1750_v32 = vadd.f32 %v1749_v19, %v1623_v62  ;;  %v3601_v51 = vld [vmem:[#allocation25_spill] sm:$0xff]  ;;  %v1639_v62 = vmul.f32 %v3594_v37, %v3594_v37 }
 0x20d   : > { %v1497_v18 = vadd.f32 %v3586_v53, %v1496_v15  ;;  %v1751_v9 = vadd.f32 %v1750_v32, %v1624_v56  ;;  %v3602_v53 = vld [vmem:[#allocation22_spill] sm:$0xff]  ;;  %v1640_v56 = vmul.f32 %v3595_v39, %v3595_v39 }
 0x20f   : > { %v1498_v38 = vadd.f32 %v3587_v55, %v1497_v18  ;;  %v1752_v16 = vadd.f32 %v1751_v9, %v1625_v60  ;;  %v3603_v55 = vld [vmem:[#allocation24_spill] sm:$0xff]  ;;  %v1641_v60 = vmul.f32 %v3596_v44, %v3596_v44 }
 0x211   : > { %v1499_v22 = vadd.f32 %v1498_v38, %v3588_v41  ;;  %v1753_v42 = vadd.f32 %v1752_v16, %v1626_v2  ;;  %v3604_v41 = vld [vmem:[#allocation27_spill] sm:$0xff]  ;;  %v1642_v2 = vmul.f32 %v3597_v57, %v3597_v57 }
 0x213   : > { %v1500_v27 = vadd.f32 %v1499_v22, %v3589_v43  ;;  %v1754_v20 = vadd.f32 %v1753_v42, %v1627_v6  ;;  %v3605_v43 = vld [vmem:[#allocation29_spill] sm:$0xff]  ;;  %v1643_v6 = vmul.f32 %v3598_v8, %v3598_v8 }
 0x215   : > { %v1501_v36 = vadd.f32 %v3590_v45, %v1500_v27  ;;  %v1755_v25 = vadd.f32 %v1754_v20, %v1628_v0  ;;  %v3606_v45 = vld [vmem:[#allocation26_spill] sm:$0xff]  ;;  %v1644_v0 = vmul.f32 %v3599_v23, %v3599_v23 }
 0x217   : > { %v1502_v13 = vadd.f32 %v3591_v47, %v1501_v36  ;;  %v1756_v40 = vadd.f32 %v1755_v25, %v1629_v4  ;;  %v3607_v47 = vld [vmem:[#allocation28_spill] sm:$0xff]  ;;  %v1645_v4 = vmul.f32 %v3600_v49, %v3600_v49 }
 0x219   : > { %v1503_v17 = vadd.f32 %v1502_v13, %v3592_v33  ;;  %v1757_v10 = vadd.f32 %v1756_v40, %v1630_v5  ;;  %v3608_v33 = vld [vmem:[#allocation31_spill] sm:$0xff]  ;;  %v1646_v5 = vmul.f32 %v3601_v51, %v3601_v51 }
 0x21b   : > { %v1504_v46 = vadd.f32 %v1503_v17, %v3593_v35  ;;  %v1758_v30 = vadd.f32 %v1757_v10, %v1631_v3  ;;  %v3609_v35 = vld [vmem:[#allocation33_spill] sm:$0xff]  ;;  %v1647_v3 = vmul.f32 %v3602_v53, %v3602_v53 }
 0x21d   : > { %v1505_v31 = vadd.f32 %v3594_v37, %v1504_v46  ;;  %v1759_v59 = vadd.f32 %v1758_v30, %v1632_v1  ;;  %v3610_v37 = vld [vmem:[#allocation30_spill] sm:$0xff]  ;;  %v1648_v1 = vmul.f32 %v3603_v55, %v3603_v55 }
 0x21f   : > { %v1506_v26 = vadd.f32 %v3595_v39, %v1505_v31  ;;  %v1760_v24 = vadd.f32 %v1759_v59, %v1633_v14  ;;  %v3611_v39 = vld [vmem:[#allocation32_spill] sm:$0xff]  ;;  %v1649_v14 = vmul.f32 %v3604_v41, %v3604_v41 }
 0x221   : > { %v1507_v7 = vadd.f32 %v1506_v26, %v3596_v44  ;;  %v1761_v12 = vadd.f32 %v1760_v24, %v1634_v11  ;;  %v3612_v44 = vld [vmem:[#allocation35_spill] sm:$0xff]  ;;  %v1650_v11 = vmul.f32 %v3605_v43, %v3605_v43 }
 0x223   : > { %v1508_v50 = vadd.f32 %v1507_v7, %v3597_v57  ;;  %v1762_v29 = vadd.f32 %v1761_v12, %v1635_v61  ;;  %v3613_v57 = vld [vmem:[#allocation37_spill] sm:$0xff]  ;;  %v1651_v61 = vmul.f32 %v3606_v45, %v3606_v45 }
 0x225   : > { %v1509_v54 = vadd.f32 %v3598_v8, %v1508_v50  ;;  %v1763_v34 = vadd.f32 %v1762_v29, %v1636_v48  ;;  %v3614_v8 = vld [vmem:[#allocation34_spill] sm:$0xff]  ;;  %v1652_v48 = vmul.f32 %v3607_v47, %v3607_v47 }
 0x227   : > { %v1510_v63 = vadd.f32 %v3599_v23, %v1509_v54  ;;  %v1764_v21 = vadd.f32 %v1763_v34, %v1637_v52  ;;  %v3615_v23 = vld [vmem:[#allocation36_spill] sm:$0xff]  ;;  %v1653_v52 = vmul.f32 %v3608_v33, %v3608_v33 }
 0x229   : > { %v1511_v28 = vadd.f32 %v1510_v63, %v3600_v49  ;;  %v1765_v19 = vadd.f32 %v1764_v21, %v1638_v58  ;;  %v3616_v49 = vld [vmem:[#allocation39_spill] sm:$0xff]  ;;  %v1654_v58 = vmul.f32 %v3609_v35, %v3609_v35 }
 0x22b   : > { %v1512_v15 = vadd.f32 %v1511_v28, %v3601_v51  ;;  %v1766_v32 = vadd.f32 %v1765_v19, %v1639_v62  ;;  %v3617_v51 = vld [vmem:[#allocation41_spill] sm:$0xff]  ;;  %v1655_v62 = vmul.f32 %v3610_v37, %v3610_v37 }
 0x22d   : > { %v1513_v18 = vadd.f32 %v3602_v53, %v1512_v15  ;;  %v1767_v9 = vadd.f32 %v1766_v32, %v1640_v56  ;;  %v3618_v53 = vld [vmem:[#allocation38_spill] sm:$0xff]  ;;  %v1656_v56 = vmul.f32 %v3611_v39, %v3611_v39 }
 0x22f   : > { %v1514_v38 = vadd.f32 %v3603_v55, %v1513_v18  ;;  %v1768_v16 = vadd.f32 %v1767_v9, %v1641_v60  ;;  %v3619_v55 = vld [vmem:[#allocation40_spill] sm:$0xff]  ;;  %v1657_v60 = vmul.f32 %v3612_v44, %v3612_v44 }
 0x231   : > { %v1515_v22 = vadd.f32 %v1514_v38, %v3604_v41  ;;  %v1769_v42 = vadd.f32 %v1768_v16, %v1642_v2  ;;  %v3620_v41 = vld [vmem:[#allocation43_spill] sm:$0xff]  ;;  %v1658_v2 = vmul.f32 %v3613_v57, %v3613_v57 }
 0x233   : > { %v1516_v27 = vadd.f32 %v1515_v22, %v3605_v43  ;;  %v1770_v20 = vadd.f32 %v1769_v42, %v1643_v6  ;;  %v3621_v43 = vld [vmem:[#allocation45_spill] sm:$0xff]  ;;  %v1659_v6 = vmul.f32 %v3614_v8, %v3614_v8 }
 0x235   : > { %v1517_v36 = vadd.f32 %v3606_v45, %v1516_v27  ;;  %v1771_v25 = vadd.f32 %v1770_v20, %v1644_v0  ;;  %v3622_v45 = vld [vmem:[#allocation42_spill] sm:$0xff]  ;;  %v1660_v0 = vmul.f32 %v3615_v23, %v3615_v23 }
 0x237   : > { %v1518_v13 = vadd.f32 %v3607_v47, %v1517_v36  ;;  %v1772_v40 = vadd.f32 %v1771_v25, %v1645_v4  ;;  %v3623_v47 = vld [vmem:[#allocation44_spill] sm:$0xff]  ;;  %v1661_v4 = vmul.f32 %v3616_v49, %v3616_v49 }
 0x239   : > { %v1519_v17 = vadd.f32 %v1518_v13, %v3608_v33  ;;  %v1773_v10 = vadd.f32 %v1772_v40, %v1646_v5  ;;  %v3624_v33 = vld [vmem:[#allocation47_spill] sm:$0xff]  ;;  %v1662_v5 = vmul.f32 %v3617_v51, %v3617_v51 }
 0x23b   : > { %v1520_v46 = vadd.f32 %v1519_v17, %v3609_v35  ;;  %v1774_v30 = vadd.f32 %v1773_v10, %v1647_v3  ;;  %v3625_v35 = vld [vmem:[#allocation49_spill] sm:$0xff]  ;;  %v1663_v3 = vmul.f32 %v3618_v53, %v3618_v53 }
 0x23d   : > { %v1521_v31 = vadd.f32 %v3610_v37, %v1520_v46  ;;  %v1775_v59 = vadd.f32 %v1774_v30, %v1648_v1  ;;  %v3626_v37 = vld [vmem:[#allocation46_spill] sm:$0xff]  ;;  %v1664_v1 = vmul.f32 %v3619_v55, %v3619_v55 }
 0x23f   : > { %v1522_v26 = vadd.f32 %v3611_v39, %v1521_v31  ;;  %v1776_v24 = vadd.f32 %v1775_v59, %v1649_v14  ;;  %v3627_v39 = vld [vmem:[#allocation48_spill] sm:$0xff]  ;;  %v1665_v14 = vmul.f32 %v3620_v41, %v3620_v41 }
 0x241   : > { %v1523_v7 = vadd.f32 %v1522_v26, %v3612_v44  ;;  %v1777_v12 = vadd.f32 %v1776_v24, %v1650_v11  ;;  %v3628_v44 = vld [vmem:[#allocation51_spill] sm:$0xff]  ;;  %v1666_v11 = vmul.f32 %v3621_v43, %v3621_v43 }
 0x243   : > { %v1524_v50 = vadd.f32 %v1523_v7, %v3613_v57  ;;  %v1778_v29 = vadd.f32 %v1777_v12, %v1651_v61  ;;  %v3629_v57 = vld [vmem:[#allocation53_spill] sm:$0xff]  ;;  %v1667_v61 = vmul.f32 %v3622_v45, %v3622_v45 }
 0x245   : > { %v1525_v54 = vadd.f32 %v3614_v8, %v1524_v50  ;;  %v1779_v34 = vadd.f32 %v1778_v29, %v1652_v48  ;;  %v3630_v8 = vld [vmem:[#allocation50_spill] sm:$0xff]  ;;  %v1668_v48 = vmul.f32 %v3623_v47, %v3623_v47 }
 0x247   : > { %v1526_v63 = vadd.f32 %v3615_v23, %v1525_v54  ;;  %v1780_v21 = vadd.f32 %v1779_v34, %v1653_v52  ;;  %v3631_v23 = vld [vmem:[#allocation52_spill] sm:$0xff]  ;;  %v1669_v52 = vmul.f32 %v3624_v33, %v3624_v33 }
 0x249   : > { %v1527_v28 = vadd.f32 %v1526_v63, %v3616_v49  ;;  %v1781_v19 = vadd.f32 %v1780_v21, %v1654_v58  ;;  %v3632_v49 = vld [vmem:[#allocation57_spill] sm:$0xff]  ;;  %v1670_v58 = vmul.f32 %v3625_v35, %v3625_v35 }
 0x24b   : > { %v1528_v15 = vadd.f32 %v1527_v28, %v3617_v51  ;;  %v1782_v32 = vadd.f32 %v1781_v19, %v1655_v62  ;;  %v3633_v51 = vld [vmem:[#allocation61_spill] sm:$0xff]  ;;  %v1671_v62 = vmul.f32 %v3626_v37, %v3626_v37 }
 0x24d   : > { %v1529_v18 = vadd.f32 %v3618_v53, %v1528_v15  ;;  %v1783_v9 = vadd.f32 %v1782_v32, %v1656_v56  ;;  %v3634_v53 = vld [vmem:[#allocation55_spill] sm:$0xff]  ;;  %v1672_v56 = vmul.f32 %v3627_v39, %v3627_v39 }
 0x24f   : > { %v1530_v38 = vadd.f32 %v3619_v55, %v1529_v18  ;;  %v1784_v16 = vadd.f32 %v1783_v9, %v1657_v60  ;;  %v3635_v55 = vld [vmem:[#allocation59_spill] sm:$0xff]  ;;  %v1673_v60 = vmul.f32 %v3628_v44, %v3628_v44 }
 0x251   : > { %v1531_v22 = vadd.f32 %v1530_v38, %v3620_v41  ;;  %v1785_v42 = vadd.f32 %v1784_v16, %v1658_v2  ;;  %v3636_v41 = vld [vmem:[#allocation65_spill] sm:$0xff]  ;;  %v1674_v2 = vmul.f32 %v3629_v57, %v3629_v57 }
 0x253   : > { %v1532_v27 = vadd.f32 %v1531_v22, %v3621_v43  ;;  %v1786_v20 = vadd.f32 %v1785_v42, %v1659_v6  ;;  %v3637_v43 = vld [vmem:[#allocation69_spill] sm:$0xff]  ;;  %v1675_v6 = vmul.f32 %v3630_v8, %v3630_v8 }
 0x255   : > { %v1533_v36 = vadd.f32 %v3622_v45, %v1532_v27  ;;  %v1787_v25 = vadd.f32 %v1786_v20, %v1660_v0  ;;  %v3638_v45 = vld [vmem:[#allocation63_spill] sm:$0xff]  ;;  %v1676_v0 = vmul.f32 %v3631_v23, %v3631_v23 }
 0x257   : > { %v1534_v13 = vadd.f32 %v3623_v47, %v1533_v36  ;;  %v1788_v40 = vadd.f32 %v1787_v25, %v1661_v4  ;;  %v3639_v47 = vld [vmem:[#allocation67_spill] sm:$0xff]  ;;  %v1677_v4 = vmul.f32 %v3632_v49, %v3632_v49 }
 0x259   : > { %v1535_v17 = vadd.f32 %v1534_v13, %v3624_v33  ;;  %v1789_v10 = vadd.f32 %v1788_v40, %v1662_v5  ;;  %v3640_v33 = vld [vmem:[#allocation73_spill] sm:$0xff] }
 0x25a   : > { %v3641_v5 = vld [vmem:[#allocation77_spill] sm:$0xff] }
 0x25b   : > { %v1536_v46 = vadd.f32 %v1535_v17, %v3625_v35  ;;  %v1790_v30 = vadd.f32 %v1789_v10, %v1663_v3  ;;  %v1678_v35 = vmul.f32 %v3633_v51, %v3633_v51  ;;  %v1680_v3 = vmul.f32 %v3635_v55, %v3635_v55 }
 0x25d   : > { %v1537_v31 = vadd.f32 %v3626_v37, %v1536_v46  ;;  %v1791_v59 = vadd.f32 %v1790_v30, %v1664_v1  ;;  %v1679_v37 = vmul.f32 %v3634_v53, %v3634_v53  ;;  %v1681_v1 = vmul.f32 %v3636_v41, %v3636_v41 }
 0x25f   : > { %v1538_v26 = vadd.f32 %v3627_v39, %v1537_v31  ;;  %v1792_v24 = vadd.f32 %v1791_v59, %v1665_v14  ;;  %v3642_v39 = vld [vmem:[#allocation71_spill] sm:$0xff] }
 0x260   : > { %v3643_v14 = vld [vmem:[#allocation75_spill] sm:$0xff] }
 0x261   : > { %v1539_v7 = vadd.f32 %v1538_v26, %v3628_v44  ;;  %v1793_v12 = vadd.f32 %v1792_v24, %v1666_v11  ;;  %v1682_v44 = vmul.f32 %v3637_v43, %v3637_v43  ;;  %v1684_v11 = vmul.f32 %v3639_v47, %v3639_v47 }
 0x262   : > { %v1686_v24 = vmul.f32 %v3641_v5, %v3641_v5 }
 0x263   : > { %v1540_v50 = vadd.f32 %v1539_v7, %v3629_v57  ;;  %v1794_v29 = vadd.f32 %v1793_v12, %v1667_v61  ;;  %v1683_v57 = vmul.f32 %v3638_v45, %v3638_v45 }
 0x265   : > { %v1541_v54 = vadd.f32 %v3630_v8, %v1540_v50  ;;  %v1795_v34 = vadd.f32 %v1794_v29, %v1668_v48  ;;  %v1687_v48 = vmul.f32 %v3642_v39, %v3642_v39 }
 0x267   : > { %v1542_v63 = vadd.f32 %v3631_v23, %v1541_v54  ;;  %v1796_v21 = vadd.f32 %v1795_v34, %v1669_v52  ;;  %v1685_v54 = vmul.f32 %v3640_v33, %v3640_v33 }
 0x269   : > { %v1543_v28 = vadd.f32 %v1542_v63, %v3632_v49  ;;  %v1797_v19 = vadd.f32 %v1796_v21, %v1670_v58  ;;  %v1688_v49 = vmul.f32 %v3643_v14, %v3643_v14 }
 0x26b   : > { %v1544_v15 = vadd.f32 %v1543_v28, %v3633_v51  ;;  %v1798_v32 = vadd.f32 %v1797_v19, %v1671_v62 }
 0x26d   : > { %v1545_v18 = vadd.f32 %v3634_v53, %v1544_v15  ;;  %v1799_v9 = vadd.f32 %v1798_v32, %v1672_v56 }
 0x26f   : > { %v1546_v38 = vadd.f32 %v3635_v55, %v1545_v18  ;;  %v1800_v16 = vadd.f32 %v1799_v9, %v1673_v60 }
 0x271   : > { %v1547_v22 = vadd.f32 %v1546_v38, %v3636_v41  ;;  %v1801_v42 = vadd.f32 %v1800_v16, %v1674_v2  ;;  %v1427_v38 = vld [vmem:[%s3339_s3] sm:$0x3] }
 0x273   : > { %v1548_v27 = vadd.f32 %v1547_v22, %v3637_v43  ;;  %v1802_v20 = vadd.f32 %v1801_v42, %v1675_v6 }
 0x275   : > { %v1549_v36 = vadd.f32 %v3638_v45, %v1548_v27  ;;  %v1803_v46 = vadd.f32 %v1802_v20, %v1676_v0 }
 0x277   : > { %v1550_v13 = vadd.f32 %v3639_v47, %v1549_v36  ;;  %v1804_v31 = vadd.f32 %v1803_v46, %v1677_v4 }
 0x279   : > { %v1551_v17 = vadd.f32 %v1550_v13, %v3640_v33  ;;  %v1805_v40 = vadd.f32 %v1804_v31, %v1678_v35 }
 0x27b   : > { %v1552_v25 = vadd.f32 %v1551_v17, %v3641_v5  ;;  %v1806_v10 = vadd.f32 %v1805_v40, %v1679_v37 }
 0x27d   : > { %v1553_v26 = vadd.f32 %v3642_v39, %v1552_v25  ;;  %v1807_v7 = vadd.f32 %v1806_v10, %v1680_v3 }
 0x27f   : > { %v1554_v30 = vadd.f32 %v3643_v14, %v1553_v26  ;;  %v1808_v50 = vadd.f32 %v1807_v7, %v1681_v1 }
 0x281   : > { %v1809_v59 = vadd.f32 %v1808_v50, %v1682_v44  ;;  %v1555_v8 = vrot.slane %v1554_v30, 4 }
 0x283   : > { %v1810_v61 = vadd.f32 %v1809_v59, %v1683_v57  ;;  %v1556_v63 = vadd.f32 %v1555_v8, %v1554_v30 }
 0x285   : > { %v1811_v23 = vadd.f32 %v1810_v61, %v1684_v11  ;;  %v1557_v52 = vrot.slane %v1556_v63, 2 }
 0x287   : > { %v1812_v12 = vadd.f32 %v1811_v23, %v1685_v54  ;;  %v1558_v15 = vadd.f32 %v1557_v52, %v1556_v63 }
 0x289   : > { %v1813_v28 = vadd.f32 %v1812_v12, %v1686_v24  ;;  %v1559_v53 = vrot.slane %v1558_v15, 1 }
 0x28b   : > { %v1814_v29 = vadd.f32 %v1813_v28, %v1687_v48  ;;  %v1560_v21 = vadd.f32 %v1559_v53, %v1558_v15 }
 0x28d   : > { %v1815_v51 = vadd.f32 %v1814_v29, %v1688_v49 }
 0x28f   : > { %v1816_v58 = vrot.slane %v1815_v51, 4 }
 0x291   : > { %v1817_v34 = vadd.f32 %v1816_v58, %v1815_v51 }
 0x293   : > { %v1818_v18 = vrot.slane %v1817_v34, 2 }
 0x295   : > { %v1819_v62 = vadd.f32 %v1818_v18, %v1817_v34 }
 0x297   : > { %v1820_v55 = vrot.slane %v1819_v62, 1 }
 0x299   : > { %v1821_v56 = vadd.f32 %v1820_v55, %v1819_v62 }
 0x29b   : > { %v1823_v19 = vsel %vm1822_vm0, %v1560_v21, %v1821_v56 }
 0x29c   : > { %v1824_v41 = vadd.f32 %v1823_v19, %v1427_v38 }
 0x29e   : > { %1825 = vst [vmem:[%s3339_s3] sm:$0x3] %v1824_v41 }
 0x29f PF: > { %s14_s12 = sadd.s32 1, %s2291_s12  }
 0x2a0   : > { %p11_p5 = scmp.ge.s32.totalorder %s14_s12, 4  }
 0x2a2   :  { %13 = sbr.rel (!%p11_p5) target bundleno = 1 (0x1), region = 70 }

// kernel: beta_vae_forward.19
= control target key start
LH: loop header
LB: loop body
LE: loop exit
PB: predicated region body
PF: predicated region fallthrough
CT: control target
= control target key end

     0   :  { %v1930_v0 = vmov 0   ;;  %vm1552_vm0 = vcmask 1040384   ;;  %s2539_s1 = inlined_call_operand.vmem [shape: bf16[512,128], index: 1, kind: input, shape index: {}]   ;;  %s2540_s0 = inlined_call_operand.vmem [shape: bf16[400,512], index: 0, kind: input, shape index: {}]   ;;  %s2541_s2 = inlined_call_operand.vmem [shape: f32[400,128], index: 2, kind: output, shape index: {0}]   ;;  %s2542_s3 = inlined_call_operand.vmem [shape: f32[2,128], index: 3, kind: output, shape index: {1}]  }
   0x1   :  { %870 = vmatprep.subr.bf16.mxu1 %v1930_v0  ;;  %1103 = vmatprep.subr.bf16.mxu0 %v1930_v0  ;;  %v1748_v1 = vld [vmem:[%s2539_s1] sm:$0xff]   ;;  %v1750_v3 = vld [vmem:[%s2539_s1 + $0x8] sm:$0xff]   ;;  %v1752_v5 = vld [vmem:[%s2539_s1 + $0x10] sm:$0xff]  }
   0x2   :  { %v1749_v2 = vld [vmem:[%s2539_s1 + $0x80] sm:$0xff]   ;;  %871 = vmatpush1.bf16.msra.mxu1 %v1748_v1  ;;  %v1751_v4 = vld [vmem:[%s2539_s1 + $0x88] sm:$0xff]   ;;  %v1753_v6 = vld [vmem:[%s2539_s1 + $0x90] sm:$0xff]  }
   0x3   :  { %1104 = vmatpush1.bf16.msra.mxu0 %v1749_v2  ;;  %872 = vmatprep.subr.bf16.mxu1 %v1930_v0  ;;  %v1754_v7 = vld [vmem:[%s2539_s1 + $0x18] sm:$0xff]   ;;  %v1756_v9 = vld [vmem:[%s2539_s1 + $0x20] sm:$0xff]   ;;  %v1758_v11 = vld [vmem:[%s2539_s1 + $0x28] sm:$0xff]  }
   0x4   :  { %1105 = vmatprep.subr.bf16.mxu0 %v1930_v0  ;;  %v1755_v8 = vld [vmem:[%s2539_s1 + $0x98] sm:$0xff]   ;;  %v1757_v10 = vld [vmem:[%s2539_s1 + $0xa0] sm:$0xff]   ;;  %v1759_v12 = vld [vmem:[%s2539_s1 + $0xa8] sm:$0xff]  }
   0x5   :  { %v1760_v13 = vld [vmem:[%s2539_s1 + $0x30] sm:$0xff]   ;;  %v1762_v15 = vld [vmem:[%s2539_s1 + $0x38] sm:$0xff]   ;;  %v1764_v17 = vld [vmem:[%s2539_s1 + $0x40] sm:$0xff]  }
   0x6   :  { %873 = vmatpush1.bf16.msra.mxu1 %v1750_v3  ;;  %v1761_v14 = vld [vmem:[%s2539_s1 + $0xb0] sm:$0xff]   ;;  %v1763_v16 = vld [vmem:[%s2539_s1 + $0xb8] sm:$0xff]   ;;  %v1765_v18 = vld [vmem:[%s2539_s1 + $0xc0] sm:$0xff]  }
   0x7   :  { %1106 = vmatpush1.bf16.msra.mxu0 %v1751_v4  ;;  %874 = vmatprep.subr.bf16.mxu1 %v1930_v0  ;;  %v1782_v19 = vld [vmem:[%s2540_s0 + $0x4] ss:$16 sps:$4 sm:$0xff]   ;;  %v1766_v20 = vld [vmem:[%s2539_s1 + $0x48] sm:$0xff]   ;;  %v1770_v25 = vld [vmem:[%s2539_s1 + $0x58] sm:$0xff]  }
   0x8   :  { %1107 = vmatprep.subr.bf16.mxu0 %v1930_v0  ;;  %v1785_v21 = vld [vmem:[%s2540_s0 + $0xc] ss:$16 sps:$4 sm:$0xff]   ;;  %902 = vmatprep.mubr.bf16.mxu1 %v1782_v19  ;;  %v1768_v23 = vld [vmem:[%s2539_s1 + $0x50] sm:$0xff]   ;;  %v1772_v27 = vld [vmem:[%s2539_s1 + $0x60] sm:$0xff]  }
   0x9   :  { %v1767_v22 = vld [vmem:[%s2539_s1 + $0xc8] sm:$0xff]   ;;  %1135 = vmatprep.mubr.bf16.mxu0 %v1785_v21  ;;  %v1769_v24 = vld [vmem:[%s2539_s1 + $0xd0] sm:$0xff]   ;;  %v1771_v26 = vld [vmem:[%s2539_s1 + $0xd8] sm:$0xff]  }
   0xa   :  { %875 = vmatpush1.bf16.msra.mxu1 %v1752_v5  ;;  %v1773_v28 = vld [vmem:[%s2539_s1 + $0xe0] sm:$0xff]   ;;  %v1774_v29 = vld [vmem:[%s2539_s1 + $0x68] sm:$0xff]   ;;  %v1776_v31 = vld [vmem:[%s2539_s1 + $0x70] sm:$0xff]  }
   0xb   :  { %1108 = vmatpush1.bf16.msra.mxu0 %v1753_v6  ;;  %876 = vmatprep.subr.bf16.mxu1 %v1930_v0  ;;  %v1775_v30 = vld [vmem:[%s2539_s1 + $0xe8] sm:$0xff]   ;;  %v1777_v32 = vld [vmem:[%s2539_s1 + $0xf0] sm:$0xff]   ;;  %v1778_v33 = vld [vmem:[%s2539_s1 + $0x78] sm:$0xff]  }
   0xc   :  { %1109 = vmatprep.subr.bf16.mxu0 %v1930_v0  ;;  %v1779_v34 = vld [vmem:[%s2539_s1 + $0xf8] sm:$0xff]   ;;  %v1780_v35 = vld [vmem:[%s2540_s0] ss:$16 sps:$4 sm:$0xff]   ;;  %v1786_v37 = vld [vmem:[%s2540_s0 + $0x24] ss:$16 sps:$4 sm:$0xff]  }
   0xd   :  { %v1783_v36 = vld [vmem:[%s2540_s0 + $0x8] ss:$16 sps:$4 sm:$0xff]   ;;  %v1788_v38 = vld [vmem:[%s2540_s0 + $0x2c] ss:$16 sps:$4 sm:$0xff]   ;;  %v1790_v39 = vld [vmem:[%s2540_s0 + $0x20] ss:$16 sps:$4 sm:$0xff]  }
   0xe   :  { %877 = vmatpush1.bf16.msra.mxu1 %v1754_v7  ;;  %v1791_v40 = vld [vmem:[%s2540_s0 + $0x28] ss:$16 sps:$4 sm:$0xff]   ;;  %v1792_v41 = vld [vmem:[%s2540_s0 + $0x44] ss:$16 sps:$4 sm:$0xff]   ;;  %v1794_v42 = vld [vmem:[%s2540_s0 + $0x4c] ss:$16 sps:$4 sm:$0xff]  }
   0xf   :  { %1110 = vmatpush1.bf16.msra.mxu0 %v1755_v8  ;;  %878 = vmatprep.subr.bf16.mxu1 %v1930_v0  ;;  %v1796_v43 = vld [vmem:[%s2540_s0 + $0x40] ss:$16 sps:$4 sm:$0xff]   ;;  %v1797_v44 = vld [vmem:[%s2540_s0 + $0x48] ss:$16 sps:$4 sm:$0xff]   ;;  %v1798_v45 = vld [vmem:[%s2540_s0 + $0x64] ss:$16 sps:$4 sm:$0xff]  }
  0x10   :  { %1111 = vmatprep.subr.bf16.mxu0 %v1930_v0  ;;  %v1800_v46 = vld [vmem:[%s2540_s0 + $0x6c] ss:$16 sps:$4 sm:$0xff]   ;;  %v1802_v47 = vld [vmem:[%s2540_s0 + $0x60] ss:$16 sps:$4 sm:$0xff]   ;;  %v1803_v48 = vld [vmem:[%s2540_s0 + $0x68] ss:$16 sps:$4 sm:$0xff]  }
  0x11   :  { %v1804_v49 = vld [vmem:[%s2540_s0 + $0x84] ss:$16 sps:$4 sm:$0xff]   ;;  %v1806_v50 = vld [vmem:[%s2540_s0 + $0x8c] ss:$16 sps:$4 sm:$0xff]   ;;  %v1808_v51 = vld [vmem:[%s2540_s0 + $0x80] ss:$16 sps:$4 sm:$0xff]  }
  0x12   :  { %879 = vmatpush1.bf16.msra.mxu1 %v1756_v9  ;;  %v1809_v52 = vld [vmem:[%s2540_s0 + $0x88] ss:$16 sps:$4 sm:$0xff]   ;;  %v1810_v53 = vld [vmem:[%s2540_s0 + $0xa4] ss:$16 sps:$4 sm:$0xff]   ;;  %v1812_v54 = vld [vmem:[%s2540_s0 + $0xac] ss:$16 sps:$4 sm:$0xff]  }
  0x13   :  { %1112 = vmatpush1.bf16.msra.mxu0 %v1757_v10  ;;  %880 = vmatprep.subr.bf16.mxu1 %v1930_v0  ;;  %v1814_v55 = vld [vmem:[%s2540_s0 + $0xa0] ss:$16 sps:$4 sm:$0xff]   ;;  %v1815_v56 = vld [vmem:[%s2540_s0 + $0xa8] ss:$16 sps:$4 sm:$0xff]   ;;  %v1816_v57 = vld [vmem:[%s2540_s0 + $0xc4] ss:$16 sps:$4 sm:$0xff]  }
  0x14   :  { %1113 = vmatprep.subr.bf16.mxu0 %v1930_v0  ;;  %v1818_v58 = vld [vmem:[%s2540_s0 + $0xcc] ss:$16 sps:$4 sm:$0xff]   ;;  %v1820_v59 = vld [vmem:[%s2540_s0 + $0xc0] ss:$16 sps:$4 sm:$0xff]   ;;  %v1821_v60 = vld [vmem:[%s2540_s0 + $0xc8] ss:$16 sps:$4 sm:$0xff]  }
  0x15   :  { %v1822_v61 = vld [vmem:[%s2540_s0 + $0xe4] ss:$16 sps:$4 sm:$0xff]   ;;  %v1824_v62 = vld [vmem:[%s2540_s0 + $0xec] ss:$16 sps:$4 sm:$0xff]   ;;  %v1826_v63 = vld [vmem:[%s2540_s0 + $0xe0] ss:$16 sps:$4 sm:$0xff]  }
  0x16   :  { %881 = vmatpush1.bf16.msra.mxu1 %v1758_v11  ;;  %v1828_v1 = vld [vmem:[%s2540_s0 + $0x104] ss:$16 sps:$4 sm:$0xff]   ;;  %v1830_v2 = vld [vmem:[%s2540_s0 + $0x10c] ss:$16 sps:$4 sm:$0xff]   ;;  %v1832_v3 = vld [vmem:[%s2540_s0 + $0x100] ss:$16 sps:$4 sm:$0xff]  }
  0x17   :  { %1114 = vmatpush1.bf16.msra.mxu0 %v1759_v12  ;;  %882 = vmatprep.subr.bf16.mxu1 %v1930_v0  ;;  %v1833_v4 = vld [vmem:[%s2540_s0 + $0x108] ss:$16 sps:$4 sm:$0xff]   ;;  %v1834_v5 = vld [vmem:[%s2540_s0 + $0x124] ss:$16 sps:$4 sm:$0xff]   ;;  %v1836_v6 = vld [vmem:[%s2540_s0 + $0x12c] ss:$16 sps:$4 sm:$0xff]  }
  0x18   :  { %1115 = vmatprep.subr.bf16.mxu0 %v1930_v0  ;;  %v1838_v7 = vld [vmem:[%s2540_s0 + $0x120] ss:$16 sps:$4 sm:$0xff]   ;;  %v1839_v8 = vld [vmem:[%s2540_s0 + $0x128] ss:$16 sps:$4 sm:$0xff]   ;;  %v1840_v9 = vld [vmem:[%s2540_s0 + $0x144] ss:$16 sps:$4 sm:$0xff]  }
  0x19   :  { %v1842_v10 = vld [vmem:[%s2540_s0 + $0x14c] ss:$16 sps:$4 sm:$0xff]   ;;  %v1844_v11 = vld [vmem:[%s2540_s0 + $0x140] ss:$16 sps:$4 sm:$0xff]   ;;  %v1845_v12 = vld [vmem:[%s2540_s0 + $0x148] ss:$16 sps:$4 sm:$0xff]  }
  0x1a   :  { %883 = vmatpush1.bf16.msra.mxu1 %v1760_v13  ;;  %v1846_v13 = vld [vmem:[%s2540_s0 + $0x164] ss:$16 sps:$4 sm:$0xff]   ;;  %v1856_v19 = vld [vmem:[%s2540_s0 + $0x180] ss:$16 sps:$4 sm:$0xff]  }
  0x1b   :  { %1116 = vmatpush1.bf16.msra.mxu0 %v1761_v14  ;;  %884 = vmatprep.subr.bf16.mxu1 %v1930_v0  ;;  %v1848_v14 = vld [vmem:[%s2540_s0 + $0x16c] ss:$16 sps:$4 sm:$0xff]   ;;  %v1858_v21 = vld [vmem:[%s2540_s0 + $0x1a4] ss:$16 sps:$4 sm:$0xff]  }
  0x1c   :  { %1117 = vmatprep.subr.bf16.mxu0 %v1930_v0 }
  0x1e   :  { %885 = vmatpush1.bf16.msra.mxu1 %v1762_v15  ;;  %v1850_v15 = vld [vmem:[%s2540_s0 + $0x160] ss:$16 sps:$4 sm:$0xff]  }
  0x1f   :  { %1118 = vmatpush1.bf16.msra.mxu0 %v1763_v16  ;;  %886 = vmatprep.subr.bf16.mxu1 %v1930_v0  ;;  %v1851_v16 = vld [vmem:[%s2540_s0 + $0x168] ss:$16 sps:$4 sm:$0xff]  }
  0x20   :  { %1119 = vmatprep.subr.bf16.mxu0 %v1930_v0 }
  0x22   :  { %887 = vmatpush1.bf16.msra.mxu1 %v1764_v17  ;;  %v1852_v17 = vld [vmem:[%s2540_s0 + $0x184] ss:$16 sps:$4 sm:$0xff]  }
  0x23   :  { %1120 = vmatpush1.bf16.msra.mxu0 %v1765_v18  ;;  %888 = vmatprep.subr.bf16.mxu1 %v1930_v0  ;;  %v1854_v18 = vld [vmem:[%s2540_s0 + $0x18c] ss:$16 sps:$4 sm:$0xff]  }
  0x24   :  { %1121 = vmatprep.subr.bf16.mxu0 %v1930_v0 }
  0x26   :  { %889 = vmatpush1.bf16.msra.mxu1 %v1766_v20  ;;  %v1857_v20 = vld [vmem:[%s2540_s0 + $0x188] ss:$16 sps:$4 sm:$0xff]  }
  0x27   :  { %1122 = vmatpush1.bf16.msra.mxu0 %v1767_v22  ;;  %890 = vmatprep.subr.bf16.mxu1 %v1930_v0  ;;  %v1860_v22 = vld [vmem:[%s2540_s0 + $0x1ac] ss:$16 sps:$4 sm:$0xff]  }
  0x28   :  { %1123 = vmatprep.subr.bf16.mxu0 %v1930_v0 }
  0x2a   :  { %891 = vmatpush1.bf16.msra.mxu1 %v1768_v23  ;;  %v1862_v23 = vld [vmem:[%s2540_s0 + $0x1a0] ss:$16 sps:$4 sm:$0xff]  }
  0x2b   :  { %1124 = vmatpush1.bf16.msra.mxu0 %v1769_v24  ;;  %892 = vmatprep.subr.bf16.mxu1 %v1930_v0  ;;  %v1863_v24 = vld [vmem:[%s2540_s0 + $0x1a8] ss:$16 sps:$4 sm:$0xff]  }
  0x2c   :  { %1125 = vmatprep.subr.bf16.mxu0 %v1930_v0 }
  0x2e   :  { %893 = vmatpush1.bf16.msra.mxu1 %v1770_v25  ;;  %v1864_v25 = vld [vmem:[%s2540_s0 + $0x1c4] ss:$16 sps:$4 sm:$0xff]  }
  0x2f   :  { %1126 = vmatpush1.bf16.msra.mxu0 %v1771_v26  ;;  %894 = vmatprep.subr.bf16.mxu1 %v1930_v0  ;;  %v1866_v26 = vld [vmem:[%s2540_s0 + $0x1cc] ss:$16 sps:$4 sm:$0xff]  }
  0x30   :  { %1127 = vmatprep.subr.bf16.mxu0 %v1930_v0 }
  0x32   :  { %895 = vmatpush1.bf16.msra.mxu1 %v1772_v27  ;;  %v1868_v27 = vld [vmem:[%s2540_s0 + $0x1c0] ss:$16 sps:$4 sm:$0xff]  }
  0x33   :  { %1128 = vmatpush1.bf16.msra.mxu0 %v1773_v28  ;;  %896 = vmatprep.subr.bf16.mxu1 %v1930_v0  ;;  %v1869_v28 = vld [vmem:[%s2540_s0 + $0x1c8] ss:$16 sps:$4 sm:$0xff]  }
  0x34   :  { %1129 = vmatprep.subr.bf16.mxu0 %v1930_v0 }
  0x36   :  { %897 = vmatpush1.bf16.msra.mxu1 %v1774_v29  ;;  %v1870_v29 = vld [vmem:[%s2540_s0 + $0x1e4] ss:$16 sps:$4 sm:$0xff]  }
  0x37   :  { %1130 = vmatpush1.bf16.msra.mxu0 %v1775_v30  ;;  %898 = vmatprep.subr.bf16.mxu1 %v1930_v0  ;;  %v1872_v30 = vld [vmem:[%s2540_s0 + $0x1ec] ss:$16 sps:$4 sm:$0xff]  }
  0x38   :  { %1131 = vmatprep.subr.bf16.mxu0 %v1930_v0 }
  0x3a   :  { %899 = vmatpush1.bf16.msra.mxu1 %v1776_v31  ;;  %v1874_v31 = vld [vmem:[%s2540_s0 + $0x1e0] ss:$16 sps:$4 sm:$0xff]  }
  0x3b   :  { %1132 = vmatpush1.bf16.msra.mxu0 %v1777_v32  ;;  %900 = vmatprep.subr.bf16.mxu1 %v1930_v0  ;;  %v1875_v32 = vld [vmem:[%s2540_s0 + $0x1e8] ss:$16 sps:$4 sm:$0xff]  }
  0x3c   :  { %1133 = vmatprep.subr.bf16.mxu0 %v1930_v0  ;;  %v1827_v0 = vld [vmem:[%s2540_s0 + $0xe8] ss:$16 sps:$4 sm:$0xff]  }
  0x3e   :  { %901 = vmatpush1.bf16.msra.mxu1 %v1778_v33  ;;  %v1876_v33 = vld [vmem:[%s2540_s0 + $0x204] ss:$16 sps:$4 sm:$0xff]  }
  0x3f   :  { %1134 = vmatpush1.bf16.msra.mxu0 %v1779_v34  ;;  %v1878_v34 = vld [vmem:[%s2540_s0 + $0x20c] ss:$16 sps:$4 sm:$0xff]  }
  0x41   :  { %903 = vmatmul.mubr.bf16.vlgmr.msra.gmra.mrb[0].mxu1 %v1780_v35  ;;  %v1880_v35 = vld [vmem:[%s2540_s0 + $0x200] ss:$16 sps:$4 sm:$0xff]  }
  0x42   :  { %1136 = vmatmul.mubr.bf16.vlgmr.msra.gmra.mrb[0].mxu0 %v1783_v36  ;;  %910 = vmatprep.mubr.bf16.mxu1 %v1786_v37  ;;  %v1881_v36 = vld [vmem:[%s2540_s0 + $0x208] ss:$16 sps:$4 sm:$0xff]   ;;  %v1882_v37 = vld [vmem:[%s2540_s0 + $0x224] ss:$16 sps:$4 sm:$0xff]  }
  0x43   :  { %1143 = vmatprep.mubr.bf16.mxu0 %v1788_v38  ;;  %v1884_v38 = vld [vmem:[%s2540_s0 + $0x22c] ss:$16 sps:$4 sm:$0xff]  }
  0x49   :  { %911 = vmatmul.mubr.bf16.gmra.mrb[4].mxu1 %v1790_v39  ;;  %v1886_v39 = vld [vmem:[%s2540_s0 + $0x220] ss:$16 sps:$4 sm:$0xff]  }
  0x4a   :  { %1144 = vmatmul.mubr.bf16.gmra.mrb[4].mxu0 %v1791_v40  ;;  %918 = vmatprep.mubr.bf16.mxu1 %v1792_v41  ;;  %v1887_v40 = vld [vmem:[%s2540_s0 + $0x228] ss:$16 sps:$4 sm:$0xff]   ;;  %v1888_v41 = vld [vmem:[%s2540_s0 + $0x244] ss:$16 sps:$4 sm:$0xff]  }
  0x4b   :  { %1151 = vmatprep.mubr.bf16.mxu0 %v1794_v42  ;;  %v1890_v42 = vld [vmem:[%s2540_s0 + $0x24c] ss:$16 sps:$4 sm:$0xff]  }
  0x51   :  { %919 = vmatmul.mubr.bf16.gmra.mrb[8].mxu1 %v1796_v43  ;;  %v1892_v43 = vld [vmem:[%s2540_s0 + $0x240] ss:$16 sps:$4 sm:$0xff]  }
  0x52   :  { %1152 = vmatmul.mubr.bf16.gmra.mrb[8].mxu0 %v1797_v44  ;;  %926 = vmatprep.mubr.bf16.mxu1 %v1798_v45  ;;  %v1893_v44 = vld [vmem:[%s2540_s0 + $0x248] ss:$16 sps:$4 sm:$0xff]   ;;  %v1894_v45 = vld [vmem:[%s2540_s0 + $0x264] ss:$16 sps:$4 sm:$0xff]  }
  0x53   :  { %1159 = vmatprep.mubr.bf16.mxu0 %v1800_v46  ;;  %v1896_v46 = vld [vmem:[%s2540_s0 + $0x26c] ss:$16 sps:$4 sm:$0xff]  }
  0x59   :  { %927 = vmatmul.mubr.bf16.gmra.mrb[12].mxu1 %v1802_v47  ;;  %v1898_v47 = vld [vmem:[%s2540_s0 + $0x260] ss:$16 sps:$4 sm:$0xff]  }
  0x5a   :  { %1160 = vmatmul.mubr.bf16.gmra.mrb[12].mxu0 %v1803_v48  ;;  %934 = vmatprep.mubr.bf16.mxu1 %v1804_v49  ;;  %v1899_v48 = vld [vmem:[%s2540_s0 + $0x268] ss:$16 sps:$4 sm:$0xff]   ;;  %v1900_v49 = vld [vmem:[%s2540_s0 + $0x284] ss:$16 sps:$4 sm:$0xff]  }
  0x5b   :  { %1167 = vmatprep.mubr.bf16.mxu0 %v1806_v50  ;;  %v1902_v50 = vld [vmem:[%s2540_s0 + $0x28c] ss:$16 sps:$4 sm:$0xff]  }
  0x61   :  { %935 = vmatmul.mubr.bf16.gmra.mrb[16].mxu1 %v1808_v51  ;;  %v1904_v51 = vld [vmem:[%s2540_s0 + $0x280] ss:$16 sps:$4 sm:$0xff]  }
  0x62   :  { %1168 = vmatmul.mubr.bf16.gmra.mrb[16].mxu0 %v1809_v52  ;;  %942 = vmatprep.mubr.bf16.mxu1 %v1810_v53  ;;  %v1905_v52 = vld [vmem:[%s2540_s0 + $0x288] ss:$16 sps:$4 sm:$0xff]   ;;  %v1906_v53 = vld [vmem:[%s2540_s0 + $0x2a4] ss:$16 sps:$4 sm:$0xff]  }
  0x63   :  { %1175 = vmatprep.mubr.bf16.mxu0 %v1812_v54  ;;  %v1908_v54 = vld [vmem:[%s2540_s0 + $0x2ac] ss:$16 sps:$4 sm:$0xff]  }
  0x69   :  { %943 = vmatmul.mubr.bf16.gmra.mrb[20].mxu1 %v1814_v55  ;;  %v1910_v55 = vld [vmem:[%s2540_s0 + $0x2a0] ss:$16 sps:$4 sm:$0xff]  }
  0x6a   :  { %1176 = vmatmul.mubr.bf16.gmra.mrb[20].mxu0 %v1815_v56  ;;  %950 = vmatprep.mubr.bf16.mxu1 %v1816_v57  ;;  %v1911_v56 = vld [vmem:[%s2540_s0 + $0x2a8] ss:$16 sps:$4 sm:$0xff]   ;;  %v1912_v57 = vld [vmem:[%s2540_s0 + $0x2c4] ss:$16 sps:$4 sm:$0xff]  }
  0x6b   :  { %1183 = vmatprep.mubr.bf16.mxu0 %v1818_v58  ;;  %v1914_v58 = vld [vmem:[%s2540_s0 + $0x2cc] ss:$16 sps:$4 sm:$0xff]  }
  0x71   :  { %951 = vmatmul.mubr.bf16.gmra.mrb[24].mxu1 %v1820_v59  ;;  %v1916_v59 = vld [vmem:[%s2540_s0 + $0x2c0] ss:$16 sps:$4 sm:$0xff]  }
  0x72   :  { %1184 = vmatmul.mubr.bf16.gmra.mrb[24].mxu0 %v1821_v60  ;;  %958 = vmatprep.mubr.bf16.mxu1 %v1822_v61  ;;  %v1917_v60 = vld [vmem:[%s2540_s0 + $0x2c8] ss:$16 sps:$4 sm:$0xff]   ;;  %v1918_v61 = vld [vmem:[%s2540_s0 + $0x2e4] ss:$16 sps:$4 sm:$0xff]  }
  0x73   :  { %1191 = vmatprep.mubr.bf16.mxu0 %v1824_v62  ;;  %v1920_v62 = vld [vmem:[%s2540_s0 + $0x2ec] ss:$16 sps:$4 sm:$0xff]  }
  0x79   :  { %959 = vmatmul.mubr.bf16.gmra.mrb[28].mxu1 %v1826_v63  ;;  %v1922_v63 = vld [vmem:[%s2540_s0 + $0x2e0] ss:$16 sps:$4 sm:$0xff]  }
  0x7a   :  { %1192 = vmatmul.mubr.bf16.gmra.mrb[28].mxu0 %v1827_v0  ;;  %966 = vmatprep.mubr.bf16.mxu1 %v1828_v1  ;;  %v1923_v0 = vld [vmem:[%s2540_s0 + $0x2e8] ss:$16 sps:$4 sm:$0xff]   ;;  %v1924_v1 = vld [vmem:[%s2540_s0 + $0x304] ss:$16 sps:$4 sm:$0xff]  }
  0x7b   :  { %1199 = vmatprep.mubr.bf16.mxu0 %v1830_v2  ;;  %v1926_v2 = vld [vmem:[%s2540_s0 + $0x30c] ss:$16 sps:$4 sm:$0xff]  }
  0x81   :  { %967 = vmatmul.mubr.bf16.gmra.mrb[32].mxu1 %v1832_v3  ;;  %v1928_v3 = vld [vmem:[%s2540_s0 + $0x300] ss:$16 sps:$4 sm:$0xff]  }
  0x82   :  { %1200 = vmatmul.mubr.bf16.gmra.mrb[32].mxu0 %v1833_v4  ;;  %974 = vmatprep.mubr.bf16.mxu1 %v1834_v5  ;;  %v1929_v4 = vld [vmem:[%s2540_s0 + $0x308] ss:$16 sps:$4 sm:$0xff]  }
  0x83   :  { %1207 = vmatprep.mubr.bf16.mxu0 %v1836_v6 }
  0x89   :  { %975 = vmatmul.mubr.bf16.gmra.mrb[36].mxu1 %v1838_v7 }
  0x8a   :  { %1208 = vmatmul.mubr.bf16.gmra.mrb[36].mxu0 %v1839_v8  ;;  %982 = vmatprep.mubr.bf16.mxu1 %v1840_v9 }
  0x8b   :  { %1215 = vmatprep.mubr.bf16.mxu0 %v1842_v10 }
  0x91   :  { %983 = vmatmul.mubr.bf16.gmra.mrb[40].mxu1 %v1844_v11 }
  0x92   :  { %1216 = vmatmul.mubr.bf16.gmra.mrb[40].mxu0 %v1845_v12  ;;  %990 = vmatprep.mubr.bf16.mxu1 %v1846_v13 }
  0x93   :  { %1223 = vmatprep.mubr.bf16.mxu0 %v1848_v14 }
  0x99   :  { %991 = vmatmul.mubr.bf16.gmra.mrb[44].mxu1 %v1850_v15 }
  0x9a   :  { %1224 = vmatmul.mubr.bf16.gmra.mrb[44].mxu0 %v1851_v16  ;;  %998 = vmatprep.mubr.bf16.mxu1 %v1852_v17 }
  0x9b   :  { %1231 = vmatprep.mubr.bf16.mxu0 %v1854_v18 }
  0xa1   :  { %999 = vmatmul.mubr.bf16.gmra.mrb[48].mxu1 %v1856_v19 }
  0xa2   :  { %1232 = vmatmul.mubr.bf16.gmra.mrb[48].mxu0 %v1857_v20  ;;  %1006 = vmatprep.mubr.bf16.mxu1 %v1858_v21 }
  0xa3   :  { %1239 = vmatprep.mubr.bf16.mxu0 %v1860_v22 }
  0xa9   :  { %1007 = vmatmul.mubr.bf16.gmra.mrb[52].mxu1 %v1862_v23 }
  0xaa   :  { %1240 = vmatmul.mubr.bf16.gmra.mrb[52].mxu0 %v1863_v24  ;;  %1014 = vmatprep.mubr.bf16.mxu1 %v1864_v25 }
  0xab   :  { %1247 = vmatprep.mubr.bf16.mxu0 %v1866_v26 }
  0xb1   :  { %1015 = vmatmul.mubr.bf16.gmra.mrb[56].mxu1 %v1868_v27 }
  0xb2   :  { %1248 = vmatmul.mubr.bf16.gmra.mrb[56].mxu0 %v1869_v28  ;;  %1022 = vmatprep.mubr.bf16.mxu1 %v1870_v29 }
  0xb3   :  { %1255 = vmatprep.mubr.bf16.mxu0 %v1872_v30 }
  0xb9   :  { %1023 = vmatmul.mubr.bf16.gmra.mrb[60].mxu1 %v1874_v31 }
  0xba   :  { %1256 = vmatmul.mubr.bf16.gmra.mrb[60].mxu0 %v1875_v32  ;;  %1030 = vmatprep.mubr.bf16.mxu1 %v1876_v33 }
  0xbb   :  { %1263 = vmatprep.mubr.bf16.mxu0 %v1878_v34 }
  0xc1   :  { %1031 = vmatmul.mubr.bf16.gmra.mrb[64].mxu1 %v1880_v35 }
  0xc2   :  { %1264 = vmatmul.mubr.bf16.gmra.mrb[64].mxu0 %v1881_v36  ;;  %1038 = vmatprep.mubr.bf16.mxu1 %v1882_v37 }
  0xc3   :  { %1271 = vmatprep.mubr.bf16.mxu0 %v1884_v38 }
  0xc9   :  { %1039 = vmatmul.mubr.bf16.gmra.mrb[68].mxu1 %v1886_v39 }
  0xca   :  { %1272 = vmatmul.mubr.bf16.gmra.mrb[68].mxu0 %v1887_v40  ;;  %1046 = vmatprep.mubr.bf16.mxu1 %v1888_v41 }
  0xcb   :  { %1279 = vmatprep.mubr.bf16.mxu0 %v1890_v42 }
  0xd1   :  { %1047 = vmatmul.mubr.bf16.gmra.mrb[72].mxu1 %v1892_v43 }
  0xd2   :  { %1280 = vmatmul.mubr.bf16.gmra.mrb[72].mxu0 %v1893_v44  ;;  %1054 = vmatprep.mubr.bf16.mxu1 %v1894_v45 }
  0xd3   :  { %1287 = vmatprep.mubr.bf16.mxu0 %v1896_v46 }
  0xd9   :  { %1055 = vmatmul.mubr.bf16.gmra.mrb[76].mxu1 %v1898_v47 }
  0xda   :  { %1288 = vmatmul.mubr.bf16.gmra.mrb[76].mxu0 %v1899_v48  ;;  %1062 = vmatprep.mubr.bf16.mxu1 %v1900_v49 }
  0xdb   :  { %1295 = vmatprep.mubr.bf16.mxu0 %v1902_v50 }
  0xe1   :  { %1063 = vmatmul.mubr.bf16.gmra.mrb[80].mxu1 %v1904_v51 }
  0xe2   :  { %1296 = vmatmul.mubr.bf16.gmra.mrb[80].mxu0 %v1905_v52  ;;  %1070 = vmatprep.mubr.bf16.mxu1 %v1906_v53 }
  0xe3   :  { %1303 = vmatprep.mubr.bf16.mxu0 %v1908_v54 }
  0xe9   :  { %1071 = vmatmul.mubr.bf16.gmra.mrb[84].mxu1 %v1910_v55 }
  0xea   :  { %1304 = vmatmul.mubr.bf16.gmra.mrb[84].mxu0 %v1911_v56  ;;  %1078 = vmatprep.mubr.bf16.mxu1 %v1912_v57 }
  0xeb   :  { %1311 = vmatprep.mubr.bf16.mxu0 %v1914_v58 }
  0xf1   :  { %1079 = vmatmul.mubr.bf16.gmra.mrb[88].mxu1 %v1916_v59 }
  0xf2   :  { %1312 = vmatmul.mubr.bf16.gmra.mrb[88].mxu0 %v1917_v60  ;;  %1086 = vmatprep.mubr.bf16.mxu1 %v1918_v61 }
  0xf3   :  { %1319 = vmatprep.mubr.bf16.mxu0 %v1920_v62 }
  0xf9   :  { %1087 = vmatmul.mubr.bf16.gmra.mrb[92].mxu1 %v1922_v63 }
  0xfa   :  { %1320 = vmatmul.mubr.bf16.gmra.mrb[92].mxu0 %v1923_v0  ;;  %1094 = vmatprep.mubr.bf16.mxu1 %v1924_v1 }
  0xfb   :  { %1327 = vmatprep.mubr.bf16.mxu0 %v1926_v2 }
 0x101   :  { %1095 = vmatmul.mubr.bf16.gmra.mrb[96].mxu1 %v1928_v3 }
 0x102   :  { %1328 = vmatmul.mubr.bf16.gmra.mrb[96].mxu0 %v1929_v4 }
 0x114   :  { %v904_v5 = vpop.f32.mrb[0].mxu1 }
 0x115   :  { %v1137_v6 = vpop.f32.mrb[0].mxu0  ;;  %v906_v7 = vpop.f32.mrb[1].mxu1 }
 0x116   :  { %v1138_v8 = vadd.f32 %v1137_v6, %v904_v5  ;;  %v1139_v9 = vpop.f32.mrb[1].mxu0  ;;  %v907_v10 = vpop.f32.mrb[2].mxu1 }
 0x117   :  { %v1140_v11 = vpop.f32.mrb[2].mxu0  ;;  %v909_v12 = vpop.f32.mrb[3].mxu1 }
 0x118   :  { %1336 = vst [vmem:[%s2541_s2] sm:$0xff] %v1138_v8  ;;  %v1141_v13 = vadd.f32 %v1140_v11, %v907_v10  ;;  %v1142_v14 = vpop.f32.mrb[3].mxu0  ;;  %v1447_v15 = vmul.f32 %v1138_v8, %v1138_v8 }
 0x11a   :  { %1337 = vst [vmem:[%s2541_s2 + $0x8] sm:$0xff] %v1141_v13  ;;  %v1392_v16 = vadd.f32 %v1141_v13, %v1138_v8  ;;  %v1448_v17 = vmul.f32 %v1141_v13, %v1141_v13 }
 0x11c   :  { %v1497_v18 = vadd.f32 %v1448_v17, %v1447_v15  ;;  %v912_v19 = vpop.f32.mrb[4].mxu1 }
 0x11d   :  { %v1145_v20 = vpop.f32.mrb[4].mxu0  ;;  %v914_v21 = vpop.f32.mrb[5].mxu1 }
 0x11e   :  { %v1146_v22 = vadd.f32 %v1145_v20, %v912_v19  ;;  %v1147_v23 = vpop.f32.mrb[5].mxu0  ;;  %v915_v24 = vpop.f32.mrb[6].mxu1 }
 0x11f   :  { %v1148_v25 = vpop.f32.mrb[6].mxu0  ;;  %v917_v26 = vpop.f32.mrb[7].mxu1 }
 0x120   :  { %1338 = vst [vmem:[%s2541_s2 + $0x10] sm:$0xff] %v1146_v22  ;;  %v1393_v27 = vadd.f32 %v1392_v16, %v1146_v22  ;;  %v1449_v28 = vmul.f32 %v1146_v22, %v1146_v22  ;;  %v1149_v29 = vadd.f32 %v1148_v25, %v915_v24  ;;  %v1150_v30 = vpop.f32.mrb[7].mxu0 }
 0x122   :  { %v1498_v31 = vadd.f32 %v1497_v18, %v1449_v28  ;;  %1339 = vst [vmem:[%s2541_s2 + $0x18] sm:$0xff] %v1149_v29  ;;  %v1394_v32 = vadd.f32 %v1393_v27, %v1149_v29  ;;  %v1450_v33 = vmul.f32 %v1149_v29, %v1149_v29 }
 0x124   :  { %v1499_v34 = vadd.f32 %v1498_v31, %v1450_v33  ;;  %v920_v35 = vpop.f32.mrb[8].mxu1 }
 0x125   :  { %v1153_v36 = vpop.f32.mrb[8].mxu0  ;;  %v922_v37 = vpop.f32.mrb[9].mxu1 }
 0x126   :  { %v1154_v38 = vadd.f32 %v1153_v36, %v920_v35  ;;  %v1155_v39 = vpop.f32.mrb[9].mxu0  ;;  %v923_v40 = vpop.f32.mrb[10].mxu1 }
 0x127   :  { %v1156_v41 = vpop.f32.mrb[10].mxu0  ;;  %v925_v42 = vpop.f32.mrb[11].mxu1 }
 0x128   :  { %1340 = vst [vmem:[%s2541_s2 + $0x20] sm:$0xff] %v1154_v38  ;;  %v1395_v43 = vadd.f32 %v1394_v32, %v1154_v38  ;;  %v1451_v44 = vmul.f32 %v1154_v38, %v1154_v38  ;;  %v1157_v45 = vadd.f32 %v1156_v41, %v923_v40  ;;  %v1158_v46 = vpop.f32.mrb[11].mxu0 }
 0x12a   :  { %v1500_v47 = vadd.f32 %v1499_v34, %v1451_v44  ;;  %1341 = vst [vmem:[%s2541_s2 + $0x28] sm:$0xff] %v1157_v45  ;;  %v1396_v48 = vadd.f32 %v1395_v43, %v1157_v45  ;;  %v1452_v49 = vmul.f32 %v1157_v45, %v1157_v45 }
 0x12c   :  { %v1501_v50 = vadd.f32 %v1500_v47, %v1452_v49  ;;  %v928_v51 = vpop.f32.mrb[12].mxu1 }
 0x12d   :  { %v1161_v52 = vpop.f32.mrb[12].mxu0  ;;  %v930_v53 = vpop.f32.mrb[13].mxu1 }
 0x12e   :  { %v1162_v54 = vadd.f32 %v1161_v52, %v928_v51  ;;  %v1163_v55 = vpop.f32.mrb[13].mxu0  ;;  %v931_v56 = vpop.f32.mrb[14].mxu1 }
 0x12f   :  { %v1164_v57 = vpop.f32.mrb[14].mxu0  ;;  %v933_v58 = vpop.f32.mrb[15].mxu1 }
 0x130   :  { %1342 = vst [vmem:[%s2541_s2 + $0x30] sm:$0xff] %v1162_v54  ;;  %v1397_v59 = vadd.f32 %v1396_v48, %v1162_v54  ;;  %v1453_v60 = vmul.f32 %v1162_v54, %v1162_v54  ;;  %v1165_v61 = vadd.f32 %v1164_v57, %v931_v56  ;;  %v1166_v62 = vpop.f32.mrb[15].mxu0 }
 0x132   :  { %v1502_v63 = vadd.f32 %v1501_v50, %v1453_v60  ;;  %1343 = vst [vmem:[%s2541_s2 + $0x38] sm:$0xff] %v1165_v61  ;;  %v1398_v0 = vadd.f32 %v1397_v59, %v1165_v61  ;;  %v1454_v1 = vmul.f32 %v1165_v61, %v1165_v61 }
 0x134   :  { %v1503_v2 = vadd.f32 %v1502_v63, %v1454_v1  ;;  %v936_v3 = vpop.f32.mrb[16].mxu1 }
 0x135   :  { %v1169_v4 = vpop.f32.mrb[16].mxu0  ;;  %v938_v5 = vpop.f32.mrb[17].mxu1 }
 0x136   :  { %v1170_v6 = vadd.f32 %v1169_v4, %v936_v3  ;;  %v1171_v7 = vpop.f32.mrb[17].mxu0  ;;  %v939_v8 = vpop.f32.mrb[18].mxu1 }
 0x137   :  { %v1172_v9 = vpop.f32.mrb[18].mxu0  ;;  %v941_v10 = vpop.f32.mrb[19].mxu1 }
 0x138   :  { %1344 = vst [vmem:[%s2541_s2 + $0x40] sm:$0xff] %v1170_v6  ;;  %v1399_v11 = vadd.f32 %v1398_v0, %v1170_v6  ;;  %v1455_v12 = vmul.f32 %v1170_v6, %v1170_v6  ;;  %v1173_v13 = vadd.f32 %v1172_v9, %v939_v8  ;;  %v1174_v14 = vpop.f32.mrb[19].mxu0 }
 0x13a   :  { %v1504_v15 = vadd.f32 %v1503_v2, %v1455_v12  ;;  %1345 = vst [vmem:[%s2541_s2 + $0x48] sm:$0xff] %v1173_v13  ;;  %v1400_v16 = vadd.f32 %v1399_v11, %v1173_v13  ;;  %v1456_v17 = vmul.f32 %v1173_v13, %v1173_v13 }
 0x13c   :  { %v1505_v18 = vadd.f32 %v1504_v15, %v1456_v17  ;;  %v944_v19 = vpop.f32.mrb[20].mxu1 }
 0x13d   :  { %v1177_v20 = vpop.f32.mrb[20].mxu0  ;;  %v946_v21 = vpop.f32.mrb[21].mxu1 }
 0x13e   :  { %v1178_v22 = vadd.f32 %v1177_v20, %v944_v19  ;;  %v1179_v23 = vpop.f32.mrb[21].mxu0  ;;  %v947_v24 = vpop.f32.mrb[22].mxu1 }
 0x13f   :  { %v1180_v25 = vpop.f32.mrb[22].mxu0  ;;  %v949_v26 = vpop.f32.mrb[23].mxu1 }
 0x140   :  { %1346 = vst [vmem:[%s2541_s2 + $0x50] sm:$0xff] %v1178_v22  ;;  %v1401_v27 = vadd.f32 %v1400_v16, %v1178_v22  ;;  %v1457_v28 = vmul.f32 %v1178_v22, %v1178_v22  ;;  %v1181_v29 = vadd.f32 %v1180_v25, %v947_v24  ;;  %v1182_v30 = vpop.f32.mrb[23].mxu0 }
 0x142   :  { %v1506_v31 = vadd.f32 %v1505_v18, %v1457_v28  ;;  %1347 = vst [vmem:[%s2541_s2 + $0x58] sm:$0xff] %v1181_v29  ;;  %v1402_v32 = vadd.f32 %v1401_v27, %v1181_v29  ;;  %v1458_v33 = vmul.f32 %v1181_v29, %v1181_v29  ;;  %v1931_v18 = vmov 0.0  }
 0x143   :  { %1390 = vst [vmem:[%s2542_s3] sm:$0x3] %v1931_v18 }
 0x144   :  { %v1507_v34 = vadd.f32 %v1506_v31, %v1458_v33  ;;  %v952_v35 = vpop.f32.mrb[24].mxu1 }
 0x145   :  { %v1185_v36 = vpop.f32.mrb[24].mxu0  ;;  %v954_v37 = vpop.f32.mrb[25].mxu1 }
 0x146   :  { %v1186_v38 = vadd.f32 %v1185_v36, %v952_v35  ;;  %v1187_v39 = vpop.f32.mrb[25].mxu0  ;;  %v955_v40 = vpop.f32.mrb[26].mxu1 }
 0x147   :  { %v1188_v41 = vpop.f32.mrb[26].mxu0  ;;  %v957_v42 = vpop.f32.mrb[27].mxu1 }
 0x148   :  { %1348 = vst [vmem:[%s2541_s2 + $0x60] sm:$0xff] %v1186_v38  ;;  %v1403_v43 = vadd.f32 %v1402_v32, %v1186_v38  ;;  %v1459_v44 = vmul.f32 %v1186_v38, %v1186_v38  ;;  %v1189_v45 = vadd.f32 %v1188_v41, %v955_v40  ;;  %v1190_v46 = vpop.f32.mrb[27].mxu0 }
 0x14a   :  { %v1508_v47 = vadd.f32 %v1507_v34, %v1459_v44  ;;  %1349 = vst [vmem:[%s2541_s2 + $0x68] sm:$0xff] %v1189_v45  ;;  %v1404_v48 = vadd.f32 %v1403_v43, %v1189_v45  ;;  %v1460_v49 = vmul.f32 %v1189_v45, %v1189_v45 }
 0x14c   :  { %v1509_v50 = vadd.f32 %v1508_v47, %v1460_v49  ;;  %v960_v51 = vpop.f32.mrb[28].mxu1 }
 0x14d   :  { %v1193_v52 = vpop.f32.mrb[28].mxu0  ;;  %v962_v53 = vpop.f32.mrb[29].mxu1 }
 0x14e   :  { %v1194_v54 = vadd.f32 %v1193_v52, %v960_v51  ;;  %v1195_v55 = vpop.f32.mrb[29].mxu0  ;;  %v963_v56 = vpop.f32.mrb[30].mxu1 }
 0x14f   :  { %v1196_v57 = vpop.f32.mrb[30].mxu0  ;;  %v965_v58 = vpop.f32.mrb[31].mxu1 }
 0x150   :  { %1350 = vst [vmem:[%s2541_s2 + $0x70] sm:$0xff] %v1194_v54  ;;  %v1405_v59 = vadd.f32 %v1404_v48, %v1194_v54  ;;  %v1461_v60 = vmul.f32 %v1194_v54, %v1194_v54  ;;  %v1197_v61 = vadd.f32 %v1196_v57, %v963_v56  ;;  %v1198_v62 = vpop.f32.mrb[31].mxu0 }
 0x152   :  { %v1510_v63 = vadd.f32 %v1509_v50, %v1461_v60  ;;  %1351 = vst [vmem:[%s2541_s2 + $0x78] sm:$0xff] %v1197_v61  ;;  %v1406_v0 = vadd.f32 %v1405_v59, %v1197_v61  ;;  %v1462_v1 = vmul.f32 %v1197_v61, %v1197_v61 }
 0x154   :  { %v1511_v2 = vadd.f32 %v1510_v63, %v1462_v1  ;;  %v968_v3 = vpop.f32.mrb[32].mxu1 }
 0x155   :  { %v1201_v4 = vpop.f32.mrb[32].mxu0  ;;  %v970_v5 = vpop.f32.mrb[33].mxu1 }
 0x156   :  { %v1202_v6 = vadd.f32 %v1201_v4, %v968_v3  ;;  %v1203_v7 = vpop.f32.mrb[33].mxu0  ;;  %v971_v8 = vpop.f32.mrb[34].mxu1 }
 0x157   :  { %v1204_v9 = vpop.f32.mrb[34].mxu0  ;;  %v973_v10 = vpop.f32.mrb[35].mxu1 }
 0x158   :  { %1352 = vst [vmem:[%s2541_s2 + $0x80] sm:$0xff] %v1202_v6  ;;  %v1407_v11 = vadd.f32 %v1406_v0, %v1202_v6  ;;  %v1463_v12 = vmul.f32 %v1202_v6, %v1202_v6  ;;  %v1205_v13 = vadd.f32 %v1204_v9, %v971_v8  ;;  %v1206_v14 = vpop.f32.mrb[35].mxu0 }
 0x15a   :  { %v1512_v15 = vadd.f32 %v1511_v2, %v1463_v12  ;;  %1353 = vst [vmem:[%s2541_s2 + $0x88] sm:$0xff] %v1205_v13  ;;  %v1408_v16 = vadd.f32 %v1407_v11, %v1205_v13  ;;  %v1464_v17 = vmul.f32 %v1205_v13, %v1205_v13 }
 0x15c   :  { %v1513_v19 = vadd.f32 %v1512_v15, %v1464_v17  ;;  %v976_v20 = vpop.f32.mrb[36].mxu1 }
 0x15d   :  { %v1209_v21 = vpop.f32.mrb[36].mxu0  ;;  %v978_v22 = vpop.f32.mrb[37].mxu1 }
 0x15e   :  { %v1210_v23 = vadd.f32 %v1209_v21, %v976_v20  ;;  %v1211_v24 = vpop.f32.mrb[37].mxu0  ;;  %v979_v25 = vpop.f32.mrb[38].mxu1 }
 0x15f   :  { %v1212_v26 = vpop.f32.mrb[38].mxu0  ;;  %v981_v27 = vpop.f32.mrb[39].mxu1 }
 0x160   :  { %1354 = vst [vmem:[%s2541_s2 + $0x90] sm:$0xff] %v1210_v23  ;;  %v1409_v28 = vadd.f32 %v1408_v16, %v1210_v23  ;;  %v1465_v29 = vmul.f32 %v1210_v23, %v1210_v23  ;;  %v1213_v30 = vadd.f32 %v1212_v26, %v979_v25  ;;  %v1214_v31 = vpop.f32.mrb[39].mxu0 }
 0x162   :  { %v1514_v32 = vadd.f32 %v1513_v19, %v1465_v29  ;;  %1355 = vst [vmem:[%s2541_s2 + $0x98] sm:$0xff] %v1213_v30  ;;  %v1410_v33 = vadd.f32 %v1409_v28, %v1213_v30  ;;  %v1466_v34 = vmul.f32 %v1213_v30, %v1213_v30 }
 0x164   :  { %v1515_v35 = vadd.f32 %v1514_v32, %v1466_v34  ;;  %v984_v36 = vpop.f32.mrb[40].mxu1 }
 0x165   :  { %v1217_v37 = vpop.f32.mrb[40].mxu0  ;;  %v986_v38 = vpop.f32.mrb[41].mxu1 }
 0x166   :  { %v1218_v39 = vadd.f32 %v1217_v37, %v984_v36  ;;  %v1219_v40 = vpop.f32.mrb[41].mxu0  ;;  %v987_v41 = vpop.f32.mrb[42].mxu1 }
 0x167   :  { %v1220_v42 = vpop.f32.mrb[42].mxu0  ;;  %v989_v43 = vpop.f32.mrb[43].mxu1 }
 0x168   :  { %1356 = vst [vmem:[%s2541_s2 + $0xa0] sm:$0xff] %v1218_v39  ;;  %v1411_v44 = vadd.f32 %v1410_v33, %v1218_v39  ;;  %v1467_v45 = vmul.f32 %v1218_v39, %v1218_v39  ;;  %v1221_v46 = vadd.f32 %v1220_v42, %v987_v41  ;;  %v1222_v47 = vpop.f32.mrb[43].mxu0 }
 0x16a   :  { %v1516_v48 = vadd.f32 %v1515_v35, %v1467_v45  ;;  %1357 = vst [vmem:[%s2541_s2 + $0xa8] sm:$0xff] %v1221_v46  ;;  %v1412_v49 = vadd.f32 %v1411_v44, %v1221_v46  ;;  %v1468_v50 = vmul.f32 %v1221_v46, %v1221_v46 }
 0x16c   :  { %v1517_v51 = vadd.f32 %v1516_v48, %v1468_v50  ;;  %v992_v52 = vpop.f32.mrb[44].mxu1 }
 0x16d   :  { %v1225_v53 = vpop.f32.mrb[44].mxu0  ;;  %v994_v54 = vpop.f32.mrb[45].mxu1 }
 0x16e   :  { %v1226_v55 = vadd.f32 %v1225_v53, %v992_v52  ;;  %v1227_v56 = vpop.f32.mrb[45].mxu0  ;;  %v995_v57 = vpop.f32.mrb[46].mxu1 }
 0x16f   :  { %v1228_v58 = vpop.f32.mrb[46].mxu0  ;;  %v997_v59 = vpop.f32.mrb[47].mxu1 }
 0x170   :  { %1358 = vst [vmem:[%s2541_s2 + $0xb0] sm:$0xff] %v1226_v55  ;;  %v1413_v60 = vadd.f32 %v1412_v49, %v1226_v55  ;;  %v1469_v61 = vmul.f32 %v1226_v55, %v1226_v55  ;;  %v1229_v62 = vadd.f32 %v1228_v58, %v995_v57  ;;  %v1230_v63 = vpop.f32.mrb[47].mxu0 }
 0x172   :  { %v1518_v0 = vadd.f32 %v1517_v51, %v1469_v61  ;;  %1359 = vst [vmem:[%s2541_s2 + $0xb8] sm:$0xff] %v1229_v62  ;;  %v1414_v1 = vadd.f32 %v1413_v60, %v1229_v62  ;;  %v1470_v2 = vmul.f32 %v1229_v62, %v1229_v62 }
 0x174   :  { %v1519_v3 = vadd.f32 %v1518_v0, %v1470_v2  ;;  %v1000_v4 = vpop.f32.mrb[48].mxu1 }
 0x175   :  { %v1233_v5 = vpop.f32.mrb[48].mxu0  ;;  %v1002_v6 = vpop.f32.mrb[49].mxu1 }
 0x176   :  { %v1234_v7 = vadd.f32 %v1233_v5, %v1000_v4  ;;  %v1235_v8 = vpop.f32.mrb[49].mxu0  ;;  %v1003_v9 = vpop.f32.mrb[50].mxu1 }
 0x177   :  { %v1236_v10 = vpop.f32.mrb[50].mxu0  ;;  %v1005_v11 = vpop.f32.mrb[51].mxu1 }
 0x178   :  { %1360 = vst [vmem:[%s2541_s2 + $0xc0] sm:$0xff] %v1234_v7  ;;  %v1415_v12 = vadd.f32 %v1414_v1, %v1234_v7  ;;  %v1471_v13 = vmul.f32 %v1234_v7, %v1234_v7  ;;  %v1237_v14 = vadd.f32 %v1236_v10, %v1003_v9  ;;  %v1238_v15 = vpop.f32.mrb[51].mxu0 }
 0x17a   :  { %v1520_v16 = vadd.f32 %v1519_v3, %v1471_v13  ;;  %1361 = vst [vmem:[%s2541_s2 + $0xc8] sm:$0xff] %v1237_v14  ;;  %v1416_v17 = vadd.f32 %v1415_v12, %v1237_v14  ;;  %v1472_v18 = vmul.f32 %v1237_v14, %v1237_v14 }
 0x17c   :  { %v1521_v19 = vadd.f32 %v1520_v16, %v1472_v18  ;;  %v1008_v20 = vpop.f32.mrb[52].mxu1 }
 0x17d   :  { %v1241_v21 = vpop.f32.mrb[52].mxu0  ;;  %v1010_v22 = vpop.f32.mrb[53].mxu1 }
 0x17e   :  { %v1242_v23 = vadd.f32 %v1241_v21, %v1008_v20  ;;  %v1243_v24 = vpop.f32.mrb[53].mxu0  ;;  %v1011_v25 = vpop.f32.mrb[54].mxu1 }
 0x17f   :  { %v1244_v26 = vpop.f32.mrb[54].mxu0  ;;  %v1013_v27 = vpop.f32.mrb[55].mxu1 }
 0x180   :  { %1362 = vst [vmem:[%s2541_s2 + $0xd0] sm:$0xff] %v1242_v23  ;;  %v1417_v28 = vadd.f32 %v1416_v17, %v1242_v23  ;;  %v1473_v29 = vmul.f32 %v1242_v23, %v1242_v23  ;;  %v1245_v30 = vadd.f32 %v1244_v26, %v1011_v25  ;;  %v1246_v31 = vpop.f32.mrb[55].mxu0 }
 0x182   :  { %v1522_v32 = vadd.f32 %v1521_v19, %v1473_v29  ;;  %1363 = vst [vmem:[%s2541_s2 + $0xd8] sm:$0xff] %v1245_v30  ;;  %v1418_v33 = vadd.f32 %v1417_v28, %v1245_v30  ;;  %v1474_v34 = vmul.f32 %v1245_v30, %v1245_v30 }
 0x184   :  { %v1523_v35 = vadd.f32 %v1522_v32, %v1474_v34  ;;  %v1016_v36 = vpop.f32.mrb[56].mxu1 }
 0x185   :  { %v1249_v37 = vpop.f32.mrb[56].mxu0  ;;  %v1018_v38 = vpop.f32.mrb[57].mxu1 }
 0x186   :  { %v1250_v39 = vadd.f32 %v1249_v37, %v1016_v36  ;;  %v1251_v40 = vpop.f32.mrb[57].mxu0  ;;  %v1019_v41 = vpop.f32.mrb[58].mxu1 }
 0x187   :  { %v1252_v42 = vpop.f32.mrb[58].mxu0  ;;  %v1021_v43 = vpop.f32.mrb[59].mxu1 }
 0x188   :  { %1364 = vst [vmem:[%s2541_s2 + $0xe0] sm:$0xff] %v1250_v39  ;;  %v1419_v44 = vadd.f32 %v1418_v33, %v1250_v39  ;;  %v1475_v45 = vmul.f32 %v1250_v39, %v1250_v39  ;;  %v1253_v46 = vadd.f32 %v1252_v42, %v1019_v41  ;;  %v1254_v47 = vpop.f32.mrb[59].mxu0 }
 0x18a   :  { %v1524_v48 = vadd.f32 %v1523_v35, %v1475_v45  ;;  %1365 = vst [vmem:[%s2541_s2 + $0xe8] sm:$0xff] %v1253_v46  ;;  %v1420_v49 = vadd.f32 %v1419_v44, %v1253_v46  ;;  %v1476_v50 = vmul.f32 %v1253_v46, %v1253_v46 }
 0x18c   :  { %v1525_v51 = vadd.f32 %v1524_v48, %v1476_v50  ;;  %v1024_v52 = vpop.f32.mrb[60].mxu1 }
 0x18d   :  { %v1257_v53 = vpop.f32.mrb[60].mxu0  ;;  %v1026_v54 = vpop.f32.mrb[61].mxu1 }
 0x18e   :  { %v1258_v55 = vadd.f32 %v1257_v53, %v1024_v52  ;;  %v1259_v56 = vpop.f32.mrb[61].mxu0  ;;  %v1027_v57 = vpop.f32.mrb[62].mxu1 }
 0x18f   :  { %v1260_v58 = vpop.f32.mrb[62].mxu0  ;;  %v1029_v59 = vpop.f32.mrb[63].mxu1 }
 0x190   :  { %1366 = vst [vmem:[%s2541_s2 + $0xf0] sm:$0xff] %v1258_v55  ;;  %v1421_v60 = vadd.f32 %v1420_v49, %v1258_v55  ;;  %v1477_v61 = vmul.f32 %v1258_v55, %v1258_v55  ;;  %v1261_v62 = vadd.f32 %v1260_v58, %v1027_v57  ;;  %v1262_v63 = vpop.f32.mrb[63].mxu0 }
 0x192   :  { %v1526_v0 = vadd.f32 %v1525_v51, %v1477_v61  ;;  %1367 = vst [vmem:[%s2541_s2 + $0xf8] sm:$0xff] %v1261_v62  ;;  %v1422_v1 = vadd.f32 %v1421_v60, %v1261_v62  ;;  %v1478_v2 = vmul.f32 %v1261_v62, %v1261_v62 }
 0x194   :  { %v1527_v3 = vadd.f32 %v1526_v0, %v1478_v2  ;;  %v1032_v4 = vpop.f32.mrb[64].mxu1 }
 0x195   :  { %v1265_v5 = vpop.f32.mrb[64].mxu0  ;;  %v1034_v6 = vpop.f32.mrb[65].mxu1 }
 0x196   :  { %v1266_v7 = vadd.f32 %v1265_v5, %v1032_v4  ;;  %v1267_v8 = vpop.f32.mrb[65].mxu0  ;;  %v1035_v9 = vpop.f32.mrb[66].mxu1 }
 0x197   :  { %v1268_v10 = vpop.f32.mrb[66].mxu0  ;;  %v1037_v11 = vpop.f32.mrb[67].mxu1 }
 0x198   :  { %1368 = vst [vmem:[%s2541_s2 + $0x100] sm:$0xff] %v1266_v7  ;;  %v1423_v12 = vadd.f32 %v1422_v1, %v1266_v7  ;;  %v1479_v13 = vmul.f32 %v1266_v7, %v1266_v7  ;;  %v1269_v14 = vadd.f32 %v1268_v10, %v1035_v9  ;;  %v1270_v15 = vpop.f32.mrb[67].mxu0 }
 0x19a   :  { %v1528_v16 = vadd.f32 %v1527_v3, %v1479_v13  ;;  %1369 = vst [vmem:[%s2541_s2 + $0x108] sm:$0xff] %v1269_v14  ;;  %v1424_v17 = vadd.f32 %v1423_v12, %v1269_v14  ;;  %v1480_v18 = vmul.f32 %v1269_v14, %v1269_v14 }
 0x19c   :  { %v1529_v19 = vadd.f32 %v1528_v16, %v1480_v18  ;;  %v1040_v20 = vpop.f32.mrb[68].mxu1 }
 0x19d   :  { %v1273_v21 = vpop.f32.mrb[68].mxu0  ;;  %v1042_v22 = vpop.f32.mrb[69].mxu1 }
 0x19e   :  { %v1274_v23 = vadd.f32 %v1273_v21, %v1040_v20  ;;  %v1275_v24 = vpop.f32.mrb[69].mxu0  ;;  %v1043_v25 = vpop.f32.mrb[70].mxu1 }
 0x19f   :  { %v1276_v26 = vpop.f32.mrb[70].mxu0  ;;  %v1045_v27 = vpop.f32.mrb[71].mxu1 }
 0x1a0   :  { %1370 = vst [vmem:[%s2541_s2 + $0x110] sm:$0xff] %v1274_v23  ;;  %v1425_v28 = vadd.f32 %v1424_v17, %v1274_v23  ;;  %v1481_v29 = vmul.f32 %v1274_v23, %v1274_v23  ;;  %v1277_v30 = vadd.f32 %v1276_v26, %v1043_v25  ;;  %v1278_v31 = vpop.f32.mrb[71].mxu0 }
 0x1a2   :  { %v1530_v32 = vadd.f32 %v1529_v19, %v1481_v29  ;;  %1371 = vst [vmem:[%s2541_s2 + $0x118] sm:$0xff] %v1277_v30  ;;  %v1426_v33 = vadd.f32 %v1425_v28, %v1277_v30  ;;  %v1482_v34 = vmul.f32 %v1277_v30, %v1277_v30 }
 0x1a4   :  { %v1531_v35 = vadd.f32 %v1530_v32, %v1482_v34  ;;  %v1048_v36 = vpop.f32.mrb[72].mxu1 }
 0x1a5   :  { %v1281_v37 = vpop.f32.mrb[72].mxu0  ;;  %v1050_v38 = vpop.f32.mrb[73].mxu1 }
 0x1a6   :  { %v1282_v39 = vadd.f32 %v1281_v37, %v1048_v36  ;;  %v1283_v40 = vpop.f32.mrb[73].mxu0  ;;  %v1051_v41 = vpop.f32.mrb[74].mxu1 }
 0x1a7   :  { %v1284_v42 = vpop.f32.mrb[74].mxu0  ;;  %v1053_v43 = vpop.f32.mrb[75].mxu1 }
 0x1a8   :  { %1372 = vst [vmem:[%s2541_s2 + $0x120] sm:$0xff] %v1282_v39  ;;  %v1427_v44 = vadd.f32 %v1426_v33, %v1282_v39  ;;  %v1483_v45 = vmul.f32 %v1282_v39, %v1282_v39  ;;  %v1285_v46 = vadd.f32 %v1284_v42, %v1051_v41  ;;  %v1286_v47 = vpop.f32.mrb[75].mxu0 }
 0x1aa   :  { %v1532_v48 = vadd.f32 %v1531_v35, %v1483_v45  ;;  %1373 = vst [vmem:[%s2541_s2 + $0x128] sm:$0xff] %v1285_v46  ;;  %v1428_v49 = vadd.f32 %v1427_v44, %v1285_v46  ;;  %v1484_v50 = vmul.f32 %v1285_v46, %v1285_v46 }
 0x1ac   :  { %v1533_v51 = vadd.f32 %v1532_v48, %v1484_v50  ;;  %v1056_v52 = vpop.f32.mrb[76].mxu1 }
 0x1ad   :  { %v1289_v53 = vpop.f32.mrb[76].mxu0  ;;  %v1058_v54 = vpop.f32.mrb[77].mxu1 }
 0x1ae   :  { %v1290_v55 = vadd.f32 %v1289_v53, %v1056_v52  ;;  %v1291_v56 = vpop.f32.mrb[77].mxu0  ;;  %v1059_v57 = vpop.f32.mrb[78].mxu1 }
 0x1af   :  { %v1292_v58 = vpop.f32.mrb[78].mxu0  ;;  %v1061_v59 = vpop.f32.mrb[79].mxu1 }
 0x1b0   :  { %1374 = vst [vmem:[%s2541_s2 + $0x130] sm:$0xff] %v1290_v55  ;;  %v1429_v60 = vadd.f32 %v1428_v49, %v1290_v55  ;;  %v1485_v61 = vmul.f32 %v1290_v55, %v1290_v55  ;;  %v1293_v62 = vadd.f32 %v1292_v58, %v1059_v57  ;;  %v1294_v63 = vpop.f32.mrb[79].mxu0 }
 0x1b2   :  { %v1534_v0 = vadd.f32 %v1533_v51, %v1485_v61  ;;  %1375 = vst [vmem:[%s2541_s2 + $0x138] sm:$0xff] %v1293_v62  ;;  %v1430_v1 = vadd.f32 %v1429_v60, %v1293_v62  ;;  %v1486_v2 = vmul.f32 %v1293_v62, %v1293_v62 }
 0x1b4   :  { %v1535_v3 = vadd.f32 %v1534_v0, %v1486_v2  ;;  %v1064_v4 = vpop.f32.mrb[80].mxu1 }
 0x1b5   :  { %v1297_v5 = vpop.f32.mrb[80].mxu0  ;;  %v1066_v6 = vpop.f32.mrb[81].mxu1 }
 0x1b6   :  { %v1298_v7 = vadd.f32 %v1297_v5, %v1064_v4  ;;  %v1299_v8 = vpop.f32.mrb[81].mxu0  ;;  %v1067_v9 = vpop.f32.mrb[82].mxu1 }
 0x1b7   :  { %v1300_v10 = vpop.f32.mrb[82].mxu0  ;;  %v1069_v11 = vpop.f32.mrb[83].mxu1 }
 0x1b8   :  { %1376 = vst [vmem:[%s2541_s2 + $0x140] sm:$0xff] %v1298_v7  ;;  %v1431_v12 = vadd.f32 %v1430_v1, %v1298_v7  ;;  %v1487_v13 = vmul.f32 %v1298_v7, %v1298_v7  ;;  %v1301_v14 = vadd.f32 %v1300_v10, %v1067_v9  ;;  %v1302_v15 = vpop.f32.mrb[83].mxu0 }
 0x1ba   :  { %v1536_v16 = vadd.f32 %v1535_v3, %v1487_v13  ;;  %1377 = vst [vmem:[%s2541_s2 + $0x148] sm:$0xff] %v1301_v14  ;;  %v1432_v17 = vadd.f32 %v1431_v12, %v1301_v14  ;;  %v1488_v18 = vmul.f32 %v1301_v14, %v1301_v14 }
 0x1bc   :  { %v1537_v19 = vadd.f32 %v1536_v16, %v1488_v18  ;;  %v1072_v20 = vpop.f32.mrb[84].mxu1 }
 0x1bd   :  { %v1305_v21 = vpop.f32.mrb[84].mxu0  ;;  %v1074_v22 = vpop.f32.mrb[85].mxu1 }
 0x1be   :  { %v1306_v23 = vadd.f32 %v1305_v21, %v1072_v20  ;;  %v1307_v24 = vpop.f32.mrb[85].mxu0  ;;  %v1075_v25 = vpop.f32.mrb[86].mxu1 }
 0x1bf   :  { %v1308_v26 = vpop.f32.mrb[86].mxu0  ;;  %v1077_v27 = vpop.f32.mrb[87].mxu1 }
 0x1c0   :  { %1378 = vst [vmem:[%s2541_s2 + $0x150] sm:$0xff] %v1306_v23  ;;  %v1433_v28 = vadd.f32 %v1432_v17, %v1306_v23  ;;  %v1489_v29 = vmul.f32 %v1306_v23, %v1306_v23  ;;  %v1309_v30 = vadd.f32 %v1308_v26, %v1075_v25  ;;  %v1310_v31 = vpop.f32.mrb[87].mxu0 }
 0x1c2   :  { %v1538_v32 = vadd.f32 %v1537_v19, %v1489_v29  ;;  %1379 = vst [vmem:[%s2541_s2 + $0x158] sm:$0xff] %v1309_v30  ;;  %v1434_v33 = vadd.f32 %v1433_v28, %v1309_v30  ;;  %v1490_v34 = vmul.f32 %v1309_v30, %v1309_v30  ;;  %v1391_v30 = vld [vmem:[%s2542_s3] sm:$0x3] }
 0x1c4   :  { %v1539_v35 = vadd.f32 %v1538_v32, %v1490_v34  ;;  %v1080_v36 = vpop.f32.mrb[88].mxu1 }
 0x1c5   :  { %v1313_v37 = vpop.f32.mrb[88].mxu0  ;;  %v1082_v38 = vpop.f32.mrb[89].mxu1 }
 0x1c6   :  { %v1314_v39 = vadd.f32 %v1313_v37, %v1080_v36  ;;  %v1315_v40 = vpop.f32.mrb[89].mxu0  ;;  %v1083_v41 = vpop.f32.mrb[90].mxu1 }
 0x1c7   :  { %v1316_v42 = vpop.f32.mrb[90].mxu0  ;;  %v1085_v43 = vpop.f32.mrb[91].mxu1 }
 0x1c8   :  { %1380 = vst [vmem:[%s2541_s2 + $0x160] sm:$0xff] %v1314_v39  ;;  %v1435_v44 = vadd.f32 %v1434_v33, %v1314_v39  ;;  %v1491_v45 = vmul.f32 %v1314_v39, %v1314_v39  ;;  %v1317_v46 = vadd.f32 %v1316_v42, %v1083_v41  ;;  %v1318_v47 = vpop.f32.mrb[91].mxu0 }
 0x1ca   :  { %v1540_v48 = vadd.f32 %v1539_v35, %v1491_v45  ;;  %1381 = vst [vmem:[%s2541_s2 + $0x168] sm:$0xff] %v1317_v46  ;;  %v1436_v49 = vadd.f32 %v1435_v44, %v1317_v46  ;;  %v1492_v50 = vmul.f32 %v1317_v46, %v1317_v46 }
 0x1cc   :  { %v1541_v51 = vadd.f32 %v1540_v48, %v1492_v50  ;;  %v1088_v52 = vpop.f32.mrb[92].mxu1 }
 0x1cd   :  { %v1321_v53 = vpop.f32.mrb[92].mxu0  ;;  %v1090_v54 = vpop.f32.mrb[93].mxu1 }
 0x1ce   :  { %v1322_v55 = vadd.f32 %v1321_v53, %v1088_v52  ;;  %v1323_v56 = vpop.f32.mrb[93].mxu0  ;;  %v1091_v57 = vpop.f32.mrb[94].mxu1 }
 0x1cf   :  { %v1324_v58 = vpop.f32.mrb[94].mxu0  ;;  %v1093_v59 = vpop.f32.mrb[95].mxu1 }
 0x1d0   :  { %1382 = vst [vmem:[%s2541_s2 + $0x170] sm:$0xff] %v1322_v55  ;;  %v1437_v60 = vadd.f32 %v1436_v49, %v1322_v55  ;;  %v1493_v61 = vmul.f32 %v1322_v55, %v1322_v55  ;;  %v1325_v62 = vadd.f32 %v1324_v58, %v1091_v57  ;;  %v1326_v63 = vpop.f32.mrb[95].mxu0 }
 0x1d2   :  { %v1542_v0 = vadd.f32 %v1541_v51, %v1493_v61  ;;  %1383 = vst [vmem:[%s2541_s2 + $0x178] sm:$0xff] %v1325_v62  ;;  %v1438_v1 = vadd.f32 %v1437_v60, %v1325_v62  ;;  %v1494_v2 = vmul.f32 %v1325_v62, %v1325_v62 }
 0x1d4   :  { %v1543_v3 = vadd.f32 %v1542_v0, %v1494_v2  ;;  %v1096_v4 = vpop.f32.mrb[96].mxu1 }
 0x1d5   :  { %v1329_v5 = vpop.f32.mrb[96].mxu0  ;;  %v1098_v6 = vpop.f32.mrb[97].mxu1 }
 0x1d6   :  { %v1330_v7 = vadd.f32 %v1329_v5, %v1096_v4  ;;  %v1331_v8 = vpop.f32.mrb[97].mxu0  ;;  %v1099_v9 = vpop.f32.mrb[98].mxu1 }
 0x1d7   :  { %v1332_v10 = vpop.f32.mrb[98].mxu0  ;;  %v1101_v11 = vpop.f32.mrb[99].mxu1 }
 0x1d8   :  { %1384 = vst [vmem:[%s2541_s2 + $0x180] sm:$0xff] %v1330_v7  ;;  %v1439_v12 = vadd.f32 %v1438_v1, %v1330_v7  ;;  %v1495_v13 = vmul.f32 %v1330_v7, %v1330_v7  ;;  %v1333_v14 = vadd.f32 %v1332_v10, %v1099_v9  ;;  %v1334_v15 = vpop.f32.mrb[99].mxu0 }
 0x1da   :  { %v1544_v16 = vadd.f32 %v1543_v3, %v1495_v13  ;;  %1385 = vst [vmem:[%s2541_s2 + $0x188] sm:$0xff] %v1333_v14  ;;  %v1440_v17 = vadd.f32 %v1439_v12, %v1333_v14  ;;  %v1496_v18 = vmul.f32 %v1333_v14, %v1333_v14 }
 0x1dc   :  { %v1441_v19 = vrot.slane %v1440_v17, 4  ;;  %v1545_v20 = vadd.f32 %v1544_v16, %v1496_v18 }
 0x1de   :  { %v1442_v21 = vadd.f32 %v1441_v19, %v1440_v17  ;;  %v1546_v22 = vrot.slane %v1545_v20, 4 }
 0x1e0   :  { %v1443_v23 = vrot.slane %v1442_v21, 2  ;;  %v1547_v24 = vadd.f32 %v1546_v22, %v1545_v20 }
 0x1e2   :  { %v1444_v25 = vadd.f32 %v1443_v23, %v1442_v21  ;;  %v1548_v26 = vrot.slane %v1547_v24, 2 }
 0x1e4   :  { %v1445_v27 = vrot.slane %v1444_v25, 1  ;;  %v1549_v28 = vadd.f32 %v1548_v26, %v1547_v24 }
 0x1e6   :  { %v1550_v29 = vrot.slane %v1549_v28, 1  ;;  %v1446_v31 = vadd.f32 %v1445_v27, %v1444_v25 }
 0x1e8   :  { %v1551_v32 = vadd.f32 %v1550_v29, %v1549_v28 }
 0x1ea   :  { %v1553_v33 = vsel %vm1552_vm0, %v1446_v31, %v1551_v32 }
 0x1eb   :  { %v1554_v34 = vadd.f32 %v1553_v33, %v1391_v30 }
 0x1ed   :  { %1555 = vst [vmem:[%s2542_s3] sm:$0x3] %v1554_v34 }

// kernel: beta_vae_forward.20
= control target key start
LH: loop header
LB: loop body
LE: loop exit
PB: predicated region body
PF: predicated region fallthrough
CT: control target
= control target key end

     0   :  { %s1088_s0 = inlined_call_operand.vmem [shape: f32[400,128], index: 0, kind: input, shape index: {}]   ;;  %s1089_s1 = inlined_call_operand.vmem [shape: f32[1,128], index: 1, kind: input, shape index: {}]   ;;  %s1090_s2 = inlined_call_operand.vmem [shape: f32[1,128], index: 2, kind: input, shape index: {}]   ;;  %s1091_s3 = inlined_call_operand.vmem [shape: bf16[400,128], index: 3, kind: output, shape index: {}]  }
   0x1   :  { %v14_v0 = vld [vmem:[%s1088_s0] sm:$0xff]  ;;  %v15_v1 = vld [vmem:[%s1088_s0 + $0x8] sm:$0xff]  ;;  %v16_v6 = vld [vmem:[%s1088_s0 + $0x10] sm:$0xff] }
   0x2   :  { %v762_v2 = vld [vmem:[%s1089_s1] ss:$0 sm:$0xff]  ;;  %v17_v7 = vld [vmem:[%s1088_s0 + $0x18] sm:$0xff]  ;;  %v19_v11 = vld [vmem:[%s1088_s0 + $0x28] sm:$0xff] }
   0x3   :  { %v71_v3 = vmul.f32 %v762_v2, %v14_v0  ;;  %v72_v4 = vmul.f32 %v762_v2, %v15_v1  ;;  %v769_v5 = vld [vmem:[%s1090_s2] ss:$0 sm:$0xff]  ;;  %v73_v8 = vmul.f32 %v762_v2, %v16_v6  ;;  %v74_v9 = vmul.f32 %v762_v2, %v17_v7  ;;  %v20_v12 = vld [vmem:[%s1088_s0 + $0x30] sm:$0xff]  ;;  %v21_v17 = vld [vmem:[%s1088_s0 + $0x38] sm:$0xff] }
   0x4   :  { %v18_v10 = vld [vmem:[%s1088_s0 + $0x20] sm:$0xff]  ;;  %v76_v16 = vmul.f32 %v762_v2, %v19_v11  ;;  %v77_v20 = vmul.f32 %v762_v2, %v20_v12  ;;  %v78_v21 = vmul.f32 %v762_v2, %v21_v17  ;;  %v23_v27 = vld [vmem:[%s1088_s0 + $0x48] sm:$0xff]  ;;  %v24_v32 = vld [vmem:[%s1088_s0 + $0x50] sm:$0xff] }
   0x5   :  { %v128_v13 = vadd.f32 %v769_v5, %v71_v3  ;;  %v129_v14 = vadd.f32 %v769_v5, %v72_v4  ;;  %v75_v15 = vmul.f32 %v762_v2, %v18_v10  ;;  %v130_v18 = vadd.f32 %v769_v5, %v73_v8  ;;  %v22_v22 = vld [vmem:[%s1088_s0 + $0x40] sm:$0xff]  ;;  %v25_v33 = vld [vmem:[%s1088_s0 + $0x58] sm:$0xff]  ;;  %v27_v39 = vld [vmem:[%s1088_s0 + $0x68] sm:$0xff] }
   0x6   :  { %v131_v19 = vadd.f32 %v769_v5, %v74_v9  ;;  %v133_v26 = vadd.f32 %v769_v5, %v76_v16  ;;  %v134_v30 = vadd.f32 %v769_v5, %v77_v20  ;;  %v135_v31 = vadd.f32 %v769_v5, %v78_v21  ;;  %v26_v38 = vld [vmem:[%s1088_s0 + $0x60] sm:$0xff]  ;;  %v28_v44 = vld [vmem:[%s1088_s0 + $0x70] sm:$0xff]  ;;  %v29_v49 = vld [vmem:[%s1088_s0 + $0x78] sm:$0xff] }
   0x7   :  { %v178_v23 = vmax.f32 %v128_v13, 0.0  ;;  %v179_v24 = vmax.f32 %v129_v14, 0.0  ;;  %v132_v25 = vadd.f32 %v769_v5, %v75_v15  ;;  %v180_v28 = vmax.f32 %v130_v18, 0.0  ;;  %v30_v54 = vld [vmem:[%s1088_s0 + $0x80] sm:$0xff]  ;;  %v31_v63 = vld [vmem:[%s1088_s0 + $0x88] sm:$0xff]  ;;  %v32_v6 = vld [vmem:[%s1088_s0 + $0x90] sm:$0xff] }
   0x8   :  { %v181_v29 = vmax.f32 %v131_v19, 0.0  ;;  %v183_v36 = vmax.f32 %v133_v26, 0.0  ;;  %v79_v37 = vmul.f32 %v762_v2, %v22_v22  ;;  %v184_v41 = vmax.f32 %v134_v30, 0.0  ;;  %v33_v7 = vld [vmem:[%s1088_s0 + $0x98] sm:$0xff]  ;;  %v34_v12 = vld [vmem:[%s1088_s0 + $0xa0] sm:$0xff]  ;;  %v35_v13 = vld [vmem:[%s1088_s0 + $0xa8] sm:$0xff] }
   0x9   :  { %v587_v34 = vpack.c.bf16 %v179_v24, %v178_v23  ;;  %v182_v35 = vmax.f32 %v132_v25, 0.0  ;;  %v185_v42 = vmax.f32 %v135_v31, 0.0  ;;  %v80_v43 = vmul.f32 %v762_v2, %v23_v27  ;;  %v36_v18 = vld [vmem:[%s1088_s0 + $0xb0] sm:$0xff]  ;;  %v37_v23 = vld [vmem:[%s1088_s0 + $0xb8] sm:$0xff] }
   0xa   :  { %v592_v40 = vpack.c.bf16 %v181_v29, %v180_v28  ;;  %v136_v46 = vadd.f32 %v769_v5, %v79_v37  ;;  %v81_v47 = vmul.f32 %v762_v2, %v24_v32  ;;  %v82_v48 = vmul.f32 %v762_v2, %v25_v33  ;;  %v38_v28 = vld [vmem:[%s1088_s0 + $0xc0] sm:$0xff]  ;;  %v39_v37 = vld [vmem:[%s1088_s0 + $0xc8] sm:$0xff] }
   0xb   :  { %588 = vst [vmem:[%s1091_s3] sm:$0xff] %v587_v34   ;;  %v597_v45 = vpack.c.bf16 %v183_v36, %v182_v35  ;;  %v602_v50 = vpack.c.bf16 %v185_v42, %v184_v41  ;;  %v137_v51 = vadd.f32 %v769_v5, %v80_v43  ;;  %v83_v52 = vmul.f32 %v762_v2, %v26_v38  ;;  %v40_v42 = vld [vmem:[%s1088_s0 + $0xd0] sm:$0xff]  ;;  %v41_v43 = vld [vmem:[%s1088_s0 + $0xd8] sm:$0xff] }
   0xc   :  { %709 = vst [vmem:[%s1091_s3 + $0x8] sm:$0xff] %v592_v40   ;;  %v84_v53 = vmul.f32 %v762_v2, %v27_v39  ;;  %v186_v55 = vmax.f32 %v136_v46, 0.0  ;;  %v138_v56 = vadd.f32 %v769_v5, %v81_v47  ;;  %v139_v57 = vadd.f32 %v769_v5, %v82_v48  ;;  %v42_v48 = vld [vmem:[%s1088_s0 + $0xe0] sm:$0xff] }
   0xd   :  { %710 = vst [vmem:[%s1091_s3 + $0x10] sm:$0xff] %v597_v45   ;;  %v85_v58 = vmul.f32 %v762_v2, %v28_v44  ;;  %711 = vst [vmem:[%s1091_s3 + $0x18] sm:$0xff] %v602_v50   ;;  %v187_v59 = vmax.f32 %v137_v51, 0.0  ;;  %v140_v60 = vadd.f32 %v769_v5, %v83_v52  ;;  %v86_v62 = vmul.f32 %v762_v2, %v29_v49  ;;  %v43_v49 = vld [vmem:[%s1088_s0 + $0xe8] sm:$0xff] }
   0xe   :  { %v141_v61 = vadd.f32 %v769_v5, %v84_v53  ;;  %v188_v0 = vmax.f32 %v138_v56, 0.0  ;;  %v189_v1 = vmax.f32 %v139_v57, 0.0  ;;  %v87_v4 = vmul.f32 %v762_v2, %v30_v54  ;;  %v44_v54 = vld [vmem:[%s1088_s0 + $0xf0] sm:$0xff] }
   0xf   :  { %v142_v3 = vadd.f32 %v769_v5, %v85_v58  ;;  %v607_v8 = vpack.c.bf16 %v187_v59, %v186_v55  ;;  %v190_v9 = vmax.f32 %v140_v60, 0.0  ;;  %v143_v11 = vadd.f32 %v769_v5, %v86_v62  ;;  %v45_v59 = vld [vmem:[%s1088_s0 + $0xf8] sm:$0xff] }
  0x10   :  { %v191_v10 = vmax.f32 %v141_v61, 0.0  ;;  %v612_v14 = vpack.c.bf16 %v189_v1, %v188_v0  ;;  %v88_v16 = vmul.f32 %v762_v2, %v31_v63  ;;  %v144_v17 = vadd.f32 %v769_v5, %v87_v4  ;;  %v46_v0 = vld [vmem:[%s1088_s0 + $0x100] sm:$0xff] }
  0x11   :  { %v192_v15 = vmax.f32 %v142_v3, 0.0  ;;  %712 = vst [vmem:[%s1091_s3 + $0x20] sm:$0xff] %v607_v8   ;;  %v193_v20 = vmax.f32 %v143_v11, 0.0  ;;  %v89_v21 = vmul.f32 %v762_v2, %v32_v6  ;;  %v90_v22 = vmul.f32 %v762_v2, %v33_v7  ;;  %v47_v11 = vld [vmem:[%s1088_s0 + $0x108] sm:$0xff] }
  0x12   :  { %v617_v19 = vpack.c.bf16 %v191_v10, %v190_v9  ;;  %713 = vst [vmem:[%s1091_s3 + $0x28] sm:$0xff] %v612_v14   ;;  %v145_v24 = vadd.f32 %v769_v5, %v88_v16  ;;  %v194_v25 = vmax.f32 %v144_v17, 0.0  ;;  %v91_v26 = vmul.f32 %v762_v2, %v34_v12  ;;  %v48_v16 = vld [vmem:[%s1088_s0 + $0x110] sm:$0xff]  ;;  %v49_v17 = vld [vmem:[%s1088_s0 + $0x118] sm:$0xff] }
  0x13   :  { %v92_v27 = vmul.f32 %v762_v2, %v35_v13  ;;  %v622_v29 = vpack.c.bf16 %v193_v20, %v192_v15  ;;  %v146_v30 = vadd.f32 %v769_v5, %v89_v21  ;;  %v147_v31 = vadd.f32 %v769_v5, %v90_v22  ;;  %v50_v22 = vld [vmem:[%s1088_s0 + $0x120] sm:$0xff] }
  0x14   :  { %714 = vst [vmem:[%s1091_s3 + $0x30] sm:$0xff] %v617_v19   ;;  %v93_v32 = vmul.f32 %v762_v2, %v36_v18  ;;  %v195_v33 = vmax.f32 %v145_v24, 0.0  ;;  %v148_v34 = vadd.f32 %v769_v5, %v91_v26  ;;  %v94_v36 = vmul.f32 %v762_v2, %v37_v23  ;;  %v51_v23 = vld [vmem:[%s1088_s0 + $0x128] sm:$0xff] }
  0x15   :  { %v149_v35 = vadd.f32 %v769_v5, %v92_v27  ;;  %715 = vst [vmem:[%s1091_s3 + $0x38] sm:$0xff] %v622_v29   ;;  %v196_v38 = vmax.f32 %v146_v30, 0.0  ;;  %v197_v39 = vmax.f32 %v147_v31, 0.0  ;;  %v95_v41 = vmul.f32 %v762_v2, %v38_v28  ;;  %v52_v28 = vld [vmem:[%s1088_s0 + $0x130] sm:$0xff] }
  0x16   :  { %v150_v40 = vadd.f32 %v769_v5, %v93_v32  ;;  %v627_v44 = vpack.c.bf16 %v195_v33, %v194_v25  ;;  %v198_v45 = vmax.f32 %v148_v34, 0.0  ;;  %v151_v47 = vadd.f32 %v769_v5, %v94_v36  ;;  %v53_v33 = vld [vmem:[%s1088_s0 + $0x138] sm:$0xff] }
  0x17   :  { %v199_v46 = vmax.f32 %v149_v35, 0.0  ;;  %v632_v50 = vpack.c.bf16 %v197_v39, %v196_v38  ;;  %v96_v52 = vmul.f32 %v762_v2, %v39_v37  ;;  %v152_v53 = vadd.f32 %v769_v5, %v95_v41  ;;  %v54_v38 = vld [vmem:[%s1088_s0 + $0x140] sm:$0xff] }
  0x18   :  { %v200_v51 = vmax.f32 %v150_v40, 0.0  ;;  %716 = vst [vmem:[%s1091_s3 + $0x40] sm:$0xff] %v627_v44   ;;  %v201_v56 = vmax.f32 %v151_v47, 0.0  ;;  %v97_v57 = vmul.f32 %v762_v2, %v40_v42  ;;  %v98_v58 = vmul.f32 %v762_v2, %v41_v43  ;;  %v55_v47 = vld [vmem:[%s1088_s0 + $0x148] sm:$0xff] }
  0x19   :  { %v637_v55 = vpack.c.bf16 %v199_v46, %v198_v45  ;;  %717 = vst [vmem:[%s1091_s3 + $0x48] sm:$0xff] %v632_v50   ;;  %v153_v60 = vadd.f32 %v769_v5, %v96_v52  ;;  %v202_v61 = vmax.f32 %v152_v53, 0.0  ;;  %v99_v62 = vmul.f32 %v762_v2, %v42_v48  ;;  %v56_v52 = vld [vmem:[%s1088_s0 + $0x150] sm:$0xff]  ;;  %v57_v53 = vld [vmem:[%s1088_s0 + $0x158] sm:$0xff] }
  0x1a   :  { %v100_v63 = vmul.f32 %v762_v2, %v43_v49  ;;  %v642_v1 = vpack.c.bf16 %v201_v56, %v200_v51  ;;  %v154_v3 = vadd.f32 %v769_v5, %v97_v57  ;;  %v155_v4 = vadd.f32 %v769_v5, %v98_v58  ;;  %v58_v58 = vld [vmem:[%s1088_s0 + $0x160] sm:$0xff] }
  0x1b   :  { %718 = vst [vmem:[%s1091_s3 + $0x50] sm:$0xff] %v637_v55   ;;  %v101_v6 = vmul.f32 %v762_v2, %v44_v54  ;;  %v203_v7 = vmax.f32 %v153_v60, 0.0  ;;  %v156_v8 = vadd.f32 %v769_v5, %v99_v62  ;;  %v102_v10 = vmul.f32 %v762_v2, %v45_v59  ;;  %v59_v59 = vld [vmem:[%s1088_s0 + $0x168] sm:$0xff] }
  0x1c   :  { %v157_v9 = vadd.f32 %v769_v5, %v100_v63  ;;  %719 = vst [vmem:[%s1091_s3 + $0x58] sm:$0xff] %v642_v1   ;;  %v204_v12 = vmax.f32 %v154_v3, 0.0  ;;  %v205_v13 = vmax.f32 %v155_v4, 0.0  ;;  %v103_v15 = vmul.f32 %v762_v2, %v46_v0  ;;  %v60_v0 = vld [vmem:[%s1088_s0 + $0x170] sm:$0xff] }
  0x1d   :  { %v158_v14 = vadd.f32 %v769_v5, %v101_v6  ;;  %v647_v18 = vpack.c.bf16 %v203_v7, %v202_v61  ;;  %v206_v19 = vmax.f32 %v156_v8, 0.0  ;;  %v159_v21 = vadd.f32 %v769_v5, %v102_v10  ;;  %v61_v7 = vld [vmem:[%s1088_s0 + $0x178] sm:$0xff] }
  0x1e   :  { %v207_v20 = vmax.f32 %v157_v9, 0.0  ;;  %v652_v24 = vpack.c.bf16 %v205_v13, %v204_v12  ;;  %v104_v26 = vmul.f32 %v762_v2, %v47_v11  ;;  %v160_v27 = vadd.f32 %v769_v5, %v103_v15  ;;  %v62_v12 = vld [vmem:[%s1088_s0 + $0x180] sm:$0xff] }
  0x1f   :  { %v208_v25 = vmax.f32 %v158_v14, 0.0  ;;  %720 = vst [vmem:[%s1091_s3 + $0x60] sm:$0xff] %v647_v18   ;;  %v209_v30 = vmax.f32 %v159_v21, 0.0  ;;  %v105_v31 = vmul.f32 %v762_v2, %v48_v16  ;;  %v106_v32 = vmul.f32 %v762_v2, %v49_v17  ;;  %v63_v21 = vld [vmem:[%s1088_s0 + $0x188] sm:$0xff] }
  0x20   :  { %v657_v29 = vpack.c.bf16 %v207_v20, %v206_v19  ;;  %721 = vst [vmem:[%s1091_s3 + $0x68] sm:$0xff] %v652_v24   ;;  %v161_v34 = vadd.f32 %v769_v5, %v104_v26  ;;  %v210_v35 = vmax.f32 %v160_v27, 0.0  ;;  %v107_v36 = vmul.f32 %v762_v2, %v50_v22 }
  0x21   :  { %v108_v37 = vmul.f32 %v762_v2, %v51_v23  ;;  %v662_v39 = vpack.c.bf16 %v209_v30, %v208_v25  ;;  %v162_v40 = vadd.f32 %v769_v5, %v105_v31  ;;  %v163_v41 = vadd.f32 %v769_v5, %v106_v32 }
  0x22   :  { %722 = vst [vmem:[%s1091_s3 + $0x70] sm:$0xff] %v657_v29   ;;  %v109_v42 = vmul.f32 %v762_v2, %v52_v28  ;;  %v211_v43 = vmax.f32 %v161_v34, 0.0  ;;  %v164_v44 = vadd.f32 %v769_v5, %v107_v36  ;;  %v110_v46 = vmul.f32 %v762_v2, %v53_v33 }
  0x23   :  { %v165_v45 = vadd.f32 %v769_v5, %v108_v37  ;;  %723 = vst [vmem:[%s1091_s3 + $0x78] sm:$0xff] %v662_v39   ;;  %v212_v48 = vmax.f32 %v162_v40, 0.0  ;;  %v213_v49 = vmax.f32 %v163_v41, 0.0  ;;  %v111_v51 = vmul.f32 %v762_v2, %v54_v38 }
  0x24   :  { %v166_v50 = vadd.f32 %v769_v5, %v109_v42  ;;  %v667_v54 = vpack.c.bf16 %v211_v43, %v210_v35  ;;  %v214_v55 = vmax.f32 %v164_v44, 0.0  ;;  %v167_v57 = vadd.f32 %v769_v5, %v110_v46 }
  0x25   :  { %v215_v56 = vmax.f32 %v165_v45, 0.0  ;;  %v672_v60 = vpack.c.bf16 %v213_v49, %v212_v48  ;;  %v112_v62 = vmul.f32 %v762_v2, %v55_v47  ;;  %v168_v63 = vadd.f32 %v769_v5, %v111_v51 }
  0x26   :  { %v216_v61 = vmax.f32 %v166_v50, 0.0  ;;  %724 = vst [vmem:[%s1091_s3 + $0x80] sm:$0xff] %v667_v54   ;;  %v217_v3 = vmax.f32 %v167_v57, 0.0  ;;  %v113_v4 = vmul.f32 %v762_v2, %v56_v52  ;;  %v114_v6 = vmul.f32 %v762_v2, %v57_v53 }
  0x27   :  { %v677_v1 = vpack.c.bf16 %v215_v56, %v214_v55  ;;  %725 = vst [vmem:[%s1091_s3 + $0x88] sm:$0xff] %v672_v60   ;;  %v169_v8 = vadd.f32 %v769_v5, %v112_v62  ;;  %v218_v9 = vmax.f32 %v168_v63, 0.0  ;;  %v115_v10 = vmul.f32 %v762_v2, %v58_v58 }
  0x28   :  { %v116_v11 = vmul.f32 %v762_v2, %v59_v59  ;;  %v682_v13 = vpack.c.bf16 %v217_v3, %v216_v61  ;;  %v170_v14 = vadd.f32 %v769_v5, %v113_v4  ;;  %v171_v15 = vadd.f32 %v769_v5, %v114_v6 }
  0x29   :  { %726 = vst [vmem:[%s1091_s3 + $0x90] sm:$0xff] %v677_v1   ;;  %v117_v16 = vmul.f32 %v762_v2, %v60_v0  ;;  %v219_v17 = vmax.f32 %v169_v8, 0.0  ;;  %v172_v18 = vadd.f32 %v769_v5, %v115_v10  ;;  %v118_v20 = vmul.f32 %v762_v2, %v61_v7 }
  0x2a   :  { %v173_v19 = vadd.f32 %v769_v5, %v116_v11  ;;  %727 = vst [vmem:[%s1091_s3 + $0x98] sm:$0xff] %v682_v13   ;;  %v220_v22 = vmax.f32 %v170_v14, 0.0  ;;  %v221_v23 = vmax.f32 %v171_v15, 0.0  ;;  %v119_v25 = vmul.f32 %v762_v2, %v62_v12 }
  0x2b   :  { %v174_v24 = vadd.f32 %v769_v5, %v117_v16  ;;  %v687_v26 = vpack.c.bf16 %v219_v17, %v218_v9  ;;  %v222_v27 = vmax.f32 %v172_v18, 0.0  ;;  %v175_v29 = vadd.f32 %v769_v5, %v118_v20 }
  0x2c   :  { %v223_v28 = vmax.f32 %v173_v19, 0.0  ;;  %v692_v30 = vpack.c.bf16 %v221_v23, %v220_v22  ;;  %v120_v32 = vmul.f32 %v762_v2, %v63_v21  ;;  %v176_v33 = vadd.f32 %v769_v5, %v119_v25 }
  0x2d   :  { %v224_v31 = vmax.f32 %v174_v24, 0.0  ;;  %728 = vst [vmem:[%s1091_s3 + $0xa0] sm:$0xff] %v687_v26   ;;  %v225_v35 = vmax.f32 %v175_v29, 0.0 }
  0x2e   :  { %v697_v34 = vpack.c.bf16 %v223_v28, %v222_v27  ;;  %729 = vst [vmem:[%s1091_s3 + $0xa8] sm:$0xff] %v692_v30   ;;  %v177_v36 = vadd.f32 %v769_v5, %v120_v32  ;;  %v226_v37 = vmax.f32 %v176_v33, 0.0 }
  0x2f   :  { %v702_v2 = vpack.c.bf16 %v225_v35, %v224_v31 }
  0x30   :  { %730 = vst [vmem:[%s1091_s3 + $0xb0] sm:$0xff] %v697_v34   ;;  %v227_v38 = vmax.f32 %v177_v36, 0.0 }
  0x31   :  { %731 = vst [vmem:[%s1091_s3 + $0xb8] sm:$0xff] %v702_v2  }
  0x32   :  { %v707_v39 = vpack.c.bf16 %v227_v38, %v226_v37 }
  0x34   :  { %732 = vst [vmem:[%s1091_s3 + $0xc0] sm:$0xff] %v707_v39  }

// kernel: beta_vae_forward.22
= control target key start
LH: loop header
LB: loop body
LE: loop exit
PB: predicated region body
PF: predicated region fallthrough
CT: control target
= control target key end

     0   :  { %s244_s0 = inlined_call_operand.vmem [shape: f32[80,128], index: 0, kind: input, shape index: {}]   ;;  %s245_s1 = inlined_call_operand.vmem [shape: f32[1,128], index: 1, kind: input, shape index: {}]   ;;  %s246_s2 = inlined_call_operand.vmem [shape: f32[1,128], index: 2, kind: input, shape index: {}]   ;;  %s247_s3 = inlined_call_operand.vmem [shape: bf16[80,128], index: 3, kind: output, shape index: {}]  }
   0x1   :  { %v14_v0 = vld [vmem:[%s244_s0] sm:$0xff]  ;;  %v15_v1 = vld [vmem:[%s244_s0 + $0x8] sm:$0xff]  ;;  %v16_v6 = vld [vmem:[%s244_s0 + $0x10] sm:$0xff] }
   0x2   :  { %v122_v2 = vld [vmem:[%s245_s1] ss:$0 sm:$0xff]  ;;  %v17_v7 = vld [vmem:[%s244_s0 + $0x18] sm:$0xff]  ;;  %v19_v11 = vld [vmem:[%s244_s0 + $0x28] sm:$0xff] }
   0x3   :  { %v31_v3 = vmul.f32 %v122_v2, %v14_v0  ;;  %v32_v4 = vmul.f32 %v122_v2, %v15_v1  ;;  %v123_v5 = vld [vmem:[%s246_s2] ss:$0 sm:$0xff]  ;;  %v33_v8 = vmul.f32 %v122_v2, %v16_v6  ;;  %v34_v9 = vmul.f32 %v122_v2, %v17_v7  ;;  %v20_v12 = vld [vmem:[%s244_s0 + $0x30] sm:$0xff]  ;;  %v21_v17 = vld [vmem:[%s244_s0 + $0x38] sm:$0xff] }
   0x4   :  { %v18_v10 = vld [vmem:[%s244_s0 + $0x20] sm:$0xff]  ;;  %v36_v16 = vmul.f32 %v122_v2, %v19_v11  ;;  %v37_v20 = vmul.f32 %v122_v2, %v20_v12  ;;  %v38_v21 = vmul.f32 %v122_v2, %v21_v17  ;;  %v23_v27 = vld [vmem:[%s244_s0 + $0x48] sm:$0xff] }
   0x5   :  { %v48_v13 = vadd.f32 %v123_v5, %v31_v3  ;;  %v49_v14 = vadd.f32 %v123_v5, %v32_v4  ;;  %v35_v15 = vmul.f32 %v122_v2, %v18_v10  ;;  %v50_v18 = vadd.f32 %v123_v5, %v33_v8  ;;  %v22_v22 = vld [vmem:[%s244_s0 + $0x40] sm:$0xff] }
   0x6   :  { %v51_v19 = vadd.f32 %v123_v5, %v34_v9  ;;  %v53_v26 = vadd.f32 %v123_v5, %v36_v16  ;;  %v54_v30 = vadd.f32 %v123_v5, %v37_v20  ;;  %v55_v31 = vadd.f32 %v123_v5, %v38_v21 }
   0x7   :  { %v58_v23 = vmax.f32 %v48_v13, 0.0  ;;  %v59_v24 = vmax.f32 %v49_v14, 0.0  ;;  %v52_v25 = vadd.f32 %v123_v5, %v35_v15  ;;  %v60_v28 = vmax.f32 %v50_v18, 0.0 }
   0x8   :  { %v61_v29 = vmax.f32 %v51_v19, 0.0  ;;  %v63_v34 = vmax.f32 %v53_v26, 0.0  ;;  %v39_v35 = vmul.f32 %v122_v2, %v22_v22  ;;  %v64_v37 = vmax.f32 %v54_v30, 0.0 }
   0x9   :  { %v147_v32 = vpack.c.bf16 %v59_v24, %v58_v23  ;;  %v62_v33 = vmax.f32 %v52_v25, 0.0  ;;  %v65_v38 = vmax.f32 %v55_v31, 0.0  ;;  %v40_v39 = vmul.f32 %v122_v2, %v23_v27 }
   0xa   :  { %v152_v36 = vpack.c.bf16 %v61_v29, %v60_v28  ;;  %v56_v41 = vadd.f32 %v123_v5, %v39_v35 }
   0xb   :  { %148 = vst [vmem:[%s247_s3] sm:$0xff] %v147_v32   ;;  %v157_v40 = vpack.c.bf16 %v63_v34, %v62_v33  ;;  %v162_v42 = vpack.c.bf16 %v65_v38, %v64_v37  ;;  %v57_v43 = vadd.f32 %v123_v5, %v40_v39 }
   0xc   :  { %169 = vst [vmem:[%s247_s3 + $0x8] sm:$0xff] %v152_v36   ;;  %v66_v44 = vmax.f32 %v56_v41, 0.0 }
   0xd   :  { %170 = vst [vmem:[%s247_s3 + $0x10] sm:$0xff] %v157_v40   ;;  %171 = vst [vmem:[%s247_s3 + $0x18] sm:$0xff] %v162_v42   ;;  %v67_v45 = vmax.f32 %v57_v43, 0.0 }
   0xf   :  { %v167_v46 = vpack.c.bf16 %v67_v45, %v66_v44 }
  0x11   :  { %172 = vst [vmem:[%s247_s3 + $0x20] sm:$0xff] %v167_v46  }

// kernel: beta_vae_forward.21
= control target key start
LH: loop header
LB: loop body
LE: loop exit
PB: predicated region body
PF: predicated region fallthrough
CT: control target
= control target key end

     0   :  { %v811_v52 = vmov 0.0   ;;  %vm592_vm0 = vcmask 1040384   ;;  %s1027_s1 = inlined_call_operand.vmem [shape: bf16[512,128], index: 1, kind: input, shape index: {}]   ;;  %s1028_s0 = inlined_call_operand.vmem [shape: bf16[80,512], index: 0, kind: input, shape index: {}]   ;;  %s1029_s3 = inlined_call_operand.vmem [shape: f32[2,128], index: 3, kind: output, shape index: {1}]   ;;  %s1030_s2 = inlined_call_operand.vmem [shape: f32[80,128], index: 2, kind: output, shape index: {0}]  }
   0x1   :  { %v749_v0 = vld [vmem:[%s1027_s1 + $0x40] sm:$0xff]   ;;  %v753_v4 = vld [vmem:[%s1027_s1 + $0x48] sm:$0xff]   ;;  %v757_v8 = vld [vmem:[%s1027_s1 + $0x50] sm:$0xff]   ;;  %550 = vst [vmem:[%s1029_s3] sm:$0x3] %v811_v52 }
   0x2   :  { %v750_v1 = vld [vmem:[%s1027_s1 + $0xc0] sm:$0xff]   ;;  %656 = vmatprep.subr.bf16.mxu0 %v749_v0  ;;  %v754_v5 = vld [vmem:[%s1027_s1 + $0xc8] sm:$0xff]   ;;  %v758_v9 = vld [vmem:[%s1027_s1 + $0xd0] sm:$0xff]  }
   0x3   :  { %v751_v2 = vld [vmem:[%s1027_s1] sm:$0xff]   ;;  %702 = vmatprep.subr.bf16.mxu1 %v750_v1  ;;  %v755_v6 = vld [vmem:[%s1027_s1 + $0x8] sm:$0xff]   ;;  %v759_v10 = vld [vmem:[%s1027_s1 + $0x10] sm:$0xff]  }
   0x4   :  { %v752_v3 = vld [vmem:[%s1027_s1 + $0x80] sm:$0xff]   ;;  %657 = vmatpush3.bf16.msra.mxu0 %v751_v2  ;;  %v756_v7 = vld [vmem:[%s1027_s1 + $0x88] sm:$0xff]   ;;  %v760_v11 = vld [vmem:[%s1027_s1 + $0x90] sm:$0xff]  }
   0x5   :  { %703 = vmatpush3.bf16.msra.mxu1 %v752_v3  ;;  %658 = vmatprep.subr.bf16.mxu0 %v753_v4  ;;  %v761_v12 = vld [vmem:[%s1027_s1 + $0x58] sm:$0xff]   ;;  %v765_v16 = vld [vmem:[%s1027_s1 + $0x60] sm:$0xff]   ;;  %v769_v20 = vld [vmem:[%s1027_s1 + $0x68] sm:$0xff]  }
   0x6   :  { %704 = vmatprep.subr.bf16.mxu1 %v754_v5  ;;  %v762_v13 = vld [vmem:[%s1027_s1 + $0xd8] sm:$0xff]   ;;  %v766_v17 = vld [vmem:[%s1027_s1 + $0xe0] sm:$0xff]   ;;  %v770_v21 = vld [vmem:[%s1027_s1 + $0xe8] sm:$0xff]  }
   0x7   :  { %v763_v14 = vld [vmem:[%s1027_s1 + $0x18] sm:$0xff]   ;;  %v767_v18 = vld [vmem:[%s1027_s1 + $0x20] sm:$0xff]   ;;  %v771_v22 = vld [vmem:[%s1027_s1 + $0x28] sm:$0xff]  }
   0x8   :  { %659 = vmatpush3.bf16.msra.mxu0 %v755_v6  ;;  %v764_v15 = vld [vmem:[%s1027_s1 + $0x98] sm:$0xff]   ;;  %v768_v19 = vld [vmem:[%s1027_s1 + $0xa0] sm:$0xff]   ;;  %v772_v23 = vld [vmem:[%s1027_s1 + $0xa8] sm:$0xff]  }
   0x9   :  { %705 = vmatpush3.bf16.msra.mxu1 %v756_v7  ;;  %660 = vmatprep.subr.bf16.mxu0 %v757_v8  ;;  %v773_v24 = vld [vmem:[%s1027_s1 + $0x70] sm:$0xff]   ;;  %v777_v28 = vld [vmem:[%s1027_s1 + $0x78] sm:$0xff]  }
   0xa   :  { %706 = vmatprep.subr.bf16.mxu1 %v758_v9  ;;  %v774_v25 = vld [vmem:[%s1027_s1 + $0xf0] sm:$0xff]   ;;  %v778_v29 = vld [vmem:[%s1027_s1 + $0xf8] sm:$0xff]  }
   0xb   :  { %v775_v26 = vld [vmem:[%s1027_s1 + $0x30] sm:$0xff]   ;;  %v779_v30 = vld [vmem:[%s1027_s1 + $0x38] sm:$0xff]  }
   0xc   :  { %661 = vmatpush3.bf16.msra.mxu0 %v759_v10  ;;  %v776_v27 = vld [vmem:[%s1027_s1 + $0xb0] sm:$0xff]   ;;  %v780_v31 = vld [vmem:[%s1027_s1 + $0xb8] sm:$0xff]  }
   0xd   :  { %707 = vmatpush3.bf16.msra.mxu1 %v760_v11  ;;  %662 = vmatprep.subr.bf16.mxu0 %v761_v12  ;;  %v781_v32 = vld [vmem:[%s1028_s0] ss:$16 sps:$4 sm:$0xff]   ;;  %v783_v33 = vld [vmem:[%s1028_s0 + $0x4] ss:$16 sps:$4 sm:$0xff]   ;;  %v784_v34 = vld [vmem:[%s1028_s0 + $0x8] ss:$16 sps:$4 sm:$0xff]  }
   0xe   :  { %708 = vmatprep.subr.bf16.mxu1 %v762_v13  ;;  %v786_v35 = vld [vmem:[%s1028_s0 + $0xc] ss:$16 sps:$4 sm:$0xff]   ;;  %422 = vmatprep.mubr.bf16.mxu0 %v783_v33  ;;  %v787_v36 = vld [vmem:[%s1028_s0 + $0x24] ss:$16 sps:$4 sm:$0xff]   ;;  %v791_v38 = vld [vmem:[%s1028_s0 + $0x20] ss:$16 sps:$4 sm:$0xff]  }
   0xf   :  { %495 = vmatprep.mubr.bf16.mxu1 %v786_v35  ;;  %v789_v37 = vld [vmem:[%s1028_s0 + $0x2c] ss:$16 sps:$4 sm:$0xff]   ;;  %v792_v39 = vld [vmem:[%s1028_s0 + $0x28] ss:$16 sps:$4 sm:$0xff]   ;;  %v793_v40 = vld [vmem:[%s1028_s0 + $0x44] ss:$16 sps:$4 sm:$0xff]  }
  0x10   :  { %663 = vmatpush3.bf16.msra.mxu0 %v763_v14  ;;  %v795_v41 = vld [vmem:[%s1028_s0 + $0x4c] ss:$16 sps:$4 sm:$0xff]   ;;  %v797_v42 = vld [vmem:[%s1028_s0 + $0x40] ss:$16 sps:$4 sm:$0xff]   ;;  %v798_v43 = vld [vmem:[%s1028_s0 + $0x48] ss:$16 sps:$4 sm:$0xff]  }
  0x11   :  { %709 = vmatpush3.bf16.msra.mxu1 %v764_v15  ;;  %664 = vmatprep.subr.bf16.mxu0 %v765_v16  ;;  %v799_v44 = vld [vmem:[%s1028_s0 + $0x64] ss:$16 sps:$4 sm:$0xff]   ;;  %v801_v45 = vld [vmem:[%s1028_s0 + $0x6c] ss:$16 sps:$4 sm:$0xff]   ;;  %v803_v46 = vld [vmem:[%s1028_s0 + $0x60] ss:$16 sps:$4 sm:$0xff]  }
  0x12   :  { %710 = vmatprep.subr.bf16.mxu1 %v766_v17  ;;  %v804_v47 = vld [vmem:[%s1028_s0 + $0x68] ss:$16 sps:$4 sm:$0xff]   ;;  %v805_v48 = vld [vmem:[%s1028_s0 + $0x84] ss:$16 sps:$4 sm:$0xff]   ;;  %v807_v49 = vld [vmem:[%s1028_s0 + $0x8c] ss:$16 sps:$4 sm:$0xff]  }
  0x13   :  { %v809_v50 = vld [vmem:[%s1028_s0 + $0x80] ss:$16 sps:$4 sm:$0xff]   ;;  %v810_v51 = vld [vmem:[%s1028_s0 + $0x88] ss:$16 sps:$4 sm:$0xff]  }
  0x14   :  { %665 = vmatpush3.bf16.msra.mxu0 %v767_v18 }
  0x15   :  { %711 = vmatpush3.bf16.msra.mxu1 %v768_v19  ;;  %666 = vmatprep.subr.bf16.mxu0 %v769_v20 }
  0x16   :  { %712 = vmatprep.subr.bf16.mxu1 %v770_v21 }
  0x18   :  { %667 = vmatpush3.bf16.msra.mxu0 %v771_v22 }
  0x19   :  { %713 = vmatpush3.bf16.msra.mxu1 %v772_v23  ;;  %668 = vmatprep.subr.bf16.mxu0 %v773_v24 }
  0x1a   :  { %714 = vmatprep.subr.bf16.mxu1 %v774_v25 }
  0x1c   :  { %669 = vmatpush3.bf16.msra.mxu0 %v775_v26 }
  0x1d   :  { %715 = vmatpush3.bf16.msra.mxu1 %v776_v27  ;;  %670 = vmatprep.subr.bf16.mxu0 %v777_v28 }
  0x1e   :  { %716 = vmatprep.subr.bf16.mxu1 %v778_v29 }
  0x20   :  { %671 = vmatpush3.bf16.msra.mxu0 %v779_v30 }
  0x21   :  { %717 = vmatpush3.bf16.msra.mxu1 %v780_v31 }
  0x23   :  { %423 = vmatmul.mubr.bf16.vlgmr.msra.gmra.mrb[0].mxu0 %v781_v32 }
  0x24   :  { %496 = vmatmul.mubr.bf16.vlgmr.msra.gmra.mrb[0].mxu1 %v784_v34  ;;  %430 = vmatprep.mubr.bf16.mxu0 %v787_v36 }
  0x25   :  { %503 = vmatprep.mubr.bf16.mxu1 %v789_v37 }
  0x2b   :  { %431 = vmatmul.mubr.bf16.gmra.mrb[4].mxu0 %v791_v38 }
  0x2c   :  { %504 = vmatmul.mubr.bf16.gmra.mrb[4].mxu1 %v792_v39  ;;  %438 = vmatprep.mubr.bf16.mxu0 %v793_v40 }
  0x2d   :  { %511 = vmatprep.mubr.bf16.mxu1 %v795_v41 }
  0x33   :  { %439 = vmatmul.mubr.bf16.gmra.mrb[8].mxu0 %v797_v42 }
  0x34   :  { %512 = vmatmul.mubr.bf16.gmra.mrb[8].mxu1 %v798_v43  ;;  %446 = vmatprep.mubr.bf16.mxu0 %v799_v44 }
  0x35   :  { %519 = vmatprep.mubr.bf16.mxu1 %v801_v45 }
  0x3b   :  { %447 = vmatmul.mubr.bf16.gmra.mrb[12].mxu0 %v803_v46 }
  0x3c   :  { %520 = vmatmul.mubr.bf16.gmra.mrb[12].mxu1 %v804_v47  ;;  %454 = vmatprep.mubr.bf16.mxu0 %v805_v48 }
  0x3d   :  { %527 = vmatprep.mubr.bf16.mxu1 %v807_v49 }
  0x43   :  { %455 = vmatmul.mubr.bf16.gmra.mrb[16].mxu0 %v809_v50 }
  0x44   :  { %528 = vmatmul.mubr.bf16.gmra.mrb[16].mxu1 %v810_v51 }
  0xf6   :  { %v672_v53 = vpop.f32.mrb[0].mxu0 }
  0xf7   :  { %v718_v54 = vpop.f32.mrb[0].mxu1  ;;  %v673_v55 = vpop.f32.mrb[1].mxu0 }
  0xf8   :  { %v674_v56 = vadd.f32 %v673_v55, %v672_v53  ;;  %v719_v57 = vpop.f32.mrb[1].mxu1  ;;  %v675_v58 = vpop.f32.mrb[2].mxu0 }
  0xf9   :  { %v720_v59 = vadd.f32 %v719_v57, %v718_v54  ;;  %v721_v60 = vpop.f32.mrb[2].mxu1  ;;  %v676_v61 = vpop.f32.mrb[3].mxu0 }
  0xfa   :  { %v677_v62 = vadd.f32 %v676_v61, %v675_v58  ;;  %v722_v63 = vpop.f32.mrb[3].mxu1 }
  0xfb   :  { %v498_v0 = vadd.f32 %v720_v59, %v674_v56  ;;  %v723_v1 = vadd.f32 %v722_v63, %v721_v60 }
  0xfd   :  { %536 = vst [vmem:[%s1030_s2] sm:$0xff] %v498_v0  ;;  %v501_v2 = vadd.f32 %v723_v1, %v677_v62  ;;  %v567_v4 = vmul.f32 %v498_v0, %v498_v0 }
  0xfe   :  { %v678_v3 = vpop.f32.mrb[4].mxu0 }
  0xff   :  { %537 = vst [vmem:[%s1030_s2 + $0x8] sm:$0xff] %v501_v2  ;;  %v552_v5 = vadd.f32 %v501_v2, %v498_v0  ;;  %v568_v6 = vmul.f32 %v501_v2, %v501_v2  ;;  %v724_v7 = vpop.f32.mrb[4].mxu1  ;;  %v679_v8 = vpop.f32.mrb[5].mxu0 }
 0x100   :  { %v680_v9 = vadd.f32 %v679_v8, %v678_v3  ;;  %v725_v10 = vpop.f32.mrb[5].mxu1  ;;  %v681_v11 = vpop.f32.mrb[6].mxu0 }
 0x101   :  { %v577_v12 = vadd.f32 %v568_v6, %v567_v4  ;;  %v726_v13 = vadd.f32 %v725_v10, %v724_v7  ;;  %v727_v14 = vpop.f32.mrb[6].mxu1  ;;  %v682_v15 = vpop.f32.mrb[7].mxu0 }
 0x102   :  { %v683_v16 = vadd.f32 %v682_v15, %v681_v11  ;;  %v728_v17 = vpop.f32.mrb[7].mxu1 }
 0x103   :  { %v506_v18 = vadd.f32 %v726_v13, %v680_v9  ;;  %v729_v19 = vadd.f32 %v728_v17, %v727_v14 }
 0x105   :  { %538 = vst [vmem:[%s1030_s2 + $0x10] sm:$0xff] %v506_v18  ;;  %v553_v20 = vadd.f32 %v552_v5, %v506_v18  ;;  %v569_v21 = vmul.f32 %v506_v18, %v506_v18  ;;  %v509_v22 = vadd.f32 %v729_v19, %v683_v16 }
 0x106   :  { %v684_v23 = vpop.f32.mrb[8].mxu0 }
 0x107   :  { %v578_v24 = vadd.f32 %v577_v12, %v569_v21  ;;  %539 = vst [vmem:[%s1030_s2 + $0x18] sm:$0xff] %v509_v22  ;;  %v554_v25 = vadd.f32 %v553_v20, %v509_v22  ;;  %v570_v26 = vmul.f32 %v509_v22, %v509_v22  ;;  %v730_v27 = vpop.f32.mrb[8].mxu1  ;;  %v685_v28 = vpop.f32.mrb[9].mxu0 }
 0x108   :  { %v686_v29 = vadd.f32 %v685_v28, %v684_v23  ;;  %v731_v30 = vpop.f32.mrb[9].mxu1  ;;  %v687_v31 = vpop.f32.mrb[10].mxu0 }
 0x109   :  { %v579_v32 = vadd.f32 %v578_v24, %v570_v26  ;;  %v732_v33 = vadd.f32 %v731_v30, %v730_v27  ;;  %v733_v34 = vpop.f32.mrb[10].mxu1  ;;  %v688_v35 = vpop.f32.mrb[11].mxu0 }
 0x10a   :  { %v689_v36 = vadd.f32 %v688_v35, %v687_v31  ;;  %v734_v37 = vpop.f32.mrb[11].mxu1 }
 0x10b   :  { %v514_v38 = vadd.f32 %v732_v33, %v686_v29  ;;  %v735_v39 = vadd.f32 %v734_v37, %v733_v34  ;;  %v551_v33 = vld [vmem:[%s1029_s3] sm:$0x3] }
 0x10d   :  { %540 = vst [vmem:[%s1030_s2 + $0x20] sm:$0xff] %v514_v38  ;;  %v555_v40 = vadd.f32 %v554_v25, %v514_v38  ;;  %v571_v41 = vmul.f32 %v514_v38, %v514_v38  ;;  %v517_v42 = vadd.f32 %v735_v39, %v689_v36 }
 0x10e   :  { %v690_v43 = vpop.f32.mrb[12].mxu0 }
 0x10f   :  { %v580_v44 = vadd.f32 %v579_v32, %v571_v41  ;;  %541 = vst [vmem:[%s1030_s2 + $0x28] sm:$0xff] %v517_v42  ;;  %v556_v45 = vadd.f32 %v555_v40, %v517_v42  ;;  %v572_v46 = vmul.f32 %v517_v42, %v517_v42  ;;  %v736_v47 = vpop.f32.mrb[12].mxu1  ;;  %v691_v48 = vpop.f32.mrb[13].mxu0 }
 0x110   :  { %v692_v49 = vadd.f32 %v691_v48, %v690_v43  ;;  %v737_v50 = vpop.f32.mrb[13].mxu1  ;;  %v693_v51 = vpop.f32.mrb[14].mxu0 }
 0x111   :  { %v581_v52 = vadd.f32 %v580_v44, %v572_v46  ;;  %v738_v53 = vadd.f32 %v737_v50, %v736_v47  ;;  %v739_v54 = vpop.f32.mrb[14].mxu1  ;;  %v694_v55 = vpop.f32.mrb[15].mxu0 }
 0x112   :  { %v695_v56 = vadd.f32 %v694_v55, %v693_v51  ;;  %v740_v57 = vpop.f32.mrb[15].mxu1 }
 0x113   :  { %v522_v58 = vadd.f32 %v738_v53, %v692_v49  ;;  %v741_v59 = vadd.f32 %v740_v57, %v739_v54 }
 0x115   :  { %542 = vst [vmem:[%s1030_s2 + $0x30] sm:$0xff] %v522_v58  ;;  %v557_v60 = vadd.f32 %v556_v45, %v522_v58  ;;  %v573_v61 = vmul.f32 %v522_v58, %v522_v58  ;;  %v525_v62 = vadd.f32 %v741_v59, %v695_v56 }
 0x116   :  { %v696_v63 = vpop.f32.mrb[16].mxu0 }
 0x117   :  { %v582_v0 = vadd.f32 %v581_v52, %v573_v61  ;;  %543 = vst [vmem:[%s1030_s2 + $0x38] sm:$0xff] %v525_v62  ;;  %v558_v1 = vadd.f32 %v557_v60, %v525_v62  ;;  %v574_v2 = vmul.f32 %v525_v62, %v525_v62  ;;  %v742_v3 = vpop.f32.mrb[16].mxu1  ;;  %v697_v4 = vpop.f32.mrb[17].mxu0 }
 0x118   :  { %v698_v5 = vadd.f32 %v697_v4, %v696_v63  ;;  %v743_v6 = vpop.f32.mrb[17].mxu1  ;;  %v699_v7 = vpop.f32.mrb[18].mxu0 }
 0x119   :  { %v583_v8 = vadd.f32 %v582_v0, %v574_v2  ;;  %v744_v9 = vadd.f32 %v743_v6, %v742_v3  ;;  %v745_v10 = vpop.f32.mrb[18].mxu1  ;;  %v700_v11 = vpop.f32.mrb[19].mxu0 }
 0x11a   :  { %v701_v12 = vadd.f32 %v700_v11, %v699_v7  ;;  %v746_v13 = vpop.f32.mrb[19].mxu1 }
 0x11b   :  { %v530_v14 = vadd.f32 %v744_v9, %v698_v5  ;;  %v747_v15 = vadd.f32 %v746_v13, %v745_v10 }
 0x11d   :  { %544 = vst [vmem:[%s1030_s2 + $0x40] sm:$0xff] %v530_v14  ;;  %v559_v16 = vadd.f32 %v558_v1, %v530_v14  ;;  %v575_v17 = vmul.f32 %v530_v14, %v530_v14  ;;  %v533_v18 = vadd.f32 %v747_v15, %v701_v12 }
 0x11f   :  { %v584_v19 = vadd.f32 %v583_v8, %v575_v17  ;;  %545 = vst [vmem:[%s1030_s2 + $0x48] sm:$0xff] %v533_v18  ;;  %v560_v20 = vadd.f32 %v559_v16, %v533_v18  ;;  %v576_v21 = vmul.f32 %v533_v18, %v533_v18 }
 0x121   :  { %v561_v22 = vrot.slane %v560_v20, 4  ;;  %v585_v23 = vadd.f32 %v584_v19, %v576_v21 }
 0x123   :  { %v562_v24 = vadd.f32 %v561_v22, %v560_v20  ;;  %v586_v25 = vrot.slane %v585_v23, 4 }
 0x125   :  { %v563_v26 = vrot.slane %v562_v24, 2  ;;  %v587_v27 = vadd.f32 %v586_v25, %v585_v23 }
 0x127   :  { %v564_v28 = vadd.f32 %v563_v26, %v562_v24  ;;  %v588_v29 = vrot.slane %v587_v27, 2 }
 0x129   :  { %v565_v30 = vrot.slane %v564_v28, 1  ;;  %v589_v31 = vadd.f32 %v588_v29, %v587_v27 }
 0x12b   :  { %v590_v32 = vrot.slane %v589_v31, 1  ;;  %v566_v34 = vadd.f32 %v565_v30, %v564_v28 }
 0x12d   :  { %v591_v35 = vadd.f32 %v590_v32, %v589_v31 }
 0x12f   :  { %v593_v36 = vsel %vm592_vm0, %v566_v34, %v591_v35 }
 0x130   :  { %v594_v37 = vadd.f32 %v593_v36, %v551_v33 }
 0x132   :  { %595 = vst [vmem:[%s1029_s3] sm:$0x3] %v594_v37 }

// kernel: beta_vae_forward.23
= control target key start
LH: loop header
LB: loop body
LE: loop exit
PB: predicated region body
PF: predicated region fallthrough
CT: control target
= control target key end

     0   :  { %vm762_vm0 = vcmask 1040384   ;;  %s1251_s1 = inlined_call_operand.vmem [shape: bf16[1024,128], index: 1, kind: input, shape index: {}]   ;;  %s1252_s0 = inlined_call_operand.vmem [shape: bf16[16,1024], index: 0, kind: input, shape index: {}]   ;;  %s1253_s3 = inlined_call_operand.vmem [shape: f32[2,128], index: 3, kind: output, shape index: {1}]   ;;  %s1254_s2 = inlined_call_operand.vmem [shape: f32[16,128], index: 2, kind: output, shape index: {0}]  }
   0x1   :  { %v935_v0 = vld [vmem:[%s1251_s1 + $0x40] sm:$0xff]   ;;  %v939_v4 = vld [vmem:[%s1251_s1 + $0x48] sm:$0xff]   ;;  %v943_v8 = vld [vmem:[%s1251_s1 + $0x50] sm:$0xff]  }
   0x2   :  { %v936_v1 = vld [vmem:[%s1251_s1 + $0xc0] sm:$0xff]   ;;  %846 = vmatprep.subr.bf16.mxu0 %v935_v0  ;;  %v940_v5 = vld [vmem:[%s1251_s1 + $0xc8] sm:$0xff]   ;;  %v944_v9 = vld [vmem:[%s1251_s1 + $0xd0] sm:$0xff]  }
   0x3   :  { %v937_v2 = vld [vmem:[%s1251_s1] sm:$0xff]   ;;  %868 = vmatprep.subr.bf16.mxu1 %v936_v1  ;;  %v941_v6 = vld [vmem:[%s1251_s1 + $0x8] sm:$0xff]   ;;  %v945_v10 = vld [vmem:[%s1251_s1 + $0x10] sm:$0xff]  }
   0x4   :  { %v938_v3 = vld [vmem:[%s1251_s1 + $0x80] sm:$0xff]   ;;  %847 = vmatpush3.bf16.msra.mxu0 %v937_v2  ;;  %v942_v7 = vld [vmem:[%s1251_s1 + $0x88] sm:$0xff]   ;;  %v946_v11 = vld [vmem:[%s1251_s1 + $0x90] sm:$0xff]  }
   0x5   :  { %869 = vmatpush3.bf16.msra.mxu1 %v938_v3  ;;  %848 = vmatprep.subr.bf16.mxu0 %v939_v4  ;;  %v947_v12 = vld [vmem:[%s1251_s1 + $0x58] sm:$0xff]   ;;  %v951_v16 = vld [vmem:[%s1251_s1 + $0x60] sm:$0xff]   ;;  %v955_v20 = vld [vmem:[%s1251_s1 + $0x68] sm:$0xff]  }
   0x6   :  { %870 = vmatprep.subr.bf16.mxu1 %v940_v5  ;;  %v948_v13 = vld [vmem:[%s1251_s1 + $0xd8] sm:$0xff]   ;;  %v952_v17 = vld [vmem:[%s1251_s1 + $0xe0] sm:$0xff]   ;;  %v956_v21 = vld [vmem:[%s1251_s1 + $0xe8] sm:$0xff]  }
   0x7   :  { %v949_v14 = vld [vmem:[%s1251_s1 + $0x18] sm:$0xff]   ;;  %v953_v18 = vld [vmem:[%s1251_s1 + $0x20] sm:$0xff]   ;;  %v957_v22 = vld [vmem:[%s1251_s1 + $0x28] sm:$0xff]  }
   0x8   :  { %849 = vmatpush3.bf16.msra.mxu0 %v941_v6  ;;  %v950_v15 = vld [vmem:[%s1251_s1 + $0x98] sm:$0xff]   ;;  %v954_v19 = vld [vmem:[%s1251_s1 + $0xa0] sm:$0xff]   ;;  %v958_v23 = vld [vmem:[%s1251_s1 + $0xa8] sm:$0xff]  }
   0x9   :  { %871 = vmatpush3.bf16.msra.mxu1 %v942_v7  ;;  %850 = vmatprep.subr.bf16.mxu0 %v943_v8  ;;  %v959_v24 = vld [vmem:[%s1251_s1 + $0x70] sm:$0xff]   ;;  %v963_v28 = vld [vmem:[%s1251_s1 + $0x78] sm:$0xff]   ;;  %v14_v32 = vld [vmem:[%s1252_s0] sm:$0xff] }
   0xa   :  { %872 = vmatprep.subr.bf16.mxu1 %v944_v9  ;;  %v960_v25 = vld [vmem:[%s1251_s1 + $0xf0] sm:$0xff]   ;;  %v964_v29 = vld [vmem:[%s1251_s1 + $0xf8] sm:$0xff]   ;;  %v18_v33 = vld [vmem:[%s1252_s0 + $0x20] sm:$0xff] }
   0xb   :  { %v961_v26 = vld [vmem:[%s1251_s1 + $0x30] sm:$0xff]   ;;  %v965_v30 = vld [vmem:[%s1251_s1 + $0x38] sm:$0xff]   ;;  %v15_v34 = vld [vmem:[%s1252_s0 + $0x8] sm:$0xff]  ;;  %v774_v35 = vcombine.low %v14_v32, %v18_v33  ;;  %v775_v36 = vcombine.high %v14_v32, %v18_v33 }
   0xc   :  { %851 = vmatpush3.bf16.msra.mxu0 %v945_v10  ;;  %v962_v27 = vld [vmem:[%s1251_s1 + $0xb0] sm:$0xff]   ;;  %v966_v31 = vld [vmem:[%s1251_s1 + $0xb8] sm:$0xff]   ;;  %v19_v37 = vld [vmem:[%s1252_s0 + $0x28] sm:$0xff] }
   0xd   :  { %873 = vmatpush3.bf16.msra.mxu1 %v946_v11  ;;  %852 = vmatprep.subr.bf16.mxu0 %v947_v12  ;;  %v776_v38 = vcombine.low %v15_v34, %v19_v37  ;;  %v777_v39 = vcombine.high %v15_v34, %v19_v37  ;;  %v967_v40 = vld [vmem:[%s1251_s1 + $0x140] sm:$0xff]   ;;  %v971_v44 = vld [vmem:[%s1251_s1 + $0x148] sm:$0xff]   ;;  %v975_v48 = vld [vmem:[%s1251_s1 + $0x150] sm:$0xff]  }
   0xe   :  { %874 = vmatprep.subr.bf16.mxu1 %v948_v13  ;;  %606 = vmatprep.mubr.bf16.mxu0 %v775_v36  ;;  %v968_v41 = vld [vmem:[%s1251_s1 + $0x1c0] sm:$0xff]   ;;  %v972_v45 = vld [vmem:[%s1251_s1 + $0x1c8] sm:$0xff]   ;;  %v976_v49 = vld [vmem:[%s1251_s1 + $0x1d0] sm:$0xff]  }
   0xf   :  { %647 = vmatprep.mubr.bf16.mxu1 %v777_v39  ;;  %v969_v42 = vld [vmem:[%s1251_s1 + $0x100] sm:$0xff]   ;;  %v973_v46 = vld [vmem:[%s1251_s1 + $0x108] sm:$0xff]   ;;  %v977_v50 = vld [vmem:[%s1251_s1 + $0x110] sm:$0xff]  }
  0x10   :  { %853 = vmatpush3.bf16.msra.mxu0 %v949_v14  ;;  %v970_v43 = vld [vmem:[%s1251_s1 + $0x180] sm:$0xff]   ;;  %v974_v47 = vld [vmem:[%s1251_s1 + $0x188] sm:$0xff]   ;;  %v978_v51 = vld [vmem:[%s1251_s1 + $0x190] sm:$0xff]  }
  0x11   :  { %875 = vmatpush3.bf16.msra.mxu1 %v950_v15  ;;  %854 = vmatprep.subr.bf16.mxu0 %v951_v16  ;;  %v979_v52 = vld [vmem:[%s1251_s1 + $0x158] sm:$0xff]   ;;  %v983_v56 = vld [vmem:[%s1251_s1 + $0x160] sm:$0xff]   ;;  %v987_v60 = vld [vmem:[%s1251_s1 + $0x168] sm:$0xff]   ;;  %v999_v16 = vmov 0.0  }
  0x12   :  { %876 = vmatprep.subr.bf16.mxu1 %v952_v17  ;;  %v980_v53 = vld [vmem:[%s1251_s1 + $0x1d8] sm:$0xff]   ;;  %v984_v57 = vld [vmem:[%s1251_s1 + $0x1e0] sm:$0xff]   ;;  %v988_v61 = vld [vmem:[%s1251_s1 + $0x1e8] sm:$0xff]   ;;  %744 = vst [vmem:[%s1253_s3] sm:$0x3] %v999_v16 }
  0x13   :  { %v981_v54 = vld [vmem:[%s1251_s1 + $0x118] sm:$0xff]   ;;  %v985_v58 = vld [vmem:[%s1251_s1 + $0x120] sm:$0xff]   ;;  %v989_v62 = vld [vmem:[%s1251_s1 + $0x128] sm:$0xff]  }
  0x14   :  { %855 = vmatpush3.bf16.msra.mxu0 %v953_v18  ;;  %v982_v55 = vld [vmem:[%s1251_s1 + $0x198] sm:$0xff]   ;;  %v986_v59 = vld [vmem:[%s1251_s1 + $0x1a0] sm:$0xff]   ;;  %v990_v63 = vld [vmem:[%s1251_s1 + $0x1a8] sm:$0xff]  }
  0x15   :  { %877 = vmatpush3.bf16.msra.mxu1 %v954_v19  ;;  %856 = vmatprep.subr.bf16.mxu0 %v955_v20  ;;  %v991_v0 = vld [vmem:[%s1251_s1 + $0x170] sm:$0xff]   ;;  %v995_v4 = vld [vmem:[%s1251_s1 + $0x178] sm:$0xff]  }
  0x16   :  { %878 = vmatprep.subr.bf16.mxu1 %v956_v21  ;;  %v992_v1 = vld [vmem:[%s1251_s1 + $0x1f0] sm:$0xff]   ;;  %v996_v5 = vld [vmem:[%s1251_s1 + $0x1f8] sm:$0xff]  }
  0x17   :  { %v993_v2 = vld [vmem:[%s1251_s1 + $0x130] sm:$0xff]   ;;  %v997_v6 = vld [vmem:[%s1251_s1 + $0x138] sm:$0xff]  }
  0x18   :  { %857 = vmatpush3.bf16.msra.mxu0 %v957_v22  ;;  %v994_v3 = vld [vmem:[%s1251_s1 + $0x1b0] sm:$0xff]   ;;  %v998_v7 = vld [vmem:[%s1251_s1 + $0x1b8] sm:$0xff]  }
  0x19   :  { %879 = vmatpush3.bf16.msra.mxu1 %v958_v23  ;;  %858 = vmatprep.subr.bf16.mxu0 %v959_v24  ;;  %v16_v8 = vld [vmem:[%s1252_s0 + $0x10] sm:$0xff]  ;;  %v17_v12 = vld [vmem:[%s1252_s0 + $0x18] sm:$0xff] }
  0x1a   :  { %880 = vmatprep.subr.bf16.mxu1 %v960_v25  ;;  %v20_v9 = vld [vmem:[%s1252_s0 + $0x30] sm:$0xff]  ;;  %v21_v13 = vld [vmem:[%s1252_s0 + $0x38] sm:$0xff] }
  0x1b   :  { %v778_v10 = vcombine.low %v16_v8, %v20_v9  ;;  %v779_v11 = vcombine.high %v16_v8, %v20_v9  ;;  %v780_v14 = vcombine.low %v17_v12, %v21_v13  ;;  %v781_v15 = vcombine.high %v17_v12, %v21_v13 }
  0x1c   :  { %859 = vmatpush3.bf16.msra.mxu0 %v961_v26 }
  0x1d   :  { %881 = vmatpush3.bf16.msra.mxu1 %v962_v27  ;;  %860 = vmatprep.subr.bf16.mxu0 %v963_v28 }
  0x1e   :  { %882 = vmatprep.subr.bf16.mxu1 %v964_v29 }
  0x20   :  { %861 = vmatpush3.bf16.msra.mxu0 %v965_v30 }
  0x21   :  { %883 = vmatpush3.bf16.msra.mxu1 %v966_v31  ;;  %890 = vmatprep.subr.bf16.mxu0 %v967_v40 }
  0x22   :  { %912 = vmatprep.subr.bf16.mxu1 %v968_v41 }
  0x23   :  { %607 = vmatmul.mubr.bf16.vlgmr.msra.gmra.mrb[0].mxu0 %v774_v35 }
  0x24   :  { %648 = vmatmul.mubr.bf16.vlgmr.msra.gmra.mrb[0].mxu1 %v776_v38  ;;  %891 = vmatpush3.bf16.msra.mxu0 %v969_v42 }
  0x25   :  { %913 = vmatpush3.bf16.msra.mxu1 %v970_v43  ;;  %892 = vmatprep.subr.bf16.mxu0 %v971_v44 }
  0x26   :  { %914 = vmatprep.subr.bf16.mxu1 %v972_v45  ;;  %688 = vmatprep.mubr.bf16.mxu0 %v779_v11 }
  0x27   :  { %729 = vmatprep.mubr.bf16.mxu1 %v781_v15 }
  0x28   :  { %893 = vmatpush3.bf16.msra.mxu0 %v973_v46 }
  0x29   :  { %915 = vmatpush3.bf16.msra.mxu1 %v974_v47  ;;  %894 = vmatprep.subr.bf16.mxu0 %v975_v48 }
  0x2a   :  { %916 = vmatprep.subr.bf16.mxu1 %v976_v49 }
  0x2c   :  { %895 = vmatpush3.bf16.msra.mxu0 %v977_v50 }
  0x2d   :  { %917 = vmatpush3.bf16.msra.mxu1 %v978_v51  ;;  %896 = vmatprep.subr.bf16.mxu0 %v979_v52 }
  0x2e   :  { %918 = vmatprep.subr.bf16.mxu1 %v980_v53 }
  0x30   :  { %897 = vmatpush3.bf16.msra.mxu0 %v981_v54 }
  0x31   :  { %919 = vmatpush3.bf16.msra.mxu1 %v982_v55  ;;  %898 = vmatprep.subr.bf16.mxu0 %v983_v56 }
  0x32   :  { %920 = vmatprep.subr.bf16.mxu1 %v984_v57 }
  0x34   :  { %899 = vmatpush3.bf16.msra.mxu0 %v985_v58 }
  0x35   :  { %921 = vmatpush3.bf16.msra.mxu1 %v986_v59  ;;  %900 = vmatprep.subr.bf16.mxu0 %v987_v60 }
  0x36   :  { %922 = vmatprep.subr.bf16.mxu1 %v988_v61  ;;  %v745_v61 = vld [vmem:[%s1253_s3] sm:$0x3] }
  0x38   :  { %901 = vmatpush3.bf16.msra.mxu0 %v989_v62 }
  0x39   :  { %923 = vmatpush3.bf16.msra.mxu1 %v990_v63  ;;  %902 = vmatprep.subr.bf16.mxu0 %v991_v0 }
  0x3a   :  { %924 = vmatprep.subr.bf16.mxu1 %v992_v1 }
  0x3c   :  { %903 = vmatpush3.bf16.msra.mxu0 %v993_v2 }
  0x3d   :  { %925 = vmatpush3.bf16.msra.mxu1 %v994_v3  ;;  %904 = vmatprep.subr.bf16.mxu0 %v995_v4 }
  0x3e   :  { %926 = vmatprep.subr.bf16.mxu1 %v996_v5 }
  0x40   :  { %905 = vmatpush3.bf16.msra.mxu0 %v997_v6 }
  0x41   :  { %927 = vmatpush3.bf16.msra.mxu1 %v998_v7 }
  0x43   :  { %689 = vmatmul.mubr.bf16.vlgmr.msra.gmra.mrb[4].mxu0 %v778_v10 }
  0x44   :  { %730 = vmatmul.mubr.bf16.vlgmr.msra.gmra.mrb[4].mxu1 %v780_v14 }
  0xf6   :  { %v862_v17 = vpop.f32.mrb[0].mxu0 }
  0xf7   :  { %v884_v18 = vpop.f32.mrb[0].mxu1  ;;  %v863_v19 = vpop.f32.mrb[1].mxu0 }
  0xf8   :  { %v864_v20 = vadd.f32 %v863_v19, %v862_v17  ;;  %v885_v21 = vpop.f32.mrb[1].mxu1  ;;  %v865_v22 = vpop.f32.mrb[2].mxu0 }
  0xf9   :  { %v886_v23 = vadd.f32 %v885_v21, %v884_v18  ;;  %v887_v24 = vpop.f32.mrb[2].mxu1  ;;  %v866_v25 = vpop.f32.mrb[3].mxu0 }
  0xfa   :  { %v867_v26 = vadd.f32 %v866_v25, %v865_v22  ;;  %v888_v27 = vpop.f32.mrb[3].mxu1 }
  0xfb   :  { %v650_v28 = vadd.f32 %v886_v23, %v864_v20  ;;  %v889_v29 = vadd.f32 %v888_v27, %v887_v24 }
  0xfd   :  { %v653_v30 = vadd.f32 %v889_v29, %v867_v26 }
 0x116   :  { %v906_v31 = vpop.f32.mrb[4].mxu0 }
 0x117   :  { %v928_v32 = vpop.f32.mrb[4].mxu1  ;;  %v907_v33 = vpop.f32.mrb[5].mxu0 }
 0x118   :  { %v908_v34 = vadd.f32 %v907_v33, %v906_v31  ;;  %v929_v35 = vpop.f32.mrb[5].mxu1  ;;  %v909_v36 = vpop.f32.mrb[6].mxu0 }
 0x119   :  { %v930_v37 = vadd.f32 %v929_v35, %v928_v32  ;;  %v931_v38 = vpop.f32.mrb[6].mxu1  ;;  %v910_v39 = vpop.f32.mrb[7].mxu0 }
 0x11a   :  { %v691_v40 = vadd.f32 %v908_v34, %v650_v28  ;;  %v911_v41 = vadd.f32 %v910_v39, %v909_v36  ;;  %v932_v42 = vpop.f32.mrb[7].mxu1 }
 0x11b   :  { %v933_v43 = vadd.f32 %v932_v42, %v931_v38 }
 0x11c   :  { %v732_v44 = vadd.f32 %v930_v37, %v691_v40  ;;  %v694_v45 = vadd.f32 %v911_v41, %v653_v30 }
 0x11e   :  { %738 = vst [vmem:[%s1254_s2] sm:$0xff] %v732_v44  ;;  %v735_v46 = vadd.f32 %v933_v43, %v694_v45  ;;  %v753_v47 = vmul.f32 %v732_v44, %v732_v44 }
 0x120   :  { %739 = vst [vmem:[%s1254_s2 + $0x8] sm:$0xff] %v735_v46  ;;  %v746_v48 = vadd.f32 %v735_v46, %v732_v44  ;;  %v754_v49 = vmul.f32 %v735_v46, %v735_v46 }
 0x122   :  { %v747_v50 = vrot.slane %v746_v48, 4  ;;  %v755_v51 = vadd.f32 %v754_v49, %v753_v47 }
 0x124   :  { %v748_v52 = vadd.f32 %v747_v50, %v746_v48  ;;  %v756_v53 = vrot.slane %v755_v51, 4 }
 0x126   :  { %v749_v54 = vrot.slane %v748_v52, 2  ;;  %v757_v55 = vadd.f32 %v756_v53, %v755_v51 }
 0x128   :  { %v750_v56 = vadd.f32 %v749_v54, %v748_v52  ;;  %v758_v57 = vrot.slane %v757_v55, 2 }
 0x12a   :  { %v751_v58 = vrot.slane %v750_v56, 1  ;;  %v759_v59 = vadd.f32 %v758_v57, %v757_v55 }
 0x12c   :  { %v760_v60 = vrot.slane %v759_v59, 1  ;;  %v752_v62 = vadd.f32 %v751_v58, %v750_v56 }
 0x12e   :  { %v761_v63 = vadd.f32 %v760_v60, %v759_v59 }
 0x130   :  { %v763_v0 = vsel %vm762_vm0, %v752_v62, %v761_v63 }
 0x131   :  { %v764_v1 = vadd.f32 %v763_v0, %v745_v61 }
 0x133   :  { %765 = vst [vmem:[%s1253_s3] sm:$0x3] %v764_v1 }

// kernel: beta_vae_forward.24
= control target key start
LH: loop header
LB: loop body
LE: loop exit
PB: predicated region body
PF: predicated region fallthrough
CT: control target
= control target key end

     0   :  { %s96_s0 = inlined_call_operand.vmem [shape: f32[16,128], index: 0, kind: input, shape index: {}]   ;;  %s97_s1 = inlined_call_operand.vmem [shape: f32[1,128], index: 1, kind: input, shape index: {}]   ;;  %s98_s2 = inlined_call_operand.vmem [shape: f32[1,128], index: 2, kind: input, shape index: {}]   ;;  %s99_s3 = inlined_call_operand.vmem [shape: bf16[16,128], index: 3, kind: output, shape index: {}]  }
   0x1   :  { %v14_v0 = vld [vmem:[%s96_s0] sm:$0xff]  ;;  %v15_v1 = vld [vmem:[%s96_s0 + $0x8] sm:$0xff] }
   0x2   :  { %v50_v2 = vld [vmem:[%s97_s1] ss:$0 sm:$0xff] }
   0x3   :  { %v23_v3 = vmul.f32 %v50_v2, %v14_v0  ;;  %v24_v4 = vmul.f32 %v50_v2, %v15_v1  ;;  %v51_v5 = vld [vmem:[%s98_s2] ss:$0 sm:$0xff] }
   0x5   :  { %v32_v6 = vadd.f32 %v51_v5, %v23_v3  ;;  %v33_v7 = vadd.f32 %v51_v5, %v24_v4 }
   0x7   :  { %v34_v8 = vmax.f32 %v32_v6, 0.0  ;;  %v35_v9 = vmax.f32 %v33_v7, 0.0 }
   0x9   :  { %v59_v10 = vpack.c.bf16 %v35_v9, %v34_v8 }
   0xb   :  { %60 = vst [vmem:[%s99_s3] sm:$0xff] %v59_v10  }

// kernel: beta_vae_forward.25
= control target key start
LH: loop header
LB: loop body
LE: loop exit
PB: predicated region body
PF: predicated region fallthrough
CT: control target
= control target key end

     0   :  { %s934_s3 = inlined_call_operand.vmem [shape: f32[256,128], index: 3, kind: input, shape index: {}]   ;;  %s935_s1 = inlined_call_operand.vmem [shape: f32[256,128], index: 1, kind: input, shape index: {}]   ;;  %s936_s0 = inlined_call_operand.vmem [shape: f32[8,256], index: 0, kind: input, shape index: {}]   ;;  %s937_s6 = inlined_call_operand.vmem [shape: f32[128,256], index: 6, kind: input, shape index: {}]   ;;  %s938_s4 = inlined_call_operand.vmem [shape: f32[1,128], index: 4, kind: input, shape index: {}]   ;;  %s939_s9 = inlined_call_operand.vmem [shape: f32[8,128], index: 9, kind: output, shape index: {1}]   ;;  %s940_s2 = inlined_call_operand.vmem [shape: f32[1,128], index: 2, kind: input, shape index: {}]   ;;  %s941_s8 = inlined_call_operand.vmem [shape: f32[8,128], index: 8, kind: output, shape index: {0}]   ;;  %s942_s5 = inlined_call_operand.vmem [shape: f32[8,128], index: 5, kind: input, shape index: {}]   ;;  %s943_s7 = inlined_call_operand.vmem [shape: f32[1,256], index: 7, kind: input, shape index: {}]   ;;  %s944_s10 = inlined_call_operand.vmem [shape: f32[8,256], index: 10, kind: output, shape index: {2}]  }
   0x1   :  { %v159_v0 = vld [vmem:[%s934_s3 + $0x80] sm:$0xff]  ;;  %v160_v1 = vld [vmem:[%s934_s3 + $0x88] sm:$0xff]  ;;  %v161_v5 = vld [vmem:[%s934_s3 + $0x90] sm:$0xff] }
   0x2   :  { %v143_v2 = vld [vmem:[%s934_s3] sm:$0xff]  ;;  %v493_v3 = vpack.c.bf16 %v160_v1, %v159_v0  ;;  %v144_v4 = vld [vmem:[%s934_s3 + $0x8] sm:$0xff]  ;;  %v162_v6 = vld [vmem:[%s934_s3 + $0x98] sm:$0xff] }
   0x3   :  { %v495_v7 = vpack.c.bf16 %v144_v4, %v143_v2  ;;  %v497_v8 = vpack.c.bf16 %v162_v6, %v161_v5  ;;  %v145_v9 = vld [vmem:[%s934_s3 + $0x10] sm:$0xff]  ;;  %v146_v10 = vld [vmem:[%s934_s3 + $0x18] sm:$0xff]  ;;  %v163_v11 = vld [vmem:[%s934_s3 + $0xa0] sm:$0xff] }
   0x4   :  { %494 = vmatprep.subr.bf16.mxu1 %v493_v3  ;;  %v164_v12 = vld [vmem:[%s934_s3 + $0xa8] sm:$0xff]  ;;  %v499_v13 = vpack.c.bf16 %v146_v10, %v145_v9  ;;  %v147_v14 = vld [vmem:[%s934_s3 + $0x20] sm:$0xff]  ;;  %v165_v19 = vld [vmem:[%s934_s3 + $0xb0] sm:$0xff] }
   0x5   :  { %496 = vmatpush3.bf16.msra.mxu1 %v495_v7  ;;  %v501_v15 = vpack.c.bf16 %v164_v12, %v163_v11  ;;  %v148_v16 = vld [vmem:[%s934_s3 + $0x28] sm:$0xff]  ;;  %v50_v17 = vld [vmem:[%s935_s1 + $0x80] sm:$0xff]  ;;  %v166_v20 = vld [vmem:[%s934_s3 + $0xb8] sm:$0xff] }
   0x6   :  { %498 = vmatprep.subr.bf16.mxu1 %v497_v8  ;;  %v51_v18 = vld [vmem:[%s935_s1 + $0x88] sm:$0xff]  ;;  %v34_v22 = vld [vmem:[%s935_s1] sm:$0xff]  ;;  %v503_v24 = vpack.c.bf16 %v148_v16, %v147_v14  ;;  %v149_v25 = vld [vmem:[%s934_s3 + $0x30] sm:$0xff]  ;;  %v505_v29 = vpack.c.bf16 %v166_v20, %v165_v19 }
   0x7   :  { %v461_v21 = vpack.c.bf16 %v51_v18, %v50_v17  ;;  %v35_v23 = vld [vmem:[%s935_s1 + $0x8] sm:$0xff]  ;;  %v52_v27 = vld [vmem:[%s935_s1 + $0x90] sm:$0xff]  ;;  %v53_v28 = vld [vmem:[%s935_s1 + $0x98] sm:$0xff] }
   0x8   :  { %v463_v26 = vpack.c.bf16 %v35_v23, %v34_v22  ;;  %v150_v30 = vld [vmem:[%s934_s3 + $0x38] sm:$0xff]  ;;  %v465_v31 = vpack.c.bf16 %v53_v28, %v52_v27  ;;  %v36_v32 = vld [vmem:[%s935_s1 + $0x10] sm:$0xff]  ;;  %v167_v34 = vld [vmem:[%s934_s3 + $0xc0] sm:$0xff] }
   0x9   :  { %500 = vmatpush3.bf16.msra.mxu1 %v499_v13  ;;  %462 = vmatprep.subr.bf16.mxu0 %v461_v21  ;;  %v37_v33 = vld [vmem:[%s935_s1 + $0x18] sm:$0xff]  ;;  %v168_v35 = vld [vmem:[%s934_s3 + $0xc8] sm:$0xff]  ;;  %v54_v37 = vld [vmem:[%s935_s1 + $0xa0] sm:$0xff]  ;;  %v507_v39 = vpack.c.bf16 %v150_v30, %v149_v25 }
   0xa   :  { %502 = vmatprep.subr.bf16.mxu1 %v501_v15  ;;  %464 = vmatpush3.bf16.msra.mxu0 %v463_v26  ;;  %v467_v36 = vpack.c.bf16 %v37_v33, %v36_v32  ;;  %v55_v38 = vld [vmem:[%s935_s1 + $0xa8] sm:$0xff]  ;;  %v151_v40 = vld [vmem:[%s934_s3 + $0x40] sm:$0xff]  ;;  %v509_v44 = vpack.c.bf16 %v168_v35, %v167_v34  ;;  %v56_v46 = vld [vmem:[%s935_s1 + $0xb0] sm:$0xff] }
   0xb   :  { %466 = vmatprep.subr.bf16.mxu0 %v465_v31  ;;  %v469_v41 = vpack.c.bf16 %v55_v38, %v54_v37  ;;  %v38_v42 = vld [vmem:[%s935_s1 + $0x20] sm:$0xff]  ;;  %v39_v43 = vld [vmem:[%s935_s1 + $0x28] sm:$0xff]  ;;  %v57_v47 = vld [vmem:[%s935_s1 + $0xb8] sm:$0xff] }
   0xc   :  { %v152_v45 = vld [vmem:[%s934_s3 + $0x48] sm:$0xff]  ;;  %v169_v48 = vld [vmem:[%s934_s3 + $0xd0] sm:$0xff]  ;;  %v170_v49 = vld [vmem:[%s934_s3 + $0xd8] sm:$0xff]  ;;  %v471_v50 = vpack.c.bf16 %v39_v43, %v38_v42  ;;  %v473_v51 = vpack.c.bf16 %v57_v47, %v56_v46 }
   0xd   :  { %504 = vmatpush3.bf16.msra.mxu1 %v503_v24  ;;  %v40_v52 = vld [vmem:[%s935_s1 + $0x30] sm:$0xff]  ;;  %v41_v53 = vld [vmem:[%s935_s1 + $0x38] sm:$0xff]  ;;  %v511_v54 = vpack.c.bf16 %v152_v45, %v151_v40  ;;  %v33_v55 = vld [vmem:[%s936_s0 + $0x8] sm:$0xff]  ;;  %v513_v58 = vpack.c.bf16 %v170_v49, %v169_v48 }
   0xe   :  { %506 = vmatprep.subr.bf16.mxu1 %v505_v29  ;;  %468 = vmatpush3.bf16.msra.mxu0 %v467_v36  ;;  %v58_v56 = vld [vmem:[%s935_s1 + $0xc0] sm:$0xff]  ;;  %v59_v57 = vld [vmem:[%s935_s1 + $0xc8] sm:$0xff]  ;;  %v153_v59 = vld [vmem:[%s934_s3 + $0x50] sm:$0xff]  ;;  %v475_v63 = vpack.c.bf16 %v41_v53, %v40_v52 }
   0xf   :  { %470 = vmatprep.subr.bf16.mxu0 %v469_v41  ;;  %v154_v60 = vld [vmem:[%s934_s3 + $0x58] sm:$0xff]  ;;  %246 = vmatprep.mubr.f32.mxu1 %v33_v55  ;;  %v171_v61 = vld [vmem:[%s934_s3 + $0xe0] sm:$0xff]  ;;  %v172_v62 = vld [vmem:[%s934_s3 + $0xe8] sm:$0xff]  ;;  %v477_v0 = vpack.c.bf16 %v59_v57, %v58_v56 }
  0x10   :  { %137 = vmatprep.mubr.f32.mxu0 %v33_v55  ;;  %v42_v1 = vld [vmem:[%s935_s1 + $0x40] sm:$0xff]  ;;  %v43_v2 = vld [vmem:[%s935_s1 + $0x48] sm:$0xff]  ;;  %v515_v3 = vpack.c.bf16 %v154_v60, %v153_v59  ;;  %v60_v4 = vld [vmem:[%s935_s1 + $0xd0] sm:$0xff]  ;;  %v517_v6 = vpack.c.bf16 %v172_v62, %v171_v61 }
  0x11   :  { %508 = vmatpush3.bf16.msra.mxu1 %v507_v39  ;;  %v61_v5 = vld [vmem:[%s935_s1 + $0xd8] sm:$0xff]  ;;  %v155_v7 = vld [vmem:[%s934_s3 + $0x60] sm:$0xff]  ;;  %v156_v8 = vld [vmem:[%s934_s3 + $0x68] sm:$0xff]  ;;  %v479_v11 = vpack.c.bf16 %v43_v2, %v42_v1 }
  0x12   :  { %510 = vmatprep.subr.bf16.mxu1 %v509_v44  ;;  %472 = vmatpush3.bf16.msra.mxu0 %v471_v50  ;;  %v173_v9 = vld [vmem:[%s934_s3 + $0xf0] sm:$0xff]  ;;  %v174_v10 = vld [vmem:[%s934_s3 + $0xf8] sm:$0xff]  ;;  %v481_v12 = vpack.c.bf16 %v61_v5, %v60_v4  ;;  %v519_v15 = vpack.c.bf16 %v156_v8, %v155_v7  ;;  %v62_v16 = vld [vmem:[%s935_s1 + $0xe0] sm:$0xff] }
  0x13   :  { %474 = vmatprep.subr.bf16.mxu0 %v473_v51  ;;  %v44_v13 = vld [vmem:[%s935_s1 + $0x50] sm:$0xff]  ;;  %v45_v14 = vld [vmem:[%s935_s1 + $0x58] sm:$0xff]  ;;  %v63_v17 = vld [vmem:[%s935_s1 + $0xe8] sm:$0xff]  ;;  %v521_v18 = vpack.c.bf16 %v174_v10, %v173_v9 }
  0x14   :  { %v157_v19 = vld [vmem:[%s934_s3 + $0x70] sm:$0xff]  ;;  %v158_v20 = vld [vmem:[%s934_s3 + $0x78] sm:$0xff]  ;;  %v483_v21 = vpack.c.bf16 %v45_v14, %v44_v13  ;;  %v485_v22 = vpack.c.bf16 %v63_v17, %v62_v16  ;;  %v46_v23 = vld [vmem:[%s935_s1 + $0x60] sm:$0xff] }
  0x15   :  { %512 = vmatpush3.bf16.msra.mxu1 %v511_v54  ;;  %v47_v24 = vld [vmem:[%s935_s1 + $0x68] sm:$0xff]  ;;  %v523_v25 = vpack.c.bf16 %v158_v20, %v157_v19  ;;  %v64_v26 = vld [vmem:[%s935_s1 + $0xf0] sm:$0xff]  ;;  %v65_v27 = vld [vmem:[%s935_s1 + $0xf8] sm:$0xff] }
  0x16   :  { %514 = vmatprep.subr.bf16.mxu1 %v513_v58  ;;  %476 = vmatpush3.bf16.msra.mxu0 %v475_v63  ;;  %v487_v28 = vpack.c.bf16 %v47_v24, %v46_v23  ;;  %v489_v29 = vpack.c.bf16 %v65_v27, %v64_v26  ;;  %v48_v30 = vld [vmem:[%s935_s1 + $0x70] sm:$0xff]  ;;  %v49_v31 = vld [vmem:[%s935_s1 + $0x78] sm:$0xff]  ;;  %v32_v32 = vld [vmem:[%s936_s0] sm:$0xff] }
  0x17   :  { %478 = vmatprep.subr.bf16.mxu0 %v477_v0  ;;  %v259_v33 = vld [vmem:[%s937_s6 + $0x8] sm:$0xff]  ;;  %v261_v34 = vld [vmem:[%s937_s6 + $0x18] sm:$0xff]  ;;  %v491_v35 = vpack.c.bf16 %v49_v31, %v48_v30  ;;  %v258_v37 = vld [vmem:[%s937_s6] sm:$0xff] }
  0x18   :  { %v525_v36 = vpack.c.bf16 %v261_v34, %v259_v33  ;;  %v260_v38 = vld [vmem:[%s937_s6 + $0x10] sm:$0xff]  ;;  %v263_v39 = vld [vmem:[%s937_s6 + $0x28] sm:$0xff]  ;;  %v265_v40 = vld [vmem:[%s937_s6 + $0x38] sm:$0xff] }
  0x19   :  { %516 = vmatpush3.bf16.msra.mxu1 %v515_v3  ;;  %v527_v41 = vpack.c.bf16 %v260_v38, %v258_v37  ;;  %v529_v42 = vpack.c.bf16 %v265_v40, %v263_v39  ;;  %v262_v43 = vld [vmem:[%s937_s6 + $0x20] sm:$0xff]  ;;  %v264_v44 = vld [vmem:[%s937_s6 + $0x30] sm:$0xff]  ;;  %v267_v46 = vld [vmem:[%s937_s6 + $0x48] sm:$0xff] }
  0x1a   :  { %518 = vmatprep.subr.bf16.mxu1 %v517_v6  ;;  %480 = vmatpush3.bf16.msra.mxu0 %v479_v11  ;;  %v531_v45 = vpack.c.bf16 %v264_v44, %v262_v43  ;;  %v269_v47 = vld [vmem:[%s937_s6 + $0x58] sm:$0xff]  ;;  %v266_v49 = vld [vmem:[%s937_s6 + $0x40] sm:$0xff]  ;;  %v268_v50 = vld [vmem:[%s937_s6 + $0x50] sm:$0xff] }
  0x1b   :  { %482 = vmatprep.subr.bf16.mxu0 %v481_v12  ;;  %v533_v48 = vpack.c.bf16 %v269_v47, %v267_v46  ;;  %v535_v51 = vpack.c.bf16 %v268_v50, %v266_v49  ;;  %v271_v52 = vld [vmem:[%s937_s6 + $0x68] sm:$0xff]  ;;  %v273_v53 = vld [vmem:[%s937_s6 + $0x78] sm:$0xff]  ;;  %v270_v55 = vld [vmem:[%s937_s6 + $0x60] sm:$0xff] }
  0x1c   :  { %v537_v54 = vpack.c.bf16 %v273_v53, %v271_v52  ;;  %v272_v56 = vld [vmem:[%s937_s6 + $0x70] sm:$0xff]  ;;  %v275_v58 = vld [vmem:[%s937_s6 + $0x88] sm:$0xff]  ;;  %v277_v59 = vld [vmem:[%s937_s6 + $0x98] sm:$0xff] }
  0x1d   :  { %520 = vmatpush3.bf16.msra.mxu1 %v519_v15  ;;  %v539_v57 = vpack.c.bf16 %v272_v56, %v270_v55  ;;  %v541_v60 = vpack.c.bf16 %v277_v59, %v275_v58  ;;  %v274_v61 = vld [vmem:[%s937_s6 + $0x80] sm:$0xff]  ;;  %v276_v62 = vld [vmem:[%s937_s6 + $0x90] sm:$0xff]  ;;  %v279_v0 = vld [vmem:[%s937_s6 + $0xa8] sm:$0xff] }
  0x1e   :  { %522 = vmatprep.subr.bf16.mxu1 %v521_v18  ;;  %484 = vmatpush3.bf16.msra.mxu0 %v483_v21  ;;  %v543_v63 = vpack.c.bf16 %v276_v62, %v274_v61  ;;  %v281_v1 = vld [vmem:[%s937_s6 + $0xb8] sm:$0xff]  ;;  %v278_v2 = vld [vmem:[%s937_s6 + $0xa0] sm:$0xff]  ;;  %v280_v4 = vld [vmem:[%s937_s6 + $0xb0] sm:$0xff]  ;;  %v560_v18 = vmov 0.0  }
  0x1f   :  { %486 = vmatprep.subr.bf16.mxu0 %v485_v22  ;;  %v545_v3 = vpack.c.bf16 %v281_v1, %v279_v0  ;;  %v547_v5 = vpack.c.bf16 %v280_v4, %v278_v2  ;;  %v283_v6 = vld [vmem:[%s937_s6 + $0xc8] sm:$0xff]  ;;  %v285_v7 = vld [vmem:[%s937_s6 + $0xd8] sm:$0xff]  ;;  %v282_v9 = vld [vmem:[%s937_s6 + $0xc0] sm:$0xff] }
  0x20   :  { %v549_v8 = vpack.c.bf16 %v285_v7, %v283_v6  ;;  %v284_v10 = vld [vmem:[%s937_s6 + $0xd0] sm:$0xff]  ;;  %v287_v12 = vld [vmem:[%s937_s6 + $0xe8] sm:$0xff]  ;;  %v289_v13 = vld [vmem:[%s937_s6 + $0xf8] sm:$0xff] }
  0x21   :  { %524 = vmatpush3.bf16.msra.mxu1 %v523_v25  ;;  %v551_v11 = vpack.c.bf16 %v284_v10, %v282_v9  ;;  %v553_v14 = vpack.c.bf16 %v289_v13, %v287_v12  ;;  %v286_v15 = vld [vmem:[%s937_s6 + $0xe0] sm:$0xff]  ;;  %v288_v16 = vld [vmem:[%s937_s6 + $0xf0] sm:$0xff] }
  0x22   :  { %488 = vmatpush3.bf16.msra.mxu0 %v487_v28  ;;  %v555_v17 = vpack.c.bf16 %v288_v16, %v286_v15  ;;  %v390_v20 = vld [vmem:[%s938_s4] ss:$0 sm:$0xff] }
  0x23   :  { %490 = vmatprep.subr.bf16.mxu0 %v489_v29  ;;  %v389_v26 = vld [vmem:[%s940_s2] ss:$0 sm:$0xff] }
  0x24   :  { %247 = vmatmul.mubr.f32.vlgmr.msra.gmra.mrb[0].mxu1 %v32_v32  ;;  %v252_v31 = vld [vmem:[%s942_s5] sm:$0xff] }
  0x25   :  { %v290_v38 = vld [vmem:[%s943_s7] sm:$0x3] }
  0x26   :  { %492 = vmatpush3.bf16.msra.mxu0 %v491_v35  ;;  %v292_v35 = vlaneseq }
  0x27   :  { %526 = vmatprep.subr.bf16.mxu0 %v525_v36 }
  0x28   :  { %v293_v36 = vshrl.u32 %v292_v35, 7 }
  0x29   :  { %138 = vmatmul.mubr.f32.vlgmr.msra.gmra.mrb[0].mxu0 %v32_v32 }
  0x2a   :  { %528 = vmatpush1.bf16.msra.mxu0 %v527_v41  ;;  %366 = vmatprep.mubr.f32.mxu0 %v560_v18  ;;  %v294_v37 = vsub.s32 0, %v293_v36  ;;  %v298_v39 = vsub.s32 1, %v293_v36 }
  0x2b   :  { %530 = vmatprep.subr.bf16.mxu0 %v529_v42 }
  0x2c   :  { %v295_v40 = vrot.slane %v290_v38, %v294_v37  ;;  %v299_v41 = vrot.slane %v290_v38, %v298_v39 }
  0x2e   :  { %532 = vmatpush1.bf16.msra.mxu0 %v531_v45 }
  0x2f   :  { %534 = vmatprep.subr.bf16.mxu0 %v533_v48 }
  0x32   :  { %536 = vmatpush1.bf16.msra.mxu0 %v535_v51 }
  0x33   :  { %538 = vmatprep.subr.bf16.mxu0 %v537_v54 }
  0x36   :  { %540 = vmatpush1.bf16.msra.mxu0 %v539_v57 }
  0x37   :  { %542 = vmatprep.subr.bf16.mxu0 %v541_v60 }
  0x3a   :  { %544 = vmatpush1.bf16.msra.mxu0 %v543_v63 }
  0x3b   :  { %546 = vmatprep.subr.bf16.mxu0 %v545_v3 }
  0x3e   :  { %548 = vmatpush1.bf16.msra.mxu0 %v547_v5 }
  0x3f   :  { %550 = vmatprep.subr.bf16.mxu0 %v549_v8 }
  0x42   :  { %552 = vmatpush1.bf16.msra.mxu0 %v551_v11 }
  0x43   :  { %554 = vmatprep.subr.bf16.mxu0 %v553_v14 }
  0x46   :  { %556 = vmatpush1.bf16.msra.mxu0 %v555_v17 }
  0xf7   :  { %v458_v19 = vpop.f32.mrb[0].mxu1 }
  0xf8   :  { %v459_v21 = vpop.f32.mrb[1].mxu1 }
  0xf9   :  { %v460_v22 = vadd.f32 %v459_v21, %v458_v19 }
  0xfb   :  { %v249_v23 = vadd.f32 %v460_v22, %v390_v20 }
  0xfc   :  { %v423_v25 = vpop.f32.mrb[0].mxu0 }
  0xfd   :  { %v253_v24 = vmul.f32 0.5, %v249_v23  ;;  %374 = vst [vmem:[%s939_s9] sm:$0xff] %v249_v23  ;;  %v424_v27 = vpop.f32.mrb[1].mxu0 }
  0xfe   :  { %v425_v29 = vadd.f32 %v424_v27, %v423_v25 }
  0xff   :  { %v254_v28 = vmul.f32 1.442695, %v253_v24 }
 0x100   :  { %v140_v30 = vadd.f32 %v425_v29, %v389_v26 }
 0x101   :  { %558 = vpow2.f32 %v254_v28 }
 0x102   :  { %373 = vst [vmem:[%s941_s8] sm:$0xff] %v140_v30 }
 0x10b   :  { %v559_v32 = vpop.eup %558 }
 0x10c   :  { %v256_v33 = vmul.f32 %v559_v32, %v252_v31 }
 0x10e   :  { %v257_v34 = vadd.f32 %v256_v33, %v140_v30 }
 0x110   :  { %367 = vmatmul.mubr.f32.vlgmr.msra.gmra.mrb[2].mxu0 %v257_v34 }
 0x1e3   :  { %v368_v42 = vpop.f32.mrb[2].mxu0 }
 0x1e4   :  { %v369_v43 = vadd.f32 %v368_v42, %v295_v40  ;;  %v370_v44 = vpop.f32.mrb[3].mxu0 }
 0x1e5   :  { %v371_v45 = vadd.f32 %v370_v44, %v299_v41 }
 0x1e6   :  { %375 = vst [vmem:[%s944_s10] sm:$0xff] %v369_v43 }
 0x1e7   :  { %376 = vst [vmem:[%s944_s10 + $0x8] sm:$0xff] %v371_v45 }

// kernel: squeeze.8
= control target key start
LH: loop header
LB: loop body
LE: loop exit
PB: predicated region body
PF: predicated region fallthrough
CT: control target
= control target key end

     0   :  { %vm7_vm0 = vcmask 523264   ;;  %s39_s0 = inlined_call_operand.vmem [shape: f32[256], index: 0, kind: input, shape index: {}]   ;;  %s40_s1 = inlined_call_operand.vmem [shape: f32[4,64], index: 1, kind: output, shape index: {}]  }
   0x1   :  { %v4_v0 = vld [vmem:[%s39_s0] sm:$0x3]  ;;  %s22_s0 = smov 64  }
   0x2   :  { %5 = vst [vmem:[#allocation1] sm:$0x3] %v4_v0 }
   0x9   :  { %v9_v1 = vld [vmem:[#allocation1] sm:$0x3]  }
   0xa   :  { %v6_v2 = vld [vmem:[#allocation1] sm:$0x3]   ;;  %10 = vrot.lane.b32.xlu0 %v9_v1, %s22_s0 }
   0xb   :  { %8 = vst.msk [vmem:[#allocation0] ss:$2 sm:$0x3] %vm7_vm0, %v6_v2  }
  0x7c   :  { %v11_v3 = vpop.permute.xlu0 %10  }
  0x7d   :  { %14 = vst.msk [vmem:[#allocation0 + $0x1] ss:$2 sm:$0x3] %vm7_vm0, %v11_v3  }
  0x84   :  { %v18_v4 = vld [vmem:[#allocation0] sm:$0xf] }
  0x85   :  { %20 = vst [vmem:[%s40_s1] sm:$0xf] %v18_v4 }

// kernel: tile.43
= control target key start
LH: loop header
LB: loop body
LE: loop exit
PB: predicated region body
PF: predicated region fallthrough
CT: control target
= control target key end

     0   :  { %s22_s0 = inlined_call_operand.vmem [shape: f32[64], index: 0, kind: input, shape index: {}]   ;;  %s23_s1 = inlined_call_operand.vmem [shape: f32[4,64], index: 1, kind: output, shape index: {}]  }
   0x1   :  { %v4_v0 = vld [vmem:[%s22_s0] ss:$0 sm:$0xff] }
   0x2   :  { %5 = vst [vmem:[%s23_s1] sm:$0xf] %v4_v0 }

// kernel: beta_vae_forward.26
= control target key start
LH: loop header
LB: loop body
LE: loop exit
PB: predicated region body
PF: predicated region fallthrough
CT: control target
= control target key end

     0   :  { %v488_v36 = vmov 0.0   ;;  %vm340_vm0 = vcmask 1040384   ;;  %s651_s1 = inlined_call_operand.vmem [shape: bf16[256,256], index: 1, kind: input, shape index: {}]   ;;  %s652_s0 = inlined_call_operand.vmem [shape: bf16[32,256], index: 0, kind: input, shape index: {}]   ;;  %s653_s3 = inlined_call_operand.vmem [shape: f32[2,256], index: 3, kind: output, shape index: {1}]   ;;  %s654_s2 = inlined_call_operand.vmem [shape: f32[32,256], index: 2, kind: output, shape index: {0}]  }
   0x1   :  { %v434_v0 = vld [vmem:[%s651_s1 + $0x4] ss:$8 sps:$4 sm:$0xff]   ;;  %v436_v1 = vld [vmem:[%s651_s1] ss:$8 sps:$4 sm:$0xff]   ;;  %v437_v2 = vld [vmem:[%s651_s1 + $0x14] ss:$8 sps:$4 sm:$0xff]  }
   0x2   :  { %229 = vmatprep.subr.bf16.mxu0 %v434_v0  ;;  %400 = vmatprep.subr.bf16.mxu1 %v434_v0  ;;  %v439_v3 = vld [vmem:[%s651_s1 + $0x10] ss:$8 sps:$4 sm:$0xff]   ;;  %v440_v4 = vld [vmem:[%s651_s1 + $0x24] ss:$8 sps:$4 sm:$0xff]   ;;  %v442_v5 = vld [vmem:[%s651_s1 + $0x20] ss:$8 sps:$4 sm:$0xff]  }
   0x3   :  { %230 = vmatpush1.bf16.msra.mxu0 %v436_v1  ;;  %416 = vmatpush1.bf16.msra.mxu1 %v436_v1  ;;  %v443_v6 = vld [vmem:[%s651_s1 + $0x34] ss:$8 sps:$4 sm:$0xff]   ;;  %v445_v7 = vld [vmem:[%s651_s1 + $0x30] ss:$8 sps:$4 sm:$0xff]   ;;  %v446_v8 = vld [vmem:[%s651_s1 + $0x44] ss:$8 sps:$4 sm:$0xff]  }
   0x4   :  { %231 = vmatprep.subr.bf16.mxu0 %v437_v2  ;;  %401 = vmatprep.subr.bf16.mxu1 %v437_v2  ;;  %v448_v9 = vld [vmem:[%s651_s1 + $0x40] ss:$8 sps:$4 sm:$0xff]   ;;  %v449_v10 = vld [vmem:[%s651_s1 + $0x54] ss:$8 sps:$4 sm:$0xff]   ;;  %v451_v11 = vld [vmem:[%s651_s1 + $0x50] ss:$8 sps:$4 sm:$0xff]  }
   0x5   :  { %v452_v12 = vld [vmem:[%s651_s1 + $0x64] ss:$8 sps:$4 sm:$0xff]   ;;  %v454_v14 = vld [vmem:[%s651_s1 + $0x60] ss:$8 sps:$4 sm:$0xff]   ;;  %v487_v15 = vld [vmem:[%s652_s0 + $0x14] ss:$8 sps:$4 sm:$0xff]  }
   0x6   :  { %v484_v13 = vld [vmem:[%s652_s0 + $0x4] ss:$8 sps:$4 sm:$0xff]   ;;  %v455_v16 = vld [vmem:[%s651_s1 + $0x74] ss:$8 sps:$4 sm:$0xff]   ;;  %271 = vmatprep.mubr.bf16.mxu1 %v487_v15  ;;  %v457_v17 = vld [vmem:[%s651_s1 + $0x70] ss:$8 sps:$4 sm:$0xff]   ;;  %v349_v15 = vlaneseq }
   0x7   :  { %232 = vmatpush1.bf16.msra.mxu0 %v439_v3  ;;  %417 = vmatpush1.bf16.msra.mxu1 %v439_v3  ;;  %v458_v18 = vld [vmem:[%s651_s1 + $0x84] ss:$8 sps:$4 sm:$0xff]   ;;  %v460_v19 = vld [vmem:[%s651_s1 + $0x80] ss:$8 sps:$4 sm:$0xff]   ;;  %v461_v20 = vld [vmem:[%s651_s1 + $0x94] ss:$8 sps:$4 sm:$0xff]  }
   0x8   :  { %233 = vmatprep.subr.bf16.mxu0 %v440_v4  ;;  %402 = vmatprep.subr.bf16.mxu1 %v440_v4  ;;  %v463_v21 = vld [vmem:[%s651_s1 + $0x90] ss:$8 sps:$4 sm:$0xff]   ;;  %v464_v22 = vld [vmem:[%s651_s1 + $0xa4] ss:$8 sps:$4 sm:$0xff]   ;;  %v466_v23 = vld [vmem:[%s651_s1 + $0xa0] ss:$8 sps:$4 sm:$0xff]  }
   0x9   :  { %261 = vmatprep.mubr.bf16.mxu0 %v484_v13  ;;  %v467_v24 = vld [vmem:[%s651_s1 + $0xb4] ss:$8 sps:$4 sm:$0xff]   ;;  %v469_v25 = vld [vmem:[%s651_s1 + $0xb0] ss:$8 sps:$4 sm:$0xff]   ;;  %v470_v26 = vld [vmem:[%s651_s1 + $0xc4] ss:$8 sps:$4 sm:$0xff]  }
   0xa   :  { %v472_v27 = vld [vmem:[%s651_s1 + $0xc0] ss:$8 sps:$4 sm:$0xff]   ;;  %v473_v28 = vld [vmem:[%s651_s1 + $0xd4] ss:$8 sps:$4 sm:$0xff]   ;;  %v475_v29 = vld [vmem:[%s651_s1 + $0xd0] ss:$8 sps:$4 sm:$0xff]  }
   0xb   :  { %234 = vmatpush1.bf16.msra.mxu0 %v442_v5  ;;  %418 = vmatpush1.bf16.msra.mxu1 %v442_v5  ;;  %v476_v30 = vld [vmem:[%s651_s1 + $0xe4] ss:$8 sps:$4 sm:$0xff]   ;;  %v478_v31 = vld [vmem:[%s651_s1 + $0xe0] ss:$8 sps:$4 sm:$0xff]   ;;  %v479_v32 = vld [vmem:[%s651_s1 + $0xf4] ss:$8 sps:$4 sm:$0xff]  }
   0xc   :  { %235 = vmatprep.subr.bf16.mxu0 %v443_v6  ;;  %403 = vmatprep.subr.bf16.mxu1 %v443_v6  ;;  %v481_v33 = vld [vmem:[%s651_s1 + $0xf0] ss:$8 sps:$4 sm:$0xff]   ;;  %v482_v34 = vld [vmem:[%s652_s0] ss:$8 sps:$4 sm:$0xff]   ;;  %294 = vst [vmem:[%s653_s3] sm:$0xf] %v488_v36 }
   0xd   :  { %v485_v35 = vld [vmem:[%s652_s0 + $0x10] ss:$8 sps:$4 sm:$0xff]   ;;  %v489_v13 = vmov 1983009808  }
   0xf   :  { %236 = vmatpush1.bf16.msra.mxu0 %v445_v7  ;;  %419 = vmatpush1.bf16.msra.mxu1 %v445_v7 }
  0x10   :  { %237 = vmatprep.subr.bf16.mxu0 %v446_v8  ;;  %404 = vmatprep.subr.bf16.mxu1 %v446_v8 }
  0x13   :  { %238 = vmatpush1.bf16.msra.mxu0 %v448_v9  ;;  %420 = vmatpush1.bf16.msra.mxu1 %v448_v9 }
  0x14   :  { %239 = vmatprep.subr.bf16.mxu0 %v449_v10  ;;  %405 = vmatprep.subr.bf16.mxu1 %v449_v10 }
  0x17   :  { %240 = vmatpush1.bf16.msra.mxu0 %v451_v11  ;;  %421 = vmatpush1.bf16.msra.mxu1 %v451_v11 }
  0x18   :  { %241 = vmatprep.subr.bf16.mxu0 %v452_v12  ;;  %406 = vmatprep.subr.bf16.mxu1 %v452_v12 }
  0x1b   :  { %242 = vmatpush1.bf16.msra.mxu0 %v454_v14  ;;  %422 = vmatpush1.bf16.msra.mxu1 %v454_v14  ;;  %v347_v14 = vunpack.c.l.s4 %v489_v13 }
  0x1c   :  { %243 = vmatprep.subr.bf16.mxu0 %v455_v16  ;;  %407 = vmatprep.subr.bf16.mxu1 %v455_v16 }
  0x1f   :  { %244 = vmatpush1.bf16.msra.mxu0 %v457_v17  ;;  %423 = vmatpush1.bf16.msra.mxu1 %v457_v17 }
  0x20   :  { %245 = vmatprep.subr.bf16.mxu0 %v458_v18  ;;  %408 = vmatprep.subr.bf16.mxu1 %v458_v18 }
  0x23   :  { %246 = vmatpush1.bf16.msra.mxu0 %v460_v19  ;;  %424 = vmatpush1.bf16.msra.mxu1 %v460_v19 }
  0x24   :  { %247 = vmatprep.subr.bf16.mxu0 %v461_v20  ;;  %409 = vmatprep.subr.bf16.mxu1 %v461_v20 }
  0x27   :  { %248 = vmatpush1.bf16.msra.mxu0 %v463_v21  ;;  %425 = vmatpush1.bf16.msra.mxu1 %v463_v21 }
  0x28   :  { %249 = vmatprep.subr.bf16.mxu0 %v464_v22  ;;  %410 = vmatprep.subr.bf16.mxu1 %v464_v22 }
  0x2b   :  { %250 = vmatpush1.bf16.msra.mxu0 %v466_v23  ;;  %426 = vmatpush1.bf16.msra.mxu1 %v466_v23  ;;  %v348_v23 = vunpack.c.0.s8 %v347_v14 }
  0x2c   :  { %251 = vmatprep.subr.bf16.mxu0 %v467_v24  ;;  %411 = vmatprep.subr.bf16.mxu1 %v467_v24  ;;  %v350_v24 = vshrl.u32 %v349_v15, 7 }
  0x2f   :  { %252 = vmatpush1.bf16.msra.mxu0 %v469_v25  ;;  %427 = vmatpush1.bf16.msra.mxu1 %v469_v25 }
  0x30   :  { %253 = vmatprep.subr.bf16.mxu0 %v470_v26  ;;  %412 = vmatprep.subr.bf16.mxu1 %v470_v26 }
  0x33   :  { %254 = vmatpush1.bf16.msra.mxu0 %v472_v27  ;;  %428 = vmatpush1.bf16.msra.mxu1 %v472_v27 }
  0x34   :  { %255 = vmatprep.subr.bf16.mxu0 %v473_v28  ;;  %413 = vmatprep.subr.bf16.mxu1 %v473_v28 }
  0x37   :  { %256 = vmatpush1.bf16.msra.mxu0 %v475_v29  ;;  %429 = vmatpush1.bf16.msra.mxu1 %v475_v29 }
  0x38   :  { %257 = vmatprep.subr.bf16.mxu0 %v476_v30  ;;  %414 = vmatprep.subr.bf16.mxu1 %v476_v30 }
  0x3b   :  { %258 = vmatpush1.bf16.msra.mxu0 %v478_v31  ;;  %430 = vmatpush1.bf16.msra.mxu1 %v478_v31  ;;  %v351_v31 = vsub.s32 %v348_v23, %v350_v24 }
  0x3c   :  { %259 = vmatprep.subr.bf16.mxu0 %v479_v32  ;;  %415 = vmatprep.subr.bf16.mxu1 %v479_v32 }
  0x3f   :  { %260 = vmatpush1.bf16.msra.mxu0 %v481_v33  ;;  %431 = vmatpush1.bf16.msra.mxu1 %v481_v33 }
  0x42   :  { %262 = vmatmul.mubr.bf16.vlgmr.msra.gmra.mrb[0].mxu0 %v482_v34  ;;  %272 = vmatmul.mubr.bf16.vlgmr.msra.gmra.mrb[0].mxu1 %v485_v35  ;;  %v295_v34 = vld [vmem:[%s653_s3] sm:$0xf] }
 0x115   :  { %v263_v37 = vpop.f32.mrb[0].mxu0  ;;  %v273_v38 = vpop.f32.mrb[0].mxu1 }
 0x116   :  { %282 = vst [vmem:[%s654_s2] sm:$0xff] %v263_v37  ;;  %v265_v39 = vpop.f32.mrb[1].mxu0  ;;  %286 = vst [vmem:[%s654_s2 + $0x20] sm:$0xff] %v273_v38  ;;  %v275_v40 = vpop.f32.mrb[1].mxu1  ;;  %v314_v43 = vmul.f32 %v263_v37, %v263_v37  ;;  %v318_v44 = vmul.f32 %v273_v38, %v273_v38 }
 0x117   :  { %283 = vst [vmem:[%s654_s2 + $0x8] sm:$0xff] %v265_v39  ;;  %v267_v41 = vpop.f32.mrb[2].mxu0  ;;  %287 = vst [vmem:[%s654_s2 + $0x28] sm:$0xff] %v275_v40  ;;  %v277_v42 = vpop.f32.mrb[2].mxu1  ;;  %v315_v49 = vmul.f32 %v265_v39, %v265_v39  ;;  %v319_v50 = vmul.f32 %v275_v40, %v275_v40 }
 0x118   :  { %284 = vst [vmem:[%s654_s2 + $0x10] sm:$0xff] %v267_v41  ;;  %v296_v45 = vadd.f32 %v267_v41, %v263_v37  ;;  %v316_v46 = vmul.f32 %v267_v41, %v267_v41  ;;  %v269_v47 = vpop.f32.mrb[3].mxu0  ;;  %288 = vst [vmem:[%s654_s2 + $0x30] sm:$0xff] %v277_v42  ;;  %v279_v48 = vpop.f32.mrb[3].mxu1  ;;  %v320_v58 = vmul.f32 %v277_v42, %v277_v42 }
 0x119   :  { %285 = vst [vmem:[%s654_s2 + $0x18] sm:$0xff] %v269_v47  ;;  %v305_v51 = vadd.f32 %v269_v47, %v265_v39  ;;  %v317_v52 = vmul.f32 %v269_v47, %v269_v47  ;;  %289 = vst [vmem:[%s654_s2 + $0x38] sm:$0xff] %v279_v48  ;;  %v321_v61 = vmul.f32 %v279_v48, %v279_v48 }
 0x11a   :  { %v322_v53 = vadd.f32 %v316_v46, %v314_v43  ;;  %v297_v54 = vadd.f32 %v296_v45, %v273_v38 }
 0x11b   :  { %v331_v55 = vadd.f32 %v317_v52, %v315_v49  ;;  %v306_v56 = vadd.f32 %v305_v51, %v275_v40 }
 0x11c   :  { %v298_v57 = vadd.f32 %v297_v54, %v277_v42  ;;  %v323_v59 = vadd.f32 %v322_v53, %v318_v44 }
 0x11d   :  { %v307_v60 = vadd.f32 %v306_v56, %v279_v48  ;;  %v332_v62 = vadd.f32 %v331_v55, %v319_v50 }
 0x11e   :  { %v299_v63 = vrot.slane %v298_v57, 4  ;;  %v324_v0 = vadd.f32 %v323_v59, %v320_v58 }
 0x11f   :  { %v308_v1 = vrot.slane %v307_v60, 4  ;;  %v333_v2 = vadd.f32 %v332_v62, %v321_v61 }
 0x120   :  { %v300_v3 = vadd.f32 %v299_v63, %v298_v57  ;;  %v325_v4 = vrot.slane %v324_v0, 4 }
 0x121   :  { %v309_v5 = vadd.f32 %v308_v1, %v307_v60  ;;  %v334_v6 = vrot.slane %v333_v2, 4 }
 0x122   :  { %v301_v7 = vrot.slane %v300_v3, 2  ;;  %v326_v8 = vadd.f32 %v325_v4, %v324_v0 }
 0x123   :  { %v310_v9 = vrot.slane %v309_v5, 2  ;;  %v335_v10 = vadd.f32 %v334_v6, %v333_v2 }
 0x124   :  { %v302_v11 = vadd.f32 %v301_v7, %v300_v3  ;;  %v327_v12 = vrot.slane %v326_v8, 2 }
 0x125   :  { %v311_v16 = vadd.f32 %v310_v9, %v309_v5  ;;  %v336_v17 = vrot.slane %v335_v10, 2 }
 0x126   :  { %v303_v18 = vrot.slane %v302_v11, 1  ;;  %v328_v19 = vadd.f32 %v327_v12, %v326_v8 }
 0x127   :  { %v312_v20 = vrot.slane %v311_v16, 1  ;;  %v337_v21 = vadd.f32 %v336_v17, %v335_v10 }
 0x128   :  { %v329_v22 = vrot.slane %v328_v19, 1  ;;  %v304_v26 = vadd.f32 %v303_v18, %v302_v11 }
 0x129   :  { %v338_v25 = vrot.slane %v337_v21, 1  ;;  %v313_v28 = vadd.f32 %v312_v20, %v311_v16 }
 0x12a   :  { %v330_v27 = vadd.f32 %v329_v22, %v328_v19 }
 0x12b   :  { %v339_v29 = vadd.f32 %v338_v25, %v337_v21 }
 0x12c   :  { %v341_v30 = vsel %vm340_vm0, %v304_v26, %v330_v27 }
 0x12d   :  { %v342_v32 = vsel %vm340_vm0, %v313_v28, %v339_v29 }
 0x12e   :  { %v345_v33 = vcombine.low %v341_v30, %v342_v32 }
 0x130   :  { %v352_v35 = vrot.slane %v345_v33, %v351_v31 }
 0x132   :  { %v354_v36 = vadd.f32 %v352_v35, %v295_v34 }
 0x134   :  { %355 = vst [vmem:[%s653_s3] sm:$0xf] %v354_v36 }

// kernel: beta_vae_forward.27
= control target key start
LH: loop header
LB: loop body
LE: loop exit
PB: predicated region body
PF: predicated region fallthrough
CT: control target
= control target key end

     0   :  { %v24_v0 = vlaneseq  ;;  %s172_s1 = inlined_call_operand.vmem [shape: f32[1,256], index: 1, kind: input, shape index: {}]   ;;  %s173_s2 = inlined_call_operand.vmem [shape: f32[1,256], index: 2, kind: input, shape index: {}]   ;;  %s174_s0 = inlined_call_operand.vmem [shape: f32[32,256], index: 0, kind: input, shape index: {}]   ;;  %s175_s3 = inlined_call_operand.vmem [shape: bf16[32,256], index: 3, kind: output, shape index: {}]  }
   0x1   :  { %v22_v2 = vld [vmem:[%s172_s1] sm:$0x3]  ;;  %v15_v5 = vld [vmem:[%s174_s0 + $0x8] sm:$0xff]  ;;  %v16_v8 = vld [vmem:[%s174_s0 + $0x10] sm:$0xff] }
   0x2   :  { %v25_v1 = vshrl.u32 %v24_v0, 7  ;;  %v42_v3 = vld [vmem:[%s173_s2] sm:$0x3]  ;;  %v17_v9 = vld [vmem:[%s174_s0 + $0x18] sm:$0xff]  ;;  %v19_v15 = vld [vmem:[%s174_s0 + $0x28] sm:$0xff] }
   0x3   :  { %v14_v4 = vld [vmem:[%s174_s0] sm:$0xff]  ;;  %v20_v16 = vld [vmem:[%s174_s0 + $0x30] sm:$0xff]  ;;  %v21_v17 = vld [vmem:[%s174_s0 + $0x38] sm:$0xff] }
   0x4   :  { %v26_v6 = vsub.s32 0, %v25_v1  ;;  %v30_v7 = vsub.s32 1, %v25_v1  ;;  %v18_v10 = vld [vmem:[%s174_s0 + $0x20] sm:$0xff] }
   0x6   :  { %v27_v11 = vrot.slane %v22_v2, %v26_v6  ;;  %v31_v12 = vrot.slane %v22_v2, %v30_v7  ;;  %v47_v13 = vrot.slane %v42_v3, %v26_v6  ;;  %v51_v14 = vrot.slane %v42_v3, %v30_v7 }
   0x8   :  { %v34_v18 = vmul.f32 %v27_v11, %v14_v4  ;;  %v35_v19 = vmul.f32 %v31_v12, %v15_v5  ;;  %v36_v20 = vmul.f32 %v27_v11, %v16_v8  ;;  %v37_v21 = vmul.f32 %v31_v12, %v17_v9 }
   0x9   :  { %v38_v22 = vmul.f32 %v27_v11, %v18_v10  ;;  %v39_v23 = vmul.f32 %v31_v12, %v19_v15  ;;  %v40_v24 = vmul.f32 %v27_v11, %v20_v16  ;;  %v41_v25 = vmul.f32 %v31_v12, %v21_v17 }
   0xa   :  { %v54_v26 = vadd.f32 %v47_v13, %v34_v18  ;;  %v55_v27 = vadd.f32 %v51_v14, %v35_v19  ;;  %v56_v28 = vadd.f32 %v47_v13, %v36_v20  ;;  %v57_v29 = vadd.f32 %v51_v14, %v37_v21 }
   0xb   :  { %v58_v30 = vadd.f32 %v47_v13, %v38_v22  ;;  %v59_v31 = vadd.f32 %v51_v14, %v39_v23  ;;  %v60_v32 = vadd.f32 %v47_v13, %v40_v24  ;;  %v61_v33 = vadd.f32 %v51_v14, %v41_v25 }
   0xc   :  { %v62_v34 = vmax.f32 %v54_v26, 0.0  ;;  %v63_v35 = vmax.f32 %v55_v27, 0.0  ;;  %v64_v36 = vmax.f32 %v56_v28, 0.0  ;;  %v65_v37 = vmax.f32 %v57_v29, 0.0 }
   0xd   :  { %v66_v38 = vmax.f32 %v58_v30, 0.0  ;;  %v67_v39 = vmax.f32 %v59_v31, 0.0  ;;  %v68_v40 = vmax.f32 %v60_v32, 0.0  ;;  %v69_v41 = vmax.f32 %v61_v33, 0.0 }
   0xe   :  { %v106_v42 = vpack.c.bf16 %v63_v35, %v62_v34  ;;  %v107_v43 = vpack.c.bf16 %v65_v37, %v64_v36 }
   0xf   :  { %v108_v44 = vpack.c.bf16 %v67_v39, %v66_v38  ;;  %v109_v45 = vpack.c.bf16 %v69_v41, %v68_v40 }
  0x10   :  { %94 = vst [vmem:[%s175_s3] sm:$0xff] %v106_v42  ;;  %95 = vst [vmem:[%s175_s3 + $0x8] sm:$0xff] %v107_v43 }
  0x11   :  { %96 = vst [vmem:[%s175_s3 + $0x10] sm:$0xff] %v108_v44  ;;  %97 = vst [vmem:[%s175_s3 + $0x18] sm:$0xff] %v109_v45 }

// kernel: squeeze.10
= control target key start
LH: loop header
LB: loop body
LE: loop exit
PB: predicated region body
PF: predicated region fallthrough
CT: control target
= control target key end

     0   :  { %s37_s8 = smov 32   ;;  %vm7_vm0 = vcmask 261120   ;;  %s38_s9 = smov 64   ;;  %s55_s0 = inlined_call_operand.vmem [shape: f32[128], index: 0, kind: input, shape index: {}]   ;;  %s56_s1 = inlined_call_operand.vmem [shape: f32[4,32], index: 1, kind: output, shape index: {}]  }
   0x1   :  { %v4_v0 = vld [vmem:[%s55_s0] sm:$0x1]  ;;  %s36_s0 = smov 96  }
   0x2   :  { %5 = vst [vmem:[#allocation1] sm:$0x1] %v4_v0 }
   0x9   :  { %v9_v1 = vld [vmem:[#allocation1] sm:$0x1]  }
   0xa   :  { %v21_v2 = vld [vmem:[#allocation1] sm:$0x1]   ;;  %10 = vrot.lane.b32.xlu0 %v9_v1, %s36_s0 }
   0xb   :  { %22 = vrot.lane.b32.xlu1 %v21_v2, %s37_s8  ;;  %v6_v3 = vld [vmem:[#allocation1] sm:$0x1]  }
   0xc   :  { %v15_v4 = vld [vmem:[#allocation1] sm:$0x1]   ;;  %8 = vst.msk [vmem:[#allocation0] sm:$0x1] %vm7_vm0, %v6_v3  }
   0xe   :  { %16 = vrot.lane.b32.xlu0 %v15_v4, %s38_s9 }
  0x7c   :  { %v11_v5 = vpop.permute.xlu0 %10  }
  0x7d   :  { %v23_v6 = vpop.permute.xlu1 %22   ;;  %14 = vst.msk [vmem:[#allocation0 + $0x1] sm:$0x1] %vm7_vm0, %v11_v5  }
  0x7e   :  { %26 = vst.msk [vmem:[#allocation0 + $0x3] sm:$0x1] %vm7_vm0, %v23_v6  }
  0x80   :  { %v17_v7 = vpop.permute.xlu0 %16  }
  0x81   :  { %20 = vst.msk [vmem:[#allocation0 + $0x2] sm:$0x1] %vm7_vm0, %v17_v7  }
  0x88   :  { %v30_v8 = vld [vmem:[#allocation0] sm:$0xf] }
  0x89   :  { %32 = vst [vmem:[%s56_s1] sm:$0xf] %v30_v8 }

// kernel: tile.53
= control target key start
LH: loop header
LB: loop body
LE: loop exit
PB: predicated region body
PF: predicated region fallthrough
CT: control target
= control target key end

     0   :  { %s22_s0 = inlined_call_operand.vmem [shape: f32[32], index: 0, kind: input, shape index: {}]   ;;  %s23_s1 = inlined_call_operand.vmem [shape: f32[4,32], index: 1, kind: output, shape index: {}]  }
   0x1   :  { %v4_v0 = vld [vmem:[%s22_s0] ss:$0 sm:$0xff] }
   0x2   :  { %5 = vst [vmem:[%s23_s1] sm:$0xf] %v4_v0 }

// kernel: beta_vae_forward.28
= control target key start
LH: loop header
LB: loop body
LE: loop exit
PB: predicated region body
PF: predicated region fallthrough
CT: control target
= control target key end

     0   :  { %v541_v30 = vmov 0.0   ;;  %vm387_vm0 = vcmask 1040384   ;;  %s715_s1 = inlined_call_operand.vmem [shape: bf16[256,128], index: 1, kind: input, shape index: {}]   ;;  %s716_s0 = inlined_call_operand.vmem [shape: bf16[112,256], index: 0, kind: input, shape index: {}]   ;;  %s717_s3 = inlined_call_operand.vmem [shape: f32[2,128], index: 3, kind: output, shape index: {1}]   ;;  %s718_s2 = inlined_call_operand.vmem [shape: f32[112,128], index: 2, kind: output, shape index: {0}]  }
   0x1   :  { %v504_v0 = vld [vmem:[%s715_s1 + $0x40] sm:$0xff]   ;;  %v506_v2 = vld [vmem:[%s715_s1 + $0x48] sm:$0xff]   ;;  %v508_v4 = vld [vmem:[%s715_s1 + $0x50] sm:$0xff]   ;;  %333 = vst [vmem:[%s717_s3] sm:$0x3] %v541_v30 }
   0x2   :  { %v505_v1 = vld [vmem:[%s715_s1] sm:$0xff]   ;;  %429 = vmatprep.subr.bf16.mxu0 %v504_v0  ;;  %487 = vmatprep.subr.bf16.mxu1 %v504_v0  ;;  %v507_v3 = vld [vmem:[%s715_s1 + $0x8] sm:$0xff]   ;;  %v509_v5 = vld [vmem:[%s715_s1 + $0x10] sm:$0xff]  }
   0x3   :  { %430 = vmatpush3.bf16.msra.mxu0 %v505_v1  ;;  %495 = vmatpush3.bf16.msra.mxu1 %v505_v1  ;;  %v510_v6 = vld [vmem:[%s715_s1 + $0x58] sm:$0xff]   ;;  %v512_v8 = vld [vmem:[%s715_s1 + $0x60] sm:$0xff]   ;;  %v514_v10 = vld [vmem:[%s715_s1 + $0x68] sm:$0xff]  }
   0x4   :  { %431 = vmatprep.subr.bf16.mxu0 %v506_v2  ;;  %488 = vmatprep.subr.bf16.mxu1 %v506_v2  ;;  %v511_v7 = vld [vmem:[%s715_s1 + $0x18] sm:$0xff]   ;;  %v513_v9 = vld [vmem:[%s715_s1 + $0x20] sm:$0xff]   ;;  %v515_v12 = vld [vmem:[%s715_s1 + $0x28] sm:$0xff]  }
   0x5   :  { %v522_v11 = vld [vmem:[%s716_s0 + $0x4] ss:$8 sps:$4 sm:$0xff]   ;;  %v516_v13 = vld [vmem:[%s715_s1 + $0x70] sm:$0xff]   ;;  %v518_v16 = vld [vmem:[%s715_s1 + $0x78] sm:$0xff]  }
   0x6   :  { %258 = vmatprep.mubr.bf16.mxu0 %v522_v11  ;;  %v531_v14 = vld [vmem:[%s716_s0 + $0x44] ss:$8 sps:$4 sm:$0xff]   ;;  %v517_v15 = vld [vmem:[%s715_s1 + $0x30] sm:$0xff]   ;;  %v519_v17 = vld [vmem:[%s715_s1 + $0x38] sm:$0xff]  }
   0x7   :  { %432 = vmatpush3.bf16.msra.mxu0 %v507_v3  ;;  %496 = vmatpush3.bf16.msra.mxu1 %v507_v3  ;;  %v520_v18 = vld [vmem:[%s716_s0] ss:$8 sps:$4 sm:$0xff]   ;;  %v523_v19 = vld [vmem:[%s716_s0 + $0x14] ss:$8 sps:$4 sm:$0xff]   ;;  %v525_v22 = vld [vmem:[%s716_s0 + $0x10] ss:$8 sps:$4 sm:$0xff]  }
   0x8   :  { %433 = vmatprep.subr.bf16.mxu0 %v508_v4  ;;  %489 = vmatprep.subr.bf16.mxu1 %v508_v4  ;;  %v529_v20 = vld [vmem:[%s716_s0 + $0x40] ss:$8 sps:$4 sm:$0xff]   ;;  %v535_v21 = vld [vmem:[%s716_s0 + $0x54] ss:$8 sps:$4 sm:$0xff]   ;;  %v526_v23 = vld [vmem:[%s716_s0 + $0x24] ss:$8 sps:$4 sm:$0xff]  }
   0x9   :  { %290 = vmatprep.mubr.bf16.mxu1 %v531_v14  ;;  %v537_v24 = vld [vmem:[%s716_s0 + $0x50] ss:$8 sps:$4 sm:$0xff]   ;;  %v538_v25 = vld [vmem:[%s716_s0 + $0x64] ss:$8 sps:$4 sm:$0xff]   ;;  %v528_v26 = vld [vmem:[%s716_s0 + $0x20] ss:$8 sps:$4 sm:$0xff]  }
   0xa   :  { %v532_v27 = vld [vmem:[%s716_s0 + $0x34] ss:$8 sps:$4 sm:$0xff]   ;;  %v540_v28 = vld [vmem:[%s716_s0 + $0x60] ss:$8 sps:$4 sm:$0xff]   ;;  %v534_v29 = vld [vmem:[%s716_s0 + $0x30] ss:$8 sps:$4 sm:$0xff]  }
   0xb   :  { %434 = vmatpush3.bf16.msra.mxu0 %v509_v5  ;;  %497 = vmatpush3.bf16.msra.mxu1 %v509_v5 }
   0xc   :  { %435 = vmatprep.subr.bf16.mxu0 %v510_v6  ;;  %490 = vmatprep.subr.bf16.mxu1 %v510_v6 }
   0xf   :  { %436 = vmatpush3.bf16.msra.mxu0 %v511_v7  ;;  %498 = vmatpush3.bf16.msra.mxu1 %v511_v7 }
  0x10   :  { %437 = vmatprep.subr.bf16.mxu0 %v512_v8  ;;  %491 = vmatprep.subr.bf16.mxu1 %v512_v8 }
  0x13   :  { %438 = vmatpush3.bf16.msra.mxu0 %v513_v9  ;;  %499 = vmatpush3.bf16.msra.mxu1 %v513_v9 }
  0x14   :  { %439 = vmatprep.subr.bf16.mxu0 %v514_v10  ;;  %492 = vmatprep.subr.bf16.mxu1 %v514_v10 }
  0x17   :  { %440 = vmatpush3.bf16.msra.mxu0 %v515_v12  ;;  %500 = vmatpush3.bf16.msra.mxu1 %v515_v12 }
  0x18   :  { %441 = vmatprep.subr.bf16.mxu0 %v516_v13  ;;  %493 = vmatprep.subr.bf16.mxu1 %v516_v13 }
  0x1b   :  { %442 = vmatpush3.bf16.msra.mxu0 %v517_v15  ;;  %501 = vmatpush3.bf16.msra.mxu1 %v517_v15 }
  0x1c   :  { %443 = vmatprep.subr.bf16.mxu0 %v518_v16  ;;  %494 = vmatprep.subr.bf16.mxu1 %v518_v16 }
  0x1f   :  { %444 = vmatpush3.bf16.msra.mxu0 %v519_v17  ;;  %502 = vmatpush3.bf16.msra.mxu1 %v519_v17 }
  0x22   :  { %259 = vmatmul.mubr.bf16.vlgmr.msra.gmra.mrb[0].mxu0 %v520_v18  ;;  %291 = vmatmul.mubr.bf16.vlgmr.msra.gmra.mrb[0].mxu1 %v529_v20 }
  0x23   :  { %266 = vmatprep.mubr.bf16.mxu0 %v523_v19  ;;  %298 = vmatprep.mubr.bf16.mxu1 %v535_v21 }
  0x2a   :  { %267 = vmatmul.mubr.bf16.gmra.mrb[4].mxu0 %v525_v22  ;;  %299 = vmatmul.mubr.bf16.gmra.mrb[4].mxu1 %v537_v24 }
  0x2b   :  { %274 = vmatprep.mubr.bf16.mxu0 %v526_v23  ;;  %306 = vmatprep.mubr.bf16.mxu1 %v538_v25 }
  0x32   :  { %275 = vmatmul.mubr.bf16.gmra.mrb[8].mxu0 %v528_v26  ;;  %307 = vmatmul.mubr.bf16.gmra.mrb[8].mxu1 %v540_v28 }
  0x33   :  { %282 = vmatprep.mubr.bf16.mxu0 %v532_v27 }
  0x3a   :  { %283 = vmatmul.mubr.bf16.gmra.mrb[12].mxu0 %v534_v29 }
  0xf5   :  { %v445_v31 = vpop.f32.mrb[0].mxu0  ;;  %v469_v33 = vpop.f32.mrb[0].mxu1 }
  0xf6   :  { %v446_v32 = vpop.f32.mrb[1].mxu0  ;;  %v470_v36 = vpop.f32.mrb[1].mxu1 }
  0xf7   :  { %v447_v34 = vadd.f32 %v446_v32, %v445_v31  ;;  %v448_v35 = vpop.f32.mrb[2].mxu0  ;;  %v655_v38 = vadd.f32 %v470_v36, %v469_v33  ;;  %v472_v39 = vpop.f32.mrb[2].mxu1 }
  0xf8   :  { %v449_v37 = vpop.f32.mrb[3].mxu0  ;;  %v473_v41 = vpop.f32.mrb[3].mxu1 }
  0xf9   :  { %315 = vst [vmem:[%s718_s2] sm:$0xff] %v447_v34  ;;  %v450_v40 = vadd.f32 %v449_v37, %v448_v35  ;;  %323 = vst [vmem:[%s718_s2 + $0x40] sm:$0xff] %v655_v38  ;;  %v664_v42 = vadd.f32 %v473_v41, %v472_v39  ;;  %v354_v43 = vmul.f32 %v447_v34, %v447_v34 }
  0xfa   :  { %v362_v30 = vmul.f32 %v655_v38, %v655_v38 }
  0xfb   :  { %316 = vst [vmem:[%s718_s2 + $0x8] sm:$0xff] %v450_v40  ;;  %v335_v44 = vadd.f32 %v450_v40, %v447_v34  ;;  %v355_v45 = vmul.f32 %v450_v40, %v450_v40  ;;  %324 = vst [vmem:[%s718_s2 + $0x48] sm:$0xff] %v664_v42  ;;  %v363_v33 = vmul.f32 %v664_v42, %v664_v42 }
  0xfd   :  { %v368_v46 = vadd.f32 %v355_v45, %v354_v43  ;;  %v451_v47 = vpop.f32.mrb[4].mxu0  ;;  %v475_v49 = vpop.f32.mrb[4].mxu1 }
  0xfe   :  { %v452_v48 = vpop.f32.mrb[5].mxu0  ;;  %v476_v52 = vpop.f32.mrb[5].mxu1 }
  0xff   :  { %v453_v50 = vadd.f32 %v452_v48, %v451_v47  ;;  %v454_v51 = vpop.f32.mrb[6].mxu0  ;;  %v477_v54 = vadd.f32 %v476_v52, %v475_v49  ;;  %v478_v55 = vpop.f32.mrb[6].mxu1 }
 0x100   :  { %v455_v53 = vpop.f32.mrb[7].mxu0  ;;  %v479_v59 = vpop.f32.mrb[7].mxu1 }
 0x101   :  { %317 = vst [vmem:[%s718_s2 + $0x10] sm:$0xff] %v453_v50  ;;  %v336_v56 = vadd.f32 %v453_v50, %v335_v44  ;;  %v356_v57 = vmul.f32 %v453_v50, %v453_v50  ;;  %v456_v58 = vadd.f32 %v455_v53, %v454_v51  ;;  %325 = vst [vmem:[%s718_s2 + $0x50] sm:$0xff] %v477_v54 }
 0x102   :  { %v480_v60 = vadd.f32 %v479_v59, %v478_v55  ;;  %v364_v36 = vmul.f32 %v477_v54, %v477_v54  ;;  %v334_v59 = vld [vmem:[%s717_s3] sm:$0x3] }
 0x103   :  { %v369_v61 = vadd.f32 %v368_v46, %v356_v57  ;;  %318 = vst [vmem:[%s718_s2 + $0x18] sm:$0xff] %v456_v58  ;;  %v337_v62 = vadd.f32 %v456_v58, %v336_v56  ;;  %v357_v63 = vmul.f32 %v456_v58, %v456_v58 }
 0x104   :  { %326 = vst [vmem:[%s718_s2 + $0x58] sm:$0xff] %v480_v60  ;;  %v365_v41 = vmul.f32 %v480_v60, %v480_v60 }
 0x105   :  { %v370_v0 = vadd.f32 %v369_v61, %v357_v63  ;;  %v457_v1 = vpop.f32.mrb[8].mxu0  ;;  %v481_v3 = vpop.f32.mrb[8].mxu1 }
 0x106   :  { %v458_v2 = vpop.f32.mrb[9].mxu0  ;;  %v482_v6 = vpop.f32.mrb[9].mxu1 }
 0x107   :  { %v459_v4 = vadd.f32 %v458_v2, %v457_v1  ;;  %v460_v5 = vpop.f32.mrb[10].mxu0  ;;  %v483_v8 = vadd.f32 %v482_v6, %v481_v3  ;;  %v484_v9 = vpop.f32.mrb[10].mxu1 }
 0x108   :  { %v461_v7 = vpop.f32.mrb[11].mxu0  ;;  %v485_v13 = vpop.f32.mrb[11].mxu1 }
 0x109   :  { %319 = vst [vmem:[%s718_s2 + $0x20] sm:$0xff] %v459_v4  ;;  %v338_v10 = vadd.f32 %v459_v4, %v337_v62  ;;  %v358_v11 = vmul.f32 %v459_v4, %v459_v4  ;;  %v462_v12 = vadd.f32 %v461_v7, %v460_v5  ;;  %327 = vst [vmem:[%s718_s2 + $0x60] sm:$0xff] %v483_v8 }
 0x10a   :  { %v486_v14 = vadd.f32 %v485_v13, %v484_v9  ;;  %v366_v44 = vmul.f32 %v483_v8, %v483_v8 }
 0x10b   :  { %v371_v15 = vadd.f32 %v370_v0, %v358_v11  ;;  %320 = vst [vmem:[%s718_s2 + $0x28] sm:$0xff] %v462_v12  ;;  %v339_v16 = vadd.f32 %v462_v12, %v338_v10  ;;  %v359_v17 = vmul.f32 %v462_v12, %v462_v12 }
 0x10c   :  { %328 = vst [vmem:[%s718_s2 + $0x68] sm:$0xff] %v486_v14  ;;  %v367_v49 = vmul.f32 %v486_v14, %v486_v14 }
 0x10d   :  { %v372_v18 = vadd.f32 %v371_v15, %v359_v17  ;;  %v463_v19 = vpop.f32.mrb[12].mxu0 }
 0x10e   :  { %v464_v20 = vpop.f32.mrb[13].mxu0 }
 0x10f   :  { %v465_v21 = vadd.f32 %v464_v20, %v463_v19  ;;  %v466_v22 = vpop.f32.mrb[14].mxu0 }
 0x110   :  { %v467_v23 = vpop.f32.mrb[15].mxu0 }
 0x111   :  { %321 = vst [vmem:[%s718_s2 + $0x30] sm:$0xff] %v465_v21  ;;  %v340_v24 = vadd.f32 %v465_v21, %v339_v16  ;;  %v360_v25 = vmul.f32 %v465_v21, %v465_v21  ;;  %v468_v26 = vadd.f32 %v467_v23, %v466_v22 }
 0x113   :  { %v373_v27 = vadd.f32 %v372_v18, %v360_v25  ;;  %322 = vst [vmem:[%s718_s2 + $0x38] sm:$0xff] %v468_v26  ;;  %v341_v28 = vadd.f32 %v468_v26, %v340_v24  ;;  %v361_v29 = vmul.f32 %v468_v26, %v468_v26 }
 0x115   :  { %v342_v31 = vadd.f32 %v655_v38, %v341_v28  ;;  %v374_v32 = vadd.f32 %v373_v27, %v361_v29 }
 0x117   :  { %v375_v34 = vadd.f32 %v374_v32, %v362_v30  ;;  %v343_v35 = vadd.f32 %v664_v42, %v342_v31 }
 0x119   :  { %v344_v37 = vadd.f32 %v477_v54, %v343_v35  ;;  %v376_v39 = vadd.f32 %v375_v34, %v363_v33 }
 0x11b   :  { %v345_v40 = vadd.f32 %v480_v60, %v344_v37  ;;  %v377_v43 = vadd.f32 %v376_v39, %v364_v36 }
 0x11d   :  { %v378_v45 = vadd.f32 %v377_v43, %v365_v41  ;;  %v346_v46 = vadd.f32 %v483_v8, %v345_v40 }
 0x11f   :  { %v379_v47 = vadd.f32 %v378_v45, %v366_v44  ;;  %v347_v48 = vadd.f32 %v486_v14, %v346_v46 }
 0x121   :  { %v348_v38 = vrot.slane %v347_v48, 4  ;;  %v380_v50 = vadd.f32 %v379_v47, %v367_v49 }
 0x123   :  { %v349_v51 = vadd.f32 %v348_v38, %v347_v48  ;;  %v381_v52 = vrot.slane %v380_v50, 4 }
 0x125   :  { %v350_v53 = vrot.slane %v349_v51, 2  ;;  %v382_v55 = vadd.f32 %v381_v52, %v380_v50 }
 0x127   :  { %v351_v56 = vadd.f32 %v350_v53, %v349_v51  ;;  %v383_v42 = vrot.slane %v382_v55, 2 }
 0x129   :  { %v352_v57 = vrot.slane %v351_v56, 1  ;;  %v384_v54 = vadd.f32 %v383_v42, %v382_v55 }
 0x12b   :  { %v385_v58 = vrot.slane %v384_v54, 1  ;;  %v353_v60 = vadd.f32 %v352_v57, %v351_v56 }
 0x12d   :  { %v386_v61 = vadd.f32 %v385_v58, %v384_v54 }
 0x12f   :  { %v388_v62 = vsel %vm387_vm0, %v353_v60, %v386_v61 }
 0x130   :  { %v389_v63 = vadd.f32 %v388_v62, %v334_v59 }
 0x132   :  { %390 = vst [vmem:[%s717_s3] sm:$0x3] %v389_v63 }

// kernel: beta_vae_forward.29
= control target key start
LH: loop header
LB: loop body
LE: loop exit
PB: predicated region body
PF: predicated region fallthrough
CT: control target
= control target key end

     0   :  { %s318_s0 = inlined_call_operand.vmem [shape: f32[112,128], index: 0, kind: input, shape index: {}]   ;;  %s319_s1 = inlined_call_operand.vmem [shape: f32[1,128], index: 1, kind: input, shape index: {}]   ;;  %s320_s2 = inlined_call_operand.vmem [shape: f32[1,128], index: 2, kind: input, shape index: {}]   ;;  %s321_s3 = inlined_call_operand.vmem [shape: bf16[112,128], index: 3, kind: output, shape index: {}]  }
   0x1   :  { %v14_v0 = vld [vmem:[%s318_s0] sm:$0xff]  ;;  %v15_v1 = vld [vmem:[%s318_s0 + $0x8] sm:$0xff]  ;;  %v16_v6 = vld [vmem:[%s318_s0 + $0x10] sm:$0xff] }
   0x2   :  { %v158_v2 = vld [vmem:[%s319_s1] ss:$0 sm:$0xff]  ;;  %v17_v7 = vld [vmem:[%s318_s0 + $0x18] sm:$0xff]  ;;  %v19_v11 = vld [vmem:[%s318_s0 + $0x28] sm:$0xff] }
   0x3   :  { %v35_v3 = vmul.f32 %v158_v2, %v14_v0  ;;  %v36_v4 = vmul.f32 %v158_v2, %v15_v1  ;;  %v159_v5 = vld [vmem:[%s320_s2] ss:$0 sm:$0xff]  ;;  %v37_v8 = vmul.f32 %v158_v2, %v16_v6  ;;  %v38_v9 = vmul.f32 %v158_v2, %v17_v7  ;;  %v20_v12 = vld [vmem:[%s318_s0 + $0x30] sm:$0xff]  ;;  %v21_v17 = vld [vmem:[%s318_s0 + $0x38] sm:$0xff] }
   0x4   :  { %v18_v10 = vld [vmem:[%s318_s0 + $0x20] sm:$0xff]  ;;  %v40_v16 = vmul.f32 %v158_v2, %v19_v11  ;;  %v41_v20 = vmul.f32 %v158_v2, %v20_v12  ;;  %v42_v21 = vmul.f32 %v158_v2, %v21_v17  ;;  %v23_v27 = vld [vmem:[%s318_s0 + $0x48] sm:$0xff]  ;;  %v24_v32 = vld [vmem:[%s318_s0 + $0x50] sm:$0xff] }
   0x5   :  { %v56_v13 = vadd.f32 %v159_v5, %v35_v3  ;;  %v57_v14 = vadd.f32 %v159_v5, %v36_v4  ;;  %v39_v15 = vmul.f32 %v158_v2, %v18_v10  ;;  %v58_v18 = vadd.f32 %v159_v5, %v37_v8  ;;  %v22_v22 = vld [vmem:[%s318_s0 + $0x40] sm:$0xff]  ;;  %v25_v33 = vld [vmem:[%s318_s0 + $0x58] sm:$0xff]  ;;  %v27_v39 = vld [vmem:[%s318_s0 + $0x68] sm:$0xff] }
   0x6   :  { %v59_v19 = vadd.f32 %v159_v5, %v38_v9  ;;  %v61_v26 = vadd.f32 %v159_v5, %v40_v16  ;;  %v62_v30 = vadd.f32 %v159_v5, %v41_v20  ;;  %v63_v31 = vadd.f32 %v159_v5, %v42_v21  ;;  %v26_v38 = vld [vmem:[%s318_s0 + $0x60] sm:$0xff] }
   0x7   :  { %v70_v23 = vmax.f32 %v56_v13, 0.0  ;;  %v71_v24 = vmax.f32 %v57_v14, 0.0  ;;  %v60_v25 = vadd.f32 %v159_v5, %v39_v15  ;;  %v72_v28 = vmax.f32 %v58_v18, 0.0 }
   0x8   :  { %v73_v29 = vmax.f32 %v59_v19, 0.0  ;;  %v75_v36 = vmax.f32 %v61_v26, 0.0  ;;  %v43_v37 = vmul.f32 %v158_v2, %v22_v22  ;;  %v76_v41 = vmax.f32 %v62_v30, 0.0 }
   0x9   :  { %v191_v34 = vpack.c.bf16 %v71_v24, %v70_v23  ;;  %v74_v35 = vmax.f32 %v60_v25, 0.0  ;;  %v77_v42 = vmax.f32 %v63_v31, 0.0  ;;  %v44_v43 = vmul.f32 %v158_v2, %v23_v27 }
   0xa   :  { %v196_v40 = vpack.c.bf16 %v73_v29, %v72_v28  ;;  %v64_v45 = vadd.f32 %v159_v5, %v43_v37  ;;  %v45_v46 = vmul.f32 %v158_v2, %v24_v32  ;;  %v46_v47 = vmul.f32 %v158_v2, %v25_v33 }
   0xb   :  { %192 = vst [vmem:[%s321_s3] sm:$0xff] %v191_v34   ;;  %v201_v44 = vpack.c.bf16 %v75_v36, %v74_v35  ;;  %v206_v48 = vpack.c.bf16 %v77_v42, %v76_v41  ;;  %v65_v49 = vadd.f32 %v159_v5, %v44_v43  ;;  %v47_v50 = vmul.f32 %v158_v2, %v26_v38 }
   0xc   :  { %223 = vst [vmem:[%s321_s3 + $0x8] sm:$0xff] %v196_v40   ;;  %v48_v51 = vmul.f32 %v158_v2, %v27_v39  ;;  %v78_v52 = vmax.f32 %v64_v45, 0.0  ;;  %v66_v53 = vadd.f32 %v159_v5, %v45_v46  ;;  %v67_v54 = vadd.f32 %v159_v5, %v46_v47 }
   0xd   :  { %224 = vst [vmem:[%s321_s3 + $0x10] sm:$0xff] %v201_v44   ;;  %225 = vst [vmem:[%s321_s3 + $0x18] sm:$0xff] %v206_v48   ;;  %v79_v55 = vmax.f32 %v65_v49, 0.0  ;;  %v68_v56 = vadd.f32 %v159_v5, %v47_v50 }
   0xe   :  { %v69_v57 = vadd.f32 %v159_v5, %v48_v51  ;;  %v80_v58 = vmax.f32 %v66_v53, 0.0  ;;  %v81_v59 = vmax.f32 %v67_v54, 0.0 }
   0xf   :  { %v211_v60 = vpack.c.bf16 %v79_v55, %v78_v52  ;;  %v82_v61 = vmax.f32 %v68_v56, 0.0 }
  0x10   :  { %v83_v62 = vmax.f32 %v69_v57, 0.0  ;;  %v216_v63 = vpack.c.bf16 %v81_v59, %v80_v58 }
  0x11   :  { %226 = vst [vmem:[%s321_s3 + $0x20] sm:$0xff] %v211_v60  }
  0x12   :  { %v221_v0 = vpack.c.bf16 %v83_v62, %v82_v61  ;;  %227 = vst [vmem:[%s321_s3 + $0x28] sm:$0xff] %v216_v63  }
  0x14   :  { %228 = vst [vmem:[%s321_s3 + $0x30] sm:$0xff] %v221_v0  }

// kernel: beta_vae_forward.30
= control target key start
LH: loop header
LB: loop body
LE: loop exit
PB: predicated region body
PF: predicated region fallthrough
CT: control target
= control target key end

     0   :  { %v1124_v40 = vmov 0.0   ;;  %vm895_vm0 = vcmask 1040384   ;;  %s1658_s1 = inlined_call_operand.vmem [shape: bf16[128,128], index: 1, kind: input, shape index: {}]   ;;  %s1659_s0 = inlined_call_operand.vmem [shape: bf16[512,128], index: 0, kind: input, shape index: {}]   ;;  %s1660_s3 = inlined_call_operand.vmem [shape: f32[2,128], index: 3, kind: output, shape index: {1}]   ;;  %s1661_s2 = inlined_call_operand.vmem [shape: f32[512,128], index: 2, kind: output, shape index: {0}]  }
   0x1   :  { %v1084_v0 = vld [vmem:[%s1658_s1] sm:$0xff]   ;;  %v1085_v1 = vld [vmem:[%s1658_s1 + $0x8] sm:$0xff]   ;;  %v1086_v2 = vld [vmem:[%s1658_s1 + $0x10] sm:$0xff]   ;;  %691 = vst [vmem:[%s1660_s3] sm:$0x3] %v1124_v40 }
   0x2   :  { %987 = vmatprep.subr.bf16.mxu0 %v1084_v0  ;;  %1067 = vmatprep.subr.bf16.mxu1 %v1084_v0  ;;  %v1087_v3 = vld [vmem:[%s1658_s1 + $0x18] sm:$0xff]   ;;  %v1092_v4 = vld [vmem:[%s1659_s0] sm:$0xff]   ;;  %v1089_v6 = vld [vmem:[%s1658_s1 + $0x28] sm:$0xff]  }
   0x3   :  { %988 = vmatpush3.bf16.msra.mxu0 %v1084_v0  ;;  %1075 = vmatpush3.bf16.msra.mxu1 %v1084_v0  ;;  %v1088_v5 = vld [vmem:[%s1658_s1 + $0x20] sm:$0xff]   ;;  %v1090_v7 = vld [vmem:[%s1658_s1 + $0x30] sm:$0xff]   ;;  %v1091_v8 = vld [vmem:[%s1658_s1 + $0x38] sm:$0xff]  }
   0x4   :  { %989 = vmatprep.subr.bf16.mxu0 %v1085_v1  ;;  %1068 = vmatprep.subr.bf16.mxu1 %v1085_v1  ;;  %v1108_v9 = vld [vmem:[%s1659_s0 + $0x80] sm:$0xff]   ;;  %v1093_v10 = vld [vmem:[%s1659_s0 + $0x8] sm:$0xff]   ;;  %v1094_v11 = vld [vmem:[%s1659_s0 + $0x10] sm:$0xff]  }
   0x5   :  { %1003 = vmatprep.mubr.bf16.mxu0 %v1092_v4  ;;  %1035 = vmatprep.mubr.bf16.mxu1 %v1108_v9  ;;  %v1109_v12 = vld [vmem:[%s1659_s0 + $0x88] sm:$0xff]   ;;  %v1110_v13 = vld [vmem:[%s1659_s0 + $0x90] sm:$0xff]   ;;  %v1095_v14 = vld [vmem:[%s1659_s0 + $0x18] sm:$0xff]  }
   0x6   :  { %v1096_v15 = vld [vmem:[%s1659_s0 + $0x20] sm:$0xff]   ;;  %v1111_v16 = vld [vmem:[%s1659_s0 + $0x98] sm:$0xff]   ;;  %v1097_v18 = vld [vmem:[%s1659_s0 + $0x28] sm:$0xff]  }
   0x7   :  { %990 = vmatpush3.bf16.msra.mxu0 %v1085_v1  ;;  %1076 = vmatpush3.bf16.msra.mxu1 %v1085_v1  ;;  %v1112_v17 = vld [vmem:[%s1659_s0 + $0xa0] sm:$0xff]   ;;  %v1113_v19 = vld [vmem:[%s1659_s0 + $0xa8] sm:$0xff]   ;;  %v1098_v20 = vld [vmem:[%s1659_s0 + $0x30] sm:$0xff]  }
   0x8   :  { %991 = vmatprep.subr.bf16.mxu0 %v1086_v2  ;;  %1069 = vmatprep.subr.bf16.mxu1 %v1086_v2  ;;  %v1114_v21 = vld [vmem:[%s1659_s0 + $0xb0] sm:$0xff]   ;;  %v1099_v22 = vld [vmem:[%s1659_s0 + $0x38] sm:$0xff]   ;;  %v1100_v24 = vld [vmem:[%s1659_s0 + $0x40] sm:$0xff]  }
   0x9   :  { %v1115_v23 = vld [vmem:[%s1659_s0 + $0xb8] sm:$0xff]   ;;  %v1116_v25 = vld [vmem:[%s1659_s0 + $0xc0] sm:$0xff]   ;;  %v1101_v26 = vld [vmem:[%s1659_s0 + $0x48] sm:$0xff]  }
   0xa   :  { %v1117_v27 = vld [vmem:[%s1659_s0 + $0xc8] sm:$0xff]   ;;  %v1102_v28 = vld [vmem:[%s1659_s0 + $0x50] sm:$0xff]   ;;  %v1103_v30 = vld [vmem:[%s1659_s0 + $0x58] sm:$0xff]  }
   0xb   :  { %992 = vmatpush3.bf16.msra.mxu0 %v1086_v2  ;;  %1077 = vmatpush3.bf16.msra.mxu1 %v1086_v2  ;;  %v1118_v29 = vld [vmem:[%s1659_s0 + $0xd0] sm:$0xff]   ;;  %v1119_v31 = vld [vmem:[%s1659_s0 + $0xd8] sm:$0xff]   ;;  %v1104_v32 = vld [vmem:[%s1659_s0 + $0x60] sm:$0xff]  }
   0xc   :  { %993 = vmatprep.subr.bf16.mxu0 %v1087_v3  ;;  %1070 = vmatprep.subr.bf16.mxu1 %v1087_v3  ;;  %v1120_v33 = vld [vmem:[%s1659_s0 + $0xe0] sm:$0xff]   ;;  %v1105_v34 = vld [vmem:[%s1659_s0 + $0x68] sm:$0xff]   ;;  %v1106_v36 = vld [vmem:[%s1659_s0 + $0x70] sm:$0xff]  }
   0xd   :  { %v1121_v35 = vld [vmem:[%s1659_s0 + $0xe8] sm:$0xff]   ;;  %v1122_v37 = vld [vmem:[%s1659_s0 + $0xf0] sm:$0xff]   ;;  %v1107_v38 = vld [vmem:[%s1659_s0 + $0x78] sm:$0xff]  }
   0xe   :  { %v1123_v39 = vld [vmem:[%s1659_s0 + $0xf8] sm:$0xff]  }
   0xf   :  { %994 = vmatpush3.bf16.msra.mxu0 %v1087_v3  ;;  %1078 = vmatpush3.bf16.msra.mxu1 %v1087_v3 }
  0x10   :  { %995 = vmatprep.subr.bf16.mxu0 %v1088_v5  ;;  %1071 = vmatprep.subr.bf16.mxu1 %v1088_v5 }
  0x13   :  { %996 = vmatpush3.bf16.msra.mxu0 %v1088_v5  ;;  %1079 = vmatpush3.bf16.msra.mxu1 %v1088_v5 }
  0x14   :  { %997 = vmatprep.subr.bf16.mxu0 %v1089_v6  ;;  %1072 = vmatprep.subr.bf16.mxu1 %v1089_v6 }
  0x17   :  { %998 = vmatpush3.bf16.msra.mxu0 %v1089_v6  ;;  %1080 = vmatpush3.bf16.msra.mxu1 %v1089_v6 }
  0x18   :  { %999 = vmatprep.subr.bf16.mxu0 %v1090_v7  ;;  %1073 = vmatprep.subr.bf16.mxu1 %v1090_v7 }
  0x1b   :  { %1000 = vmatpush3.bf16.msra.mxu0 %v1090_v7  ;;  %1081 = vmatpush3.bf16.msra.mxu1 %v1090_v7 }
  0x1c   :  { %1001 = vmatprep.subr.bf16.mxu0 %v1091_v8  ;;  %1074 = vmatprep.subr.bf16.mxu1 %v1091_v8 }
  0x1f   :  { %1002 = vmatpush3.bf16.msra.mxu0 %v1091_v8  ;;  %1082 = vmatpush3.bf16.msra.mxu1 %v1091_v8 }
  0x22   :  { %1004 = vmatmul.mubr.bf16.vlgmr.msra.gmra.mrb[0].mxu0 %v1093_v10  ;;  %1036 = vmatmul.mubr.bf16.vlgmr.msra.gmra.mrb[0].mxu1 %v1109_v12 }
  0x23   :  { %1007 = vmatprep.mubr.bf16.mxu0 %v1094_v11  ;;  %1039 = vmatprep.mubr.bf16.mxu1 %v1110_v13 }
  0x2a   :  { %1008 = vmatmul.mubr.bf16.gmra.mrb[4].mxu0 %v1095_v14  ;;  %1040 = vmatmul.mubr.bf16.gmra.mrb[4].mxu1 %v1111_v16 }
  0x2b   :  { %1011 = vmatprep.mubr.bf16.mxu0 %v1096_v15  ;;  %1043 = vmatprep.mubr.bf16.mxu1 %v1112_v17 }
  0x32   :  { %1012 = vmatmul.mubr.bf16.gmra.mrb[8].mxu0 %v1097_v18  ;;  %1044 = vmatmul.mubr.bf16.gmra.mrb[8].mxu1 %v1113_v19 }
  0x33   :  { %1015 = vmatprep.mubr.bf16.mxu0 %v1098_v20  ;;  %1047 = vmatprep.mubr.bf16.mxu1 %v1114_v21 }
  0x3a   :  { %1016 = vmatmul.mubr.bf16.gmra.mrb[12].mxu0 %v1099_v22  ;;  %1048 = vmatmul.mubr.bf16.gmra.mrb[12].mxu1 %v1115_v23 }
  0x3b   :  { %1019 = vmatprep.mubr.bf16.mxu0 %v1100_v24  ;;  %1051 = vmatprep.mubr.bf16.mxu1 %v1116_v25 }
  0x42   :  { %1020 = vmatmul.mubr.bf16.gmra.mrb[16].mxu0 %v1101_v26  ;;  %1052 = vmatmul.mubr.bf16.gmra.mrb[16].mxu1 %v1117_v27 }
  0x43   :  { %1023 = vmatprep.mubr.bf16.mxu0 %v1102_v28  ;;  %1055 = vmatprep.mubr.bf16.mxu1 %v1118_v29 }
  0x4a   :  { %1024 = vmatmul.mubr.bf16.gmra.mrb[20].mxu0 %v1103_v30  ;;  %1056 = vmatmul.mubr.bf16.gmra.mrb[20].mxu1 %v1119_v31 }
  0x4b   :  { %1027 = vmatprep.mubr.bf16.mxu0 %v1104_v32  ;;  %1059 = vmatprep.mubr.bf16.mxu1 %v1120_v33 }
  0x52   :  { %1028 = vmatmul.mubr.bf16.gmra.mrb[24].mxu0 %v1105_v34  ;;  %1060 = vmatmul.mubr.bf16.gmra.mrb[24].mxu1 %v1121_v35 }
  0x53   :  { %1031 = vmatprep.mubr.bf16.mxu0 %v1106_v36  ;;  %1063 = vmatprep.mubr.bf16.mxu1 %v1122_v37 }
  0x5a   :  { %1032 = vmatmul.mubr.bf16.gmra.mrb[28].mxu0 %v1107_v38  ;;  %1064 = vmatmul.mubr.bf16.gmra.mrb[28].mxu1 %v1123_v39 }
  0xf5   :  { %v1005_v41 = vpop.f32.mrb[0].mxu0  ;;  %v1268_v42 = vpop.f32.mrb[0].mxu1 }
  0xf6   :  { %625 = vst [vmem:[%s1661_s2 + $0x10] sm:$0xff] %v1005_v41  ;;  %v368_v43 = vpop.f32.mrb[1].mxu0  ;;  %657 = vst [vmem:[%s1661_s2 + $0x110] sm:$0xff] %v1268_v42  ;;  %v1277_v44 = vpop.f32.mrb[1].mxu1  ;;  %v764_v52 = vmul.f32 %v1005_v41, %v1005_v41 }
  0xf7   :  { %623 = vst [vmem:[%s1661_s2] sm:$0xff] %v368_v43  ;;  %v1006_v45 = vpop.f32.mrb[2].mxu0  ;;  %655 = vst [vmem:[%s1661_s2 + $0x100] sm:$0xff] %v1277_v44  ;;  %v1286_v46 = vpop.f32.mrb[2].mxu1  ;;  %v762_v49 = vmul.f32 %v368_v43, %v368_v43 }
  0xf8   :  { %626 = vst [vmem:[%s1661_s2 + $0x18] sm:$0xff] %v1006_v45  ;;  %v371_v47 = vpop.f32.mrb[3].mxu0  ;;  %658 = vst [vmem:[%s1661_s2 + $0x118] sm:$0xff] %v1286_v46  ;;  %v1295_v48 = vpop.f32.mrb[3].mxu1  ;;  %v765_v55 = vmul.f32 %v1006_v45, %v1006_v45 }
  0xf9   :  { %624 = vst [vmem:[%s1661_s2 + $0x8] sm:$0xff] %v371_v47  ;;  %v693_v50 = vadd.f32 %v371_v47, %v368_v43  ;;  %v763_v51 = vmul.f32 %v371_v47, %v371_v47  ;;  %656 = vst [vmem:[%s1661_s2 + $0x108] sm:$0xff] %v1295_v48 }
  0xfb   :  { %v694_v53 = vadd.f32 %v1005_v41, %v693_v50  ;;  %v826_v54 = vadd.f32 %v763_v51, %v762_v49 }
  0xfd   :  { %v827_v56 = vadd.f32 %v826_v54, %v764_v52  ;;  %v1009_v57 = vpop.f32.mrb[4].mxu0  ;;  %v695_v58 = vadd.f32 %v1006_v45, %v694_v53  ;;  %v1304_v59 = vpop.f32.mrb[4].mxu1 }
  0xfe   :  { %629 = vst [vmem:[%s1661_s2 + $0x30] sm:$0xff] %v1009_v57  ;;  %v384_v60 = vpop.f32.mrb[5].mxu0  ;;  %661 = vst [vmem:[%s1661_s2 + $0x130] sm:$0xff] %v1304_v59  ;;  %v1313_v61 = vpop.f32.mrb[5].mxu1  ;;  %v768_v8 = vmul.f32 %v1009_v57, %v1009_v57 }
  0xff   :  { %627 = vst [vmem:[%s1661_s2 + $0x20] sm:$0xff] %v384_v60  ;;  %v696_v62 = vadd.f32 %v695_v58, %v384_v60  ;;  %v766_v63 = vmul.f32 %v384_v60, %v384_v60  ;;  %v828_v0 = vadd.f32 %v827_v56, %v765_v55  ;;  %v1010_v1 = vpop.f32.mrb[6].mxu0  ;;  %659 = vst [vmem:[%s1661_s2 + $0x120] sm:$0xff] %v1313_v61  ;;  %v1322_v2 = vpop.f32.mrb[6].mxu1 }
 0x100   :  { %630 = vst [vmem:[%s1661_s2 + $0x38] sm:$0xff] %v1010_v1  ;;  %v387_v3 = vpop.f32.mrb[7].mxu0  ;;  %662 = vst [vmem:[%s1661_s2 + $0x138] sm:$0xff] %v1322_v2  ;;  %v1331_v4 = vpop.f32.mrb[7].mxu1  ;;  %v769_v11 = vmul.f32 %v1010_v1, %v1010_v1 }
 0x101   :  { %v829_v5 = vadd.f32 %v828_v0, %v766_v63  ;;  %628 = vst [vmem:[%s1661_s2 + $0x28] sm:$0xff] %v387_v3  ;;  %v697_v6 = vadd.f32 %v696_v62, %v387_v3  ;;  %v767_v7 = vmul.f32 %v387_v3, %v387_v3  ;;  %660 = vst [vmem:[%s1661_s2 + $0x128] sm:$0xff] %v1331_v4 }
 0x103   :  { %v698_v9 = vadd.f32 %v1009_v57, %v697_v6  ;;  %v830_v10 = vadd.f32 %v829_v5, %v767_v7 }
 0x105   :  { %v831_v12 = vadd.f32 %v830_v10, %v768_v8  ;;  %v1013_v13 = vpop.f32.mrb[8].mxu0  ;;  %v699_v14 = vadd.f32 %v1010_v1, %v698_v9  ;;  %v1340_v15 = vpop.f32.mrb[8].mxu1 }
 0x106   :  { %633 = vst [vmem:[%s1661_s2 + $0x50] sm:$0xff] %v1013_v13  ;;  %v400_v16 = vpop.f32.mrb[9].mxu0  ;;  %665 = vst [vmem:[%s1661_s2 + $0x150] sm:$0xff] %v1340_v15  ;;  %v1349_v17 = vpop.f32.mrb[9].mxu1  ;;  %v772_v28 = vmul.f32 %v1013_v13, %v1013_v13 }
 0x107   :  { %631 = vst [vmem:[%s1661_s2 + $0x40] sm:$0xff] %v400_v16  ;;  %v700_v18 = vadd.f32 %v699_v14, %v400_v16  ;;  %v770_v19 = vmul.f32 %v400_v16, %v400_v16  ;;  %v832_v20 = vadd.f32 %v831_v12, %v769_v11  ;;  %v1014_v21 = vpop.f32.mrb[10].mxu0  ;;  %663 = vst [vmem:[%s1661_s2 + $0x140] sm:$0xff] %v1349_v17  ;;  %v1358_v22 = vpop.f32.mrb[10].mxu1 }
 0x108   :  { %634 = vst [vmem:[%s1661_s2 + $0x58] sm:$0xff] %v1014_v21  ;;  %v403_v23 = vpop.f32.mrb[11].mxu0  ;;  %666 = vst [vmem:[%s1661_s2 + $0x158] sm:$0xff] %v1358_v22  ;;  %v1367_v24 = vpop.f32.mrb[11].mxu1  ;;  %v773_v31 = vmul.f32 %v1014_v21, %v1014_v21 }
 0x109   :  { %v833_v25 = vadd.f32 %v832_v20, %v770_v19  ;;  %632 = vst [vmem:[%s1661_s2 + $0x48] sm:$0xff] %v403_v23  ;;  %v701_v26 = vadd.f32 %v700_v18, %v403_v23  ;;  %v771_v27 = vmul.f32 %v403_v23, %v403_v23  ;;  %664 = vst [vmem:[%s1661_s2 + $0x148] sm:$0xff] %v1367_v24 }
 0x10b   :  { %v702_v29 = vadd.f32 %v1013_v13, %v701_v26  ;;  %v834_v30 = vadd.f32 %v833_v25, %v771_v27 }
 0x10d   :  { %v835_v32 = vadd.f32 %v834_v30, %v772_v28  ;;  %v1017_v33 = vpop.f32.mrb[12].mxu0  ;;  %v703_v34 = vadd.f32 %v1014_v21, %v702_v29  ;;  %v1376_v35 = vpop.f32.mrb[12].mxu1 }
 0x10e   :  { %637 = vst [vmem:[%s1661_s2 + $0x70] sm:$0xff] %v1017_v33  ;;  %v416_v36 = vpop.f32.mrb[13].mxu0  ;;  %669 = vst [vmem:[%s1661_s2 + $0x170] sm:$0xff] %v1376_v35  ;;  %v1385_v37 = vpop.f32.mrb[13].mxu1  ;;  %v776_v52 = vmul.f32 %v1017_v33, %v1017_v33 }
 0x10f   :  { %635 = vst [vmem:[%s1661_s2 + $0x60] sm:$0xff] %v416_v36  ;;  %v704_v38 = vadd.f32 %v703_v34, %v416_v36  ;;  %v774_v39 = vmul.f32 %v416_v36, %v416_v36  ;;  %v836_v40 = vadd.f32 %v835_v32, %v773_v31  ;;  %v1018_v41 = vpop.f32.mrb[14].mxu0  ;;  %667 = vst [vmem:[%s1661_s2 + $0x160] sm:$0xff] %v1385_v37  ;;  %v1394_v43 = vpop.f32.mrb[14].mxu1 }
 0x110   :  { %638 = vst [vmem:[%s1661_s2 + $0x78] sm:$0xff] %v1018_v41  ;;  %v419_v45 = vpop.f32.mrb[15].mxu0  ;;  %670 = vst [vmem:[%s1661_s2 + $0x178] sm:$0xff] %v1394_v43  ;;  %v1403_v47 = vpop.f32.mrb[15].mxu1  ;;  %v777_v55 = vmul.f32 %v1018_v41, %v1018_v41 }
 0x111   :  { %v837_v49 = vadd.f32 %v836_v40, %v774_v39  ;;  %636 = vst [vmem:[%s1661_s2 + $0x68] sm:$0xff] %v419_v45  ;;  %v705_v50 = vadd.f32 %v704_v38, %v419_v45  ;;  %v775_v51 = vmul.f32 %v419_v45, %v419_v45  ;;  %668 = vst [vmem:[%s1661_s2 + $0x168] sm:$0xff] %v1403_v47 }
 0x113   :  { %v706_v53 = vadd.f32 %v1017_v33, %v705_v50  ;;  %v838_v54 = vadd.f32 %v837_v49, %v775_v51 }
 0x115   :  { %v839_v56 = vadd.f32 %v838_v54, %v776_v52  ;;  %v1021_v57 = vpop.f32.mrb[16].mxu0  ;;  %v707_v58 = vadd.f32 %v1018_v41, %v706_v53  ;;  %v1412_v60 = vpop.f32.mrb[16].mxu1 }
 0x116   :  { %641 = vst [vmem:[%s1661_s2 + $0x90] sm:$0xff] %v1021_v57  ;;  %v432_v62 = vpop.f32.mrb[17].mxu0  ;;  %673 = vst [vmem:[%s1661_s2 + $0x190] sm:$0xff] %v1412_v60  ;;  %v1421_v63 = vpop.f32.mrb[17].mxu1  ;;  %v780_v12 = vmul.f32 %v1021_v57, %v1021_v57 }
 0x117   :  { %639 = vst [vmem:[%s1661_s2 + $0x80] sm:$0xff] %v432_v62  ;;  %v708_v0 = vadd.f32 %v707_v58, %v432_v62  ;;  %v778_v1 = vmul.f32 %v432_v62, %v432_v62  ;;  %v840_v3 = vadd.f32 %v839_v56, %v777_v55  ;;  %v1022_v5 = vpop.f32.mrb[18].mxu0  ;;  %671 = vst [vmem:[%s1661_s2 + $0x180] sm:$0xff] %v1421_v63  ;;  %v1430_v6 = vpop.f32.mrb[18].mxu1 }
 0x118   :  { %642 = vst [vmem:[%s1661_s2 + $0x98] sm:$0xff] %v1022_v5  ;;  %v435_v7 = vpop.f32.mrb[19].mxu0  ;;  %674 = vst [vmem:[%s1661_s2 + $0x198] sm:$0xff] %v1430_v6  ;;  %v1439_v8 = vpop.f32.mrb[19].mxu1  ;;  %v781_v16 = vmul.f32 %v1022_v5, %v1022_v5 }
 0x119   :  { %v841_v9 = vadd.f32 %v840_v3, %v778_v1  ;;  %640 = vst [vmem:[%s1661_s2 + $0x88] sm:$0xff] %v435_v7  ;;  %v709_v10 = vadd.f32 %v708_v0, %v435_v7  ;;  %v779_v11 = vmul.f32 %v435_v7, %v435_v7  ;;  %672 = vst [vmem:[%s1661_s2 + $0x188] sm:$0xff] %v1439_v8 }
 0x11b   :  { %v710_v13 = vadd.f32 %v1021_v57, %v709_v10  ;;  %v842_v14 = vadd.f32 %v841_v9, %v779_v11 }
 0x11d   :  { %v843_v18 = vadd.f32 %v842_v14, %v780_v12  ;;  %v1025_v19 = vpop.f32.mrb[20].mxu0  ;;  %v711_v20 = vadd.f32 %v1022_v5, %v710_v13  ;;  %v1448_v21 = vpop.f32.mrb[20].mxu1 }
 0x11e   :  { %645 = vst [vmem:[%s1661_s2 + $0xb0] sm:$0xff] %v1025_v19  ;;  %v448_v23 = vpop.f32.mrb[21].mxu0  ;;  %677 = vst [vmem:[%s1661_s2 + $0x1b0] sm:$0xff] %v1448_v21  ;;  %v1457_v25 = vpop.f32.mrb[21].mxu1  ;;  %v784_v38 = vmul.f32 %v1025_v19, %v1025_v19 }
 0x11f   :  { %643 = vst [vmem:[%s1661_s2 + $0xa0] sm:$0xff] %v448_v23  ;;  %v712_v26 = vadd.f32 %v711_v20, %v448_v23  ;;  %v782_v27 = vmul.f32 %v448_v23, %v448_v23  ;;  %v844_v28 = vadd.f32 %v843_v18, %v781_v16  ;;  %v1026_v29 = vpop.f32.mrb[22].mxu0  ;;  %675 = vst [vmem:[%s1661_s2 + $0x1a0] sm:$0xff] %v1457_v25  ;;  %v1466_v30 = vpop.f32.mrb[22].mxu1 }
 0x120   :  { %646 = vst [vmem:[%s1661_s2 + $0xb8] sm:$0xff] %v1026_v29  ;;  %v451_v31 = vpop.f32.mrb[23].mxu0  ;;  %678 = vst [vmem:[%s1661_s2 + $0x1b8] sm:$0xff] %v1466_v30  ;;  %v1475_v32 = vpop.f32.mrb[23].mxu1  ;;  %v785_v41 = vmul.f32 %v1026_v29, %v1026_v29 }
 0x121   :  { %v845_v33 = vadd.f32 %v844_v28, %v782_v27  ;;  %644 = vst [vmem:[%s1661_s2 + $0xa8] sm:$0xff] %v451_v31  ;;  %v713_v34 = vadd.f32 %v712_v26, %v451_v31  ;;  %v783_v36 = vmul.f32 %v451_v31, %v451_v31  ;;  %676 = vst [vmem:[%s1661_s2 + $0x1a8] sm:$0xff] %v1475_v32 }
 0x123   :  { %v714_v39 = vadd.f32 %v1025_v19, %v713_v34  ;;  %v846_v40 = vadd.f32 %v845_v33, %v783_v36 }
 0x125   :  { %v847_v45 = vadd.f32 %v846_v40, %v784_v38  ;;  %v1029_v49 = vpop.f32.mrb[24].mxu0  ;;  %v715_v50 = vadd.f32 %v1026_v29, %v714_v39  ;;  %v1484_v51 = vpop.f32.mrb[24].mxu1 }
 0x126   :  { %649 = vst [vmem:[%s1661_s2 + $0xd0] sm:$0xff] %v1029_v49  ;;  %v464_v52 = vpop.f32.mrb[25].mxu0  ;;  %681 = vst [vmem:[%s1661_s2 + $0x1d0] sm:$0xff] %v1484_v51  ;;  %v1493_v53 = vpop.f32.mrb[25].mxu1  ;;  %v788_v7 = vmul.f32 %v1029_v49, %v1029_v49 }
 0x127   :  { %647 = vst [vmem:[%s1661_s2 + $0xc0] sm:$0xff] %v464_v52  ;;  %v716_v54 = vadd.f32 %v715_v50, %v464_v52  ;;  %v786_v55 = vmul.f32 %v464_v52, %v464_v52  ;;  %v848_v56 = vadd.f32 %v847_v45, %v785_v41  ;;  %v1030_v57 = vpop.f32.mrb[26].mxu0  ;;  %679 = vst [vmem:[%s1661_s2 + $0x1c0] sm:$0xff] %v1493_v53  ;;  %v1502_v58 = vpop.f32.mrb[26].mxu1 }
 0x128   :  { %650 = vst [vmem:[%s1661_s2 + $0xd8] sm:$0xff] %v1030_v57  ;;  %v467_v62 = vpop.f32.mrb[27].mxu0  ;;  %682 = vst [vmem:[%s1661_s2 + $0x1d8] sm:$0xff] %v1502_v58  ;;  %v1511_v0 = vpop.f32.mrb[27].mxu1  ;;  %v789_v11 = vmul.f32 %v1030_v57, %v1030_v57  ;;  %v794_v50 = vmul.f32 %v1277_v44, %v1277_v44 }
 0x129   :  { %v849_v1 = vadd.f32 %v848_v56, %v786_v55  ;;  %648 = vst [vmem:[%s1661_s2 + $0xc8] sm:$0xff] %v467_v62  ;;  %v717_v3 = vadd.f32 %v716_v54, %v467_v62  ;;  %v787_v5 = vmul.f32 %v467_v62, %v467_v62  ;;  %680 = vst [vmem:[%s1661_s2 + $0x1c8] sm:$0xff] %v1511_v0 }
 0x12a   :  { %v796_v62 = vmul.f32 %v1268_v42, %v1268_v42 }
 0x12b   :  { %v718_v9 = vadd.f32 %v1029_v49, %v717_v3  ;;  %v850_v10 = vadd.f32 %v849_v1, %v787_v5  ;;  %v797_v5 = vmul.f32 %v1286_v46, %v1286_v46 }
 0x12d   :  { %v851_v12 = vadd.f32 %v850_v10, %v788_v7  ;;  %v1033_v13 = vpop.f32.mrb[28].mxu0  ;;  %v719_v14 = vadd.f32 %v1030_v57, %v718_v9  ;;  %v1520_v16 = vpop.f32.mrb[28].mxu1  ;;  %v795_v57 = vmul.f32 %v1295_v48, %v1295_v48 }
 0x12e   :  { %653 = vst [vmem:[%s1661_s2 + $0xf0] sm:$0xff] %v1033_v13  ;;  %v480_v18 = vpop.f32.mrb[29].mxu0  ;;  %685 = vst [vmem:[%s1661_s2 + $0x1f0] sm:$0xff] %v1520_v16  ;;  %v1529_v19 = vpop.f32.mrb[29].mxu1  ;;  %v792_v38 = vmul.f32 %v1033_v13, %v1033_v13 }
 0x12f   :  { %651 = vst [vmem:[%s1661_s2 + $0xe0] sm:$0xff] %v480_v18  ;;  %v720_v20 = vadd.f32 %v719_v14, %v480_v18  ;;  %v790_v23 = vmul.f32 %v480_v18, %v480_v18  ;;  %v852_v26 = vadd.f32 %v851_v12, %v789_v11  ;;  %v1034_v27 = vpop.f32.mrb[30].mxu0  ;;  %683 = vst [vmem:[%s1661_s2 + $0x1e0] sm:$0xff] %v1529_v19  ;;  %v1538_v28 = vpop.f32.mrb[30].mxu1 }
 0x130   :  { %654 = vst [vmem:[%s1661_s2 + $0xf8] sm:$0xff] %v1034_v27  ;;  %v483_v29 = vpop.f32.mrb[31].mxu0  ;;  %686 = vst [vmem:[%s1661_s2 + $0x1f8] sm:$0xff] %v1538_v28  ;;  %v1547_v31 = vpop.f32.mrb[31].mxu1  ;;  %v793_v41 = vmul.f32 %v1034_v27, %v1034_v27 }
 0x131   :  { %v853_v33 = vadd.f32 %v852_v26, %v790_v23  ;;  %652 = vst [vmem:[%s1661_s2 + $0xe8] sm:$0xff] %v483_v29  ;;  %v721_v34 = vadd.f32 %v720_v20, %v483_v29  ;;  %v791_v36 = vmul.f32 %v483_v29, %v483_v29  ;;  %684 = vst [vmem:[%s1661_s2 + $0x1e8] sm:$0xff] %v1547_v31 }
 0x133   :  { %v722_v39 = vadd.f32 %v1033_v13, %v721_v34  ;;  %v854_v40 = vadd.f32 %v853_v33, %v791_v36  ;;  %v799_v13 = vmul.f32 %v1331_v4, %v1331_v4  ;;  %v803_v33 = vmul.f32 %v1367_v24, %v1367_v24 }
 0x135   :  { %v855_v45 = vadd.f32 %v854_v40, %v792_v38  ;;  %v723_v49 = vadd.f32 %v1034_v27, %v722_v39 }
 0x137   :  { %v724_v52 = vadd.f32 %v723_v49, %v1277_v44  ;;  %v856_v54 = vadd.f32 %v855_v45, %v793_v41  ;;  %v798_v44 = vmul.f32 %v1313_v61, %v1313_v61  ;;  %v807_v49 = vmul.f32 %v1403_v47, %v1403_v47 }
 0x139   :  { %v857_v55 = vadd.f32 %v856_v54, %v794_v50  ;;  %v725_v56 = vadd.f32 %v724_v52, %v1295_v48 }
 0x13b   :  { %v726_v1 = vadd.f32 %v1268_v42, %v725_v56  ;;  %v858_v3 = vadd.f32 %v857_v55, %v795_v57  ;;  %v800_v42 = vmul.f32 %v1304_v59, %v1304_v59 }
 0x13d   :  { %v859_v7 = vadd.f32 %v858_v3, %v796_v62  ;;  %v727_v9 = vadd.f32 %v1286_v46, %v726_v1  ;;  %v801_v46 = vmul.f32 %v1322_v2, %v1322_v2  ;;  %v811_v1 = vmul.f32 %v1439_v8, %v1439_v8 }
 0x13f   :  { %v728_v10 = vadd.f32 %v727_v9, %v1313_v61  ;;  %v860_v11 = vadd.f32 %v859_v7, %v797_v5  ;;  %v802_v61 = vmul.f32 %v1349_v17, %v1349_v17 }
 0x141   :  { %v861_v12 = vadd.f32 %v860_v11, %v798_v44  ;;  %v729_v48 = vadd.f32 %v728_v10, %v1331_v4 }
 0x143   :  { %v730_v14 = vadd.f32 %v1304_v59, %v729_v48  ;;  %v862_v18 = vadd.f32 %v861_v12, %v799_v13  ;;  %v804_v59 = vmul.f32 %v1340_v15, %v1340_v15  ;;  %v815_v12 = vmul.f32 %v1475_v32, %v1475_v32 }
 0x145   :  { %v863_v20 = vadd.f32 %v862_v18, %v800_v42  ;;  %v731_v23 = vadd.f32 %v1322_v2, %v730_v14  ;;  %v805_v2 = vmul.f32 %v1358_v22, %v1358_v22 }
 0x147   :  { %v732_v26 = vadd.f32 %v731_v23, %v1349_v17  ;;  %v864_v27 = vadd.f32 %v863_v20, %v801_v46  ;;  %v806_v17 = vmul.f32 %v1385_v37, %v1385_v37  ;;  %v819_v23 = vmul.f32 %v1511_v0, %v1511_v0 }
 0x149   :  { %v865_v29 = vadd.f32 %v864_v27, %v802_v61  ;;  %v733_v4 = vadd.f32 %v732_v26, %v1367_v24 }
 0x14b   :  { %v734_v34 = vadd.f32 %v1340_v15, %v733_v4  ;;  %v866_v36 = vadd.f32 %v865_v29, %v803_v33  ;;  %v808_v15 = vmul.f32 %v1376_v35, %v1376_v35 }
 0x14d   :  { %v867_v38 = vadd.f32 %v866_v36, %v804_v59  ;;  %v735_v39 = vadd.f32 %v1358_v22, %v734_v34  ;;  %v809_v22 = vmul.f32 %v1394_v43, %v1394_v43  ;;  %v823_v34 = vmul.f32 %v1547_v31, %v1547_v31 }
 0x14f   :  { %v736_v40 = vadd.f32 %v735_v39, %v1385_v37  ;;  %v868_v41 = vadd.f32 %v867_v38, %v805_v2  ;;  %v810_v37 = vmul.f32 %v1421_v63, %v1421_v63 }
 0x151   :  { %v869_v45 = vadd.f32 %v868_v41, %v806_v17  ;;  %v737_v24 = vadd.f32 %v736_v40, %v1403_v47 }
 0x153   :  { %v738_v50 = vadd.f32 %v1376_v35, %v737_v24  ;;  %v870_v52 = vadd.f32 %v869_v45, %v807_v49  ;;  %v812_v35 = vmul.f32 %v1412_v60, %v1412_v60 }
 0x155   :  { %v871_v54 = vadd.f32 %v870_v52, %v808_v15  ;;  %v739_v55 = vadd.f32 %v1394_v43, %v738_v50  ;;  %v813_v43 = vmul.f32 %v1430_v6, %v1430_v6 }
 0x157   :  { %v740_v56 = vadd.f32 %v739_v55, %v1421_v63  ;;  %v872_v57 = vadd.f32 %v871_v54, %v809_v22  ;;  %v814_v63 = vmul.f32 %v1457_v25, %v1457_v25 }
 0x159   :  { %v873_v62 = vadd.f32 %v872_v57, %v810_v37  ;;  %v741_v47 = vadd.f32 %v740_v56, %v1439_v8 }
 0x15b   :  { %v742_v3 = vadd.f32 %v1412_v60, %v741_v47  ;;  %v874_v5 = vadd.f32 %v873_v62, %v811_v1  ;;  %v816_v60 = vmul.f32 %v1448_v21, %v1448_v21 }
 0x15d   :  { %v875_v7 = vadd.f32 %v874_v5, %v812_v35  ;;  %v743_v9 = vadd.f32 %v1430_v6, %v742_v3  ;;  %v817_v6 = vmul.f32 %v1466_v30, %v1466_v30 }
 0x15f   :  { %v744_v44 = vadd.f32 %v743_v9, %v1457_v25  ;;  %v876_v10 = vadd.f32 %v875_v7, %v813_v43  ;;  %v818_v25 = vmul.f32 %v1493_v53, %v1493_v53 }
 0x161   :  { %v877_v11 = vadd.f32 %v876_v10, %v814_v63  ;;  %v745_v8 = vadd.f32 %v744_v44, %v1475_v32 }
 0x163   :  { %v746_v48 = vadd.f32 %v1448_v21, %v745_v8  ;;  %v878_v13 = vadd.f32 %v877_v11, %v815_v12  ;;  %v820_v21 = vmul.f32 %v1484_v51, %v1484_v51 }
 0x165   :  { %v879_v42 = vadd.f32 %v878_v13, %v816_v60  ;;  %v747_v14 = vadd.f32 %v1466_v30, %v746_v48  ;;  %v821_v30 = vmul.f32 %v1502_v58, %v1502_v58 }
 0x167   :  { %v748_v18 = vadd.f32 %v747_v14, %v1493_v53  ;;  %v880_v46 = vadd.f32 %v879_v42, %v817_v6  ;;  %v822_v53 = vmul.f32 %v1529_v19, %v1529_v19 }
 0x169   :  { %v881_v20 = vadd.f32 %v880_v46, %v818_v25  ;;  %v749_v32 = vadd.f32 %v748_v18, %v1511_v0 }
 0x16b   :  { %v750_v61 = vadd.f32 %v1484_v51, %v749_v32  ;;  %v882_v26 = vadd.f32 %v881_v20, %v819_v23  ;;  %v824_v51 = vmul.f32 %v1520_v16, %v1520_v16 }
 0x16d   :  { %v883_v27 = vadd.f32 %v882_v26, %v820_v21  ;;  %v751_v29 = vadd.f32 %v1502_v58, %v750_v61  ;;  %v825_v58 = vmul.f32 %v1538_v28, %v1538_v28 }
 0x16f   :  { %v752_v4 = vadd.f32 %v751_v29, %v1529_v19  ;;  %v884_v33 = vadd.f32 %v883_v27, %v821_v30 }
 0x171   :  { %v885_v59 = vadd.f32 %v884_v33, %v822_v53  ;;  %v753_v0 = vadd.f32 %v752_v4, %v1547_v31 }
 0x173   :  { %v754_v36 = vadd.f32 %v1520_v16, %v753_v0  ;;  %v886_v2 = vadd.f32 %v885_v59, %v823_v34  ;;  %v692_v16 = vld [vmem:[%s1660_s3] sm:$0x3] }
 0x175   :  { %v755_v38 = vadd.f32 %v1538_v28, %v754_v36  ;;  %v887_v39 = vadd.f32 %v886_v2, %v824_v51 }
 0x177   :  { %v756_v19 = vrot.slane %v755_v38, 4  ;;  %v888_v17 = vadd.f32 %v887_v39, %v825_v58 }
 0x179   :  { %v757_v40 = vadd.f32 %v756_v19, %v755_v38  ;;  %v889_v41 = vrot.slane %v888_v17, 4 }
 0x17b   :  { %v758_v45 = vrot.slane %v757_v40, 2  ;;  %v890_v24 = vadd.f32 %v889_v41, %v888_v17 }
 0x17d   :  { %v759_v49 = vadd.f32 %v758_v45, %v757_v40  ;;  %v891_v31 = vrot.slane %v890_v24, 2 }
 0x17f   :  { %v760_v15 = vrot.slane %v759_v49, 1  ;;  %v892_v50 = vadd.f32 %v891_v31, %v890_v24 }
 0x181   :  { %v893_v52 = vrot.slane %v892_v50, 1  ;;  %v761_v22 = vadd.f32 %v760_v15, %v759_v49 }
 0x183   :  { %v894_v54 = vadd.f32 %v893_v52, %v892_v50 }
 0x185   :  { %v896_v28 = vsel %vm895_vm0, %v761_v22, %v894_v54 }
 0x186   :  { %v897_v55 = vadd.f32 %v896_v28, %v692_v16 }
 0x188   :  { %898 = vst [vmem:[%s1660_s3] sm:$0x3] %v897_v55 }

// kernel: beta_vae_forward.31
= control target key start
LH: loop header
LB: loop body
LE: loop exit
PB: predicated region body
PF: predicated region fallthrough
CT: control target
= control target key end

     0   :  { %s1375_s0 = inlined_call_operand.vmem [shape: f32[512,128], index: 0, kind: input, shape index: {}]   ;;  %s1376_s1 = inlined_call_operand.vmem [shape: f32[1,128], index: 1, kind: input, shape index: {}]   ;;  %s1377_s2 = inlined_call_operand.vmem [shape: f32[1,128], index: 2, kind: input, shape index: {}]   ;;  %s1378_s3 = inlined_call_operand.vmem [shape: bf16[512,128], index: 3, kind: output, shape index: {}]  }
   0x1   :  { %v14_v0 = vld [vmem:[%s1375_s0] sm:$0xff]  ;;  %v15_v1 = vld [vmem:[%s1375_s0 + $0x8] sm:$0xff]  ;;  %v16_v6 = vld [vmem:[%s1375_s0 + $0x10] sm:$0xff] }
   0x2   :  { %v958_v2 = vld [vmem:[%s1376_s1] ss:$0 sm:$0xff]  ;;  %v17_v7 = vld [vmem:[%s1375_s0 + $0x18] sm:$0xff]  ;;  %v19_v11 = vld [vmem:[%s1375_s0 + $0x28] sm:$0xff] }
   0x3   :  { %v85_v3 = vmul.f32 %v958_v2, %v14_v0  ;;  %v86_v4 = vmul.f32 %v958_v2, %v15_v1  ;;  %v965_v5 = vld [vmem:[%s1377_s2] ss:$0 sm:$0xff]  ;;  %v87_v8 = vmul.f32 %v958_v2, %v16_v6  ;;  %v88_v9 = vmul.f32 %v958_v2, %v17_v7  ;;  %v20_v12 = vld [vmem:[%s1375_s0 + $0x30] sm:$0xff]  ;;  %v21_v17 = vld [vmem:[%s1375_s0 + $0x38] sm:$0xff] }
   0x4   :  { %v18_v10 = vld [vmem:[%s1375_s0 + $0x20] sm:$0xff]  ;;  %v90_v16 = vmul.f32 %v958_v2, %v19_v11  ;;  %v91_v20 = vmul.f32 %v958_v2, %v20_v12  ;;  %v92_v21 = vmul.f32 %v958_v2, %v21_v17  ;;  %v23_v27 = vld [vmem:[%s1375_s0 + $0x48] sm:$0xff]  ;;  %v24_v32 = vld [vmem:[%s1375_s0 + $0x50] sm:$0xff] }
   0x5   :  { %v156_v13 = vadd.f32 %v965_v5, %v85_v3  ;;  %v157_v14 = vadd.f32 %v965_v5, %v86_v4  ;;  %v89_v15 = vmul.f32 %v958_v2, %v18_v10  ;;  %v158_v18 = vadd.f32 %v965_v5, %v87_v8  ;;  %v22_v22 = vld [vmem:[%s1375_s0 + $0x40] sm:$0xff]  ;;  %v25_v33 = vld [vmem:[%s1375_s0 + $0x58] sm:$0xff]  ;;  %v27_v39 = vld [vmem:[%s1375_s0 + $0x68] sm:$0xff] }
   0x6   :  { %v159_v19 = vadd.f32 %v965_v5, %v88_v9  ;;  %v161_v26 = vadd.f32 %v965_v5, %v90_v16  ;;  %v162_v30 = vadd.f32 %v965_v5, %v91_v20  ;;  %v163_v31 = vadd.f32 %v965_v5, %v92_v21  ;;  %v26_v38 = vld [vmem:[%s1375_s0 + $0x60] sm:$0xff]  ;;  %v28_v44 = vld [vmem:[%s1375_s0 + $0x70] sm:$0xff]  ;;  %v29_v49 = vld [vmem:[%s1375_s0 + $0x78] sm:$0xff] }
   0x7   :  { %v220_v23 = vmax.f32 %v156_v13, 0.0  ;;  %v221_v24 = vmax.f32 %v157_v14, 0.0  ;;  %v160_v25 = vadd.f32 %v965_v5, %v89_v15  ;;  %v222_v28 = vmax.f32 %v158_v18, 0.0  ;;  %v30_v54 = vld [vmem:[%s1375_s0 + $0x80] sm:$0xff]  ;;  %v31_v63 = vld [vmem:[%s1375_s0 + $0x88] sm:$0xff]  ;;  %v32_v6 = vld [vmem:[%s1375_s0 + $0x90] sm:$0xff] }
   0x8   :  { %v223_v29 = vmax.f32 %v159_v19, 0.0  ;;  %v225_v36 = vmax.f32 %v161_v26, 0.0  ;;  %v93_v37 = vmul.f32 %v958_v2, %v22_v22  ;;  %v226_v41 = vmax.f32 %v162_v30, 0.0  ;;  %v33_v7 = vld [vmem:[%s1375_s0 + $0x98] sm:$0xff]  ;;  %v34_v12 = vld [vmem:[%s1375_s0 + $0xa0] sm:$0xff]  ;;  %v35_v13 = vld [vmem:[%s1375_s0 + $0xa8] sm:$0xff] }
   0x9   :  { %v741_v34 = vpack.c.bf16 %v221_v24, %v220_v23  ;;  %v224_v35 = vmax.f32 %v160_v25, 0.0  ;;  %v227_v42 = vmax.f32 %v163_v31, 0.0  ;;  %v94_v43 = vmul.f32 %v958_v2, %v23_v27  ;;  %v36_v18 = vld [vmem:[%s1375_s0 + $0xb0] sm:$0xff]  ;;  %v37_v23 = vld [vmem:[%s1375_s0 + $0xb8] sm:$0xff] }
   0xa   :  { %v746_v40 = vpack.c.bf16 %v223_v29, %v222_v28  ;;  %v164_v46 = vadd.f32 %v965_v5, %v93_v37  ;;  %v95_v47 = vmul.f32 %v958_v2, %v24_v32  ;;  %v96_v48 = vmul.f32 %v958_v2, %v25_v33  ;;  %v38_v28 = vld [vmem:[%s1375_s0 + $0xc0] sm:$0xff]  ;;  %v39_v37 = vld [vmem:[%s1375_s0 + $0xc8] sm:$0xff] }
   0xb   :  { %742 = vst [vmem:[%s1378_s3] sm:$0xff] %v741_v34   ;;  %v751_v45 = vpack.c.bf16 %v225_v36, %v224_v35  ;;  %v756_v50 = vpack.c.bf16 %v227_v42, %v226_v41  ;;  %v165_v51 = vadd.f32 %v965_v5, %v94_v43  ;;  %v97_v52 = vmul.f32 %v958_v2, %v26_v38  ;;  %v40_v42 = vld [vmem:[%s1375_s0 + $0xd0] sm:$0xff]  ;;  %v41_v43 = vld [vmem:[%s1375_s0 + $0xd8] sm:$0xff] }
   0xc   :  { %898 = vst [vmem:[%s1378_s3 + $0x8] sm:$0xff] %v746_v40   ;;  %v98_v53 = vmul.f32 %v958_v2, %v27_v39  ;;  %v228_v55 = vmax.f32 %v164_v46, 0.0  ;;  %v166_v56 = vadd.f32 %v965_v5, %v95_v47  ;;  %v167_v57 = vadd.f32 %v965_v5, %v96_v48  ;;  %v42_v48 = vld [vmem:[%s1375_s0 + $0xe0] sm:$0xff] }
   0xd   :  { %899 = vst [vmem:[%s1378_s3 + $0x10] sm:$0xff] %v751_v45   ;;  %v99_v58 = vmul.f32 %v958_v2, %v28_v44  ;;  %900 = vst [vmem:[%s1378_s3 + $0x18] sm:$0xff] %v756_v50   ;;  %v229_v59 = vmax.f32 %v165_v51, 0.0  ;;  %v168_v60 = vadd.f32 %v965_v5, %v97_v52  ;;  %v100_v62 = vmul.f32 %v958_v2, %v29_v49  ;;  %v43_v49 = vld [vmem:[%s1375_s0 + $0xe8] sm:$0xff] }
   0xe   :  { %v169_v61 = vadd.f32 %v965_v5, %v98_v53  ;;  %v230_v0 = vmax.f32 %v166_v56, 0.0  ;;  %v231_v1 = vmax.f32 %v167_v57, 0.0  ;;  %v101_v4 = vmul.f32 %v958_v2, %v30_v54  ;;  %v44_v54 = vld [vmem:[%s1375_s0 + $0xf0] sm:$0xff] }
   0xf   :  { %v170_v3 = vadd.f32 %v965_v5, %v99_v58  ;;  %v761_v8 = vpack.c.bf16 %v229_v59, %v228_v55  ;;  %v232_v9 = vmax.f32 %v168_v60, 0.0  ;;  %v171_v11 = vadd.f32 %v965_v5, %v100_v62  ;;  %v45_v59 = vld [vmem:[%s1375_s0 + $0xf8] sm:$0xff] }
  0x10   :  { %v233_v10 = vmax.f32 %v169_v61, 0.0  ;;  %v766_v14 = vpack.c.bf16 %v231_v1, %v230_v0  ;;  %v102_v16 = vmul.f32 %v958_v2, %v31_v63  ;;  %v172_v17 = vadd.f32 %v965_v5, %v101_v4  ;;  %v46_v0 = vld [vmem:[%s1375_s0 + $0x100] sm:$0xff] }
  0x11   :  { %v234_v15 = vmax.f32 %v170_v3, 0.0  ;;  %901 = vst [vmem:[%s1378_s3 + $0x20] sm:$0xff] %v761_v8   ;;  %v235_v20 = vmax.f32 %v171_v11, 0.0  ;;  %v103_v21 = vmul.f32 %v958_v2, %v32_v6  ;;  %v104_v22 = vmul.f32 %v958_v2, %v33_v7  ;;  %v47_v11 = vld [vmem:[%s1375_s0 + $0x108] sm:$0xff] }
  0x12   :  { %v771_v19 = vpack.c.bf16 %v233_v10, %v232_v9  ;;  %902 = vst [vmem:[%s1378_s3 + $0x28] sm:$0xff] %v766_v14   ;;  %v173_v24 = vadd.f32 %v965_v5, %v102_v16  ;;  %v236_v25 = vmax.f32 %v172_v17, 0.0  ;;  %v105_v26 = vmul.f32 %v958_v2, %v34_v12  ;;  %v48_v16 = vld [vmem:[%s1375_s0 + $0x110] sm:$0xff]  ;;  %v49_v17 = vld [vmem:[%s1375_s0 + $0x118] sm:$0xff] }
  0x13   :  { %v106_v27 = vmul.f32 %v958_v2, %v35_v13  ;;  %v776_v29 = vpack.c.bf16 %v235_v20, %v234_v15  ;;  %v174_v30 = vadd.f32 %v965_v5, %v103_v21  ;;  %v175_v31 = vadd.f32 %v965_v5, %v104_v22  ;;  %v50_v22 = vld [vmem:[%s1375_s0 + $0x120] sm:$0xff] }
  0x14   :  { %903 = vst [vmem:[%s1378_s3 + $0x30] sm:$0xff] %v771_v19   ;;  %v107_v32 = vmul.f32 %v958_v2, %v36_v18  ;;  %v237_v33 = vmax.f32 %v173_v24, 0.0  ;;  %v176_v34 = vadd.f32 %v965_v5, %v105_v26  ;;  %v108_v36 = vmul.f32 %v958_v2, %v37_v23  ;;  %v51_v23 = vld [vmem:[%s1375_s0 + $0x128] sm:$0xff] }
  0x15   :  { %v177_v35 = vadd.f32 %v965_v5, %v106_v27  ;;  %904 = vst [vmem:[%s1378_s3 + $0x38] sm:$0xff] %v776_v29   ;;  %v238_v38 = vmax.f32 %v174_v30, 0.0  ;;  %v239_v39 = vmax.f32 %v175_v31, 0.0  ;;  %v109_v41 = vmul.f32 %v958_v2, %v38_v28  ;;  %v52_v28 = vld [vmem:[%s1375_s0 + $0x130] sm:$0xff] }
  0x16   :  { %v178_v40 = vadd.f32 %v965_v5, %v107_v32  ;;  %v781_v44 = vpack.c.bf16 %v237_v33, %v236_v25  ;;  %v240_v45 = vmax.f32 %v176_v34, 0.0  ;;  %v179_v47 = vadd.f32 %v965_v5, %v108_v36  ;;  %v53_v33 = vld [vmem:[%s1375_s0 + $0x138] sm:$0xff] }
  0x17   :  { %v241_v46 = vmax.f32 %v177_v35, 0.0  ;;  %v786_v50 = vpack.c.bf16 %v239_v39, %v238_v38  ;;  %v110_v52 = vmul.f32 %v958_v2, %v39_v37  ;;  %v180_v53 = vadd.f32 %v965_v5, %v109_v41  ;;  %v54_v38 = vld [vmem:[%s1375_s0 + $0x140] sm:$0xff] }
  0x18   :  { %v242_v51 = vmax.f32 %v178_v40, 0.0  ;;  %905 = vst [vmem:[%s1378_s3 + $0x40] sm:$0xff] %v781_v44   ;;  %v243_v56 = vmax.f32 %v179_v47, 0.0  ;;  %v111_v57 = vmul.f32 %v958_v2, %v40_v42  ;;  %v112_v58 = vmul.f32 %v958_v2, %v41_v43  ;;  %v55_v47 = vld [vmem:[%s1375_s0 + $0x148] sm:$0xff] }
  0x19   :  { %v791_v55 = vpack.c.bf16 %v241_v46, %v240_v45  ;;  %906 = vst [vmem:[%s1378_s3 + $0x48] sm:$0xff] %v786_v50   ;;  %v181_v60 = vadd.f32 %v965_v5, %v110_v52  ;;  %v244_v61 = vmax.f32 %v180_v53, 0.0  ;;  %v113_v62 = vmul.f32 %v958_v2, %v42_v48  ;;  %v56_v52 = vld [vmem:[%s1375_s0 + $0x150] sm:$0xff]  ;;  %v57_v53 = vld [vmem:[%s1375_s0 + $0x158] sm:$0xff] }
  0x1a   :  { %v114_v63 = vmul.f32 %v958_v2, %v43_v49  ;;  %v796_v1 = vpack.c.bf16 %v243_v56, %v242_v51  ;;  %v182_v3 = vadd.f32 %v965_v5, %v111_v57  ;;  %v183_v4 = vadd.f32 %v965_v5, %v112_v58  ;;  %v58_v58 = vld [vmem:[%s1375_s0 + $0x160] sm:$0xff] }
  0x1b   :  { %907 = vst [vmem:[%s1378_s3 + $0x50] sm:$0xff] %v791_v55   ;;  %v115_v6 = vmul.f32 %v958_v2, %v44_v54  ;;  %v245_v7 = vmax.f32 %v181_v60, 0.0  ;;  %v184_v8 = vadd.f32 %v965_v5, %v113_v62  ;;  %v116_v10 = vmul.f32 %v958_v2, %v45_v59  ;;  %v59_v59 = vld [vmem:[%s1375_s0 + $0x168] sm:$0xff] }
  0x1c   :  { %v185_v9 = vadd.f32 %v965_v5, %v114_v63  ;;  %908 = vst [vmem:[%s1378_s3 + $0x58] sm:$0xff] %v796_v1   ;;  %v246_v12 = vmax.f32 %v182_v3, 0.0  ;;  %v247_v13 = vmax.f32 %v183_v4, 0.0  ;;  %v117_v15 = vmul.f32 %v958_v2, %v46_v0  ;;  %v60_v0 = vld [vmem:[%s1375_s0 + $0x170] sm:$0xff] }
  0x1d   :  { %v186_v14 = vadd.f32 %v965_v5, %v115_v6  ;;  %v801_v18 = vpack.c.bf16 %v245_v7, %v244_v61  ;;  %v248_v19 = vmax.f32 %v184_v8, 0.0  ;;  %v187_v21 = vadd.f32 %v965_v5, %v116_v10  ;;  %v61_v7 = vld [vmem:[%s1375_s0 + $0x178] sm:$0xff] }
  0x1e   :  { %v249_v20 = vmax.f32 %v185_v9, 0.0  ;;  %v806_v24 = vpack.c.bf16 %v247_v13, %v246_v12  ;;  %v118_v26 = vmul.f32 %v958_v2, %v47_v11  ;;  %v188_v27 = vadd.f32 %v965_v5, %v117_v15  ;;  %v62_v12 = vld [vmem:[%s1375_s0 + $0x180] sm:$0xff] }
  0x1f   :  { %v250_v25 = vmax.f32 %v186_v14, 0.0  ;;  %909 = vst [vmem:[%s1378_s3 + $0x60] sm:$0xff] %v801_v18   ;;  %v251_v30 = vmax.f32 %v187_v21, 0.0  ;;  %v119_v31 = vmul.f32 %v958_v2, %v48_v16  ;;  %v120_v32 = vmul.f32 %v958_v2, %v49_v17  ;;  %v63_v21 = vld [vmem:[%s1375_s0 + $0x188] sm:$0xff] }
  0x20   :  { %v811_v29 = vpack.c.bf16 %v249_v20, %v248_v19  ;;  %910 = vst [vmem:[%s1378_s3 + $0x68] sm:$0xff] %v806_v24   ;;  %v189_v34 = vadd.f32 %v965_v5, %v118_v26  ;;  %v252_v35 = vmax.f32 %v188_v27, 0.0  ;;  %v121_v36 = vmul.f32 %v958_v2, %v50_v22  ;;  %v64_v26 = vld [vmem:[%s1375_s0 + $0x190] sm:$0xff]  ;;  %v65_v27 = vld [vmem:[%s1375_s0 + $0x198] sm:$0xff] }
  0x21   :  { %v122_v37 = vmul.f32 %v958_v2, %v51_v23  ;;  %v816_v39 = vpack.c.bf16 %v251_v30, %v250_v25  ;;  %v190_v40 = vadd.f32 %v965_v5, %v119_v31  ;;  %v191_v41 = vadd.f32 %v965_v5, %v120_v32  ;;  %v66_v32 = vld [vmem:[%s1375_s0 + $0x1a0] sm:$0xff] }
  0x22   :  { %911 = vst [vmem:[%s1378_s3 + $0x70] sm:$0xff] %v811_v29   ;;  %v123_v42 = vmul.f32 %v958_v2, %v52_v28  ;;  %v253_v43 = vmax.f32 %v189_v34, 0.0  ;;  %v192_v44 = vadd.f32 %v965_v5, %v121_v36  ;;  %v124_v46 = vmul.f32 %v958_v2, %v53_v33  ;;  %v67_v33 = vld [vmem:[%s1375_s0 + $0x1a8] sm:$0xff] }
  0x23   :  { %v193_v45 = vadd.f32 %v965_v5, %v122_v37  ;;  %912 = vst [vmem:[%s1378_s3 + $0x78] sm:$0xff] %v816_v39   ;;  %v254_v48 = vmax.f32 %v190_v40, 0.0  ;;  %v255_v49 = vmax.f32 %v191_v41, 0.0  ;;  %v125_v51 = vmul.f32 %v958_v2, %v54_v38  ;;  %v68_v38 = vld [vmem:[%s1375_s0 + $0x1b0] sm:$0xff] }
  0x24   :  { %v194_v50 = vadd.f32 %v965_v5, %v123_v42  ;;  %v821_v54 = vpack.c.bf16 %v253_v43, %v252_v35  ;;  %v256_v55 = vmax.f32 %v192_v44, 0.0  ;;  %v195_v57 = vadd.f32 %v965_v5, %v124_v46  ;;  %v69_v43 = vld [vmem:[%s1375_s0 + $0x1b8] sm:$0xff] }
  0x25   :  { %v257_v56 = vmax.f32 %v193_v45, 0.0  ;;  %v826_v60 = vpack.c.bf16 %v255_v49, %v254_v48  ;;  %v126_v62 = vmul.f32 %v958_v2, %v55_v47  ;;  %v196_v63 = vadd.f32 %v965_v5, %v125_v51  ;;  %v70_v48 = vld [vmem:[%s1375_s0 + $0x1c0] sm:$0xff] }
  0x26   :  { %v258_v61 = vmax.f32 %v194_v50, 0.0  ;;  %913 = vst [vmem:[%s1378_s3 + $0x80] sm:$0xff] %v821_v54   ;;  %v259_v3 = vmax.f32 %v195_v57, 0.0  ;;  %v127_v4 = vmul.f32 %v958_v2, %v56_v52  ;;  %v128_v6 = vmul.f32 %v958_v2, %v57_v53  ;;  %v71_v57 = vld [vmem:[%s1375_s0 + $0x1c8] sm:$0xff] }
  0x27   :  { %v831_v1 = vpack.c.bf16 %v257_v56, %v256_v55  ;;  %914 = vst [vmem:[%s1378_s3 + $0x88] sm:$0xff] %v826_v60   ;;  %v197_v8 = vadd.f32 %v965_v5, %v126_v62  ;;  %v260_v9 = vmax.f32 %v196_v63, 0.0  ;;  %v129_v10 = vmul.f32 %v958_v2, %v58_v58  ;;  %v72_v62 = vld [vmem:[%s1375_s0 + $0x1d0] sm:$0xff]  ;;  %v73_v63 = vld [vmem:[%s1375_s0 + $0x1d8] sm:$0xff] }
  0x28   :  { %v130_v11 = vmul.f32 %v958_v2, %v59_v59  ;;  %v836_v13 = vpack.c.bf16 %v259_v3, %v258_v61  ;;  %v198_v14 = vadd.f32 %v965_v5, %v127_v4  ;;  %v199_v15 = vadd.f32 %v965_v5, %v128_v6  ;;  %v74_v6 = vld [vmem:[%s1375_s0 + $0x1e0] sm:$0xff] }
  0x29   :  { %915 = vst [vmem:[%s1378_s3 + $0x90] sm:$0xff] %v831_v1   ;;  %v131_v16 = vmul.f32 %v958_v2, %v60_v0  ;;  %v261_v17 = vmax.f32 %v197_v8, 0.0  ;;  %v200_v18 = vadd.f32 %v965_v5, %v129_v10  ;;  %v132_v20 = vmul.f32 %v958_v2, %v61_v7  ;;  %v75_v7 = vld [vmem:[%s1375_s0 + $0x1e8] sm:$0xff] }
  0x2a   :  { %v201_v19 = vadd.f32 %v965_v5, %v130_v11  ;;  %916 = vst [vmem:[%s1378_s3 + $0x98] sm:$0xff] %v836_v13   ;;  %v262_v22 = vmax.f32 %v198_v14, 0.0  ;;  %v263_v23 = vmax.f32 %v199_v15, 0.0  ;;  %v133_v25 = vmul.f32 %v958_v2, %v62_v12  ;;  %v76_v12 = vld [vmem:[%s1375_s0 + $0x1f0] sm:$0xff] }
  0x2b   :  { %v202_v24 = vadd.f32 %v965_v5, %v131_v16  ;;  %v841_v28 = vpack.c.bf16 %v261_v17, %v260_v9  ;;  %v264_v29 = vmax.f32 %v200_v18, 0.0  ;;  %v203_v31 = vadd.f32 %v965_v5, %v132_v20  ;;  %v77_v17 = vld [vmem:[%s1375_s0 + $0x1f8] sm:$0xff] }
  0x2c   :  { %v265_v30 = vmax.f32 %v201_v19, 0.0  ;;  %v846_v34 = vpack.c.bf16 %v263_v23, %v262_v22  ;;  %v134_v36 = vmul.f32 %v958_v2, %v63_v21  ;;  %v204_v37 = vadd.f32 %v965_v5, %v133_v25 }
  0x2d   :  { %v266_v35 = vmax.f32 %v202_v24, 0.0  ;;  %917 = vst [vmem:[%s1378_s3 + $0xa0] sm:$0xff] %v841_v28   ;;  %v267_v40 = vmax.f32 %v203_v31, 0.0  ;;  %v135_v41 = vmul.f32 %v958_v2, %v64_v26  ;;  %v136_v42 = vmul.f32 %v958_v2, %v65_v27 }
  0x2e   :  { %v851_v39 = vpack.c.bf16 %v265_v30, %v264_v29  ;;  %918 = vst [vmem:[%s1378_s3 + $0xa8] sm:$0xff] %v846_v34   ;;  %v205_v44 = vadd.f32 %v965_v5, %v134_v36  ;;  %v268_v45 = vmax.f32 %v204_v37, 0.0  ;;  %v137_v46 = vmul.f32 %v958_v2, %v66_v32 }
  0x2f   :  { %v138_v47 = vmul.f32 %v958_v2, %v67_v33  ;;  %v856_v49 = vpack.c.bf16 %v267_v40, %v266_v35  ;;  %v206_v50 = vadd.f32 %v965_v5, %v135_v41  ;;  %v207_v51 = vadd.f32 %v965_v5, %v136_v42 }
  0x30   :  { %919 = vst [vmem:[%s1378_s3 + $0xb0] sm:$0xff] %v851_v39   ;;  %v139_v52 = vmul.f32 %v958_v2, %v68_v38  ;;  %v269_v53 = vmax.f32 %v205_v44, 0.0  ;;  %v208_v54 = vadd.f32 %v965_v5, %v137_v46  ;;  %v140_v56 = vmul.f32 %v958_v2, %v69_v43 }
  0x31   :  { %v209_v55 = vadd.f32 %v965_v5, %v138_v47  ;;  %920 = vst [vmem:[%s1378_s3 + $0xb8] sm:$0xff] %v856_v49   ;;  %v270_v58 = vmax.f32 %v206_v50, 0.0  ;;  %v271_v59 = vmax.f32 %v207_v51, 0.0  ;;  %v141_v61 = vmul.f32 %v958_v2, %v70_v48 }
  0x32   :  { %v210_v60 = vadd.f32 %v965_v5, %v139_v52  ;;  %v861_v0 = vpack.c.bf16 %v269_v53, %v268_v45  ;;  %v272_v1 = vmax.f32 %v208_v54, 0.0  ;;  %v211_v4 = vadd.f32 %v965_v5, %v140_v56 }
  0x33   :  { %v273_v3 = vmax.f32 %v209_v55, 0.0  ;;  %v866_v8 = vpack.c.bf16 %v271_v59, %v270_v58  ;;  %v142_v10 = vmul.f32 %v958_v2, %v71_v57  ;;  %v212_v11 = vadd.f32 %v965_v5, %v141_v61 }
  0x34   :  { %v274_v9 = vmax.f32 %v210_v60, 0.0  ;;  %921 = vst [vmem:[%s1378_s3 + $0xc0] sm:$0xff] %v861_v0   ;;  %v275_v14 = vmax.f32 %v211_v4, 0.0  ;;  %v143_v15 = vmul.f32 %v958_v2, %v72_v62  ;;  %v144_v16 = vmul.f32 %v958_v2, %v73_v63 }
  0x35   :  { %v871_v13 = vpack.c.bf16 %v273_v3, %v272_v1  ;;  %922 = vst [vmem:[%s1378_s3 + $0xc8] sm:$0xff] %v866_v8   ;;  %v213_v18 = vadd.f32 %v965_v5, %v142_v10  ;;  %v276_v19 = vmax.f32 %v212_v11, 0.0  ;;  %v145_v20 = vmul.f32 %v958_v2, %v74_v6 }
  0x36   :  { %v146_v21 = vmul.f32 %v958_v2, %v75_v7  ;;  %v876_v22 = vpack.c.bf16 %v275_v14, %v274_v9  ;;  %v214_v23 = vadd.f32 %v965_v5, %v143_v15  ;;  %v215_v24 = vadd.f32 %v965_v5, %v144_v16 }
  0x37   :  { %923 = vst [vmem:[%s1378_s3 + $0xd0] sm:$0xff] %v871_v13   ;;  %v147_v25 = vmul.f32 %v958_v2, %v76_v12  ;;  %v277_v26 = vmax.f32 %v213_v18, 0.0  ;;  %v216_v27 = vadd.f32 %v965_v5, %v145_v20  ;;  %v148_v29 = vmul.f32 %v958_v2, %v77_v17 }
  0x38   :  { %v217_v28 = vadd.f32 %v965_v5, %v146_v21  ;;  %924 = vst [vmem:[%s1378_s3 + $0xd8] sm:$0xff] %v876_v22   ;;  %v278_v30 = vmax.f32 %v214_v23, 0.0  ;;  %v279_v31 = vmax.f32 %v215_v24, 0.0 }
  0x39   :  { %v218_v32 = vadd.f32 %v965_v5, %v147_v25  ;;  %v881_v33 = vpack.c.bf16 %v277_v26, %v276_v19  ;;  %v280_v34 = vmax.f32 %v216_v27, 0.0  ;;  %v219_v36 = vadd.f32 %v965_v5, %v148_v29 }
  0x3a   :  { %v281_v35 = vmax.f32 %v217_v28, 0.0  ;;  %v886_v37 = vpack.c.bf16 %v279_v31, %v278_v30 }
  0x3b   :  { %v282_v38 = vmax.f32 %v218_v32, 0.0  ;;  %925 = vst [vmem:[%s1378_s3 + $0xe0] sm:$0xff] %v881_v33   ;;  %v283_v39 = vmax.f32 %v219_v36, 0.0 }
  0x3c   :  { %v891_v2 = vpack.c.bf16 %v281_v35, %v280_v34  ;;  %926 = vst [vmem:[%s1378_s3 + $0xe8] sm:$0xff] %v886_v37  }
  0x3d   :  { %v896_v40 = vpack.c.bf16 %v283_v39, %v282_v38 }
  0x3e   :  { %927 = vst [vmem:[%s1378_s3 + $0xf0] sm:$0xff] %v891_v2  }
  0x3f   :  { %928 = vst [vmem:[%s1378_s3 + $0xf8] sm:$0xff] %v896_v40  }

// kernel: squeeze.14
= control target key start
LH: loop header
LB: loop body
LE: loop exit
PB: predicated region body
PF: predicated region fallthrough
CT: control target
= control target key end

     0   :  { %s37_s8 = smov 119   ;;  %vm7_vm0 = vcmask 23552   ;;  %s38_s9 = smov 122   ;;  %s55_s0 = inlined_call_operand.vmem [shape: f32[12], index: 0, kind: input, shape index: {}]   ;;  %s56_s1 = inlined_call_operand.vmem [shape: f32[4,3], index: 1, kind: output, shape index: {}]  }
   0x1   :  { %v4_v0 = vld [vmem:[%s55_s0] sm:$0x1]  ;;  %s36_s0 = smov 125  }
   0x2   :  { %5 = vst [vmem:[#allocation1] sm:$0x1] %v4_v0 }
   0x9   :  { %v9_v1 = vld [vmem:[#allocation1] sm:$0x1]  }
   0xa   :  { %v21_v2 = vld [vmem:[#allocation1] sm:$0x1]   ;;  %10 = vrot.lane.b32.xlu0 %v9_v1, %s36_s0 }
   0xb   :  { %22 = vrot.lane.b32.xlu1 %v21_v2, %s37_s8  ;;  %v6_v3 = vld [vmem:[#allocation1] sm:$0x1]  }
   0xc   :  { %v15_v4 = vld [vmem:[#allocation1] sm:$0x1]   ;;  %8 = vst.msk [vmem:[#allocation0] sm:$0x1] %vm7_vm0, %v6_v3  }
   0xe   :  { %16 = vrot.lane.b32.xlu0 %v15_v4, %s38_s9 }
  0x7c   :  { %v11_v5 = vpop.permute.xlu0 %10  }
  0x7d   :  { %v23_v6 = vpop.permute.xlu1 %22   ;;  %14 = vst.msk [vmem:[#allocation0 + $0x1] sm:$0x1] %vm7_vm0, %v11_v5  }
  0x7e   :  { %26 = vst.msk [vmem:[#allocation0 + $0x3] sm:$0x1] %vm7_vm0, %v23_v6  }
  0x80   :  { %v17_v7 = vpop.permute.xlu0 %16  }
  0x81   :  { %20 = vst.msk [vmem:[#allocation0 + $0x2] sm:$0x1] %vm7_vm0, %v17_v7  }
  0x88   :  { %v30_v8 = vld [vmem:[#allocation0] sm:$0xf] }
  0x89   :  { %32 = vst [vmem:[%s56_s1] sm:$0xf] %v30_v8 }

// kernel: beta_vae_forward.33
= control target key start
LH: loop header
LB: loop body
LE: loop exit
PB: predicated region body
PF: predicated region fallthrough
CT: control target
= control target key end

     0   :  { %s2345_s12 = smov 0   ;;  %s2990_s0 = inlined_call_operand.vmem [shape: f32[2048,128], index: 0, kind: input, shape index: {}]   ;;  %s2991_s1 = inlined_call_operand.vmem [shape: f32[1,128], index: 1, kind: input, shape index: {}]   ;;  %s2992_s2 = inlined_call_operand.vmem [shape: f32[1,128], index: 2, kind: input, shape index: {}]   ;;  %s2993_s3 = inlined_call_operand.vmem [shape: f32[2048,128], index: 3, kind: output, shape index: {}]  }
   0x1 LB: > { %s1652_s13 = sadd.s32 4294967295, %s2323_s12   ;;  %p1656_p0 = scmp.ge.s32.totalorder %s2323_s12, 1  ;;  %s2323_s12 = sphi %s2345_s12, %s13_s12  }
   0x2   : > { %p138_p1 = scmp.lt.s32.totalorder %s2323_s12, 3 }
   0x4   : > { %p139_p2 = pnand %p1656_p0, %p138_p1 }
   0x5   : > { %s1657_s14 = sshll.u32 (!%p139_p2), %s1652_s13, 7  ;;  %v2359_v0 = vld [vmem:[%s2991_s1] ss:$0 sm:$0xff] (!%p139_p2) }
   0x6   : > { %142 = sbr.rel (%p139_p2) target bundleno = 294 (0x126), region = 32  ;;  %p163_p3 = scmp.lt.s32.totalorder (!%p139_p2), %s1657_s14, 255  ;;  %v2371_v1 = vld [vmem:[%s2992_s2] ss:$0 sm:$0xff] (!%p139_p2) }
   0xd   : > { %s2995_s14 = smov (!%p163_p3, %s1657_s14), 255 }
   0xe   : > { %s1658_s15 = sshll.u32 %s2995_s14, 3 }
   0xf   : > { %s2366_s20 = scalar_lea.vmem %s2990_s0, %s1658_s15  ;;  %s2446_s25 = scalar_lea.vmem %s2993_s3, %s1658_s15 }
  0x10   : > { %v174_v2 = vld [vmem:[%s2366_s20] sm:$0xff]  ;;  %v175_v3 = vld [vmem:[%s2366_s20 + $0x8] sm:$0xff]  ;;  %v176_v4 = vld [vmem:[%s2366_s20 + $0x10] sm:$0xff] }
  0x11   : > { %v309_v5 = vmul.f32 %v2359_v0, %v174_v2  ;;  %v310_v6 = vmul.f32 %v2359_v0, %v175_v3  ;;  %v311_v7 = vmul.f32 %v2359_v0, %v176_v4  ;;  %v177_v8 = vld [vmem:[%s2366_s20 + $0x18] sm:$0xff]  ;;  %v178_v9 = vld [vmem:[%s2366_s20 + $0x20] sm:$0xff]  ;;  %v179_v10 = vld [vmem:[%s2366_s20 + $0x28] sm:$0xff] }
  0x12   : > { %v312_v11 = vmul.f32 %v2359_v0, %v177_v8  ;;  %v313_v12 = vmul.f32 %v2359_v0, %v178_v9  ;;  %v314_v13 = vmul.f32 %v2359_v0, %v179_v10  ;;  %v180_v14 = vld [vmem:[%s2366_s20 + $0x30] sm:$0xff]  ;;  %v181_v15 = vld [vmem:[%s2366_s20 + $0x38] sm:$0xff]  ;;  %v182_v24 = vld [vmem:[%s2366_s20 + $0x40] sm:$0xff] }
  0x13   : > { %v444_v16 = vadd.f32 %v2371_v1, %v309_v5  ;;  %v445_v17 = vadd.f32 %v2371_v1, %v310_v6  ;;  %v446_v18 = vadd.f32 %v2371_v1, %v311_v7  ;;  %v315_v19 = vmul.f32 %v2359_v0, %v180_v14  ;;  %v183_v29 = vld [vmem:[%s2366_s20 + $0x48] sm:$0xff]  ;;  %v184_v34 = vld [vmem:[%s2366_s20 + $0x50] sm:$0xff]  ;;  %v185_v35 = vld [vmem:[%s2366_s20 + $0x58] sm:$0xff] }
  0x14   : > { %v447_v20 = vadd.f32 %v2371_v1, %v312_v11  ;;  %v448_v21 = vadd.f32 %v2371_v1, %v313_v12  ;;  %v449_v22 = vadd.f32 %v2371_v1, %v314_v13  ;;  %v316_v23 = vmul.f32 %v2359_v0, %v181_v15  ;;  %v186_v50 = vld [vmem:[%s2366_s20 + $0x60] sm:$0xff]  ;;  %v187_v51 = vld [vmem:[%s2366_s20 + $0x68] sm:$0xff]  ;;  %v188_v58 = vld [vmem:[%s2366_s20 + $0x70] sm:$0xff] }
  0x15   : > { %v572_v25 = vmax.f32 %v444_v16, 0.0  ;;  %v573_v26 = vmax.f32 %v445_v17, 0.0  ;;  %v574_v27 = vmax.f32 %v446_v18, 0.0  ;;  %v450_v28 = vadd.f32 %v2371_v1, %v315_v19  ;;  %v189_v62 = vld [vmem:[%s2366_s20 + $0x78] sm:$0xff]  ;;  %v190_v7 = vld [vmem:[%s2366_s20 + $0x80] sm:$0xff]  ;;  %v191_v13 = vld [vmem:[%s2366_s20 + $0x88] sm:$0xff] }
  0x16   : > { %v575_v30 = vmax.f32 %v447_v20, 0.0  ;;  %v576_v31 = vmax.f32 %v448_v21, 0.0  ;;  %v577_v32 = vmax.f32 %v449_v22, 0.0  ;;  %v451_v33 = vadd.f32 %v2371_v1, %v316_v23 }
  0x17   : > { %v1663_v36 = vmul.f32 -1.442695, %v572_v25  ;;  %v1664_v37 = vmul.f32 -1.442695, %v573_v26  ;;  %v1665_v38 = vmul.f32 -1.442695, %v574_v27  ;;  %v317_v39 = vmul.f32 %v2359_v0, %v182_v24 }
  0x18   : > { %v1666_v40 = vmul.f32 -1.442695, %v575_v30  ;;  %v1667_v41 = vmul.f32 -1.442695, %v576_v31  ;;  %v1668_v42 = vmul.f32 -1.442695, %v577_v32  ;;  %v318_v43 = vmul.f32 %v2359_v0, %v183_v29 }
  0x19   : > { %1801 = vpow2.f32 %v1663_v36  ;;  %v578_v44 = vmax.f32 %v450_v28, 0.0  ;;  %v579_v45 = vmax.f32 %v451_v33, 0.0  ;;  %v452_v46 = vadd.f32 %v2371_v1, %v317_v39  ;;  %v192_v24 = vld [vmem:[%s2366_s20 + $0x90] sm:$0xff]  ;;  %v193_v28 = vld [vmem:[%s2366_s20 + $0x98] sm:$0xff]  ;;  %v194_v33 = vld [vmem:[%s2366_s20 + $0xa0] sm:$0xff] }
  0x1a   : > { %1803 = vpow2.f32 %v1664_v37  ;;  %v453_v47 = vadd.f32 %v2371_v1, %v318_v43  ;;  %v319_v48 = vmul.f32 %v2359_v0, %v184_v34  ;;  %v320_v49 = vmul.f32 %v2359_v0, %v185_v35 }
  0x1b   : > { %1805 = vpow2.f32 %v1665_v38  ;;  %v1669_v52 = vmul.f32 -1.442695, %v578_v44  ;;  %v1670_v53 = vmul.f32 -1.442695, %v579_v45  ;;  %v580_v54 = vmax.f32 %v452_v46, 0.0  ;;  %v195_v38 = vld [vmem:[%s2366_s20 + $0xa8] sm:$0xff] }
  0x1c   : > { %1807 = vpow2.f32 %v1666_v40  ;;  %v581_v55 = vmax.f32 %v453_v47, 0.0  ;;  %v454_v56 = vadd.f32 %v2371_v1, %v319_v48  ;;  %v455_v57 = vadd.f32 %v2371_v1, %v320_v49 }
  0x1d   : > { %1809 = vpow2.f32 %v1667_v41  ;;  %v1671_v59 = vmul.f32 -1.442695, %v580_v54  ;;  %v321_v60 = vmul.f32 %v2359_v0, %v186_v50  ;;  %v322_v61 = vmul.f32 %v2359_v0, %v187_v51 }
  0x1e   : > { %1811 = vpow2.f32 %v1668_v42  ;;  %v1672_v63 = vmul.f32 -1.442695, %v581_v55  ;;  %v582_v2 = vmax.f32 %v454_v56, 0.0  ;;  %v583_v3 = vmax.f32 %v455_v57, 0.0  ;;  %v196_v55 = vld [vmem:[%s2366_s20 + $0xb0] sm:$0xff] }
  0x1f   : > { %1813 = vpow2.f32 %v1669_v52  ;;  %v456_v4 = vadd.f32 %v2371_v1, %v321_v60  ;;  %v457_v5 = vadd.f32 %v2371_v1, %v322_v61  ;;  %v323_v6 = vmul.f32 %v2359_v0, %v188_v58  ;;  %v197_v60 = vld [vmem:[%s2366_s20 + $0xb8] sm:$0xff] }
  0x20   : > { %1815 = vpow2.f32 %v1670_v53  ;;  %v1673_v8 = vmul.f32 -1.442695, %v582_v2  ;;  %v1674_v9 = vmul.f32 -1.442695, %v583_v3  ;;  %v324_v10 = vmul.f32 %v2359_v0, %v189_v62  ;;  %v198_v3 = vld [vmem:[%s2366_s20 + $0xc0] sm:$0xff] }
  0x21   : > { %1817 = vpow2.f32 %v1671_v59  ;;  %v584_v11 = vmax.f32 %v456_v4, 0.0  ;;  %v325_v12 = vmul.f32 %v2359_v0, %v190_v7  ;;  %v585_v16 = vmax.f32 %v457_v5, 0.0 }
  0x22   : > { %1819 = vpow2.f32 %v1672_v63  ;;  %v458_v17 = vadd.f32 %v2371_v1, %v323_v6  ;;  %v459_v20 = vadd.f32 %v2371_v1, %v324_v10  ;;  %v326_v23 = vmul.f32 %v2359_v0, %v191_v13 }
  0x23   : > { %v1802_v14 = vpop.eup %1801  ;;  %1821 = vpow2.f32 %v1673_v8  ;;  %v1675_v15 = vmul.f32 -1.442695, %v584_v11  ;;  %v460_v27 = vadd.f32 %v2371_v1, %v325_v12  ;;  %v2428_v31 = vmul.f32 -1.442695, %v585_v16  ;;  %v199_v8 = vld [vmem:[%s2366_s20 + $0xc8] sm:$0xff] }
  0x24   : > { %v1804_v18 = vpop.eup %1803  ;;  %v1084_v19 = vadd.f32 1.0, %v1802_v14  ;;  %1823 = vpow2.f32 %v1674_v9  ;;  %v586_v32 = vmax.f32 %v458_v17, 0.0  ;;  %v587_v36 = vmax.f32 %v459_v20, 0.0 }
  0x25   : > { %v1806_v21 = vpop.eup %1805  ;;  %v1085_v22 = vadd.f32 1.0, %v1804_v18  ;;  %1825 = vpow2.f32 %v1675_v15  ;;  %v327_v37 = vmul.f32 %v2359_v0, %v192_v24  ;;  %v461_v41 = vadd.f32 %v2371_v1, %v326_v23 }
  0x26   : > { %v1808_v25 = vpop.eup %1807  ;;  %1827 = vrcp.f32 %v1084_v19  ;;  %v1086_v26 = vadd.f32 1.0, %v1806_v21  ;;  %v328_v42 = vmul.f32 %v2359_v0, %v193_v28  ;;  %v588_v45 = vmax.f32 %v460_v27, 0.0  ;;  %v200_v21 = vld [vmem:[%s2366_s20 + $0xd0] sm:$0xff] }
  0x27   : > { %v1810_v29 = vpop.eup %1809  ;;  %1829 = vrcp.f32 %v1085_v22  ;;  %v1087_v30 = vadd.f32 1.0, %v1808_v25  ;;  %v329_v46 = vmul.f32 %v2359_v0, %v194_v33  ;;  %v1677_v49 = vmul.f32 -1.442695, %v586_v32 }
  0x28   : > { %v1812_v34 = vpop.eup %1811  ;;  %1831 = vrcp.f32 %v1086_v26  ;;  %v1088_v35 = vadd.f32 1.0, %v1810_v29  ;;  %v330_v50 = vmul.f32 %v2359_v0, %v195_v38  ;;  %v1678_v53 = vmul.f32 -1.442695, %v587_v36  ;;  %v201_v26 = vld [vmem:[%s2366_s20 + $0xd8] sm:$0xff] }
  0x29   : > { %v1814_v39 = vpop.eup %1813  ;;  %1833 = vrcp.f32 %v1087_v30  ;;  %v1089_v40 = vadd.f32 1.0, %v1812_v34  ;;  %v462_v54 = vadd.f32 %v2371_v1, %v327_v37  ;;  %v589_v58 = vmax.f32 %v461_v41, 0.0 }
  0x2a   : > { %v1816_v43 = vpop.eup %1815  ;;  %1835 = vrcp.f32 %v1088_v35  ;;  %v1090_v44 = vadd.f32 1.0, %v1814_v39  ;;  %v463_v59 = vadd.f32 %v2371_v1, %v328_v42  ;;  %v1679_v63 = vmul.f32 -1.442695, %v588_v45 }
  0x2b   : > { %v1818_v47 = vpop.eup %1817  ;;  %1837 = vrcp.f32 %v1089_v40  ;;  %v1091_v48 = vadd.f32 1.0, %v1816_v43  ;;  %v464_v2 = vadd.f32 %v2371_v1, %v329_v46  ;;  %v465_v6 = vadd.f32 %v2371_v1, %v330_v50 }
  0x2c   : > { %v1820_v51 = vpop.eup %1819  ;;  %1839 = vrcp.f32 %v1090_v44  ;;  %v1092_v52 = vadd.f32 1.0, %v1818_v47  ;;  %v331_v7 = vmul.f32 %v2359_v0, %v196_v55  ;;  %v590_v11 = vmax.f32 %v462_v54, 0.0  ;;  %v202_v44 = vld [vmem:[%s2366_s20 + $0xe0] sm:$0xff] }
  0x2d   : > { %v1822_v56 = vpop.eup %1821  ;;  %1841 = vrcp.f32 %v1091_v48  ;;  %v1093_v57 = vadd.f32 1.0, %v1820_v51  ;;  %v332_v12 = vmul.f32 %v2359_v0, %v197_v60  ;;  %v591_v14 = vmax.f32 %v463_v59, 0.0  ;;  %v203_v48 = vld [vmem:[%s2366_s20 + $0xe8] sm:$0xff] }
  0x2e   : > { %v1824_v61 = vpop.eup %1823  ;;  %1843 = vrcp.f32 %v1092_v52  ;;  %v1094_v62 = vadd.f32 1.0, %v1822_v56  ;;  %v466_v15 = vadd.f32 %v2371_v1, %v331_v7  ;;  %v333_v16 = vmul.f32 %v2359_v0, %v198_v3 }
  0x2f   : > { %v1826_v4 = vpop.eup %1825  ;;  %1845 = vrcp.f32 %v1093_v57  ;;  %v1095_v5 = vadd.f32 1.0, %v1824_v61  ;;  %v592_v18 = vmax.f32 %v464_v2, 0.0  ;;  %v467_v19 = vadd.f32 %v2371_v1, %v332_v12  ;;  %v204_v57 = vld [vmem:[%s2366_s20 + $0xf0] sm:$0xff] }
  0x30   : > { %v1828_v9 = vpop.eup %1827  ;;  %1847 = vrcp.f32 %v1094_v62  ;;  %v1096_v10 = vadd.f32 1.0, %v1826_v4  ;;  %v334_v20 = vmul.f32 %v2359_v0, %v199_v8  ;;  %v1680_v23 = vmul.f32 -1.442695, %v589_v58 }
  0x31   : > { %v1830_v13 = vpop.eup %1829  ;;  %1468 = vst [vmem:[%s2446_s25] sm:$0xff] %v1828_v9  ;;  %1849 = vrcp.f32 %v1095_v5  ;;  %v593_v24 = vmax.f32 %v465_v6, 0.0  ;;  %v468_v25 = vadd.f32 %v2371_v1, %v333_v16  ;;  %v1681_v28 = vmul.f32 -1.442695, %v590_v11  ;;  %v206_v6 = vld [vmem:[%s2366_s20 + $0x100] sm:$0xff] }
  0x32   : > { %v1832_v17 = vpop.eup %1831  ;;  %1469 = vst [vmem:[%s2446_s25 + $0x8] sm:$0xff] %v1830_v13  ;;  %1851 = vrcp.f32 %v1096_v10  ;;  %v594_v29 = vmax.f32 %v466_v15, 0.0  ;;  %v469_v30 = vadd.f32 %v2371_v1, %v334_v20  ;;  %v1682_v33 = vmul.f32 -1.442695, %v591_v14  ;;  %v207_v14 = vld [vmem:[%s2366_s20 + $0x108] sm:$0xff] }
  0x33   : > { %v1834_v22 = vpop.eup %1833  ;;  %1470 = vst [vmem:[%s2446_s25 + $0x10] sm:$0xff] %v1832_v17  ;;  %1853 = vpow2.f32 %v2428_v31  ;;  %v595_v31 = vmax.f32 %v467_v19, 0.0  ;;  %v335_v34 = vmul.f32 %v2359_v0, %v200_v21  ;;  %v1683_v36 = vmul.f32 -1.442695, %v592_v18  ;;  %v208_v19 = vld [vmem:[%s2366_s20 + $0x110] sm:$0xff] }
  0x34   : > { %v1836_v27 = vpop.eup %1835  ;;  %1471 = vst [vmem:[%s2446_s25 + $0x18] sm:$0xff] %v1834_v22  ;;  %1855 = vpow2.f32 %v1677_v49  ;;  %v596_v37 = vmax.f32 %v468_v25, 0.0  ;;  %v336_v38 = vmul.f32 %v2359_v0, %v201_v26  ;;  %v1684_v40 = vmul.f32 -1.442695, %v593_v24  ;;  %v209_v24 = vld [vmem:[%s2366_s20 + $0x118] sm:$0xff] }
  0x35   : > { %v1838_v32 = vpop.eup %1837  ;;  %1472 = vst [vmem:[%s2446_s25 + $0x20] sm:$0xff] %v1836_v27  ;;  %1857 = vpow2.f32 %v1678_v53  ;;  %v597_v41 = vmax.f32 %v469_v30, 0.0  ;;  %v1685_v43 = vmul.f32 -1.442695, %v594_v29  ;;  %v1686_v46 = vmul.f32 -1.442695, %v595_v31 }
  0x36   : > { %v1840_v35 = vpop.eup %1839  ;;  %1473 = vst [vmem:[%s2446_s25 + $0x28] sm:$0xff] %v1838_v32  ;;  %1859 = vpow2.f32 %v1679_v63  ;;  %v470_v47 = vadd.f32 %v2371_v1, %v335_v34  ;;  %v1687_v50 = vmul.f32 -1.442695, %v596_v37  ;;  %v471_v51 = vadd.f32 %v2371_v1, %v336_v38  ;;  %v205_v63 = vld [vmem:[%s2366_s20 + $0xf8] sm:$0xff]  ;;  %v210_v29 = vld [vmem:[%s2366_s20 + $0x120] sm:$0xff]  ;;  %v211_v34 = vld [vmem:[%s2366_s20 + $0x128] sm:$0xff] }
  0x37   : > { %v1842_v39 = vpop.eup %1841  ;;  %1474 = vst [vmem:[%s2446_s25 + $0x30] sm:$0xff] %v1840_v35  ;;  %1861 = vpow2.f32 %v1680_v23  ;;  %v1688_v53 = vmul.f32 -1.442695, %v597_v41  ;;  %v337_v54 = vmul.f32 %v2359_v0, %v202_v44  ;;  %v338_v56 = vmul.f32 %v2359_v0, %v203_v48 }
  0x38   : > { %v1844_v42 = vpop.eup %1843  ;;  %1475 = vst [vmem:[%s2446_s25 + $0x38] sm:$0xff] %v1842_v39  ;;  %1863 = vpow2.f32 %v1681_v28  ;;  %v598_v59 = vmax.f32 %v470_v47, 0.0  ;;  %v599_v62 = vmax.f32 %v471_v51, 0.0  ;;  %v339_v5 = vmul.f32 %v2359_v0, %v204_v57  ;;  %v212_v39 = vld [vmem:[%s2366_s20 + $0x130] sm:$0xff] }
  0x39   : > { %v1846_v45 = vpop.eup %1845  ;;  %1476 = vst [vmem:[%s2446_s25 + $0x40] sm:$0xff] %v1844_v42  ;;  %1865 = vpow2.f32 %v1682_v33  ;;  %v2487_v4 = vadd.f32 %v2371_v1, %v337_v54  ;;  %v2492_v9 = vadd.f32 %v2371_v1, %v338_v56  ;;  %v340_v13 = vmul.f32 %v2359_v0, %v205_v63 }
  0x3a   : > { %v1848_v49 = vpop.eup %1847  ;;  %1477 = vst [vmem:[%s2446_s25 + $0x48] sm:$0xff] %v1846_v45  ;;  %1867 = vpow2.f32 %v1683_v36  ;;  %v2494_v12 = vmul.f32 -1.442695, %v598_v59  ;;  %v2498_v17 = vmul.f32 -1.442695, %v599_v62  ;;  %v341_v18 = vmul.f32 %v2359_v0, %v206_v6  ;;  %v213_v6 = vld [vmem:[%s2366_s20 + $0x138] sm:$0xff] }
  0x3b   : > { %v1850_v52 = vpop.eup %1849  ;;  %1478 = vst [vmem:[%s2446_s25 + $0x50] sm:$0xff] %v1848_v49  ;;  %1869 = vpow2.f32 %v1684_v40  ;;  %v600_v22 = vmax.f32 %v2487_v4, 0.0  ;;  %v474_v23 = vadd.f32 %v2371_v1, %v339_v5  ;;  %v601_v27 = vmax.f32 %v2492_v9, 0.0 }
  0x3c   : > { %v1852_v55 = vpop.eup %1851  ;;  %1479 = vst [vmem:[%s2446_s25 + $0x58] sm:$0xff] %v1850_v52  ;;  %1871 = vpow2.f32 %v1685_v43  ;;  %v342_v28 = vmul.f32 %v2359_v0, %v207_v14  ;;  %v475_v33 = vadd.f32 %v2371_v1, %v340_v13  ;;  %v343_v31 = vmul.f32 %v2359_v0, %v208_v19 }
  0x3d   : > { %v1854_v58 = vpop.eup %1853  ;;  %1480 = vst [vmem:[%s2446_s25 + $0x60] sm:$0xff] %v1852_v55  ;;  %1873 = vpow2.f32 %v1686_v46  ;;  %v476_v37 = vadd.f32 %v2371_v1, %v341_v18  ;;  %v344_v38 = vmul.f32 %v2359_v0, %v209_v24  ;;  %v602_v42 = vmax.f32 %v474_v23, 0.0  ;;  %v214_v18 = vld [vmem:[%s2366_s20 + $0x140] sm:$0xff]  ;;  %v216_v24 = vld [vmem:[%s2366_s20 + $0x150] sm:$0xff] }
  0x3e   : > { %v1856_v60 = vpop.eup %1855  ;;  %v1097_v61 = vadd.f32 1.0, %v1854_v58  ;;  %1875 = vpow2.f32 %v1687_v50  ;;  %v345_v43 = vmul.f32 %v2359_v0, %v210_v29  ;;  %v477_v46 = vadd.f32 %v2371_v1, %v342_v28  ;;  %v217_v29 = vld [vmem:[%s2366_s20 + $0x158] sm:$0xff] }
  0x3f   : > { %v1858_v2 = vpop.eup %1857  ;;  %v1098_v3 = vadd.f32 1.0, %v1856_v60  ;;  %1877 = vpow2.f32 %v1688_v53  ;;  %v346_v47 = vmul.f32 %v2359_v0, %v211_v34  ;;  %v478_v50 = vadd.f32 %v2371_v1, %v343_v31 }
  0x40   : > { %v1860_v7 = vpop.eup %1859  ;;  %1879 = vrcp.f32 %v1097_v61  ;;  %v1099_v8 = vadd.f32 1.0, %v1858_v2  ;;  %v347_v51 = vmul.f32 %v2359_v0, %v212_v39  ;;  %v603_v54 = vmax.f32 %v475_v33, 0.0 }
  0x41   : > { %v1862_v10 = vpop.eup %1861  ;;  %1881 = vrcp.f32 %v1098_v3  ;;  %v1100_v11 = vadd.f32 1.0, %v1860_v7  ;;  %v479_v55 = vadd.f32 %v2371_v1, %v344_v38  ;;  %v1691_v57 = vmul.f32 -1.442695, %v600_v22 }
  0x42   : > { %v1864_v15 = vpop.eup %1863  ;;  %1883 = vrcp.f32 %v1099_v8  ;;  %v1101_v16 = vadd.f32 1.0, %v1862_v10  ;;  %v604_v58 = vmax.f32 %v476_v37, 0.0  ;;  %v480_v59 = vadd.f32 %v2371_v1, %v345_v43 }
  0x43   : > { %v1866_v20 = vpop.eup %1865  ;;  %1885 = vrcp.f32 %v1100_v11  ;;  %v1102_v21 = vadd.f32 1.0, %v1864_v15  ;;  %v1692_v61 = vmul.f32 -1.442695, %v601_v27  ;;  %v605_v62 = vmax.f32 %v477_v46, 0.0 }
  0x44   : > { %v1868_v25 = vpop.eup %1867  ;;  %1887 = vrcp.f32 %v1101_v16  ;;  %v1103_v26 = vadd.f32 1.0, %v1866_v20  ;;  %v481_v63 = vadd.f32 %v2371_v1, %v346_v47  ;;  %v1693_v3 = vmul.f32 -1.442695, %v602_v42  ;;  %v218_v47 = vld [vmem:[%s2366_s20 + $0x160] sm:$0xff] }
  0x45   : > { %v1870_v30 = vpop.eup %1869  ;;  %1889 = vrcp.f32 %v1102_v21  ;;  %v1104_v32 = vadd.f32 1.0, %v1868_v25  ;;  %v606_v4 = vmax.f32 %v478_v50, 0.0  ;;  %v482_v5 = vadd.f32 %v2371_v1, %v347_v51  ;;  %v219_v51 = vld [vmem:[%s2366_s20 + $0x168] sm:$0xff] }
  0x46   : > { %v1872_v35 = vpop.eup %1871  ;;  %1891 = vrcp.f32 %v1103_v26  ;;  %v1105_v36 = vadd.f32 1.0, %v1870_v30  ;;  %v1694_v8 = vmul.f32 -1.442695, %v603_v54  ;;  %v607_v9 = vmax.f32 %v479_v55, 0.0 }
  0x47   : > { %v1874_v40 = vpop.eup %1873  ;;  %1893 = vrcp.f32 %v1104_v32  ;;  %v1106_v41 = vadd.f32 1.0, %v1872_v35  ;;  %v1695_v11 = vmul.f32 -1.442695, %v604_v58  ;;  %v1696_v14 = vmul.f32 -1.442695, %v605_v62 }
  0x48   : > { %v1876_v44 = vpop.eup %1875  ;;  %1895 = vrcp.f32 %v1105_v36  ;;  %v1107_v45 = vadd.f32 1.0, %v1874_v40  ;;  %v609_v15 = vmax.f32 %v481_v63, 0.0  ;;  %v348_v16 = vmul.f32 %v2359_v0, %v213_v6 }
  0x49   : > { %v1878_v48 = vpop.eup %1877  ;;  %1897 = vrcp.f32 %v1106_v41  ;;  %v1108_v49 = vadd.f32 1.0, %v1876_v44  ;;  %v1697_v20 = vmul.f32 -1.442695, %v606_v4  ;;  %v610_v21 = vmax.f32 %v482_v5, 0.0  ;;  %v222_v4 = vld [vmem:[%s2366_s20 + $0x180] sm:$0xff] }
  0x4a   : > { %v1880_v52 = vpop.eup %1879  ;;  %1899 = vrcp.f32 %v1107_v45  ;;  %v1109_v53 = vadd.f32 1.0, %v1878_v48  ;;  %v1698_v23 = vmul.f32 -1.442695, %v607_v9  ;;  %v349_v27 = vmul.f32 %v2359_v0, %v214_v18  ;;  %v223_v9 = vld [vmem:[%s2366_s20 + $0x188] sm:$0xff] }
  0x4b   : > { %v1882_v56 = vpop.eup %1881  ;;  %1481 = vst [vmem:[%s2446_s25 + $0x68] sm:$0xff] %v1880_v52  ;;  %1901 = vrcp.f32 %v1108_v49  ;;  %v1700_v32 = vmul.f32 -1.442695, %v609_v15  ;;  %v483_v33 = vadd.f32 %v2371_v1, %v348_v16  ;;  %v1701_v34 = vmul.f32 -1.442695, %v610_v21 }
  0x4c   : > { %v1884_v60 = vpop.eup %1883  ;;  %1482 = vst [vmem:[%s2446_s25 + $0x70] sm:$0xff] %v1882_v56  ;;  %1903 = vrcp.f32 %v1109_v53  ;;  %v351_v35 = vmul.f32 %v2359_v0, %v216_v24  ;;  %v352_v37 = vmul.f32 %v2359_v0, %v217_v29  ;;  %v484_v39 = vadd.f32 %v2371_v1, %v349_v27  ;;  %v220_v56 = vld [vmem:[%s2366_s20 + $0x170] sm:$0xff] }
  0x4d   : > { %v1886_v2 = vpop.eup %1885  ;;  %1483 = vst [vmem:[%s2446_s25 + $0x78] sm:$0xff] %v1884_v60  ;;  %1905 = vpow2.f32 %v2494_v12  ;;  %v608_v12 = vmax.f32 %v480_v59, 0.0  ;;  %v611_v43 = vmax.f32 %v483_v33, 0.0  ;;  %v353_v60 = vmul.f32 %v2359_v0, %v218_v47 }
  0x4e   : > { %v1888_v7 = vpop.eup %1887  ;;  %1484 = vst [vmem:[%s2446_s25 + $0x80] sm:$0xff] %v1886_v2  ;;  %1907 = vpow2.f32 %v2498_v17  ;;  %v215_v17 = vld [vmem:[%s2366_s20 + $0x148] sm:$0xff]  ;;  %v2554_v46 = vadd.f32 %v2371_v1, %v351_v35  ;;  %v2558_v50 = vadd.f32 %v2371_v1, %v352_v37  ;;  %v612_v54 = vmax.f32 %v484_v39, 0.0 }
  0x4f   : > { %v1890_v10 = vpop.eup %1889  ;;  %1485 = vst [vmem:[%s2446_s25 + $0x88] sm:$0xff] %v1888_v7  ;;  %1909 = vpow2.f32 %v1691_v57  ;;  %v1699_v26 = vmul.f32 -1.442695, %v608_v12  ;;  %v350_v28 = vmul.f32 %v2359_v0, %v215_v17  ;;  %v1702_v59 = vmul.f32 -1.442695, %v611_v43 }
  0x50   : > { %v1892_v13 = vpop.eup %1891  ;;  %1486 = vst [vmem:[%s2446_s25 + $0x90] sm:$0xff] %v1890_v10  ;;  %1911 = vpow2.f32 %v1692_v61  ;;  %v221_v61 = vld [vmem:[%s2366_s20 + $0x178] sm:$0xff]  ;;  %v614_v2 = vmax.f32 %v2554_v46, 0.0  ;;  %v615_v7 = vmax.f32 %v2558_v50, 0.0  ;;  %v1703_v12 = vmul.f32 -1.442695, %v612_v54 }
  0x51   : > { %v1894_v19 = vpop.eup %1893  ;;  %1487 = vst [vmem:[%s2446_s25 + $0x98] sm:$0xff] %v1892_v13  ;;  %1913 = vpow2.f32 %v1693_v3  ;;  %v2551_v40 = vadd.f32 %v2371_v1, %v350_v28  ;;  %v354_v3 = vmul.f32 %v2359_v0, %v219_v51  ;;  %v356_v13 = vmul.f32 %v2359_v0, %v221_v61 }
  0x52   : > { %v1896_v22 = vpop.eup %1895  ;;  %1488 = vst [vmem:[%s2446_s25 + $0xa0] sm:$0xff] %v1894_v19  ;;  %1915 = vpow2.f32 %v1694_v8  ;;  %v355_v8 = vmul.f32 %v2359_v0, %v220_v56  ;;  %v488_v18 = vadd.f32 %v2371_v1, %v353_v60  ;;  %v357_v17 = vmul.f32 %v2359_v0, %v222_v4  ;;  %v225_v19 = vld [vmem:[%s2366_s20 + $0x198] sm:$0xff] }
  0x53   : > { %v1898_v25 = vpop.eup %1897  ;;  %1489 = vst [vmem:[%s2446_s25 + $0xa8] sm:$0xff] %v1896_v22  ;;  %1917 = vpow2.f32 %v1695_v11  ;;  %v613_v55 = vmax.f32 %v2551_v40, 0.0  ;;  %v489_v22 = vadd.f32 %v2371_v1, %v354_v3  ;;  %v1706_v46 = vmul.f32 -1.442695, %v615_v7  ;;  %v229_v7 = vld [vmem:[%s2366_s20 + $0x1b8] sm:$0xff] }
  0x54   : > { %v1900_v30 = vpop.eup %1899  ;;  %1490 = vst [vmem:[%s2446_s25 + $0xb0] sm:$0xff] %v1898_v25  ;;  %1919 = vpow2.f32 %v1696_v14  ;;  %v224_v14 = vld [vmem:[%s2366_s20 + $0x190] sm:$0xff]  ;;  %v492_v35 = vadd.f32 %v2371_v1, %v357_v17 }
  0x55   : > { %v1902_v31 = vpop.eup %1901  ;;  %1491 = vst [vmem:[%s2446_s25 + $0xb8] sm:$0xff] %v1900_v30  ;;  %1921 = vpow2.f32 %v1697_v20  ;;  %v359_v27 = vmul.f32 %v2359_v0, %v224_v14  ;;  %v491_v30 = vadd.f32 %v2371_v1, %v356_v13  ;;  %v1704_v37 = vmul.f32 -1.442695, %v613_v55  ;;  %v230_v13 = vld [vmem:[%s2366_s20 + $0x1c0] sm:$0xff] }
  0x56   : > { %v1904_v36 = vpop.eup %1903  ;;  %1492 = vst [vmem:[%s2446_s25 + $0xc0] sm:$0xff] %v1902_v31  ;;  %1923 = vpow2.f32 %v1698_v23  ;;  %v358_v23 = vmul.f32 %v2359_v0, %v223_v9 }
  0x57   : > { %v1906_v38 = vpop.eup %1905  ;;  %1493 = vst [vmem:[%s2446_s25 + $0xc8] sm:$0xff] %v1904_v36  ;;  %1925 = vpow2.f32 %v1699_v26  ;;  %v490_v26 = vadd.f32 %v2371_v1, %v355_v8  ;;  %v494_v43 = vadd.f32 %v2371_v1, %v359_v27  ;;  %v619_v47 = vmax.f32 %v491_v30, 0.0 }
  0x58   : > { %v1908_v41 = vpop.eup %1907  ;;  %v1110_v42 = vadd.f32 1.0, %v1906_v38  ;;  %1927 = vpow2.f32 %v1700_v32  ;;  %v360_v32 = vmul.f32 %v2359_v0, %v225_v19  ;;  %v617_v38 = vmax.f32 %v489_v22, 0.0 }
  0x59   : > { %v1910_v44 = vpop.eup %1909  ;;  %v1111_v45 = vadd.f32 1.0, %v1908_v41  ;;  %1929 = vpow2.f32 %v1701_v34  ;;  %v616_v34 = vmax.f32 %v488_v18, 0.0  ;;  %v493_v39 = vadd.f32 %v2371_v1, %v358_v23  ;;  %v231_v23 = vld [vmem:[%s2366_s20 + $0x1c8] sm:$0xff] }
  0x5a   : > { %v1912_v48 = vpop.eup %1911  ;;  %1931 = vrcp.f32 %v1110_v42  ;;  %v1112_v49 = vadd.f32 1.0, %v1910_v44  ;;  %v1705_v41 = vmul.f32 -1.442695, %v614_v2  ;;  %v618_v42 = vmax.f32 %v490_v26, 0.0  ;;  %v226_v44 = vld [vmem:[%s2366_s20 + $0x1a0] sm:$0xff] }
  0x5b   : > { %v1914_v52 = vpop.eup %1913  ;;  %1933 = vrcp.f32 %v1111_v45  ;;  %v1113_v53 = vadd.f32 1.0, %v1912_v48  ;;  %v495_v48 = vadd.f32 %v2371_v1, %v360_v32  ;;  %v1707_v51 = vmul.f32 -1.442695, %v616_v34  ;;  %v232_v32 = vld [vmem:[%s2366_s20 + $0x1d0] sm:$0xff] }
  0x5c   : > { %v1916_v57 = vpop.eup %1915  ;;  %1935 = vrcp.f32 %v1112_v49  ;;  %v1114_v58 = vadd.f32 1.0, %v1914_v52  ;;  %v227_v49 = vld [vmem:[%s2366_s20 + $0x1a8] sm:$0xff]  ;;  %v620_v52 = vmax.f32 %v492_v35, 0.0  ;;  %v1708_v54 = vmul.f32 -1.442695, %v617_v38 }
  0x5d   : > { %v1918_v62 = vpop.eup %1917  ;;  %1937 = vrcp.f32 %v1113_v53  ;;  %v1115_v63 = vadd.f32 1.0, %v1916_v57  ;;  %v621_v55 = vmax.f32 %v493_v39, 0.0  ;;  %v361_v56 = vmul.f32 %v2359_v0, %v226_v44 }
  0x5e   : > { %v1920_v5 = vpop.eup %1919  ;;  %1939 = vrcp.f32 %v1114_v58  ;;  %v1116_v6 = vadd.f32 1.0, %v1918_v62  ;;  %v1709_v58 = vmul.f32 -1.442695, %v618_v42  ;;  %v362_v60 = vmul.f32 %v2359_v0, %v227_v49 }
  0x5f   : > { %v1922_v10 = vpop.eup %1921  ;;  %1941 = vrcp.f32 %v1115_v63  ;;  %v1117_v11 = vadd.f32 1.0, %v1920_v5  ;;  %v1710_v62 = vmul.f32 -1.442695, %v619_v47  ;;  %v623_v63 = vmax.f32 %v495_v48, 0.0 }
  0x60   : > { %v1924_v15 = vpop.eup %1923  ;;  %1943 = vrcp.f32 %v1116_v6  ;;  %v1118_v16 = vadd.f32 1.0, %v1922_v10  ;;  %v1711_v3 = vmul.f32 -1.442695, %v620_v52  ;;  %v1712_v5 = vmul.f32 -1.442695, %v621_v55  ;;  %v228_v6 = vld [vmem:[%s2366_s20 + $0x1b0] sm:$0xff] }
  0x61   : > { %v1926_v20 = vpop.eup %1925  ;;  %1945 = vrcp.f32 %v1117_v11  ;;  %v1119_v21 = vadd.f32 1.0, %v1924_v15  ;;  %v496_v0 = vadd.f32 %v2371_v1, %v361_v56  ;;  %v497_v10 = vadd.f32 %v2371_v1, %v362_v60  ;;  %v2610_v15 = vld [vmem:[%s2991_s1] ss:$0 sm:$0xff]  ;;  %v237_v56 = vld [vmem:[%s2366_s20 + $0x1f8] sm:$0xff] }
  0x62   : > { %v1928_v24 = vpop.eup %1927  ;;  %1947 = vrcp.f32 %v1118_v16  ;;  %v1120_v25 = vadd.f32 1.0, %v1926_v20  ;;  %v363_v16 = vmul.f32 %v2610_v15, %v228_v6  ;;  %v364_v18 = vmul.f32 %v2610_v15, %v229_v7 }
  0x63   : > { %v1930_v28 = vpop.eup %1929  ;;  %1949 = vrcp.f32 %v1119_v21  ;;  %v1121_v29 = vadd.f32 1.0, %v1928_v24  ;;  %v624_v1 = vmax.f32 %v496_v0, 0.0  ;;  %v625_v21 = vmax.f32 %v497_v10, 0.0 }
  0x64   : > { %v1932_v33 = vpop.eup %1931  ;;  %1951 = vrcp.f32 %v1120_v25  ;;  %v1122_v31 = vadd.f32 1.0, %v1930_v28  ;;  %v365_v22 = vmul.f32 %v2610_v15, %v230_v13  ;;  %v2620_v28 = vld [vmem:[%s2992_s2] ss:$0 sm:$0xff]  ;;  %v367_v44 = vmul.f32 %v2610_v15, %v232_v32 }
  0x65   : > { %v1934_v36 = vpop.eup %1933  ;;  %1494 = vst [vmem:[%s2446_s25 + $0xd0] sm:$0xff] %v1932_v33  ;;  %1953 = vrcp.f32 %v1121_v29  ;;  %v498_v29 = vadd.f32 %v2620_v28, %v363_v16  ;;  %v2624_v30 = vadd.f32 %v2620_v28, %v364_v18  ;;  %v233_v33 = vld [vmem:[%s2366_s20 + $0x1d8] sm:$0xff]  ;;  %v2628_v35 = vmul.f32 -1.442695, %v624_v1 }
  0x66   : > { %v1936_v40 = vpop.eup %1935  ;;  %1495 = vst [vmem:[%s2446_s25 + $0xd8] sm:$0xff] %v1934_v36  ;;  %1955 = vrcp.f32 %v1122_v31  ;;  %v366_v36 = vmul.f32 %v2610_v15, %v231_v23  ;;  %v2631_v39 = vmul.f32 -1.442695, %v625_v21  ;;  %v372_v6 = vmul.f32 %v2610_v15, %v237_v56  ;;  %v239_v23 = vld [vmem:[%s2366_s20 + $0x208] sm:$0xff] }
  0x67   : > { %v1938_v45 = vpop.eup %1937  ;;  %1496 = vst [vmem:[%s2446_s25 + $0xe0] sm:$0xff] %v1936_v40  ;;  %1957 = vpow2.f32 %v1702_v59  ;;  %v622_v59 = vmax.f32 %v494_v43, 0.0  ;;  %v500_v40 = vadd.f32 %v2620_v28, %v365_v22  ;;  %v626_v49 = vmax.f32 %v498_v29, 0.0 }
  0x68   : > { %v1940_v50 = vpop.eup %1939  ;;  %1497 = vst [vmem:[%s2446_s25 + $0xe8] sm:$0xff] %v1938_v45  ;;  %1959 = vpow2.f32 %v1703_v12  ;;  %v1714_v12 = vmul.f32 -1.442695, %v623_v63  ;;  %v368_v45 = vmul.f32 %v2610_v15, %v233_v33  ;;  %v507_v22 = vadd.f32 %v2620_v28, %v372_v6  ;;  %v240_v33 = vld [vmem:[%s2366_s20 + $0x210] sm:$0xff] }
  0x69   : > { %v1942_v53 = vpop.eup %1941  ;;  %1498 = vst [vmem:[%s2446_s25 + $0xf0] sm:$0xff] %v1940_v50  ;;  %1961 = vpow2.f32 %v1704_v37  ;;  %v1713_v9 = vmul.f32 -1.442695, %v622_v59  ;;  %v627_v50 = vmax.f32 %v2624_v30, 0.0  ;;  %v628_v59 = vmax.f32 %v500_v40, 0.0  ;;  %v244_v6 = vld [vmem:[%s2366_s20 + $0x230] sm:$0xff] }
  0x6a   : > { %v1944_v57 = vpop.eup %1943  ;;  %1499 = vst [vmem:[%s2446_s25 + $0xf8] sm:$0xff] %v1942_v53  ;;  %1963 = vpow2.f32 %v1705_v41  ;;  %v234_v41 = vld [vmem:[%s2366_s20 + $0x1e0] sm:$0xff]  ;;  %v503_v0 = vadd.f32 %v2620_v28, %v368_v45  ;;  %v1717_v18 = vmul.f32 -1.442695, %v626_v49  ;;  %v635_v40 = vmax.f32 %v507_v22, 0.0 }
  0x6b   : > { %v1946_v61 = vpop.eup %1945  ;;  %1500 = vst [vmem:[%s2446_s25 + $0x100] sm:$0xff] %v1944_v57  ;;  %1965 = vpow2.f32 %v1706_v46  ;;  %v235_v46 = vld [vmem:[%s2366_s20 + $0x1e8] sm:$0xff]  ;;  %v369_v55 = vmul.f32 %v2610_v15, %v234_v41 }
  0x6c   : > { %v1948_v2 = vpop.eup %1947  ;;  %1501 = vst [vmem:[%s2446_s25 + $0x108] sm:$0xff] %v1946_v61  ;;  %1967 = vpow2.f32 %v1707_v51  ;;  %v236_v51 = vld [vmem:[%s2366_s20 + $0x1f0] sm:$0xff]  ;;  %v370_v60 = vmul.f32 %v2610_v15, %v235_v46  ;;  %v238_v61 = vld [vmem:[%s2366_s20 + $0x200] sm:$0xff]  ;;  %v631_v21 = vmax.f32 %v503_v0, 0.0 }
  0x6d   : > { %v1950_v4 = vpop.eup %1949  ;;  %1502 = vst [vmem:[%s2446_s25 + $0x110] sm:$0xff] %v1948_v2  ;;  %1969 = vpow2.f32 %v1708_v54  ;;  %v501_v54 = vadd.f32 %v2620_v28, %v366_v36  ;;  %v502_v2 = vadd.f32 %v2620_v28, %v367_v44  ;;  %v373_v10 = vmul.f32 %v2610_v15, %v238_v61  ;;  %v241_v44 = vld [vmem:[%s2366_s20 + $0x218] sm:$0xff] }
  0x6e   : > { %v1952_v8 = vpop.eup %1951  ;;  %1503 = vst [vmem:[%s2446_s25 + $0x118] sm:$0xff] %v1950_v4  ;;  %1971 = vpow2.f32 %v1709_v58  ;;  %v374_v36 = vmul.f32 %v2610_v15, %v239_v23 }
  0x6f   : > { %v1954_v11 = vpop.eup %1953  ;;  %1504 = vst [vmem:[%s2446_s25 + $0x120] sm:$0xff] %v1952_v8  ;;  %1973 = vpow2.f32 %v1710_v62  ;;  %v629_v13 = vmax.f32 %v501_v54, 0.0  ;;  %v243_v54 = vld [vmem:[%s2366_s20 + $0x228] sm:$0xff] }
  0x70   : > { %v1956_v14 = vpop.eup %1955  ;;  %1505 = vst [vmem:[%s2446_s25 + $0x128] sm:$0xff] %v1954_v11  ;;  %1975 = vpow2.f32 %v1711_v3  ;;  %v371_v3 = vmul.f32 %v2610_v15, %v236_v51  ;;  %v509_v49 = vadd.f32 %v2620_v28, %v374_v36  ;;  %v250_v36 = vld [vmem:[%s2366_s20 + $0x260] sm:$0xff] }
  0x71   : > { %v1958_v17 = vpop.eup %1957  ;;  %1506 = vst [vmem:[%s2446_s25 + $0x130] sm:$0xff] %v1956_v14  ;;  %1977 = vpow2.f32 %v1712_v5  ;;  %v505_v14 = vadd.f32 %v2620_v28, %v370_v60  ;;  %v1720_v30 = vmul.f32 -1.442695, %v629_v13 }
  0x72   : > { %v1960_v19 = vpop.eup %1959  ;;  %v1123_v20 = vadd.f32 1.0, %v1958_v17  ;;  %1979 = vpow2.f32 %v1713_v9  ;;  %v504_v9 = vadd.f32 %v2620_v28, %v369_v55  ;;  %v630_v17 = vmax.f32 %v502_v2, 0.0 }
  0x73   : > { %v1962_v24 = vpop.eup %1961  ;;  %v1124_v25 = vadd.f32 1.0, %v1960_v19  ;;  %1981 = vpow2.f32 %v1714_v12  ;;  %v506_v1 = vadd.f32 %v2620_v28, %v371_v3  ;;  %v633_v32 = vmax.f32 %v505_v14, 0.0 }
  0x74   : > { %v1964_v26 = vpop.eup %1963  ;;  %1983 = vrcp.f32 %v1123_v20  ;;  %v1125_v27 = vadd.f32 1.0, %v1962_v24  ;;  %v1718_v20 = vmul.f32 -1.442695, %v627_v50  ;;  %v242_v50 = vld [vmem:[%s2366_s20 + $0x220] sm:$0xff]  ;;  %v637_v61 = vmax.f32 %v509_v49, 0.0 }
  0x75   : > { %v1966_v31 = vpop.eup %1965  ;;  %1985 = vrcp.f32 %v1124_v25  ;;  %v1126_v34 = vadd.f32 1.0, %v1964_v26  ;;  %v1719_v25 = vmul.f32 -1.442695, %v628_v59  ;;  %v632_v26 = vmax.f32 %v504_v9, 0.0 }
  0x76   : > { %v1968_v37 = vpop.eup %1967  ;;  %1987 = vrcp.f32 %v1125_v27  ;;  %v1127_v38 = vadd.f32 1.0, %v1966_v31  ;;  %v508_v27 = vadd.f32 %v2620_v28, %v373_v10  ;;  %v1724_v46 = vmul.f32 -1.442695, %v633_v32  ;;  %v245_v10 = vld [vmem:[%s2366_s20 + $0x238] sm:$0xff] }
  0x77   : > { %v1970_v42 = vpop.eup %1969  ;;  %1989 = vrcp.f32 %v1126_v34  ;;  %v1128_v43 = vadd.f32 1.0, %v1968_v37  ;;  %v1721_v34 = vmul.f32 -1.442695, %v630_v17  ;;  %v1723_v41 = vmul.f32 -1.442695, %v632_v26  ;;  %v249_v32 = vld [vmem:[%s2366_s20 + $0x258] sm:$0xff] }
  0x78   : > { %v1972_v47 = vpop.eup %1971  ;;  %1991 = vrcp.f32 %v1127_v38  ;;  %v1129_v48 = vadd.f32 1.0, %v1970_v42  ;;  %v1722_v38 = vmul.f32 -1.442695, %v631_v21  ;;  %v636_v42 = vmax.f32 %v508_v27, 0.0 }
  0x79   : > { %v1974_v52 = vpop.eup %1973  ;;  %1993 = vrcp.f32 %v1128_v43  ;;  %v1130_v53 = vadd.f32 1.0, %v1972_v47  ;;  %v375_v43 = vmul.f32 %v2610_v15, %v240_v33  ;;  %v377_v59 = vmul.f32 %v2610_v15, %v242_v50 }
  0x7a   : > { %v1976_v57 = vpop.eup %1975  ;;  %1995 = vrcp.f32 %v1129_v48  ;;  %v1131_v58 = vadd.f32 1.0, %v1974_v52  ;;  %v1726_v52 = vmul.f32 -1.442695, %v635_v40  ;;  %v1727_v56 = vmul.f32 -1.442695, %v636_v42 }
  0x7b   : > { %v1978_v62 = vpop.eup %1977  ;;  %1997 = vrcp.f32 %v1130_v53  ;;  %v1132_v63 = vadd.f32 1.0, %v1976_v57  ;;  %v376_v53 = vmul.f32 %v2610_v15, %v241_v44  ;;  %v510_v57 = vadd.f32 %v2620_v28, %v375_v43 }
  0x7c   : > { %v1980_v4 = vpop.eup %1979  ;;  %1999 = vrcp.f32 %v1131_v58  ;;  %v1133_v5 = vadd.f32 1.0, %v1978_v62  ;;  %v378_v62 = vmul.f32 %v2610_v15, %v243_v54  ;;  %v2687_v9 = vadd.f32 %v2620_v28, %v377_v59 }
  0x7d   : > { %v1982_v7 = vpop.eup %1981  ;;  %2001 = vrcp.f32 %v1132_v63  ;;  %v1134_v8 = vadd.f32 1.0, %v1980_v4  ;;  %v2683_v3 = vadd.f32 %v2620_v28, %v376_v53  ;;  %v638_v0 = vmax.f32 %v510_v57, 0.0 }
  0x7e   : > { %v1984_v11 = vpop.eup %1983  ;;  %2003 = vrcp.f32 %v1133_v5  ;;  %v1135_v12 = vadd.f32 1.0, %v1982_v7  ;;  %v2690_v13 = vmul.f32 -1.442695, %v637_v61  ;;  %v2693_v14 = vadd.f32 %v2620_v28, %v378_v62 }
  0x7f   : > { %v1986_v16 = vpop.eup %1985  ;;  %1507 = vst [vmem:[%s2446_s25 + $0x138] sm:$0xff] %v1984_v11  ;;  %2005 = vrcp.f32 %v1134_v8  ;;  %v1729_v23 = vmul.f32 -1.442695, %v638_v0  ;;  %v385_v49 = vmul.f32 %v2610_v15, %v250_v36 }
  0x80   : > { %v1988_v19 = vpop.eup %1987  ;;  %1508 = vst [vmem:[%s2446_s25 + $0x140] sm:$0xff] %v1986_v16  ;;  %2007 = vrcp.f32 %v1135_v12  ;;  %v246_v16 = vld [vmem:[%s2366_s20 + $0x240] sm:$0xff] }
  0x81   : > { %v1990_v24 = vpop.eup %1989  ;;  %1509 = vst [vmem:[%s2446_s25 + $0x148] sm:$0xff] %v1988_v19  ;;  %2009 = vpow2.f32 %v2628_v35  ;;  %v634_v35 = vmax.f32 %v506_v1, 0.0  ;;  %v639_v1 = vmax.f32 %v2683_v3, 0.0  ;;  %v379_v19 = vmul.f32 %v2610_v15, %v244_v6 }
  0x82   : > { %v1992_v29 = vpop.eup %1991  ;;  %1510 = vst [vmem:[%s2446_s25 + $0x150] sm:$0xff] %v1990_v24  ;;  %2011 = vpow2.f32 %v2631_v39  ;;  %v380_v24 = vmul.f32 %v2610_v15, %v245_v10  ;;  %v520_v3 = vadd.f32 %v2620_v28, %v385_v49 }
  0x83   : > { %v1994_v31 = vpop.eup %1993  ;;  %1511 = vst [vmem:[%s2446_s25 + $0x158] sm:$0xff] %v1992_v29  ;;  %2013 = vpow2.f32 %v1717_v18  ;;  %v1725_v48 = vmul.f32 -1.442695, %v634_v35  ;;  %v640_v29 = vmax.f32 %v2687_v9, 0.0  ;;  %v514_v40 = vadd.f32 %v2620_v28, %v379_v19  ;;  %v254_v19 = vld [vmem:[%s2366_s20 + $0x280] sm:$0xff] }
  0x84   : > { %v1996_v37 = vpop.eup %1995  ;;  %1512 = vst [vmem:[%s2446_s25 + $0x160] sm:$0xff] %v1994_v31  ;;  %2015 = vpow2.f32 %v1718_v20  ;;  %v247_v20 = vld [vmem:[%s2366_s20 + $0x248] sm:$0xff]  ;;  %v515_v44 = vadd.f32 %v2620_v28, %v380_v24  ;;  %v1730_v59 = vmul.f32 -1.442695, %v639_v1 }
  0x85   : > { %v1998_v39 = vpop.eup %1997  ;;  %1513 = vst [vmem:[%s2446_s25 + $0x168] sm:$0xff] %v1996_v37  ;;  %2017 = vpow2.f32 %v1719_v25  ;;  %v248_v25 = vld [vmem:[%s2366_s20 + $0x250] sm:$0xff]  ;;  %v382_v35 = vmul.f32 %v2610_v15, %v247_v20 }
  0x86   : > { %v2000_v45 = vpop.eup %1999  ;;  %1514 = vst [vmem:[%s2446_s25 + $0x170] sm:$0xff] %v1998_v39  ;;  %2019 = vpow2.f32 %v1720_v30  ;;  %v381_v30 = vmul.f32 %v2610_v15, %v246_v16  ;;  %v383_v39 = vmul.f32 %v2610_v15, %v248_v25 }
  0x87   : > { %v2002_v47 = vpop.eup %2001  ;;  %1515 = vst [vmem:[%s2446_s25 + $0x178] sm:$0xff] %v2000_v45  ;;  %2021 = vpow2.f32 %v1721_v34  ;;  %v641_v34 = vmax.f32 %v2693_v14, 0.0  ;;  %v384_v45 = vmul.f32 %v2610_v15, %v249_v32 }
  0x88   : > { %v2004_v51 = vpop.eup %2003  ;;  %1516 = vst [vmem:[%s2446_s25 + $0x180] sm:$0xff] %v2002_v47  ;;  %2023 = vpow2.f32 %v1722_v38  ;;  %v518_v57 = vadd.f32 %v2620_v28, %v383_v39 }
  0x89   : > { %v2006_v55 = vpop.eup %2005  ;;  %1517 = vst [vmem:[%s2446_s25 + $0x188] sm:$0xff] %v2004_v51  ;;  %2025 = vpow2.f32 %v1723_v41  ;;  %v251_v41 = vld [vmem:[%s2366_s20 + $0x268] sm:$0xff]  ;;  %v519_v61 = vadd.f32 %v2620_v28, %v384_v45  ;;  %v257_v45 = vld [vmem:[%s2366_s20 + $0x298] sm:$0xff] }
  0x8a   : > { %v2008_v58 = vpop.eup %2007  ;;  %1518 = vst [vmem:[%s2446_s25 + $0x190] sm:$0xff] %v2006_v55  ;;  %2027 = vpow2.f32 %v1724_v46  ;;  %v386_v53 = vmul.f32 %v2610_v15, %v251_v41  ;;  %v646_v10 = vmax.f32 %v518_v57, 0.0  ;;  %v392_v57 = vmul.f32 %v2610_v15, %v257_v45 }
  0x8b   : > { %v2010_v60 = vpop.eup %2009  ;;  %1519 = vst [vmem:[%s2446_s25 + $0x198] sm:$0xff] %v2008_v58  ;;  %2029 = vpow2.f32 %v1725_v48  ;;  %v516_v48 = vadd.f32 %v2620_v28, %v381_v30  ;;  %v647_v14 = vmax.f32 %v519_v61, 0.0  ;;  %v389_v30 = vmul.f32 %v2610_v15, %v254_v19 }
  0x8c   : > { %v2012_v63 = vpop.eup %2011  ;;  %v1136_v2 = vadd.f32 1.0, %v2010_v60  ;;  %2031 = vpow2.f32 %v1726_v52  ;;  %v517_v52 = vadd.f32 %v2620_v28, %v382_v35  ;;  %v643_v60 = vmax.f32 %v515_v44, 0.0 }
  0x8d   : > { %v2014_v4 = vpop.eup %2013  ;;  %v1137_v5 = vadd.f32 1.0, %v2012_v63  ;;  %2033 = vpow2.f32 %v1727_v56  ;;  %v642_v56 = vmax.f32 %v514_v40, 0.0  ;;  %v1731_v63 = vmul.f32 -1.442695, %v640_v29  ;;  %v256_v40 = vld [vmem:[%s2366_s20 + $0x290] sm:$0xff] }
  0x8e   : > { %v2016_v7 = vpop.eup %2015  ;;  %2035 = vrcp.f32 %v1136_v2  ;;  %v1138_v8 = vadd.f32 1.0, %v2014_v4  ;;  %v644_v2 = vmax.f32 %v516_v48, 0.0  ;;  %v645_v0 = vmax.f32 %v517_v52, 0.0 }
  0x8f   : > { %v2018_v11 = vpop.eup %2017  ;;  %2037 = vrcp.f32 %v1137_v5  ;;  %v1139_v12 = vadd.f32 1.0, %v2016_v7  ;;  %v1732_v5 = vmul.f32 -1.442695, %v641_v34  ;;  %v521_v6 = vadd.f32 %v2620_v28, %v386_v53  ;;  %v252_v7 = vld [vmem:[%s2366_s20 + $0x270] sm:$0xff] }
  0x90   : > { %v2020_v18 = vpop.eup %2019  ;;  %2039 = vrcp.f32 %v1138_v8  ;;  %v1140_v17 = vadd.f32 1.0, %v2018_v11  ;;  %v1733_v9 = vmul.f32 -1.442695, %v642_v56  ;;  %v387_v1 = vmul.f32 %v2610_v15, %v252_v7 }
  0x91   : > { %v2022_v21 = vpop.eup %2021  ;;  %2041 = vrcp.f32 %v1139_v12  ;;  %v1141_v22 = vadd.f32 1.0, %v2020_v18  ;;  %v1734_v12 = vmul.f32 -1.442695, %v643_v60  ;;  %v1735_v18 = vmul.f32 -1.442695, %v644_v2 }
  0x92   : > { %v2024_v26 = vpop.eup %2023  ;;  %2043 = vrcp.f32 %v1140_v17  ;;  %v1142_v27 = vadd.f32 1.0, %v2022_v21  ;;  %v648_v17 = vmax.f32 %v520_v3, 0.0  ;;  %v1736_v21 = vmul.f32 -1.442695, %v645_v0  ;;  %v261_v0 = vld [vmem:[%s2366_s20 + $0x2b8] sm:$0xff] }
  0x93   : > { %v2026_v33 = vpop.eup %2025  ;;  %2045 = vrcp.f32 %v1141_v22  ;;  %v1143_v31 = vadd.f32 1.0, %v2024_v26  ;;  %v649_v22 = vmax.f32 %v521_v6, 0.0  ;;  %v1737_v24 = vmul.f32 -1.442695, %v646_v10  ;;  %v255_v26 = vld [vmem:[%s2366_s20 + $0x288] sm:$0xff]  ;;  %v262_v10 = vld [vmem:[%s2366_s20 + $0x2c0] sm:$0xff] }
  0x94   : > { %v2028_v37 = vpop.eup %2027  ;;  %2047 = vrcp.f32 %v1142_v27  ;;  %v1144_v38 = vadd.f32 1.0, %v2026_v33  ;;  %v1738_v29 = vmul.f32 -1.442695, %v647_v14  ;;  %v1739_v33 = vmul.f32 -1.442695, %v648_v17 }
  0x95   : > { %v2030_v42 = vpop.eup %2029  ;;  %2049 = vrcp.f32 %v1143_v31  ;;  %v1145_v43 = vadd.f32 1.0, %v2028_v37  ;;  %v522_v31 = vadd.f32 %v2620_v28, %v387_v1  ;;  %v1740_v35 = vmul.f32 -1.442695, %v649_v22 }
  0x96   : > { %v2032_v46 = vpop.eup %2031  ;;  %2051 = vrcp.f32 %v1144_v38  ;;  %v1146_v47 = vadd.f32 1.0, %v2030_v42  ;;  %v390_v36 = vmul.f32 %v2610_v15, %v255_v26  ;;  %v2746_v41 = vadd.f32 %v2620_v28, %v389_v30 }
  0x97   : > { %v2034_v50 = vpop.eup %2033  ;;  %2053 = vrcp.f32 %v1145_v43  ;;  %v1147_v51 = vadd.f32 1.0, %v2032_v46  ;;  %v650_v44 = vmax.f32 %v522_v31, 0.0  ;;  %v391_v49 = vmul.f32 %v2610_v15, %v256_v40 }
  0x98   : > { %v2036_v54 = vpop.eup %2035  ;;  %2055 = vrcp.f32 %v1146_v47  ;;  %v1148_v55 = vadd.f32 1.0, %v2034_v50  ;;  %v2750_v48 = vadd.f32 %v2620_v28, %v390_v36  ;;  %v258_v50 = vld [vmem:[%s2366_s20 + $0x2a0] sm:$0xff]  ;;  %v652_v56 = vmax.f32 %v2746_v41, 0.0 }
  0x99   : > { %v2038_v58 = vpop.eup %2037  ;;  %1520 = vst [vmem:[%s2446_s25 + $0x1a0] sm:$0xff] %v2036_v54  ;;  %2057 = vrcp.f32 %v1147_v51  ;;  %v1741_v61 = vmul.f32 -1.442695, %v650_v44  ;;  %v527_v14 = vadd.f32 %v2620_v28, %v392_v57  ;;  %v396_v19 = vmul.f32 %v2610_v15, %v261_v0  ;;  %v268_v0 = vld [vmem:[%s2366_s20 + $0x2f0] sm:$0xff] }
  0x9a   : > { %v2040_v62 = vpop.eup %2039  ;;  %1521 = vst [vmem:[%s2446_s25 + $0x1a8] sm:$0xff] %v2038_v58  ;;  %2059 = vrcp.f32 %v1148_v55  ;;  %v259_v58 = vld [vmem:[%s2366_s20 + $0x2a8] sm:$0xff]  ;;  %v1743_v40 = vmul.f32 -1.442695, %v652_v56 }
  0x9b   : > { %v2042_v4 = vpop.eup %2041  ;;  %1522 = vst [vmem:[%s2446_s25 + $0x1b0] sm:$0xff] %v2040_v62  ;;  %2061 = vpow2.f32 %v2690_v13  ;;  %v253_v13 = vld [vmem:[%s2366_s20 + $0x278] sm:$0xff]  ;;  %v393_v62 = vmul.f32 %v2610_v15, %v258_v50  ;;  %v655_v36 = vmax.f32 %v527_v14, 0.0 }
  0x9c   : > { %v2044_v8 = vpop.eup %2043  ;;  %1523 = vst [vmem:[%s2446_s25 + $0x1b8] sm:$0xff] %v2042_v4  ;;  %2063 = vpow2.f32 %v1729_v23  ;;  %v388_v25 = vmul.f32 %v2610_v15, %v253_v13  ;;  %v653_v4 = vmax.f32 %v2750_v48, 0.0 }
  0x9d   : > { %v2046_v11 = vpop.eup %2045  ;;  %1524 = vst [vmem:[%s2446_s25 + $0x1c0] sm:$0xff] %v2044_v8  ;;  %2065 = vpow2.f32 %v1730_v59  ;;  %v528_v1 = vadd.f32 %v2620_v28, %v393_v62 }
  0x9e   : > { %v2048_v16 = vpop.eup %2047  ;;  %1525 = vst [vmem:[%s2446_s25 + $0x1c8] sm:$0xff] %v2046_v11  ;;  %2067 = vpow2.f32 %v1731_v63  ;;  %v523_v38 = vadd.f32 %v2620_v28, %v388_v25  ;;  %v260_v63 = vld [vmem:[%s2366_s20 + $0x2b0] sm:$0xff] }
  0x9f   : > { %v2050_v20 = vpop.eup %2049  ;;  %1526 = vst [vmem:[%s2446_s25 + $0x1d0] sm:$0xff] %v2048_v16  ;;  %2069 = vpow2.f32 %v1732_v5  ;;  %v526_v5 = vadd.f32 %v2620_v28, %v391_v49  ;;  %v395_v13 = vmul.f32 %v2610_v15, %v260_v63  ;;  %v263_v16 = vld [vmem:[%s2366_s20 + $0x2c8] sm:$0xff] }
  0xa0   : > { %v2052_v23 = vpop.eup %2051  ;;  %1527 = vst [vmem:[%s2446_s25 + $0x1d8] sm:$0xff] %v2050_v20  ;;  %2071 = vpow2.f32 %v1733_v9  ;;  %v651_v53 = vmax.f32 %v523_v38, 0.0  ;;  %v394_v9 = vmul.f32 %v2610_v15, %v259_v58  ;;  %v264_v20 = vld [vmem:[%s2366_s20 + $0x2d0] sm:$0xff] }
  0xa1   : > { %v2054_v27 = vpop.eup %2053  ;;  %1528 = vst [vmem:[%s2446_s25 + $0x1e0] sm:$0xff] %v2052_v23  ;;  %2073 = vpow2.f32 %v1734_v12  ;;  %v654_v23 = vmax.f32 %v526_v5, 0.0  ;;  %v399_v31 = vmul.f32 %v2610_v15, %v264_v20  ;;  %v267_v5 = vld [vmem:[%s2366_s20 + $0x2e8] sm:$0xff] }
  0xa2   : > { %v2056_v32 = vpop.eup %2055  ;;  %1529 = vst [vmem:[%s2446_s25 + $0x1e8] sm:$0xff] %v2054_v27  ;;  %2075 = vpow2.f32 %v1735_v18  ;;  %v1742_v8 = vmul.f32 -1.442695, %v651_v53  ;;  %v529_v27 = vadd.f32 %v2620_v28, %v394_v9 }
  0xa3   : > { %v2058_v34 = vpop.eup %2057  ;;  %1530 = vst [vmem:[%s2446_s25 + $0x1f0] sm:$0xff] %v2056_v32  ;;  %2077 = vpow2.f32 %v1736_v21  ;;  %v1745_v48 = vmul.f32 -1.442695, %v654_v23  ;;  %v534_v50 = vadd.f32 %v2620_v28, %v399_v31 }
  0xa4   : > { %v2060_v37 = vpop.eup %2059  ;;  %1531 = vst [vmem:[%s2446_s25 + $0x1f8] sm:$0xff] %v2058_v34  ;;  %2079 = vpow2.f32 %v1737_v24  ;;  %v397_v24 = vmul.f32 %v2610_v15, %v262_v10  ;;  %v657_v44 = vmax.f32 %v529_v27, 0.0 }
  0xa5   : > { %v2062_v39 = vpop.eup %2061  ;;  %1532 = vst [vmem:[%s2446_s25 + $0x200] sm:$0xff] %v2060_v37  ;;  %2081 = vpow2.f32 %v1738_v29  ;;  %v398_v29 = vmul.f32 %v2610_v15, %v263_v16  ;;  %v531_v37 = vadd.f32 %v2620_v28, %v396_v19  ;;  %v403_v16 = vmul.f32 %v2610_v15, %v268_v0 }
  0xa6   : > { %v2064_v42 = vpop.eup %2063  ;;  %v1149_v43 = vadd.f32 1.0, %v2062_v39  ;;  %2083 = vpow2.f32 %v1739_v33  ;;  %v530_v33 = vadd.f32 %v2620_v28, %v395_v13  ;;  %v656_v39 = vmax.f32 %v528_v1, 0.0 }
  0xa7   : > { %v2066_v46 = vpop.eup %2065  ;;  %v1150_v47 = vadd.f32 1.0, %v2064_v42  ;;  %2085 = vpow2.f32 %v1740_v35  ;;  %v532_v41 = vadd.f32 %v2620_v28, %v397_v24  ;;  %v533_v45 = vadd.f32 %v2620_v28, %v398_v29 }
  0xa8   : > { %v2068_v51 = vpop.eup %2067  ;;  %2087 = vrcp.f32 %v1149_v43  ;;  %v1151_v52 = vadd.f32 1.0, %v2066_v46  ;;  %v1744_v43 = vmul.f32 -1.442695, %v653_v4  ;;  %v265_v46 = vld [vmem:[%s2366_s20 + $0x2d8] sm:$0xff]  ;;  %v658_v49 = vmax.f32 %v530_v33, 0.0 }
  0xa9   : > { %v2070_v54 = vpop.eup %2069  ;;  %2089 = vrcp.f32 %v1150_v47  ;;  %v1152_v55 = vadd.f32 1.0, %v2068_v51  ;;  %v659_v53 = vmax.f32 %v531_v37, 0.0  ;;  %v660_v56 = vmax.f32 %v532_v41, 0.0 }
  0xaa   : > { %v2072_v59 = vpop.eup %2071  ;;  %2091 = vrcp.f32 %v1151_v52  ;;  %v1153_v60 = vadd.f32 1.0, %v2070_v54  ;;  %v1746_v52 = vmul.f32 -1.442695, %v655_v36  ;;  %v400_v57 = vmul.f32 %v2610_v15, %v265_v46 }
  0xab   : > { %v2074_v2 = vpop.eup %2073  ;;  %2093 = vrcp.f32 %v1152_v55  ;;  %v1154_v3 = vadd.f32 1.0, %v2072_v59  ;;  %v1747_v55 = vmul.f32 -1.442695, %v656_v39  ;;  %v1748_v59 = vmul.f32 -1.442695, %v657_v44 }
  0xac   : > { %v2076_v6 = vpop.eup %2075  ;;  %2095 = vrcp.f32 %v1153_v60  ;;  %v1155_v7 = vadd.f32 1.0, %v2074_v2  ;;  %v661_v60 = vmax.f32 %v533_v45, 0.0  ;;  %v1749_v63 = vmul.f32 -1.442695, %v658_v49 }
  0xad   : > { %v2078_v11 = vpop.eup %2077  ;;  %2097 = vrcp.f32 %v1154_v3  ;;  %v1156_v12 = vadd.f32 1.0, %v2076_v6  ;;  %v662_v2 = vmax.f32 %v534_v50, 0.0  ;;  %v1750_v4 = vmul.f32 -1.442695, %v659_v53  ;;  %v275_v53 = vld [vmem:[%s2366_s20 + $0x328] sm:$0xff] }
  0xae   : > { %v2080_v18 = vpop.eup %2079  ;;  %2099 = vrcp.f32 %v1155_v7  ;;  %v1157_v17 = vadd.f32 1.0, %v2078_v11  ;;  %v1751_v7 = vmul.f32 -1.442695, %v660_v56  ;;  %v1752_v11 = vmul.f32 -1.442695, %v661_v60 }
  0xaf   : > { %v2082_v21 = vpop.eup %2081  ;;  %2101 = vrcp.f32 %v1156_v12  ;;  %v1158_v22 = vadd.f32 1.0, %v2080_v18  ;;  %v1753_v14 = vmul.f32 -1.442695, %v662_v2  ;;  %v402_v13 = vmul.f32 %v2610_v15, %v267_v5  ;;  %v269_v18 = vld [vmem:[%s2366_s20 + $0x2f8] sm:$0xff] }
  0xb0   : > { %v2084_v25 = vpop.eup %2083  ;;  %2103 = vrcp.f32 %v1157_v17  ;;  %v1159_v26 = vadd.f32 1.0, %v2082_v21  ;;  %v270_v21 = vld [vmem:[%s2366_s20 + $0x300] sm:$0xff]  ;;  %v404_v24 = vmul.f32 %v2610_v15, %v269_v18  ;;  %v2809_v29 = vadd.f32 %v2620_v28, %v403_v16 }
  0xb1   : > { %v2086_v30 = vpop.eup %2085  ;;  %2105 = vrcp.f32 %v1158_v22  ;;  %v1160_v32 = vadd.f32 1.0, %v2084_v25  ;;  %v2806_v27 = vadd.f32 %v2620_v28, %v402_v13  ;;  %v405_v31 = vmul.f32 %v2610_v15, %v270_v21 }
  0xb2   : > { %v2088_v34 = vpop.eup %2087  ;;  %2107 = vrcp.f32 %v1159_v26  ;;  %v1161_v35 = vadd.f32 1.0, %v2086_v30  ;;  %v271_v30 = vld [vmem:[%s2366_s20 + $0x308] sm:$0xff]  ;;  %v2817_v41 = vadd.f32 %v2620_v28, %v404_v24  ;;  %v410_v5 = vmul.f32 %v2610_v15, %v275_v53  ;;  %v278_v24 = vld [vmem:[%s2366_s20 + $0x340] sm:$0xff] }
  0xb3   : > { %v2090_v38 = vpop.eup %2089  ;;  %1533 = vst [vmem:[%s2446_s25 + $0x208] sm:$0xff] %v2088_v34  ;;  %2109 = vrcp.f32 %v1160_v32  ;;  %v665_v46 = vmax.f32 %v2806_v27, 0.0 }
  0xb4   : > { %v2092_v42 = vpop.eup %2091  ;;  %1534 = vst [vmem:[%s2446_s25 + $0x210] sm:$0xff] %v2090_v38  ;;  %2111 = vrcp.f32 %v1161_v35  ;;  %v272_v38 = vld [vmem:[%s2366_s20 + $0x310] sm:$0xff] }
  0xb5   : > { %v2094_v47 = vpop.eup %2093  ;;  %1535 = vst [vmem:[%s2446_s25 + $0x218] sm:$0xff] %v2092_v42  ;;  %2113 = vpow2.f32 %v1741_v61  ;;  %v266_v61 = vld [vmem:[%s2366_s20 + $0x2e0] sm:$0xff]  ;;  %v406_v42 = vmul.f32 %v2610_v15, %v271_v30 }
  0xb6   : > { %v2096_v51 = vpop.eup %2095  ;;  %1536 = vst [vmem:[%s2446_s25 + $0x220] sm:$0xff] %v2094_v47  ;;  %2115 = vpow2.f32 %v1742_v8  ;;  %v535_v8 = vadd.f32 %v2620_v28, %v400_v57  ;;  %v401_v9 = vmul.f32 %v2610_v15, %v266_v61  ;;  %v666_v47 = vmax.f32 %v2809_v29, 0.0 }
  0xb7   : > { %v2098_v54 = vpop.eup %2097  ;;  %1537 = vst [vmem:[%s2446_s25 + $0x228] sm:$0xff] %v2096_v51  ;;  %2117 = vpow2.f32 %v1743_v40  ;;  %v540_v51 = vadd.f32 %v2620_v28, %v405_v31  ;;  %v667_v61 = vmax.f32 %v2817_v41, 0.0  ;;  %v279_v31 = vld [vmem:[%s2366_s20 + $0x348] sm:$0xff] }
  0xb8   : > { %v2100_v58 = vpop.eup %2099  ;;  %1538 = vst [vmem:[%s2446_s25 + $0x230] sm:$0xff] %v2098_v54  ;;  %2119 = vpow2.f32 %v1744_v43  ;;  %v663_v19 = vmax.f32 %v535_v8, 0.0  ;;  %v536_v20 = vadd.f32 %v2620_v28, %v401_v9  ;;  %v273_v43 = vld [vmem:[%s2366_s20 + $0x318] sm:$0xff] }
  0xb9   : > { %v2102_v62 = vpop.eup %2101  ;;  %1539 = vst [vmem:[%s2446_s25 + $0x238] sm:$0xff] %v2100_v58  ;;  %2121 = vpow2.f32 %v1745_v48  ;;  %v274_v48 = vld [vmem:[%s2366_s20 + $0x320] sm:$0xff]  ;;  %v408_v57 = vmul.f32 %v2610_v15, %v273_v43  ;;  %v276_v58 = vld [vmem:[%s2366_s20 + $0x330] sm:$0xff]  ;;  %v668_v16 = vmax.f32 %v540_v51, 0.0 }
  0xba   : > { %v2104_v3 = vpop.eup %2103  ;;  %1540 = vst [vmem:[%s2446_s25 + $0x240] sm:$0xff] %v2102_v62  ;;  %2123 = vpow2.f32 %v1746_v52  ;;  %v2813_v36 = vmul.f32 -1.442695, %v663_v19  ;;  %v664_v37 = vmax.f32 %v536_v20, 0.0  ;;  %v407_v52 = vmul.f32 %v2610_v15, %v272_v38 }
  0xbb   : > { %v2106_v6 = vpop.eup %2105  ;;  %1541 = vst [vmem:[%s2446_s25 + $0x248] sm:$0xff] %v2104_v3  ;;  %2125 = vpow2.f32 %v1747_v55  ;;  %v409_v62 = vmul.f32 %v2610_v15, %v274_v48  ;;  %v411_v8 = vmul.f32 %v2610_v15, %v276_v58  ;;  %v545_v20 = vadd.f32 %v2620_v28, %v410_v5 }
  0xbc   : > { %v2108_v10 = vpop.eup %2107  ;;  %1542 = vst [vmem:[%s2446_s25 + $0x250] sm:$0xff] %v2106_v6  ;;  %2127 = vpow2.f32 %v1748_v59  ;;  %v1755_v56 = vmul.f32 -1.442695, %v664_v37 }
  0xbd   : > { %v2110_v12 = vpop.eup %2109  ;;  %1543 = vst [vmem:[%s2446_s25 + $0x258] sm:$0xff] %v2108_v10  ;;  %2129 = vpow2.f32 %v1749_v63  ;;  %v277_v63 = vld [vmem:[%s2366_s20 + $0x338] sm:$0xff]  ;;  %v544_v18 = vadd.f32 %v2620_v28, %v409_v62  ;;  %v673_v37 = vmax.f32 %v545_v20, 0.0 }
  0xbe   : > { %v2112_v17 = vpop.eup %2111  ;;  %1544 = vst [vmem:[%s2446_s25 + $0x260] sm:$0xff] %v2110_v12  ;;  %2131 = vpow2.f32 %v1750_v4  ;;  %v541_v4 = vadd.f32 %v2620_v28, %v406_v42  ;;  %v412_v12 = vmul.f32 %v2610_v15, %v277_v63  ;;  %v1757_v15 = vmul.f32 -1.442695, %v666_v47 }
  0xbf   : > { %v2114_v1 = vpop.eup %2113  ;;  %1545 = vst [vmem:[%s2446_s25 + $0x268] sm:$0xff] %v2112_v17  ;;  %2133 = vpow2.f32 %v1751_v7  ;;  %v542_v7 = vadd.f32 %v2620_v28, %v407_v52  ;;  %v281_v52 = vld [vmem:[%s2366_s20 + $0x358] sm:$0xff] }
  0xc0   : > { %v2116_v22 = vpop.eup %2115  ;;  %v1162_v23 = vadd.f32 1.0, %v2114_v1  ;;  %2135 = vpow2.f32 %v1752_v11  ;;  %v543_v11 = vadd.f32 %v2620_v28, %v408_v57  ;;  %v1756_v1 = vmul.f32 -1.442695, %v665_v46 }
  0xc1   : > { %v2118_v25 = vpop.eup %2117  ;;  %v1163_v26 = vadd.f32 1.0, %v2116_v22  ;;  %2137 = vpow2.f32 %v1753_v14  ;;  %v669_v19 = vmax.f32 %v541_v4, 0.0  ;;  %v670_v22 = vmax.f32 %v542_v7, 0.0 }
  0xc2   : > { %v2120_v32 = vpop.eup %2119  ;;  %2139 = vrcp.f32 %v1162_v23  ;;  %v1164_v33 = vadd.f32 1.0, %v2118_v25  ;;  %v546_v23 = vadd.f32 %v2620_v28, %v411_v8  ;;  %v671_v27 = vmax.f32 %v543_v11, 0.0 }
  0xc3   : > { %v2122_v34 = vpop.eup %2121  ;;  %2141 = vrcp.f32 %v1163_v26  ;;  %v1165_v35 = vadd.f32 1.0, %v2120_v32  ;;  %v1758_v26 = vmul.f32 -1.442695, %v667_v61  ;;  %v547_v29 = vadd.f32 %v2620_v28, %v412_v12  ;;  %v284_v12 = vld [vmem:[%s2366_s20 + $0x370] sm:$0xff] }
  0xc4   : > { %v2124_v40 = vpop.eup %2123  ;;  %2143 = vrcp.f32 %v1164_v33  ;;  %v1166_v39 = vadd.f32 1.0, %v2122_v34  ;;  %v1759_v32 = vmul.f32 -1.442695, %v668_v16  ;;  %v672_v33 = vmax.f32 %v544_v18, 0.0 }
  0xc5   : > { %v2126_v44 = vpop.eup %2125  ;;  %2145 = vrcp.f32 %v1165_v35  ;;  %v1167_v45 = vadd.f32 1.0, %v2124_v40  ;;  %v1760_v35 = vmul.f32 -1.442695, %v669_v19  ;;  %v1761_v40 = vmul.f32 -1.442695, %v670_v22 }
  0xc6   : > { %v2128_v49 = vpop.eup %2127  ;;  %2147 = vrcp.f32 %v1166_v39  ;;  %v1168_v50 = vadd.f32 1.0, %v2126_v44  ;;  %v674_v39 = vmax.f32 %v546_v23, 0.0  ;;  %v1762_v42 = vmul.f32 -1.442695, %v671_v27 }
  0xc7   : > { %v2130_v54 = vpop.eup %2129  ;;  %2149 = vrcp.f32 %v1167_v45  ;;  %v1169_v55 = vadd.f32 1.0, %v2128_v49  ;;  %v675_v43 = vmax.f32 %v547_v29, 0.0  ;;  %v280_v45 = vld [vmem:[%s2366_s20 + $0x350] sm:$0xff]  ;;  %v1763_v47 = vmul.f32 -1.442695, %v672_v33 }
  0xc8   : > { %v2132_v59 = vpop.eup %2131  ;;  %2151 = vrcp.f32 %v1168_v50  ;;  %v1170_v60 = vadd.f32 1.0, %v2130_v54  ;;  %v1764_v49 = vmul.f32 -1.442695, %v673_v37  ;;  %v2865_v50 = vld [vmem:[%s2992_s2] ss:$0 sm:$0xff]  ;;  %v288_v33 = vld [vmem:[%s2366_s20 + $0x390] sm:$0xff] }
  0xc9   : > { %v2134_v2 = vpop.eup %2133  ;;  %2153 = vrcp.f32 %v1169_v55  ;;  %v1171_v3 = vadd.f32 1.0, %v2132_v59  ;;  %v1765_v54 = vmul.f32 -1.442695, %v674_v39  ;;  %v1766_v57 = vmul.f32 -1.442695, %v675_v43  ;;  %v282_v59 = vld [vmem:[%s2366_s20 + $0x360] sm:$0xff] }
  0xca   : > { %v2136_v0 = vpop.eup %2135  ;;  %2155 = vrcp.f32 %v1170_v60  ;;  %v1172_v6 = vadd.f32 1.0, %v2134_v2 }
  0xcb   : > { %v2138_v9 = vpop.eup %2137  ;;  %2157 = vrcp.f32 %v1171_v3  ;;  %v1173_v10 = vadd.f32 1.0, %v2136_v0  ;;  %v283_v0 = vld [vmem:[%s2366_s20 + $0x368] sm:$0xff] }
  0xcc   : > { %v2140_v14 = vpop.eup %2139  ;;  %2159 = vrcp.f32 %v1172_v6  ;;  %v1174_v13 = vadd.f32 1.0, %v2138_v9 }
  0xcd   : > { %v2142_v17 = vpop.eup %2141  ;;  %1546 = vst [vmem:[%s2446_s25 + $0x270] sm:$0xff] %v2140_v14  ;;  %2161 = vrcp.f32 %v1173_v10 }
  0xce   : > { %v2144_v21 = vpop.eup %2143  ;;  %1547 = vst [vmem:[%s2446_s25 + $0x278] sm:$0xff] %v2142_v17  ;;  %2163 = vrcp.f32 %v1174_v13  ;;  %v285_v17 = vld [vmem:[%s2366_s20 + $0x378] sm:$0xff] }
  0xcf   : > { %v2146_v25 = vpop.eup %2145  ;;  %1548 = vst [vmem:[%s2446_s25 + $0x280] sm:$0xff] %v2144_v21  ;;  %2165 = vpow2.f32 %v2813_v36  ;;  %v2853_v36 = vld [vmem:[%s2991_s1] ss:$0 sm:$0xff] }
  0xd0   : > { %v2148_v30 = vpop.eup %2147  ;;  %1549 = vst [vmem:[%s2446_s25 + $0x288] sm:$0xff] %v2146_v25  ;;  %2167 = vpow2.f32 %v1755_v56  ;;  %v413_v28 = vmul.f32 %v2853_v36, %v278_v24  ;;  %v414_v44 = vmul.f32 %v2853_v36, %v279_v31  ;;  %v415_v55 = vmul.f32 %v2853_v36, %v280_v45 }
  0xd1   : > { %v2150_v34 = vpop.eup %2149  ;;  %1550 = vst [vmem:[%s2446_s25 + $0x290] sm:$0xff] %v2148_v30  ;;  %2169 = vpow2.f32 %v1756_v1  ;;  %v416_v61 = vmul.f32 %v2853_v36, %v281_v52  ;;  %v417_v5 = vmul.f32 %v2853_v36, %v282_v59  ;;  %v418_v18 = vmul.f32 %v2853_v36, %v283_v0  ;;  %v291_v0 = vld [vmem:[%s2366_s20 + $0x3a8] sm:$0xff] }
  0xd2   : > { %v2152_v38 = vpop.eup %2151  ;;  %1551 = vst [vmem:[%s2446_s25 + $0x298] sm:$0xff] %v2150_v34  ;;  %2171 = vpow2.f32 %v1757_v15  ;;  %v548_v51 = vadd.f32 %v2865_v50, %v413_v28  ;;  %v549_v58 = vadd.f32 %v2865_v50, %v414_v44  ;;  %v2878_v4 = vadd.f32 %v2865_v50, %v415_v55  ;;  %v286_v15 = vld [vmem:[%s2366_s20 + $0x380] sm:$0xff]  ;;  %v289_v28 = vld [vmem:[%s2366_s20 + $0x398] sm:$0xff] }
  0xd3   : > { %v2154_v41 = vpop.eup %2153  ;;  %1552 = vst [vmem:[%s2446_s25 + $0x2a0] sm:$0xff] %v2152_v38  ;;  %2173 = vpow2.f32 %v1758_v26  ;;  %v2883_v11 = vadd.f32 %v2865_v50, %v416_v61  ;;  %v552_v21 = vadd.f32 %v2865_v50, %v417_v5  ;;  %v419_v25 = vmul.f32 %v2853_v36, %v284_v12  ;;  %v287_v26 = vld [vmem:[%s2366_s20 + $0x388] sm:$0xff] }
  0xd4   : > { %v2156_v46 = vpop.eup %2155  ;;  %1553 = vst [vmem:[%s2446_s25 + $0x2a8] sm:$0xff] %v2154_v41  ;;  %2175 = vpow2.f32 %v1759_v32  ;;  %v676_v63 = vmax.f32 %v548_v51, 0.0  ;;  %v677_v8 = vmax.f32 %v549_v58, 0.0  ;;  %v678_v20 = vmax.f32 %v2878_v4, 0.0 }
  0xd5   : > { %v2158_v48 = vpop.eup %2157  ;;  %1554 = vst [vmem:[%s2446_s25 + $0x2b0] sm:$0xff] %v2156_v46  ;;  %2177 = vpow2.f32 %v1760_v35  ;;  %v679_v30 = vmax.f32 %v2883_v11, 0.0  ;;  %v420_v32 = vmul.f32 %v2853_v36, %v285_v17  ;;  %v553_v35 = vadd.f32 %v2865_v50, %v418_v18 }
  0xd6   : > { %v2160_v53 = vpop.eup %2159  ;;  %1555 = vst [vmem:[%s2446_s25 + $0x2b8] sm:$0xff] %v2158_v48  ;;  %2179 = vpow2.f32 %v1761_v40  ;;  %v2886_v16 = vmul.f32 -1.442695, %v676_v63  ;;  %v1768_v24 = vmul.f32 -1.442695, %v677_v8  ;;  %v421_v37 = vmul.f32 %v2853_v36, %v286_v15 }
  0xd7   : > { %v2162_v56 = vpop.eup %2161  ;;  %1556 = vst [vmem:[%s2446_s25 + $0x2c0] sm:$0xff] %v2160_v53  ;;  %2181 = vpow2.f32 %v1762_v42  ;;  %v680_v39 = vmax.f32 %v552_v21, 0.0  ;;  %v422_v41 = vmul.f32 %v2853_v36, %v287_v26  ;;  %v290_v42 = vld [vmem:[%s2366_s20 + $0x3a0] sm:$0xff]  ;;  %v554_v45 = vadd.f32 %v2865_v50, %v419_v25 }
  0xd8   : > { %v2164_v60 = vpop.eup %2163  ;;  %1557 = vst [vmem:[%s2446_s25 + $0x2c8] sm:$0xff] %v2162_v56  ;;  %2183 = vpow2.f32 %v1763_v47  ;;  %v423_v46 = vmul.f32 %v2853_v36, %v288_v33  ;;  %v424_v51 = vmul.f32 %v2853_v36, %v289_v28  ;;  %v425_v55 = vmul.f32 %v2853_v36, %v290_v42 }
  0xd9   : > { %v2166_v62 = vpop.eup %2165  ;;  %1558 = vst [vmem:[%s2446_s25 + $0x2d0] sm:$0xff] %v2164_v60  ;;  %2185 = vpow2.f32 %v1764_v49  ;;  %v555_v49 = vadd.f32 %v2865_v50, %v420_v32  ;;  %v681_v58 = vmax.f32 %v553_v35, 0.0  ;;  %v557_v59 = vadd.f32 %v2865_v50, %v422_v41 }
  0xda   : > { %v2168_v2 = vpop.eup %2167  ;;  %v1175_v3 = vadd.f32 1.0, %v2166_v62  ;;  %2187 = vpow2.f32 %v1765_v54  ;;  %v556_v54 = vadd.f32 %v2865_v50, %v421_v37  ;;  %v1769_v61 = vmul.f32 -1.442695, %v678_v20 }
  0xdb   : > { %v2170_v6 = vpop.eup %2169  ;;  %v1176_v7 = vadd.f32 1.0, %v2168_v2  ;;  %2189 = vpow2.f32 %v1766_v57  ;;  %v682_v62 = vmax.f32 %v554_v45, 0.0  ;;  %v558_v63 = vadd.f32 %v2865_v50, %v423_v46 }
  0xdc   : > { %v2172_v9 = vpop.eup %2171  ;;  %2191 = vrcp.f32 %v1175_v3  ;;  %v1177_v10 = vadd.f32 1.0, %v2170_v6  ;;  %v1770_v3 = vmul.f32 -1.442695, %v679_v30  ;;  %v683_v4 = vmax.f32 %v555_v49, 0.0  ;;  %v293_v30 = vld [vmem:[%s2366_s20 + $0x3b8] sm:$0xff] }
  0xdd   : > { %v2174_v14 = vpop.eup %2173  ;;  %2193 = vrcp.f32 %v1176_v7  ;;  %v1178_v13 = vadd.f32 1.0, %v2172_v9  ;;  %v559_v5 = vadd.f32 %v2865_v50, %v424_v51  ;;  %v1771_v7 = vmul.f32 -1.442695, %v680_v39 }
  0xde   : > { %v2176_v1 = vpop.eup %2175  ;;  %2195 = vrcp.f32 %v1177_v10  ;;  %v1179_v19 = vadd.f32 1.0, %v2174_v14  ;;  %v684_v8 = vmax.f32 %v556_v54, 0.0  ;;  %v560_v9 = vadd.f32 %v2865_v50, %v425_v55  ;;  %v292_v10 = vld [vmem:[%s2366_s20 + $0x3b0] sm:$0xff] }
  0xdf   : > { %v2178_v22 = vpop.eup %2177  ;;  %2197 = vrcp.f32 %v1178_v13  ;;  %v1180_v23 = vadd.f32 1.0, %v2176_v1  ;;  %v1772_v12 = vmul.f32 -1.442695, %v681_v58  ;;  %v685_v14 = vmax.f32 %v557_v59, 0.0  ;;  %v298_v58 = vld [vmem:[%s2366_s20 + $0x3e0] sm:$0xff] }
  0xe0   : > { %v2180_v27 = vpop.eup %2179  ;;  %2199 = vrcp.f32 %v1179_v19  ;;  %v1181_v29 = vadd.f32 1.0, %v2178_v22  ;;  %v1773_v18 = vmul.f32 -1.442695, %v682_v62  ;;  %v686_v17 = vmax.f32 %v558_v63, 0.0  ;;  %v299_v63 = vld [vmem:[%s2366_s20 + $0x3e8] sm:$0xff] }
  0xe1   : > { %v2182_v31 = vpop.eup %2181  ;;  %2201 = vrcp.f32 %v1180_v23  ;;  %v1182_v34 = vadd.f32 1.0, %v2180_v27  ;;  %v1774_v19 = vmul.f32 -1.442695, %v683_v4  ;;  %v687_v20 = vmax.f32 %v559_v5, 0.0 }
  0xe2   : > { %v2184_v38 = vpop.eup %2183  ;;  %2203 = vrcp.f32 %v1181_v29  ;;  %v1183_v40 = vadd.f32 1.0, %v2182_v31  ;;  %v427_v21 = vmul.f32 %v2853_v36, %v292_v10  ;;  %v1775_v22 = vmul.f32 -1.442695, %v684_v8  ;;  %v301_v10 = vld [vmem:[%s2366_s20 + $0x3f8] sm:$0xff] }
  0xe3   : > { %v2186_v43 = vpop.eup %2185  ;;  %2205 = vrcp.f32 %v1182_v34  ;;  %v1184_v44 = vadd.f32 1.0, %v2184_v38  ;;  %v688_v23 = vmax.f32 %v560_v9, 0.0  ;;  %v1776_v25 = vmul.f32 -1.442695, %v685_v14  ;;  %v294_v38 = vld [vmem:[%s2366_s20 + $0x3c0] sm:$0xff] }
  0xe4   : > { %v2188_v47 = vpop.eup %2187  ;;  %2207 = vrcp.f32 %v1183_v40  ;;  %v1185_v48 = vadd.f32 1.0, %v2186_v43  ;;  %v1777_v27 = vmul.f32 -1.442695, %v686_v17  ;;  %v1778_v33 = vmul.f32 -1.442695, %v687_v20 }
  0xe5   : > { %v2190_v52 = vpop.eup %2189  ;;  %2209 = vrcp.f32 %v1184_v44  ;;  %v1186_v53 = vadd.f32 1.0, %v2188_v47  ;;  %v562_v31 = vadd.f32 %v2865_v50, %v427_v21  ;;  %v1779_v35 = vmul.f32 -1.442695, %v688_v23  ;;  %v295_v44 = vld [vmem:[%s2366_s20 + $0x3c8] sm:$0xff] }
  0xe6   : > { %v2192_v56 = vpop.eup %2191  ;;  %2211 = vrcp.f32 %v1185_v48  ;;  %v1187_v57 = vadd.f32 1.0, %v2190_v52  ;;  %v428_v28 = vmul.f32 %v2853_v36, %v293_v30  ;;  %v429_v47 = vmul.f32 %v2853_v36, %v294_v38  ;;  %v296_v48 = vld [vmem:[%s2366_s20 + $0x3d0] sm:$0xff] }
  0xe7   : > { %v2194_v60 = vpop.eup %2193  ;;  %1559 = vst [vmem:[%s2446_s25 + $0x2d8] sm:$0xff] %v2192_v56  ;;  %2213 = vrcp.f32 %v1186_v53  ;;  %v690_v43 = vmax.f32 %v562_v31, 0.0  ;;  %v297_v53 = vld [vmem:[%s2366_s20 + $0x3d8] sm:$0xff]  ;;  %v431_v62 = vmul.f32 %v2853_v36, %v296_v48  ;;  %v433_v9 = vmul.f32 %v2853_v36, %v298_v58 }
  0xe8   : > { %v2196_v2 = vpop.eup %2195  ;;  %1560 = vst [vmem:[%s2446_s25 + $0x2e0] sm:$0xff] %v2194_v60  ;;  %2215 = vrcp.f32 %v1187_v57  ;;  %v563_v52 = vadd.f32 %v2865_v50, %v428_v28  ;;  %v430_v57 = vmul.f32 %v2853_v36, %v295_v44  ;;  %v564_v4 = vadd.f32 %v2865_v50, %v429_v47 }
  0xe9   : > { %v2198_v6 = vpop.eup %2197  ;;  %1561 = vst [vmem:[%s2446_s25 + $0x2e8] sm:$0xff] %v2196_v2  ;;  %2217 = vpow2.f32 %v2886_v16  ;;  %v426_v16 = vmul.f32 %v2853_v36, %v291_v0  ;;  %v432_v5 = vmul.f32 %v2853_v36, %v297_v53  ;;  %v300_v0 = vld [vmem:[%s2366_s20 + $0x3f0] sm:$0xff] }
  0xea   : > { %v2200_v11 = vpop.eup %2199  ;;  %1562 = vst [vmem:[%s2446_s25 + $0x2f0] sm:$0xff] %v2198_v6  ;;  %2219 = vpow2.f32 %v1768_v24  ;;  %v691_v8 = vmax.f32 %v563_v52, 0.0  ;;  %v565_v14 = vadd.f32 %v2865_v50, %v430_v57 }
  0xeb   : > { %v2202_v13 = vpop.eup %2201  ;;  %1563 = vst [vmem:[%s2446_s25 + $0x2f8] sm:$0xff] %v2200_v11  ;;  %2221 = vpow2.f32 %v1769_v61  ;;  %v561_v29 = vadd.f32 %v2865_v50, %v426_v16  ;;  %v1781_v61 = vmul.f32 -1.442695, %v690_v43  ;;  %v566_v16 = vadd.f32 %v2865_v50, %v431_v62 }
  0xec   : > { %v2204_v1 = vpop.eup %2203  ;;  %1564 = vst [vmem:[%s2446_s25 + $0x300] sm:$0xff] %v2202_v13  ;;  %2223 = vpow2.f32 %v1770_v3  ;;  %v434_v13 = vmul.f32 %v2853_v36, %v299_v63  ;;  %v567_v21 = vadd.f32 %v2865_v50, %v432_v5 }
  0xed   : > { %v2206_v15 = vpop.eup %2205  ;;  %1565 = vst [vmem:[%s2446_s25 + $0x308] sm:$0xff] %v2204_v1  ;;  %2225 = vpow2.f32 %v1771_v7  ;;  %v689_v39 = vmax.f32 %v561_v29, 0.0  ;;  %v435_v1 = vmul.f32 %v2853_v36, %v300_v0  ;;  %v693_v29 = vmax.f32 %v565_v14, 0.0 }
  0xee   : > { %v2208_v24 = vpop.eup %2207  ;;  %1566 = vst [vmem:[%s2446_s25 + $0x310] sm:$0xff] %v2206_v15  ;;  %2227 = vpow2.f32 %v1772_v12  ;;  %v436_v15 = vmul.f32 %v2853_v36, %v301_v10  ;;  %v569_v30 = vadd.f32 %v2865_v50, %v434_v13  ;;  %v694_v31 = vmax.f32 %v566_v16, 0.0 }
  0xef   : > { %v2210_v26 = vpop.eup %2209  ;;  %1567 = vst [vmem:[%s2446_s25 + $0x318] sm:$0xff] %v2208_v24  ;;  %2229 = vpow2.f32 %v1773_v18  ;;  %v2941_v56 = vmul.f32 -1.442695, %v689_v39  ;;  %v692_v24 = vmax.f32 %v564_v4, 0.0  ;;  %v570_v36 = vadd.f32 %v2865_v50, %v435_v1 }
  0xf0   : > { %v2212_v32 = vpop.eup %2211  ;;  %1568 = vst [vmem:[%s2446_s25 + $0x320] sm:$0xff] %v2210_v26  ;;  %2231 = vpow2.f32 %v1774_v19  ;;  %v571_v28 = vadd.f32 %v2865_v50, %v436_v15  ;;  %v697_v43 = vmax.f32 %v569_v30, 0.0 }
  0xf1   : > { %v2214_v34 = vpop.eup %2213  ;;  %1569 = vst [vmem:[%s2446_s25 + $0x328] sm:$0xff] %v2212_v32  ;;  %2233 = vpow2.f32 %v1775_v22 }
  0xf2   : > { %v2216_v37 = vpop.eup %2215  ;;  %1570 = vst [vmem:[%s2446_s25 + $0x330] sm:$0xff] %v2214_v34  ;;  %2235 = vpow2.f32 %v1776_v25  ;;  %v568_v25 = vadd.f32 %v2865_v50, %v433_v9  ;;  %v698_v50 = vmax.f32 %v570_v36, 0.0  ;;  %v699_v48 = vmax.f32 %v571_v28, 0.0 }
  0xf3   : > { %v2218_v40 = vpop.eup %2217  ;;  %1571 = vst [vmem:[%s2446_s25 + $0x338] sm:$0xff] %v2216_v37  ;;  %2237 = vpow2.f32 %v1777_v27  ;;  %v695_v37 = vmax.f32 %v567_v21, 0.0  ;;  %v1788_v53 = vmul.f32 -1.442695, %v697_v43 }
  0xf4   : > { %v2220_v41 = vpop.eup %2219  ;;  %v1188_v42 = vadd.f32 1.0, %v2218_v40  ;;  %2239 = vpow2.f32 %v1778_v33  ;;  %v1783_v40 = vmul.f32 -1.442695, %v692_v24  ;;  %v696_v39 = vmax.f32 %v568_v25, 0.0 }
  0xf5   : > { %v2222_v45 = vpop.eup %2221  ;;  %v1189_v46 = vadd.f32 1.0, %v2220_v41  ;;  %2241 = vpow2.f32 %v1779_v35  ;;  %v1782_v35 = vmul.f32 -1.442695, %v691_v8  ;;  %v1786_v47 = vmul.f32 -1.442695, %v695_v37 }
  0xf6   : > { %v2224_v49 = vpop.eup %2223  ;;  %2243 = vrcp.f32 %v1188_v42  ;;  %v1190_v51 = vadd.f32 1.0, %v2222_v45  ;;  %v1784_v42 = vmul.f32 -1.442695, %v693_v29  ;;  %v1785_v45 = vmul.f32 -1.442695, %v694_v31 }
  0xf7   : > { %v2226_v54 = vpop.eup %2225  ;;  %2245 = vrcp.f32 %v1189_v46  ;;  %v1191_v55 = vadd.f32 1.0, %v2224_v49  ;;  %v1790_v57 = vmul.f32 -1.442695, %v699_v48 }
  0xf8   : > { %v2228_v59 = vpop.eup %2227  ;;  %2247 = vrcp.f32 %v1190_v51  ;;  %v1192_v60 = vadd.f32 1.0, %v2226_v54  ;;  %v1787_v51 = vmul.f32 -1.442695, %v696_v39 }
  0xf9   : > { %v2230_v2 = vpop.eup %2229  ;;  %2249 = vrcp.f32 %v1191_v55  ;;  %v1193_v3 = vadd.f32 1.0, %v2228_v59  ;;  %v1789_v55 = vmul.f32 -1.442695, %v698_v50 }
  0xfa   : > { %v2232_v6 = vpop.eup %2231  ;;  %2251 = vrcp.f32 %v1192_v60  ;;  %v1194_v7 = vadd.f32 1.0, %v2230_v2 }
  0xfb   : > { %v2234_v11 = vpop.eup %2233  ;;  %2253 = vrcp.f32 %v1193_v3  ;;  %v1195_v12 = vadd.f32 1.0, %v2232_v6 }
  0xfc   : > { %v2236_v18 = vpop.eup %2235  ;;  %2255 = vrcp.f32 %v1194_v7  ;;  %v1196_v17 = vadd.f32 1.0, %v2234_v11 }
  0xfd   : > { %v2238_v19 = vpop.eup %2237  ;;  %2257 = vrcp.f32 %v1195_v12  ;;  %v1197_v20 = vadd.f32 1.0, %v2236_v18 }
  0xfe   : > { %v2240_v22 = vpop.eup %2239  ;;  %2259 = vrcp.f32 %v1196_v17  ;;  %v1198_v23 = vadd.f32 1.0, %v2238_v19 }
  0xff   : > { %v2242_v26 = vpop.eup %2241  ;;  %2261 = vrcp.f32 %v1197_v20  ;;  %v1199_v27 = vadd.f32 1.0, %v2240_v22 }
 0x100   : > { %v2244_v32 = vpop.eup %2243  ;;  %2263 = vrcp.f32 %v1198_v23  ;;  %v1200_v33 = vadd.f32 1.0, %v2242_v26 }
 0x101   : > { %v2246_v34 = vpop.eup %2245  ;;  %1572 = vst [vmem:[%s2446_s25 + $0x340] sm:$0xff] %v2244_v32  ;;  %2265 = vrcp.f32 %v1199_v27 }
 0x102   : > { %v2248_v38 = vpop.eup %2247  ;;  %1573 = vst [vmem:[%s2446_s25 + $0x348] sm:$0xff] %v2246_v34  ;;  %2267 = vrcp.f32 %v1200_v33 }
 0x103   : > { %v2250_v41 = vpop.eup %2249  ;;  %1574 = vst [vmem:[%s2446_s25 + $0x350] sm:$0xff] %v2248_v38  ;;  %2269 = vpow2.f32 %v2941_v56 }
 0x104   : > { %v2252_v44 = vpop.eup %2251  ;;  %1575 = vst [vmem:[%s2446_s25 + $0x358] sm:$0xff] %v2250_v41  ;;  %2271 = vpow2.f32 %v1781_v61 }
 0x105   : > { %v2254_v46 = vpop.eup %2253  ;;  %1576 = vst [vmem:[%s2446_s25 + $0x360] sm:$0xff] %v2252_v44  ;;  %2273 = vpow2.f32 %v1782_v35 }
 0x106   : > { %v2256_v49 = vpop.eup %2255  ;;  %1577 = vst [vmem:[%s2446_s25 + $0x368] sm:$0xff] %v2254_v46  ;;  %2275 = vpow2.f32 %v1783_v40 }
 0x107   : > { %v2258_v52 = vpop.eup %2257  ;;  %1578 = vst [vmem:[%s2446_s25 + $0x370] sm:$0xff] %v2256_v49  ;;  %2277 = vpow2.f32 %v1784_v42 }
 0x108   : > { %v2260_v54 = vpop.eup %2259  ;;  %1579 = vst [vmem:[%s2446_s25 + $0x378] sm:$0xff] %v2258_v52  ;;  %2279 = vpow2.f32 %v1785_v45 }
 0x109   : > { %v2262_v56 = vpop.eup %2261  ;;  %1580 = vst [vmem:[%s2446_s25 + $0x380] sm:$0xff] %v2260_v54  ;;  %2281 = vpow2.f32 %v1786_v47 }
 0x10a   : > { %v2264_v58 = vpop.eup %2263  ;;  %1581 = vst [vmem:[%s2446_s25 + $0x388] sm:$0xff] %v2262_v56  ;;  %2283 = vpow2.f32 %v1787_v51 }
 0x10b   : > { %v2266_v59 = vpop.eup %2265  ;;  %1582 = vst [vmem:[%s2446_s25 + $0x390] sm:$0xff] %v2264_v58  ;;  %2285 = vpow2.f32 %v1788_v53 }
 0x10c   : > { %v2268_v60 = vpop.eup %2267  ;;  %1583 = vst [vmem:[%s2446_s25 + $0x398] sm:$0xff] %v2266_v59  ;;  %2287 = vpow2.f32 %v1789_v55 }
 0x10d   : > { %v2270_v61 = vpop.eup %2269  ;;  %1584 = vst [vmem:[%s2446_s25 + $0x3a0] sm:$0xff] %v2268_v60  ;;  %2289 = vpow2.f32 %v1790_v57 }
 0x10e   : > { %v2272_v62 = vpop.eup %2271  ;;  %v1201_v63 = vadd.f32 1.0, %v2270_v61 }
 0x10f   : > { %v2274_v2 = vpop.eup %2273  ;;  %v1202_v3 = vadd.f32 1.0, %v2272_v62 }
 0x110   : > { %v2276_v4 = vpop.eup %2275  ;;  %2291 = vrcp.f32 %v1201_v63  ;;  %v1203_v5 = vadd.f32 1.0, %v2274_v2 }
 0x111   : > { %v2278_v0 = vpop.eup %2277  ;;  %2293 = vrcp.f32 %v1202_v3  ;;  %v1204_v6 = vadd.f32 1.0, %v2276_v4 }
 0x112   : > { %v2280_v7 = vpop.eup %2279  ;;  %2295 = vrcp.f32 %v1203_v5  ;;  %v1205_v8 = vadd.f32 1.0, %v2278_v0 }
 0x113   : > { %v2282_v9 = vpop.eup %2281  ;;  %2297 = vrcp.f32 %v1204_v6  ;;  %v1206_v10 = vadd.f32 1.0, %v2280_v7 }
 0x114   : > { %v2284_v11 = vpop.eup %2283  ;;  %2299 = vrcp.f32 %v1205_v8  ;;  %v1207_v12 = vadd.f32 1.0, %v2282_v9 }
 0x115   : > { %v2286_v14 = vpop.eup %2285  ;;  %2301 = vrcp.f32 %v1206_v10  ;;  %v1208_v13 = vadd.f32 1.0, %v2284_v11 }
 0x116   : > { %v2288_v18 = vpop.eup %2287  ;;  %2303 = vrcp.f32 %v1207_v12  ;;  %v1209_v17 = vadd.f32 1.0, %v2286_v14 }
 0x117   : > { %v2290_v16 = vpop.eup %2289  ;;  %2305 = vrcp.f32 %v1208_v13  ;;  %v1210_v1 = vadd.f32 1.0, %v2288_v18 }
 0x118   : > { %2307 = vrcp.f32 %v1209_v17  ;;  %v1211_v19 = vadd.f32 1.0, %v2290_v16 }
 0x119   : > { %2309 = vrcp.f32 %v1210_v1 }
 0x11a   : > { %v2292_v20 = vpop.eup %2291  ;;  %2311 = vrcp.f32 %v1211_v19 }
 0x11b   : > { %v2294_v21 = vpop.eup %2293  ;;  %1585 = vst [vmem:[%s2446_s25 + $0x3a8] sm:$0xff] %v2292_v20 }
 0x11c   : > { %v2296_v15 = vpop.eup %2295  ;;  %1586 = vst [vmem:[%s2446_s25 + $0x3b0] sm:$0xff] %v2294_v21 }
 0x11d   : > { %v2298_v22 = vpop.eup %2297  ;;  %1587 = vst [vmem:[%s2446_s25 + $0x3b8] sm:$0xff] %v2296_v15 }
 0x11e   : > { %v2300_v23 = vpop.eup %2299  ;;  %1588 = vst [vmem:[%s2446_s25 + $0x3c0] sm:$0xff] %v2298_v22 }
 0x11f   : > { %v2302_v24 = vpop.eup %2301  ;;  %1589 = vst [vmem:[%s2446_s25 + $0x3c8] sm:$0xff] %v2300_v23 }
 0x120   : > { %v2304_v25 = vpop.eup %2303  ;;  %1590 = vst [vmem:[%s2446_s25 + $0x3d0] sm:$0xff] %v2302_v24 }
 0x121   : > { %v2306_v26 = vpop.eup %2305  ;;  %1591 = vst [vmem:[%s2446_s25 + $0x3d8] sm:$0xff] %v2304_v25 }
 0x122   : > { %v2308_v27 = vpop.eup %2307  ;;  %1592 = vst [vmem:[%s2446_s25 + $0x3e0] sm:$0xff] %v2306_v26 }
 0x123   : > { %v2310_v29 = vpop.eup %2309  ;;  %1593 = vst [vmem:[%s2446_s25 + $0x3e8] sm:$0xff] %v2308_v27 }
 0x124   : > { %v2312_v30 = vpop.eup %2311  ;;  %1594 = vst [vmem:[%s2446_s25 + $0x3f0] sm:$0xff] %v2310_v29 }
 0x125   : > { %1595 = vst [vmem:[%s2446_s25 + $0x3f8] sm:$0xff] %v2312_v30 }
 0x126 PF: > { %s13_s12 = sadd.s32 1, %s2323_s12  }
 0x127   : > { %p10_p4 = scmp.ge.s32.totalorder %s13_s12, 4  }
 0x129   :  { %12 = sbr.rel (!%p10_p4) target bundleno = 1 (0x1), region = 62 }

</bundles_post_ra>
